<compile_context>
chip_gen: v6e
topology: v6e:2x2x1
jax: 0.10.0
libtpu: 0.0.40
codegen_flags: <defaults>
</compile_context>

<pallas_src>
import functools

import jax
import jax.numpy as jnp
from jax import lax
from jax.experimental import pallas as pl
from jax.experimental.pallas import tpu as pltpu

NEG_SLOPE = 0.01  # nn.LeakyReLU default


def _ceil_to(x, m):
    return ((x + m - 1) // m) * m


def _leaky(y):
    return jnp.where(y >= 0, y, NEG_SLOPE * y)


# --------------------------------------------------------------------------
# Pallas kernel: matmul + bias (+ LeakyReLU), single full-extent K block
# --------------------------------------------------------------------------
def _matmul_bias_act_kernel(x_ref, w_ref, b_ref, o_ref, *, act):
    y = jnp.dot(x_ref[...], w_ref[...],
                preferred_element_type=jnp.float32) + b_ref[...]
    if act == "leaky":
        y = _leaky(y)
    o_ref[...] = y.astype(o_ref.dtype)


def matmul_bias_act(x, w, b, act="none", out_dtype=jnp.float32, tm=128):
    """y = act(x @ w + b).  x: (M, K), w: (K, N), b: (N,).  bf16 operands,
    f32 accumulate + epilogue.  K is a single full-extent block (no K pad)."""
    M, K = x.shape
    K2, N = w.shape
    assert K == K2
    tm = min(tm, _ceil_to(max(M, 8), 8))
    Mp = _ceil_to(M, tm)
    Np = _ceil_to(N, 128)
    tn = 256 if Np % 256 == 0 else 128

    xp = x if Mp == M else jnp.pad(x, ((0, Mp - M), (0, 0)))
    wp = w if Np == N else jnp.pad(w, ((0, 0), (0, Np - N)))
    bp = (b if Np == N else jnp.pad(b, (0, Np - N)))
    xp = xp.astype(jnp.bfloat16)
    wp = wp.astype(jnp.bfloat16)
    bp = bp.reshape(1, Np).astype(jnp.float32)

    out = pl.pallas_call(
        functools.partial(_matmul_bias_act_kernel, act=act),
        out_shape=jax.ShapeDtypeStruct((Mp, Np), out_dtype),
        grid_spec=pltpu.PrefetchScalarGridSpec(
            num_scalar_prefetch=0,
            grid=(Mp // tm, Np // tn),
            in_specs=[
                pl.BlockSpec((tm, K), lambda i, j: (i, 0)),
                pl.BlockSpec((K, tn), lambda i, j: (0, j)),
                pl.BlockSpec((1, tn), lambda i, j: (0, j)),
            ],
            out_specs=pl.BlockSpec((tm, tn), lambda i, j: (i, j)),
        ),
        compiler_params=pltpu.CompilerParams(
            dimension_semantics=("parallel", "parallel")),
    )(xp, wp, bp)
    return out[:M, :N]


# --------------------------------------------------------------------------
# Pallas kernel: stride-1 'same' conv with in-kernel im2col
# --------------------------------------------------------------------------
def _conv_same_kernel(x_ref, w_ref, b_ref, o_ref, *, KH, KW):
    # x_ref: (Hp, Wp, IC) padded image (resident per batch), bf16
    # w_ref: (KH*KW*IC, OC) bf16, rows ordered (kh, kw, ic)
    # b_ref: (1, OC) f32,  o_ref: (OW, OC) one output row
    h = pl.program_id(1)
    OW, OC = o_ref.shape
    IC = x_ref.shape[-1]
    acc = jnp.zeros((OW, OC), jnp.float32)
    for ki in range(KH):
        row = x_ref[h + ki]                       # (Wp, IC)
        for kj in range(KW):
            win = row[kj:kj + OW, :]              # (OW, IC)
            wk = w_ref[(ki * KW + kj) * IC:(ki * KW + kj + 1) * IC, :]
            acc = acc + jnp.dot(win, wk, preferred_element_type=jnp.float32)
    y = _leaky(acc + b_ref[...])
    o_ref[...] = y.astype(o_ref.dtype)


def conv2d_same(x, w_mat, b, *, KH, KW):
    """Stride-1 'same' conv, LeakyReLU fused.  x: (B,H,W,IC) bf16,
    w_mat: (KH*KW*IC, OC) bf16."""
    B, H, W, IC = x.shape
    OC = w_mat.shape[1]
    ph = ((KH - 1) // 2, KH - 1 - (KH - 1) // 2)   # PyTorch 'same' split
    pw = ((KW - 1) // 2, KW - 1 - (KW - 1) // 2)
    xpad = jnp.pad(x, ((0, 0), ph, pw, (0, 0)))
    Hp, Wp = H + KH - 1, W + KW - 1
    OH, OW = H, W
    return pl.pallas_call(
        functools.partial(_conv_same_kernel, KH=KH, KW=KW),
        out_shape=jax.ShapeDtypeStruct((B, OH, OW, OC), jnp.bfloat16),
        grid_spec=pltpu.PrefetchScalarGridSpec(
            num_scalar_prefetch=0,
            grid=(B, OH),
            in_specs=[
                pl.BlockSpec((None, Hp, Wp, IC), lambda bb, hh: (bb, 0, 0, 0)),
                pl.BlockSpec((KH * KW * IC, OC), lambda bb, hh: (0, 0)),
                pl.BlockSpec((1, OC), lambda bb, hh: (0, 0)),
            ],
            out_specs=pl.BlockSpec((None, None, OW, OC),
                                   lambda bb, hh: (bb, hh, 0, 0)),
        ),
        compiler_params=pltpu.CompilerParams(
            dimension_semantics=("parallel", "parallel")),
    )(xpad, w_mat, b.reshape(1, OC).astype(jnp.float32))


def conv2d_im2col(x, w_mat, b, *, KH, KW, stride):
    """Strided (no-pad) conv via im2col + Pallas matmul (used for the two
    small stride-(1,2) front convs)."""
    B, H, W, C = x.shape
    sh, sw = stride
    oh = (H - KH) // sh + 1
    ow = (W - KW) // sw + 1
    patches = []
    for ki in range(KH):
        for kj in range(KW):
            patches.append(x[:, ki:ki + sh * (oh - 1) + 1:sh,
                             kj:kj + sw * (ow - 1) + 1:sw, :])
    cols = jnp.stack(patches, axis=3).reshape(B * oh * ow, KH * KW * C)
    OC = w_mat.shape[1]
    y = matmul_bias_act(cols, w_mat, b, act="leaky", out_dtype=jnp.bfloat16)
    return y.reshape(B, oh, ow, OC)


# --------------------------------------------------------------------------
# Pallas kernel: bidirectional LSTM recurrence, grid = (direction, time)
# --------------------------------------------------------------------------
def _bilstm_kernel(xp_ref, whh_ref, h_out_ref, h_scr, c_scr, *, hidden):
    @pl.when(pl.program_id(1) == 0)
    def _():
        h_scr[...] = jnp.zeros_like(h_scr)
        c_scr[...] = jnp.zeros_like(c_scr)

    # gates = (x_t @ W_ih^T + b)  +  h_{t-1} @ W_hh^T      (f32)
    gates = xp_ref[...] + jnp.dot(h_scr[...].astype(whh_ref.dtype),
                                  whh_ref[...],
                                  preferred_element_type=jnp.float32)
    i_g = jax.nn.sigmoid(gates[:, 0 * hidden:1 * hidden])
    f_g = jax.nn.sigmoid(gates[:, 1 * hidden:2 * hidden])
    g_g = jnp.tanh(gates[:, 2 * hidden:3 * hidden])
    o_g = jax.nn.sigmoid(gates[:, 3 * hidden:4 * hidden])
    c_new = f_g * c_scr[...] + i_g * g_g
    h_new = o_g * jnp.tanh(c_new)
    c_scr[...] = c_new
    h_scr[...] = h_new
    h_out_ref[...] = h_new.astype(h_out_ref.dtype)


def bilstm(xp_stacked, whh_stacked, hidden):
    """xp_stacked: (2, T, B, 4H) f32 precomputed input projections (dir 0 =
    fwd, dir 1 = bwd).  whh_stacked: (2, H, 4H) bf16.  Returns (2, T, B, H)
    hidden states, both directions already in forward time order."""
    D, T, B, G = xp_stacked.shape

    def t_idx(d, t):           # d=0 -> t ; d=1 -> T-1-t  (reversal in index_map)
        return t + d * (T - 1 - 2 * t)

    return pl.pallas_call(
        functools.partial(_bilstm_kernel, hidden=hidden),
        out_shape=jax.ShapeDtypeStruct((D, T, B, hidden), jnp.float32),
        grid_spec=pltpu.PrefetchScalarGridSpec(
            num_scalar_prefetch=0,
            grid=(D, T),
            in_specs=[
                pl.BlockSpec((None, None, B, G),
                             lambda d, t: (d, t_idx(d, t), 0, 0)),
                pl.BlockSpec((None, hidden, G), lambda d, t: (d, 0, 0)),
            ],
            out_specs=pl.BlockSpec((None, None, B, hidden),
                                   lambda d, t: (d, t_idx(d, t), 0, 0)),
            scratch_shapes=[
                pltpu.VMEM((B, hidden), jnp.float32),
                pltpu.VMEM((B, hidden), jnp.float32),
            ],
        ),
        compiler_params=pltpu.CompilerParams(
            dimension_semantics=("parallel", "arbitrary")),
    )(xp_stacked, whh_stacked)


# --------------------------------------------------------------------------
# Pallas kernel: fused dense head (fc1+act, fc2+act, fc3, log-softmax)
# --------------------------------------------------------------------------
def _dense_head_kernel(z_ref, w1_ref, b1_ref, w2_ref, b2_ref, w3_ref, b3_ref,
                       o_ref, *, n_valid):
    h = jnp.dot(z_ref[...], w1_ref[...],
                preferred_element_type=jnp.float32) + b1_ref[...]
    h = _leaky(h)
    h = jnp.dot(h.astype(w2_ref.dtype), w2_ref[...],
                preferred_element_type=jnp.float32) + b2_ref[...]
    h = _leaky(h)
    logits = jnp.dot(h.astype(w3_ref.dtype), w3_ref[...],
                     preferred_element_type=jnp.float32) + b3_ref[...]
    # Mask padded class lanes before the softmax normalizer.
    col = lax.broadcasted_iota(jnp.int32, logits.shape, 1)
    logits = jnp.where(col < n_valid, logits, -jnp.inf)
    m = jnp.max(logits, axis=-1, keepdims=True)
    s = logits - m
    lse = jnp.log(jnp.sum(jnp.exp(s), axis=-1, keepdims=True))
    o_ref[...] = (s - lse).astype(o_ref.dtype)


def dense_head(z, w1, b1, w2, b2, w3, b3, n_valid):
    M = z.shape[0]
    Np = w3.shape[1]
    return pl.pallas_call(
        functools.partial(_dense_head_kernel, n_valid=n_valid),
        out_shape=jax.ShapeDtypeStruct((M, Np), jnp.float32),
    )(z.astype(jnp.bfloat16), w1, b1, w2, b2, w3, b3)


# --------------------------------------------------------------------------
# Glue: BN folding, max-pool, parameter setup / preparation
# --------------------------------------------------------------------------
def fold_bn(w, b, gamma, beta, mean, var, eps=1e-5):
    scale = gamma / jnp.sqrt(var + eps)
    return w * scale[:, None, None, None], (b - mean) * scale + beta


def max_pool(x, window, strides):
    return lax.reduce_window(
        x, jnp.asarray(-jnp.inf, x.dtype), lax.max,
        (1, window[0], window[1], 1),
        (1, strides[0], strides[1], 1), "VALID")


def _uniform(key, shape, fan_in):
    bound = 1.0 / jnp.sqrt(jnp.float32(fan_in))
    return jax.random.uniform(key, shape, jnp.float32, -bound, bound)


def init_params(key, num_classes=1):
    ks = iter(jax.random.split(key, 64))
    p = {}

    def conv(name, oc, ic, kh, kw):
        fan = ic * kh * kw
        p[f"{name}_w"] = _uniform(next(ks), (oc, ic, kh, kw), fan)
        p[f"{name}_b"] = _uniform(next(ks), (oc,), fan)

    def bn(name, c):
        p[name] = (jnp.ones((c,), jnp.float32), jnp.zeros((c,), jnp.float32),
                   jnp.zeros((c,), jnp.float32), jnp.ones((c,), jnp.float32))

    conv("conv1", 64, 1, 3, 3)
    conv("conv2", 64, 64, 3, 3)
    conv("conv3", 128, 64, 3, 3); bn("bn3", 128)
    conv("conv4", 128, 128, 3, 3)
    conv("conv5", 256, 128, 3, 3); bn("bn5", 256)
    conv("conv6", 256, 256, 3, 3)
    conv("conv7", 256, 256, 2, 2); bn("bn7", 256)

    H = 128
    for d in ("fwd", "bwd"):
        p[f"lstm_{d}_wih"] = _uniform(next(ks), (4 * H, 256), H)
        p[f"lstm_{d}_whh"] = _uniform(next(ks), (4 * H, H), H)
        p[f"lstm_{d}_bih"] = _uniform(next(ks), (4 * H,), H)
        p[f"lstm_{d}_bhh"] = _uniform(next(ks), (4 * H,), H)

    p["fc1_w"] = _uniform(next(ks), (512, 256), 256)
    p["fc1_b"] = _uniform(next(ks), (512,), 256)
    p["fc2_w"] = _uniform(next(ks), (512, 512), 512)
    p["fc2_b"] = _uniform(next(ks), (512,), 512)
    p["fc3_w"] = _uniform(next(ks), (num_classes + 1, 512), 512)
    p["fc3_b"] = _uniform(next(ks), (num_classes + 1,), 512)
    return p


def prepare_params(p, num_classes=1):
    """One-time (outside jit) parameter preparation: BN folding, weight
    re-layout, bf16 casting, LSTM direction merge, fc3 class padding."""
    def conv_mat(w):  # (OC, IC, KH, KW) -> (KH*KW*IC, OC), rows (kh, kw, ic)
        OC, IC, KH, KW = w.shape
        return jnp.transpose(w, (2, 3, 1, 0)).reshape(KH * KW * IC, OC)

    q = {}
    q["conv1_w"] = conv_mat(p["conv1_w"]).astype(jnp.bfloat16)
    q["conv1_b"] = p["conv1_b"]
    q["conv2_w"] = conv_mat(p["conv2_w"]).astype(jnp.bfloat16)
    q["conv2_b"] = p["conv2_b"]

    w3, b3 = fold_bn(p["conv3_w"], p["conv3_b"], *p["bn3"])
    q["conv3_w"] = conv_mat(w3).astype(jnp.bfloat16); q["conv3_b"] = b3
    q["conv4_w"] = conv_mat(p["conv4_w"]).astype(jnp.bfloat16)
    q["conv4_b"] = p["conv4_b"]
    w5, b5 = fold_bn(p["conv5_w"], p["conv5_b"], *p["bn5"])
    q["conv5_w"] = conv_mat(w5).astype(jnp.bfloat16); q["conv5_b"] = b5
    q["conv6_w"] = conv_mat(p["conv6_w"]).astype(jnp.bfloat16)
    q["conv6_b"] = p["conv6_b"]
    w7, b7 = fold_bn(p["conv7_w"], p["conv7_b"], *p["bn7"])
    q["conv7_w"] = conv_mat(w7).astype(jnp.bfloat16); q["conv7_b"] = b7

    # Merge both LSTM directions: one input-projection weight, stacked whh.
    q["lstm_wih"] = jnp.concatenate(
        [p["lstm_fwd_wih"].T, p["lstm_bwd_wih"].T], axis=1).astype(jnp.bfloat16)
    q["lstm_b"] = jnp.concatenate(
        [p["lstm_fwd_bih"] + p["lstm_fwd_bhh"],
         p["lstm_bwd_bih"] + p["lstm_bwd_bhh"]])
    q["lstm_whh"] = jnp.stack(
        [p["lstm_fwd_whh"].T, p["lstm_bwd_whh"].T], axis=0).astype(jnp.bfloat16)

    q["fc1_w"] = p["fc1_w"].T.astype(jnp.bfloat16)
    q["fc1_b"] = p["fc1_b"].reshape(1, -1)
    q["fc2_w"] = p["fc2_w"].T.astype(jnp.bfloat16)
    q["fc2_b"] = p["fc2_b"].reshape(1, -1)

    NC = num_classes + 1
    NCp = _ceil_to(NC, 128)                 # pad class dim once, lane-dense out
    q["fc3_w"] = jnp.pad(p["fc3_w"].T, ((0, 0), (0, NCp - NC))).astype(jnp.bfloat16)
    q["fc3_b"] = jnp.pad(p["fc3_b"], (0, NCp - NC)).reshape(1, -1)
    return q


# --------------------------------------------------------------------------
# Forward pass
# --------------------------------------------------------------------------
def ocr_forward(params, x, *, num_classes=1):
    """x: (B, H, W, 1) float32 NHWC (the tensor the PyTorch model permutes)."""
    p = params
    feat = x.astype(jnp.bfloat16)

    # Two stride-(1,2) convs: tiny im2col + full-K matmul (K=9 and K=576).
    feat = conv2d_im2col(feat, p["conv1_w"], p["conv1_b"],
                         KH=3, KW=3, stride=(1, 2))
    feat = conv2d_im2col(feat, p["conv2_w"], p["conv2_b"],
                         KH=3, KW=3, stride=(1, 2))

    # Stride-1 'same' convs: im2col fused inside the Pallas kernel.
    feat = conv2d_same(feat, p["conv3_w"], p["conv3_b"], KH=3, KW=3)
    feat = conv2d_same(feat, p["conv4_w"], p["conv4_b"], KH=3, KW=3)
    feat = max_pool(feat, (2, 2), (2, 2))
    feat = conv2d_same(feat, p["conv5_w"], p["conv5_b"], KH=3, KW=3)
    feat = conv2d_same(feat, p["conv6_w"], p["conv6_b"], KH=3, KW=3)
    feat = max_pool(feat, (2, 2), (2, 1))
    feat = conv2d_same(feat, p["conv7_w"], p["conv7_b"], KH=2, KW=2)

    # MaxPool over the full height -> sequence along width.
    feat = jnp.max(feat, axis=1)                      # (B, T, 256)
    B, T, D = feat.shape
    H = 128

    # Bidirectional LSTM: single projection matmul + single recurrence kernel.
    seq = feat.reshape(B * T, D)
    xp = matmul_bias_act(seq, p["lstm_wih"], p["lstm_b"],
                         act="none", out_dtype=jnp.float32)      # (B*T, 8H)
    xp = xp.reshape(B, T, 2, 4 * H).transpose(2, 1, 0, 3)        # (2, T, B, 4H)
    h = bilstm(xp, p["lstm_whh"], H)                             # (2, T, B, H)
    lstm_out = jnp.concatenate([h[0], h[1]], axis=-1)            # (T, B, 2H)
    lstm_out = lstm_out.transpose(1, 0, 2).reshape(B * T, 2 * H)

    # Fused dense head + log-softmax (class dim padded to 128, masked inside).
    logp = dense_head(lstm_out, p["fc1_w"], p["fc1_b"],
                      p["fc2_w"], p["fc2_b"],
                      p["fc3_w"], p["fc3_b"], num_classes + 1)   # (B*T, 128)
    return logp[:, :num_classes + 1].reshape(B, T, num_classes + 1)


# --------------------------------------------------------------------------
if __name__ == "__main__":
    key = jax.random.PRNGKey(0)
    pkey, xkey = jax.random.split(key)
    raw_params = init_params(pkey, num_classes=1)
    params = prepare_params(raw_params, num_classes=1)

    # Input: (B, H, W, 1) NHWC, matching the module's expected input layout.
    x = jax.random.normal(xkey, (2, 32, 64, 1), jnp.float32)

    fwd = jax.jit(functools.partial(ocr_forward, num_classes=1))
    out = fwd(params, x)
    out = jax.block_until_ready(out)

    assert out.shape == (2, 6, 2), out.shape
    assert bool(jnp.all(jnp.isfinite(out)))
    # log-softmax sanity: exp sums to 1 along last axis.
    assert bool(jnp.allclose(jnp.sum(jnp.exp(out), axis=-1), 1.0, atol=1e-4))
    print("KERNEL_OK")
</pallas_src>

<mosaic_0001>
module attributes {stable_mosaic.version = 11 : i64} {
  func.func @_matmul_bias_act_kernel(%arg0: i32, %arg1: i32, %arg2: memref<128x9xbf16, #tpu.memory_space<vmem>>, %arg3: memref<9x128xbf16, #tpu.memory_space<vmem>>, %arg4: memref<1x128xf32, #tpu.memory_space<vmem>>, %arg5: memref<128x128xbf16, #tpu.memory_space<vmem>>) attributes {dimension_semantics = [#tpu.dimension_semantics<parallel>, #tpu.dimension_semantics<parallel>], iteration_bounds = array<i64: 15, 1>, scalar_prefetch = 0 : i64, scratch_operands = 0 : i64, tpu.core_type = #tpu.core_type<tc>, window_params = [{transform_indices = @transform_0, window_bounds = array<i64: 128, 9>}, {transform_indices = @transform_1, window_bounds = array<i64: 9, 128>}, {transform_indices = @transform_2, window_bounds = array<i64: 1, 128>}, {transform_indices = @transform_3, window_bounds = array<i64: 128, 128>}]} {
    %c0 = arith.constant 0 : index
    %c0_0 = arith.constant 0 : index
    %0 = vector.load %arg2[%c0, %c0_0] : memref<128x9xbf16, #tpu.memory_space<vmem>>, vector<128x9xbf16>
    %c0_1 = arith.constant 0 : index
    %c0_2 = arith.constant 0 : index
    %1 = vector.load %arg3[%c0_1, %c0_2] : memref<9x128xbf16, #tpu.memory_space<vmem>>, vector<9x128xbf16>
    %cst = arith.constant dense<0.000000e+00> : vector<128x128xf32>
    %2 = tpu.matmul %0, %1, %cst {dimension_numbers = #tpu.dot_dimension_numbers<[1], [0], [0], [1], [0, 0, 1, 1], [], []>} : vector<128x9xbf16>, vector<9x128xbf16>, vector<128x128xf32> -> vector<128x128xf32>
    %c0_3 = arith.constant 0 : index
    %c0_4 = arith.constant 0 : index
    %3 = vector.load %arg4[%c0_3, %c0_4] : memref<1x128xf32, #tpu.memory_space<vmem>>, vector<1x128xf32>
    %4 = vector.broadcast %3 : vector<1x128xf32> to vector<128x128xf32>
    %5 = arith.addf %2, %4 : vector<128x128xf32>
    %cst_5 = arith.constant 0.000000e+00 : f32
    %6 = vector.broadcast %cst_5 : f32 to vector<128x128xf32>
    %7 = arith.cmpf oge, %5, %6 : vector<128x128xf32>
    %cst_6 = arith.constant 0.00999999977 : f32
    %8 = vector.broadcast %cst_6 : f32 to vector<128x128xf32>
    %9 = arith.mulf %8, %5 : vector<128x128xf32>
    %10 = arith.select %7, %5, %9 : vector<128x128xi1>, vector<128x128xf32>
    %11 = arith.truncf %10 : vector<128x128xf32> to vector<128x128xbf16>
    %c0_7 = arith.constant 0 : index
    %c0_8 = arith.constant 0 : index
    %12 = vector.load %arg5[%c0_7, %c0_8] : memref<128x128xbf16, #tpu.memory_space<vmem>>, vector<128x128xbf16>
    tpu.vector_store %arg5[%c0_7, %c0_8], %11 {strides = array<i32>} : memref<128x128xbf16, #tpu.memory_space<vmem>>, vector<128x128xbf16>,
    return
  }
  func.func @transform_0(%arg0: i32, %arg1: i32) -> (i32, i32) {
    %c0_i32 = arith.constant 0 : i32
    %c0_i32_0 = arith.constant 0 : i32
    return %arg0, %c0_i32 : i32, i32
  }
  func.func @transform_1(%arg0: i32, %arg1: i32) -> (i32, i32) {
    %c0_i32 = arith.constant 0 : i32
    %c0_i32_0 = arith.constant 0 : i32
    return %c0_i32, %arg1 : i32, i32
  }
  func.func @transform_2(%arg0: i32, %arg1: i32) -> (i32, i32) {
    %c0_i32 = arith.constant 0 : i32
    %c0_i32_0 = arith.constant 0 : i32
    return %c0_i32, %arg1 : i32, i32
  }
  func.func @transform_3(%arg0: i32, %arg1: i32) -> (i32, i32) {
    %c0_i32 = arith.constant 0 : i32
    return %arg0, %arg1 : i32, i32
  }
}

module attributes {stable_mosaic.version = 11 : i64} {
  func.func @_matmul_bias_act_kernel(%arg0: i32, %arg1: i32, %arg2: memref<128x576xbf16, #tpu.memory_space<vmem>>, %arg3: memref<576x128xbf16, #tpu.memory_space<vmem>>, %arg4: memref<1x128xf32, #tpu.memory_space<vmem>>, %arg5: memref<128x128xbf16, #tpu.memory_space<vmem>>) attributes {dimension_semantics = [#tpu.dimension_semantics<parallel>, #tpu.dimension_semantics<parallel>], iteration_bounds = array<i64: 7, 1>, scalar_prefetch = 0 : i64, scratch_operands = 0 : i64, tpu.core_type = #tpu.core_type<tc>, window_params = [{transform_indices = @transform_0, window_bounds = array<i64: 128, 576>}, {transform_indices = @transform_1, window_bounds = array<i64: 576, 128>}, {transform_indices = @transform_2, window_bounds = array<i64: 1, 128>}, {transform_indices = @transform_3, window_bounds = array<i64: 128, 128>}]} {
    %c0 = arith.constant 0 : index
    %c0_0 = arith.constant 0 : index
    %0 = vector.load %arg2[%c0, %c0_0] : memref<128x576xbf16, #tpu.memory_space<vmem>>, vector<128x576xbf16>
    %c0_1 = arith.constant 0 : index
    %c0_2 = arith.constant 0 : index
    %1 = vector.load %arg3[%c0_1, %c0_2] : memref<576x128xbf16, #tpu.memory_space<vmem>>, vector<576x128xbf16>
    %cst = arith.constant dense<0.000000e+00> : vector<128x128xf32>
    %2 = tpu.matmul %0, %1, %cst {dimension_numbers = #tpu.dot_dimension_numbers<[1], [0], [0], [1], [0, 0, 1, 1], [], []>} : vector<128x576xbf16>, vector<576x128xbf16>, vector<128x128xf32> -> vector<128x128xf32>
    %c0_3 = arith.constant 0 : index
    %c0_4 = arith.constant 0 : index
    %3 = vector.load %arg4[%c0_3, %c0_4] : memref<1x128xf32, #tpu.memory_space<vmem>>, vector<1x128xf32>
    %4 = vector.broadcast %3 : vector<1x128xf32> to vector<128x128xf32>
    %5 = arith.addf %2, %4 : vector<128x128xf32>
    %cst_5 = arith.constant 0.000000e+00 : f32
    %6 = vector.broadcast %cst_5 : f32 to vector<128x128xf32>
    %7 = arith.cmpf oge, %5, %6 : vector<128x128xf32>
    %cst_6 = arith.constant 0.00999999977 : f32
    %8 = vector.broadcast %cst_6 : f32 to vector<128x128xf32>
    %9 = arith.mulf %8, %5 : vector<128x128xf32>
    %10 = arith.select %7, %5, %9 : vector<128x128xi1>, vector<128x128xf32>
    %11 = arith.truncf %10 : vector<128x128xf32> to vector<128x128xbf16>
    %c0_7 = arith.constant 0 : index
    %c0_8 = arith.constant 0 : index
    %12 = vector.load %arg5[%c0_7, %c0_8] : memref<128x128xbf16, #tpu.memory_space<vmem>>, vector<128x128xbf16>
    tpu.vector_store %arg5[%c0_7, %c0_8], %11 {strides = array<i32>} : memref<128x128xbf16, #tpu.memory_space<vmem>>, vector<128x128xbf16>,
    return
  }
  func.func @transform_0(%arg0: i32, %arg1: i32) -> (i32, i32) {
    %c0_i32 = arith.constant 0 : i32
    %c0_i32_0 = arith.constant 0 : i32
    return %arg0, %c0_i32 : i32, i32
  }
  func.func @transform_1(%arg0: i32, %arg1: i32) -> (i32, i32) {
    %c0_i32 = arith.constant 0 : i32
    %c0_i32_0 = arith.constant 0 : i32
    return %c0_i32, %arg1 : i32, i32
  }
  func.func @transform_2(%arg0: i32, %arg1: i32) -> (i32, i32) {
    %c0_i32 = arith.constant 0 : i32
    %c0_i32_0 = arith.constant 0 : i32
    return %c0_i32, %arg1 : i32, i32
  }
  func.func @transform_3(%arg0: i32, %arg1: i32) -> (i32, i32) {
    %c0_i32 = arith.constant 0 : i32
    return %arg0, %arg1 : i32, i32
  }
}

module attributes {stable_mosaic.version = 11 : i64} {
  func.func @_conv_same_kernel(%arg0: i32, %arg1: i32, %arg2: memref<1x30x17x64xbf16, #tpu.memory_space<vmem>>, %arg3: memref<576x128xbf16, #tpu.memory_space<vmem>>, %arg4: memref<1x128xf32, #tpu.memory_space<vmem>>, %arg5: memref<1x1x15x128xbf16, #tpu.memory_space<vmem>>) attributes {dimension_semantics = [#tpu.dimension_semantics<parallel>, #tpu.dimension_semantics<parallel>], iteration_bounds = array<i64: 2, 28>, scalar_prefetch = 0 : i64, scratch_operands = 0 : i64, tpu.core_type = #tpu.core_type<tc>, window_params = [{transform_indices = @transform_0, window_bounds = array<i64: 1, 30, 17, 64>}, {pipeline_mode = #tpu.pipeline_mode<synchronous>, transform_indices = @transform_1, window_bounds = array<i64: 576, 128>}, {pipeline_mode = #tpu.pipeline_mode<synchronous>, transform_indices = @transform_2, window_bounds = array<i64: 1, 128>}, {transform_indices = @transform_3, window_bounds = array<i64: 1, 1, 15, 128>}]} {
    %cst = arith.constant 0.000000e+00 : f32
    %0 = vector.broadcast %cst : f32 to vector<15x128xf32>
    %c0_i32 = arith.constant 0 : i32
    %1 = arith.addi %arg1, %c0_i32 : i32
    %c0 = arith.constant 0 : index
    %2 = arith.index_cast %1 : i32 to index
    %c0_0 = arith.constant 0 : index
    %c0_1 = arith.constant 0 : index
    %3 = vector.load %arg2[%c0, %2, %c0_0, %c0_1] : memref<1x30x17x64xbf16, #tpu.memory_space<vmem>>, vector<1x1x17x64xbf16>
    %4 = vector.shape_cast %3 : vector<1x1x17x64xbf16> to vector<17x64xbf16>
    %5 = vector.extract_strided_slice %4 {offsets = [0, 0], sizes = [15, 64], strides = [1, 1]} : vector<17x64xbf16> to vector<15x64xbf16>
    %c0_2 = arith.constant 0 : index
    %c0_3 = arith.constant 0 : index
    %6 = vector.load %arg3[%c0_2, %c0_3] : memref<576x128xbf16, #tpu.memory_space<vmem>>, vector<64x128xbf16>
    %cst_4 = arith.constant dense<0.000000e+00> : vector<15x128xf32>
    %7 = tpu.matmul %5, %6, %cst_4 {dimension_numbers = #tpu.dot_dimension_numbers<[1], [0], [0], [1], [0, 0, 1, 1], [], []>} : vector<15x64xbf16>, vector<64x128xbf16>, vector<15x128xf32> -> vector<15x128xf32>
    %8 = arith.addf %0, %7 : vector<15x128xf32>
    %9 = vector.extract_strided_slice %4 {offsets = [1, 0], sizes = [15, 64], strides = [1, 1]} : vector<17x64xbf16> to vector<15x64xbf16>
    %c64 = arith.constant 64 : index
    %c0_5 = arith.constant 0 : index
    %10 = vector.load %arg3[%c64, %c0_5] : memref<576x128xbf16, #tpu.memory_space<vmem>>, vector<64x128xbf16>
    %cst_6 = arith.constant dense<0.000000e+00> : vector<15x128xf32>
    %11 = tpu.matmul %9, %10, %cst_6 {dimension_numbers = #tpu.dot_dimension_numbers<[1], [0], [0], [1], [0, 0, 1, 1], [], []>} : vector<15x64xbf16>, vector<64x128xbf16>, vector<15x128xf32> -> vector<15x128xf32>
    %12 = arith.addf %8, %11 : vector<15x128xf32>
    %13 = vector.extract_strided_slice %4 {offsets = [2, 0], sizes = [15, 64], strides = [1, 1]} : vector<17x64xbf16> to vector<15x64xbf16>
    %c128 = arith.constant 128 : index
    %c0_7 = arith.constant 0 : index
    %14 = vector.load %arg3[%c128, %c0_7] : memref<576x128xbf16, #tpu.memory_space<vmem>>, vector<64x128xbf16>
    %cst_8 = arith.constant dense<0.000000e+00> : vector<15x128xf32>
    %15 = tpu.matmul %13, %14, %cst_8 {dimension_numbers = #tpu.dot_dimension_numbers<[1], [0], [0], [1], [0, 0, 1, 1], [], []>} : vector<15x64xbf16>, vector<64x128xbf16>, vector<15x128xf32> -> vector<15x128xf32>
    %16 = arith.addf %12, %15 : vector<15x128xf32>
    %c1_i32 = arith.constant 1 : i32
    %17 = arith.addi %arg1, %c1_i32 : i32
    %c0_9 = arith.constant 0 : index
    %18 = arith.index_cast %17 : i32 to index
    %c0_10 = arith.constant 0 : index
    %c0_11 = arith.constant 0 : index
    %19 = vector.load %arg2[%c0_9, %18, %c0_10, %c0_11] : memref<1x30x17x64xbf16, #tpu.memory_space<vmem>>, vector<1x1x17x64xbf16>
    %20 = vector.shape_cast %19 : vector<1x1x17x64xbf16> to vector<17x64xbf16>
    %21 = vector.extract_strided_slice %20 {offsets = [0, 0], sizes = [15, 64], strides = [1, 1]} : vector<17x64xbf16> to vector<15x64xbf16>
    %c192 = arith.constant 192 : index
    %c0_12 = arith.constant 0 : index
    %22 = vector.load %arg3[%c192, %c0_12] : memref<576x128xbf16, #tpu.memory_space<vmem>>, vector<64x128xbf16>
    %cst_13 = arith.constant dense<0.000000e+00> : vector<15x128xf32>
    %23 = tpu.matmul %21, %22, %cst_13 {dimension_numbers = #tpu.dot_dimension_numbers<[1], [0], [0], [1], [0, 0, 1, 1], [], []>} : vector<15x64xbf16>, vector<64x128xbf16>, vector<15x128xf32> -> vector<15x128xf32>
    %24 = arith.addf %16, %23 : vector<15x128xf32>
    %25 = vector.extract_strided_slice %20 {offsets = [1, 0], sizes = [15, 64], strides = [1, 1]} : vector<17x64xbf16> to vector<15x64xbf16>
    %c256 = arith.constant 256 : index
    %c0_14 = arith.constant 0 : index
    %26 = vector.load %arg3[%c256, %c0_14] : memref<576x128xbf16, #tpu.memory_space<vmem>>, vector<64x128xbf16>
    %cst_15 = arith.constant dense<0.000000e+00> : vector<15x128xf32>
    %27 = tpu.matmul %25, %26, %cst_15 {dimension_numbers = #tpu.dot_dimension_numbers<[1], [0], [0], [1], [0, 0, 1, 1], [], []>} : vector<15x64xbf16>, vector<64x128xbf16>, vector<15x128xf32> -> vector<15x128xf32>
    %28 = arith.addf %24, %27 : vector<15x128xf32>
    %29 = vector.extract_strided_slice %20 {offsets = [2, 0], sizes = [15, 64], strides = [1, 1]} : vector<17x64xbf16> to vector<15x64xbf16>
    %c320 = arith.constant 320 : index
    %c0_16 = arith.constant 0 : index
    %30 = vector.load %arg3[%c320, %c0_16] : memref<576x128xbf16, #tpu.memory_space<vmem>>, vector<64x128xbf16>
    %cst_17 = arith.constant dense<0.000000e+00> : vector<15x128xf32>
    %31 = tpu.matmul %29, %30, %cst_17 {dimension_numbers = #tpu.dot_dimension_numbers<[1], [0], [0], [1], [0, 0, 1, 1], [], []>} : vector<15x64xbf16>, vector<64x128xbf16>, vector<15x128xf32> -> vector<15x128xf32>
    %32 = arith.addf %28, %31 : vector<15x128xf32>
    %c2_i32 = arith.constant 2 : i32
    %33 = arith.addi %arg1, %c2_i32 : i32
    %c0_18 = arith.constant 0 : index
    %34 = arith.index_cast %33 : i32 to index
    %c0_19 = arith.constant 0 : index
    %c0_20 = arith.constant 0 : index
    %35 = vector.load %arg2[%c0_18, %34, %c0_19, %c0_20] : memref<1x30x17x64xbf16, #tpu.memory_space<vmem>>, vector<1x1x17x64xbf16>
    %36 = vector.shape_cast %35 : vector<1x1x17x64xbf16> to vector<17x64xbf16>
    %37 = vector.extract_strided_slice %36 {offsets = [0, 0], sizes = [15, 64], strides = [1, 1]} : vector<17x64xbf16> to vector<15x64xbf16>
    %c384 = arith.constant 384 : index
    %c0_21 = arith.constant 0 : index
    %38 = vector.load %arg3[%c384, %c0_21] : memref<576x128xbf16, #tpu.memory_space<vmem>>, vector<64x128xbf16>
    %cst_22 = arith.constant dense<0.000000e+00> : vector<15x128xf32>
    %39 = tpu.matmul %37, %38, %cst_22 {dimension_numbers = #tpu.dot_dimension_numbers<[1], [0], [0], [1], [0, 0, 1, 1], [], []>} : vector<15x64xbf16>, vector<64x128xbf16>, vector<15x128xf32> -> vector<15x128xf32>
    %40 = arith.addf %32, %39 : vector<15x128xf32>
    %41 = vector.extract_strided_slice %36 {offsets = [1, 0], sizes = [15, 64], strides = [1, 1]} : vector<17x64xbf16> to vector<15x64xbf16>
    %c448 = arith.constant 448 : index
    %c0_23 = arith.constant 0 : index
    %42 = vector.load %arg3[%c448, %c0_23] : memref<576x128xbf16, #tpu.memory_space<vmem>>, vector<64x128xbf16>
    %cst_24 = arith.constant dense<0.000000e+00> : vector<15x128xf32>
    %43 = tpu.matmul %41, %42, %cst_24 {dimension_numbers = #tpu.dot_dimension_numbers<[1], [0], [0], [1], [0, 0, 1, 1], [], []>} : vector<15x64xbf16>, vector<64x128xbf16>, vector<15x128xf32> -> vector<15x128xf32>
    %44 = arith.addf %40, %43 : vector<15x128xf32>
    %45 = vector.extract_strided_slice %36 {offsets = [2, 0], sizes = [15, 64], strides = [1, 1]} : vector<17x64xbf16> to vector<15x64xbf16>
    %c512 = arith.constant 512 : index
    %c0_25 = arith.constant 0 : index
    %46 = vector.load %arg3[%c512, %c0_25] : memref<576x128xbf16, #tpu.memory_space<vmem>>, vector<64x128xbf16>
    %cst_26 = arith.constant dense<0.000000e+00> : vector<15x128xf32>
    %47 = tpu.matmul %45, %46, %cst_26 {dimension_numbers = #tpu.dot_dimension_numbers<[1], [0], [0], [1], [0, 0, 1, 1], [], []>} : vector<15x64xbf16>, vector<64x128xbf16>, vector<15x128xf32> -> vector<15x128xf32>
    %48 = arith.addf %44, %47 : vector<15x128xf32>
    %c0_27 = arith.constant 0 : index
    %c0_28 = arith.constant 0 : index
    %49 = vector.load %arg4[%c0_27, %c0_28] : memref<1x128xf32, #tpu.memory_space<vmem>>, vector<1x128xf32>
    %50 = vector.broadcast %49 : vector<1x128xf32> to vector<15x128xf32>
    %51 = arith.addf %48, %50 : vector<15x128xf32>
    %cst_29 = arith.constant 0.000000e+00 : f32
    %52 = vector.broadcast %cst_29 : f32 to vector<15x128xf32>
    %53 = arith.cmpf oge, %51, %52 : vector<15x128xf32>
    %cst_30 = arith.constant 0.00999999977 : f32
    %54 = vector.broadcast %cst_30 : f32 to vector<15x128xf32>
    %55 = arith.mulf %54, %51 : vector<15x128xf32>
    %56 = arith.select %53, %51, %55 : vector<15x128xi1>, vector<15x128xf32>
    %57 = arith.truncf %56 : vector<15x128xf32> to vector<15x128xbf16>
    %c0_31 = arith.constant 0 : index
    %c0_32 = arith.constant 0 : index
    %c0_33 = arith.constant 0 : index
    %c0_34 = arith.constant 0 : index
    %58 = vector.load %arg5[%c0_31, %c0_32, %c0_33, %c0_34] : memref<1x1x15x128xbf16, #tpu.memory_space<vmem>>, vector<1x1x15x128xbf16>
    %59 = vector.shape_cast %58 : vector<1x1x15x128xbf16> to vector<15x128xbf16>
    %60 = vector.shape_cast %57 : vector<15x128xbf16> to vector<1x1x15x128xbf16>
    tpu.vector_store %arg5[%c0_31, %c0_32, %c0_33, %c0_34], %60 {strides = array<i32>} : memref<1x1x15x128xbf16, #tpu.memory_space<vmem>>, vector<1x1x15x128xbf16>,
    return
  }
  func.func @transform_0(%arg0: i32, %arg1: i32) -> (i32, i32, i32, i32) {
    %c0_i32 = arith.constant 0 : i32
    %c0_i32_0 = arith.constant 0 : i32
    %c0_i32_1 = arith.constant 0 : i32
    %c0_i32_2 = arith.constant 0 : i32
    return %arg0, %c0_i32, %c0_i32_0, %c0_i32_1 : i32, i32, i32, i32
  }
  func.func @transform_1(%arg0: i32, %arg1: i32) -> (i32, i32) {
    %c0_i32 = arith.constant 0 : i32
    %c0_i32_0 = arith.constant 0 : i32
    %c0_i32_1 = arith.constant 0 : i32
    return %c0_i32, %c0_i32_0 : i32, i32
  }
  func.func @transform_2(%arg0: i32, %arg1: i32) -> (i32, i32) {
    %c0_i32 = arith.constant 0 : i32
    %c0_i32_0 = arith.constant 0 : i32
    %c0_i32_1 = arith.constant 0 : i32
    return %c0_i32, %c0_i32_0 : i32, i32
  }
  func.func @transform_3(%arg0: i32, %arg1: i32) -> (i32, i32, i32, i32) {
    %c0_i32 = arith.constant 0 : i32
    %c0_i32_0 = arith.constant 0 : i32
    %c0_i32_1 = arith.constant 0 : i32
    return %arg0, %arg1, %c0_i32, %c0_i32_0 : i32, i32, i32, i32
  }
}

module attributes {stable_mosaic.version = 11 : i64} {
  func.func @_conv_same_kernel(%arg0: i32, %arg1: i32, %arg2: memref<1x30x17x128xbf16, #tpu.memory_space<vmem>>, %arg3: memref<1152x128xbf16, #tpu.memory_space<vmem>>, %arg4: memref<1x128xf32, #tpu.memory_space<vmem>>, %arg5: memref<1x1x15x128xbf16, #tpu.memory_space<vmem>>) attributes {dimension_semantics = [#tpu.dimension_semantics<parallel>, #tpu.dimension_semantics<parallel>], iteration_bounds = array<i64: 2, 28>, scalar_prefetch = 0 : i64, scratch_operands = 0 : i64, tpu.core_type = #tpu.core_type<tc>, window_params = [{transform_indices = @transform_0, window_bounds = array<i64: 1, 30, 17, 128>}, {pipeline_mode = #tpu.pipeline_mode<synchronous>, transform_indices = @transform_1, window_bounds = array<i64: 1152, 128>}, {pipeline_mode = #tpu.pipeline_mode<synchronous>, transform_indices = @transform_2, window_bounds = array<i64: 1, 128>}, {transform_indices = @transform_3, window_bounds = array<i64: 1, 1, 15, 128>}]} {
    %cst = arith.constant 0.000000e+00 : f32
    %0 = vector.broadcast %cst : f32 to vector<15x128xf32>
    %c0_i32 = arith.constant 0 : i32
    %1 = arith.addi %arg1, %c0_i32 : i32
    %c0 = arith.constant 0 : index
    %2 = arith.index_cast %1 : i32 to index
    %c0_0 = arith.constant 0 : index
    %c0_1 = arith.constant 0 : index
    %3 = vector.load %arg2[%c0, %2, %c0_0, %c0_1] : memref<1x30x17x128xbf16, #tpu.memory_space<vmem>>, vector<1x1x17x128xbf16>
    %4 = vector.shape_cast %3 : vector<1x1x17x128xbf16> to vector<17x128xbf16>
    %5 = vector.extract_strided_slice %4 {offsets = [0, 0], sizes = [15, 128], strides = [1, 1]} : vector<17x128xbf16> to vector<15x128xbf16>
    %c0_2 = arith.constant 0 : index
    %c0_3 = arith.constant 0 : index
    %6 = vector.load %arg3[%c0_2, %c0_3] : memref<1152x128xbf16, #tpu.memory_space<vmem>>, vector<128x128xbf16>
    %cst_4 = arith.constant dense<0.000000e+00> : vector<15x128xf32>
    %7 = tpu.matmul %5, %6, %cst_4 {dimension_numbers = #tpu.dot_dimension_numbers<[1], [0], [0], [1], [0, 0, 1, 1], [], []>} : vector<15x128xbf16>, vector<128x128xbf16>, vector<15x128xf32> -> vector<15x128xf32>
    %8 = arith.addf %0, %7 : vector<15x128xf32>
    %9 = vector.extract_strided_slice %4 {offsets = [1, 0], sizes = [15, 128], strides = [1, 1]} : vector<17x128xbf16> to vector<15x128xbf16>
    %c128 = arith.constant 128 : index
    %c0_5 = arith.constant 0 : index
    %10 = vector.load %arg3[%c128, %c0_5] : memref<1152x128xbf16, #tpu.memory_space<vmem>>, vector<128x128xbf16>
    %cst_6 = arith.constant dense<0.000000e+00> : vector<15x128xf32>
    %11 = tpu.matmul %9, %10, %cst_6 {dimension_numbers = #tpu.dot_dimension_numbers<[1], [0], [0], [1], [0, 0, 1, 1], [], []>} : vector<15x128xbf16>, vector<128x128xbf16>, vector<15x128xf32> -> vector<15x128xf32>
    %12 = arith.addf %8, %11 : vector<15x128xf32>
    %13 = vector.extract_strided_slice %4 {offsets = [2, 0], sizes = [15, 128], strides = [1, 1]} : vector<17x128xbf16> to vector<15x128xbf16>
    %c256 = arith.constant 256 : index
    %c0_7 = arith.constant 0 : index
    %14 = vector.load %arg3[%c256, %c0_7] : memref<1152x128xbf16, #tpu.memory_space<vmem>>, vector<128x128xbf16>
    %cst_8 = arith.constant dense<0.000000e+00> : vector<15x128xf32>
    %15 = tpu.matmul %13, %14, %cst_8 {dimension_numbers = #tpu.dot_dimension_numbers<[1], [0], [0], [1], [0, 0, 1, 1], [], []>} : vector<15x128xbf16>, vector<128x128xbf16>, vector<15x128xf32> -> vector<15x128xf32>
    %16 = arith.addf %12, %15 : vector<15x128xf32>
    %c1_i32 = arith.constant 1 : i32
    %17 = arith.addi %arg1, %c1_i32 : i32
    %c0_9 = arith.constant 0 : index
    %18 = arith.index_cast %17 : i32 to index
    %c0_10 = arith.constant 0 : index
    %c0_11 = arith.constant 0 : index
    %19 = vector.load %arg2[%c0_9, %18, %c0_10, %c0_11] : memref<1x30x17x128xbf16, #tpu.memory_space<vmem>>, vector<1x1x17x128xbf16>
    %20 = vector.shape_cast %19 : vector<1x1x17x128xbf16> to vector<17x128xbf16>
    %21 = vector.extract_strided_slice %20 {offsets = [0, 0], sizes = [15, 128], strides = [1, 1]} : vector<17x128xbf16> to vector<15x128xbf16>
    %c384 = arith.constant 384 : index
    %c0_12 = arith.constant 0 : index
    %22 = vector.load %arg3[%c384, %c0_12] : memref<1152x128xbf16, #tpu.memory_space<vmem>>, vector<128x128xbf16>
    %cst_13 = arith.constant dense<0.000000e+00> : vector<15x128xf32>
    %23 = tpu.matmul %21, %22, %cst_13 {dimension_numbers = #tpu.dot_dimension_numbers<[1], [0], [0], [1], [0, 0, 1, 1], [], []>} : vector<15x128xbf16>, vector<128x128xbf16>, vector<15x128xf32> -> vector<15x128xf32>
    %24 = arith.addf %16, %23 : vector<15x128xf32>
    %25 = vector.extract_strided_slice %20 {offsets = [1, 0], sizes = [15, 128], strides = [1, 1]} : vector<17x128xbf16> to vector<15x128xbf16>
    %c512 = arith.constant 512 : index
    %c0_14 = arith.constant 0 : index
    %26 = vector.load %arg3[%c512, %c0_14] : memref<1152x128xbf16, #tpu.memory_space<vmem>>, vector<128x128xbf16>
    %cst_15 = arith.constant dense<0.000000e+00> : vector<15x128xf32>
    %27 = tpu.matmul %25, %26, %cst_15 {dimension_numbers = #tpu.dot_dimension_numbers<[1], [0], [0], [1], [0, 0, 1, 1], [], []>} : vector<15x128xbf16>, vector<128x128xbf16>, vector<15x128xf32> -> vector<15x128xf32>
    %28 = arith.addf %24, %27 : vector<15x128xf32>
    %29 = vector.extract_strided_slice %20 {offsets = [2, 0], sizes = [15, 128], strides = [1, 1]} : vector<17x128xbf16> to vector<15x128xbf16>
    %c640 = arith.constant 640 : index
    %c0_16 = arith.constant 0 : index
    %30 = vector.load %arg3[%c640, %c0_16] : memref<1152x128xbf16, #tpu.memory_space<vmem>>, vector<128x128xbf16>
    %cst_17 = arith.constant dense<0.000000e+00> : vector<15x128xf32>
    %31 = tpu.matmul %29, %30, %cst_17 {dimension_numbers = #tpu.dot_dimension_numbers<[1], [0], [0], [1], [0, 0, 1, 1], [], []>} : vector<15x128xbf16>, vector<128x128xbf16>, vector<15x128xf32> -> vector<15x128xf32>
    %32 = arith.addf %28, %31 : vector<15x128xf32>
    %c2_i32 = arith.constant 2 : i32
    %33 = arith.addi %arg1, %c2_i32 : i32
    %c0_18 = arith.constant 0 : index
    %34 = arith.index_cast %33 : i32 to index
    %c0_19 = arith.constant 0 : index
    %c0_20 = arith.constant 0 : index
    %35 = vector.load %arg2[%c0_18, %34, %c0_19, %c0_20] : memref<1x30x17x128xbf16, #tpu.memory_space<vmem>>, vector<1x1x17x128xbf16>
    %36 = vector.shape_cast %35 : vector<1x1x17x128xbf16> to vector<17x128xbf16>
    %37 = vector.extract_strided_slice %36 {offsets = [0, 0], sizes = [15, 128], strides = [1, 1]} : vector<17x128xbf16> to vector<15x128xbf16>
    %c768 = arith.constant 768 : index
    %c0_21 = arith.constant 0 : index
    %38 = vector.load %arg3[%c768, %c0_21] : memref<1152x128xbf16, #tpu.memory_space<vmem>>, vector<128x128xbf16>
    %cst_22 = arith.constant dense<0.000000e+00> : vector<15x128xf32>
    %39 = tpu.matmul %37, %38, %cst_22 {dimension_numbers = #tpu.dot_dimension_numbers<[1], [0], [0], [1], [0, 0, 1, 1], [], []>} : vector<15x128xbf16>, vector<128x128xbf16>, vector<15x128xf32> -> vector<15x128xf32>
    %40 = arith.addf %32, %39 : vector<15x128xf32>
    %41 = vector.extract_strided_slice %36 {offsets = [1, 0], sizes = [15, 128], strides = [1, 1]} : vector<17x128xbf16> to vector<15x128xbf16>
    %c896 = arith.constant 896 : index
    %c0_23 = arith.constant 0 : index
    %42 = vector.load %arg3[%c896, %c0_23] : memref<1152x128xbf16, #tpu.memory_space<vmem>>, vector<128x128xbf16>
    %cst_24 = arith.constant dense<0.000000e+00> : vector<15x128xf32>
    %43 = tpu.matmul %41, %42, %cst_24 {dimension_numbers = #tpu.dot_dimension_numbers<[1], [0], [0], [1], [0, 0, 1, 1], [], []>} : vector<15x128xbf16>, vector<128x128xbf16>, vector<15x128xf32> -> vector<15x128xf32>
    %44 = arith.addf %40, %43 : vector<15x128xf32>
    %45 = vector.extract_strided_slice %36 {offsets = [2, 0], sizes = [15, 128], strides = [1, 1]} : vector<17x128xbf16> to vector<15x128xbf16>
    %c1024 = arith.constant 1024 : index
    %c0_25 = arith.constant 0 : index
    %46 = vector.load %arg3[%c1024, %c0_25] : memref<1152x128xbf16, #tpu.memory_space<vmem>>, vector<128x128xbf16>
    %cst_26 = arith.constant dense<0.000000e+00> : vector<15x128xf32>
    %47 = tpu.matmul %45, %46, %cst_26 {dimension_numbers = #tpu.dot_dimension_numbers<[1], [0], [0], [1], [0, 0, 1, 1], [], []>} : vector<15x128xbf16>, vector<128x128xbf16>, vector<15x128xf32> -> vector<15x128xf32>
    %48 = arith.addf %44, %47 : vector<15x128xf32>
    %c0_27 = arith.constant 0 : index
    %c0_28 = arith.constant 0 : index
    %49 = vector.load %arg4[%c0_27, %c0_28] : memref<1x128xf32, #tpu.memory_space<vmem>>, vector<1x128xf32>
    %50 = vector.broadcast %49 : vector<1x128xf32> to vector<15x128xf32>
    %51 = arith.addf %48, %50 : vector<15x128xf32>
    %cst_29 = arith.constant 0.000000e+00 : f32
    %52 = vector.broadcast %cst_29 : f32 to vector<15x128xf32>
    %53 = arith.cmpf oge, %51, %52 : vector<15x128xf32>
    %cst_30 = arith.constant 0.00999999977 : f32
    %54 = vector.broadcast %cst_30 : f32 to vector<15x128xf32>
    %55 = arith.mulf %54, %51 : vector<15x128xf32>
    %56 = arith.select %53, %51, %55 : vector<15x128xi1>, vector<15x128xf32>
    %57 = arith.truncf %56 : vector<15x128xf32> to vector<15x128xbf16>
    %c0_31 = arith.constant 0 : index
    %c0_32 = arith.constant 0 : index
    %c0_33 = arith.constant 0 : index
    %c0_34 = arith.constant 0 : index
    %58 = vector.load %arg5[%c0_31, %c0_32, %c0_33, %c0_34] : memref<1x1x15x128xbf16, #tpu.memory_space<vmem>>, vector<1x1x15x128xbf16>
    %59 = vector.shape_cast %58 : vector<1x1x15x128xbf16> to vector<15x128xbf16>
    %60 = vector.shape_cast %57 : vector<15x128xbf16> to vector<1x1x15x128xbf16>
    tpu.vector_store %arg5[%c0_31, %c0_32, %c0_33, %c0_34], %60 {strides = array<i32>} : memref<1x1x15x128xbf16, #tpu.memory_space<vmem>>, vector<1x1x15x128xbf16>,
    return
  }
  func.func @transform_0(%arg0: i32, %arg1: i32) -> (i32, i32, i32, i32) {
    %c0_i32 = arith.constant 0 : i32
    %c0_i32_0 = arith.constant 0 : i32
    %c0_i32_1 = arith.constant 0 : i32
    %c0_i32_2 = arith.constant 0 : i32
    return %arg0, %c0_i32, %c0_i32_0, %c0_i32_1 : i32, i32, i32, i32
  }
  func.func @transform_1(%arg0: i32, %arg1: i32) -> (i32, i32) {
    %c0_i32 = arith.constant 0 : i32
    %c0_i32_0 = arith.constant 0 : i32
    %c0_i32_1 = arith.constant 0 : i32
    return %c0_i32, %c0_i32_0 : i32, i32
  }
  func.func @transform_2(%arg0: i32, %arg1: i32) -> (i32, i32) {
    %c0_i32 = arith.constant 0 : i32
    %c0_i32_0 = arith.constant 0 : i32
    %c0_i32_1 = arith.constant 0 : i32
    return %c0_i32, %c0_i32_0 : i32, i32
  }
  func.func @transform_3(%arg0: i32, %arg1: i32) -> (i32, i32, i32, i32) {
    %c0_i32 = arith.constant 0 : i32
    %c0_i32_0 = arith.constant 0 : i32
    %c0_i32_1 = arith.constant 0 : i32
    return %arg0, %arg1, %c0_i32, %c0_i32_0 : i32, i32, i32, i32
  }
}

module attributes {stable_mosaic.version = 11 : i64} {
  func.func @_conv_same_kernel(%arg0: i32, %arg1: i32, %arg2: memref<1x16x9x128xbf16, #tpu.memory_space<vmem>>, %arg3: memref<1152x256xbf16, #tpu.memory_space<vmem>>, %arg4: memref<1x256xf32, #tpu.memory_space<vmem>>, %arg5: memref<1x1x7x256xbf16, #tpu.memory_space<vmem>>) attributes {dimension_semantics = [#tpu.dimension_semantics<parallel>, #tpu.dimension_semantics<parallel>], iteration_bounds = array<i64: 2, 14>, scalar_prefetch = 0 : i64, scratch_operands = 0 : i64, tpu.core_type = #tpu.core_type<tc>, window_params = [{transform_indices = @transform_0, window_bounds = array<i64: 1, 16, 9, 128>}, {pipeline_mode = #tpu.pipeline_mode<synchronous>, transform_indices = @transform_1, window_bounds = array<i64: 1152, 256>}, {pipeline_mode = #tpu.pipeline_mode<synchronous>, transform_indices = @transform_2, window_bounds = array<i64: 1, 256>}, {transform_indices = @transform_3, window_bounds = array<i64: 1, 1, 7, 256>}]} {
    %cst = arith.constant 0.000000e+00 : f32
    %0 = vector.broadcast %cst : f32 to vector<7x256xf32>
    %c0_i32 = arith.constant 0 : i32
    %1 = arith.addi %arg1, %c0_i32 : i32
    %c0 = arith.constant 0 : index
    %2 = arith.index_cast %1 : i32 to index
    %c0_0 = arith.constant 0 : index
    %c0_1 = arith.constant 0 : index
    %3 = vector.load %arg2[%c0, %2, %c0_0, %c0_1] : memref<1x16x9x128xbf16, #tpu.memory_space<vmem>>, vector<1x1x9x128xbf16>
    %4 = vector.shape_cast %3 : vector<1x1x9x128xbf16> to vector<9x128xbf16>
    %5 = vector.extract_strided_slice %4 {offsets = [0, 0], sizes = [7, 128], strides = [1, 1]} : vector<9x128xbf16> to vector<7x128xbf16>
    %c0_2 = arith.constant 0 : index
    %c0_3 = arith.constant 0 : index
    %6 = vector.load %arg3[%c0_2, %c0_3] : memref<1152x256xbf16, #tpu.memory_space<vmem>>, vector<128x256xbf16>
    %cst_4 = arith.constant dense<0.000000e+00> : vector<7x256xf32>
    %7 = tpu.matmul %5, %6, %cst_4 {dimension_numbers = #tpu.dot_dimension_numbers<[1], [0], [0], [1], [0, 0, 1, 1], [], []>} : vector<7x128xbf16>, vector<128x256xbf16>, vector<7x256xf32> -> vector<7x256xf32>
    %8 = arith.addf %0, %7 : vector<7x256xf32>
    %9 = vector.extract_strided_slice %4 {offsets = [1, 0], sizes = [7, 128], strides = [1, 1]} : vector<9x128xbf16> to vector<7x128xbf16>
    %c128 = arith.constant 128 : index
    %c0_5 = arith.constant 0 : index
    %10 = vector.load %arg3[%c128, %c0_5] : memref<1152x256xbf16, #tpu.memory_space<vmem>>, vector<128x256xbf16>
    %cst_6 = arith.constant dense<0.000000e+00> : vector<7x256xf32>
    %11 = tpu.matmul %9, %10, %cst_6 {dimension_numbers = #tpu.dot_dimension_numbers<[1], [0], [0], [1], [0, 0, 1, 1], [], []>} : vector<7x128xbf16>, vector<128x256xbf16>, vector<7x256xf32> -> vector<7x256xf32>
    %12 = arith.addf %8, %11 : vector<7x256xf32>
    %13 = vector.extract_strided_slice %4 {offsets = [2, 0], sizes = [7, 128], strides = [1, 1]} : vector<9x128xbf16> to vector<7x128xbf16>
    %c256 = arith.constant 256 : index
    %c0_7 = arith.constant 0 : index
    %14 = vector.load %arg3[%c256, %c0_7] : memref<1152x256xbf16, #tpu.memory_space<vmem>>, vector<128x256xbf16>
    %cst_8 = arith.constant dense<0.000000e+00> : vector<7x256xf32>
    %15 = tpu.matmul %13, %14, %cst_8 {dimension_numbers = #tpu.dot_dimension_numbers<[1], [0], [0], [1], [0, 0, 1, 1], [], []>} : vector<7x128xbf16>, vector<128x256xbf16>, vector<7x256xf32> -> vector<7x256xf32>
    %16 = arith.addf %12, %15 : vector<7x256xf32>
    %c1_i32 = arith.constant 1 : i32
    %17 = arith.addi %arg1, %c1_i32 : i32
    %c0_9 = arith.constant 0 : index
    %18 = arith.index_cast %17 : i32 to index
    %c0_10 = arith.constant 0 : index
    %c0_11 = arith.constant 0 : index
    %19 = vector.load %arg2[%c0_9, %18, %c0_10, %c0_11] : memref<1x16x9x128xbf16, #tpu.memory_space<vmem>>, vector<1x1x9x128xbf16>
    %20 = vector.shape_cast %19 : vector<1x1x9x128xbf16> to vector<9x128xbf16>
    %21 = vector.extract_strided_slice %20 {offsets = [0, 0], sizes = [7, 128], strides = [1, 1]} : vector<9x128xbf16> to vector<7x128xbf16>
    %c384 = arith.constant 384 : index
    %c0_12 = arith.constant 0 : index
    %22 = vector.load %arg3[%c384, %c0_12] : memref<1152x256xbf16, #tpu.memory_space<vmem>>, vector<128x256xbf16>
    %cst_13 = arith.constant dense<0.000000e+00> : vector<7x256xf32>
    %23 = tpu.matmul %21, %22, %cst_13 {dimension_numbers = #tpu.dot_dimension_numbers<[1], [0], [0], [1], [0, 0, 1, 1], [], []>} : vector<7x128xbf16>, vector<128x256xbf16>, vector<7x256xf32> -> vector<7x256xf32>
    %24 = arith.addf %16, %23 : vector<7x256xf32>
    %25 = vector.extract_strided_slice %20 {offsets = [1, 0], sizes = [7, 128], strides = [1, 1]} : vector<9x128xbf16> to vector<7x128xbf16>
    %c512 = arith.constant 512 : index
    %c0_14 = arith.constant 0 : index
    %26 = vector.load %arg3[%c512, %c0_14] : memref<1152x256xbf16, #tpu.memory_space<vmem>>, vector<128x256xbf16>
    %cst_15 = arith.constant dense<0.000000e+00> : vector<7x256xf32>
    %27 = tpu.matmul %25, %26, %cst_15 {dimension_numbers = #tpu.dot_dimension_numbers<[1], [0], [0], [1], [0, 0, 1, 1], [], []>} : vector<7x128xbf16>, vector<128x256xbf16>, vector<7x256xf32> -> vector<7x256xf32>
    %28 = arith.addf %24, %27 : vector<7x256xf32>
    %29 = vector.extract_strided_slice %20 {offsets = [2, 0], sizes = [7, 128], strides = [1, 1]} : vector<9x128xbf16> to vector<7x128xbf16>
    %c640 = arith.constant 640 : index
    %c0_16 = arith.constant 0 : index
    %30 = vector.load %arg3[%c640, %c0_16] : memref<1152x256xbf16, #tpu.memory_space<vmem>>, vector<128x256xbf16>
    %cst_17 = arith.constant dense<0.000000e+00> : vector<7x256xf32>
    %31 = tpu.matmul %29, %30, %cst_17 {dimension_numbers = #tpu.dot_dimension_numbers<[1], [0], [0], [1], [0, 0, 1, 1], [], []>} : vector<7x128xbf16>, vector<128x256xbf16>, vector<7x256xf32> -> vector<7x256xf32>
    %32 = arith.addf %28, %31 : vector<7x256xf32>
    %c2_i32 = arith.constant 2 : i32
    %33 = arith.addi %arg1, %c2_i32 : i32
    %c0_18 = arith.constant 0 : index
    %34 = arith.index_cast %33 : i32 to index
    %c0_19 = arith.constant 0 : index
    %c0_20 = arith.constant 0 : index
    %35 = vector.load %arg2[%c0_18, %34, %c0_19, %c0_20] : memref<1x16x9x128xbf16, #tpu.memory_space<vmem>>, vector<1x1x9x128xbf16>
    %36 = vector.shape_cast %35 : vector<1x1x9x128xbf16> to vector<9x128xbf16>
    %37 = vector.extract_strided_slice %36 {offsets = [0, 0], sizes = [7, 128], strides = [1, 1]} : vector<9x128xbf16> to vector<7x128xbf16>
    %c768 = arith.constant 768 : index
    %c0_21 = arith.constant 0 : index
    %38 = vector.load %arg3[%c768, %c0_21] : memref<1152x256xbf16, #tpu.memory_space<vmem>>, vector<128x256xbf16>
    %cst_22 = arith.constant dense<0.000000e+00> : vector<7x256xf32>
    %39 = tpu.matmul %37, %38, %cst_22 {dimension_numbers = #tpu.dot_dimension_numbers<[1], [0], [0], [1], [0, 0, 1, 1], [], []>} : vector<7x128xbf16>, vector<128x256xbf16>, vector<7x256xf32> -> vector<7x256xf32>
    %40 = arith.addf %32, %39 : vector<7x256xf32>
    %41 = vector.extract_strided_slice %36 {offsets = [1, 0], sizes = [7, 128], strides = [1, 1]} : vector<9x128xbf16> to vector<7x128xbf16>
    %c896 = arith.constant 896 : index
    %c0_23 = arith.constant 0 : index
    %42 = vector.load %arg3[%c896, %c0_23] : memref<1152x256xbf16, #tpu.memory_space<vmem>>, vector<128x256xbf16>
    %cst_24 = arith.constant dense<0.000000e+00> : vector<7x256xf32>
    %43 = tpu.matmul %41, %42, %cst_24 {dimension_numbers = #tpu.dot_dimension_numbers<[1], [0], [0], [1], [0, 0, 1, 1], [], []>} : vector<7x128xbf16>, vector<128x256xbf16>, vector<7x256xf32> -> vector<7x256xf32>
    %44 = arith.addf %40, %43 : vector<7x256xf32>
    %45 = vector.extract_strided_slice %36 {offsets = [2, 0], sizes = [7, 128], strides = [1, 1]} : vector<9x128xbf16> to vector<7x128xbf16>
    %c1024 = arith.constant 1024 : index
    %c0_25 = arith.constant 0 : index
    %46 = vector.load %arg3[%c1024, %c0_25] : memref<1152x256xbf16, #tpu.memory_space<vmem>>, vector<128x256xbf16>
    %cst_26 = arith.constant dense<0.000000e+00> : vector<7x256xf32>
    %47 = tpu.matmul %45, %46, %cst_26 {dimension_numbers = #tpu.dot_dimension_numbers<[1], [0], [0], [1], [0, 0, 1, 1], [], []>} : vector<7x128xbf16>, vector<128x256xbf16>, vector<7x256xf32> -> vector<7x256xf32>
    %48 = arith.addf %44, %47 : vector<7x256xf32>
    %c0_27 = arith.constant 0 : index
    %c0_28 = arith.constant 0 : index
    %49 = vector.load %arg4[%c0_27, %c0_28] : memref<1x256xf32, #tpu.memory_space<vmem>>, vector<1x256xf32>
    %50 = vector.broadcast %49 : vector<1x256xf32> to vector<7x256xf32>
    %51 = arith.addf %48, %50 : vector<7x256xf32>
    %cst_29 = arith.constant 0.000000e+00 : f32
    %52 = vector.broadcast %cst_29 : f32 to vector<7x256xf32>
    %53 = arith.cmpf oge, %51, %52 : vector<7x256xf32>
    %cst_30 = arith.constant 0.00999999977 : f32
    %54 = vector.broadcast %cst_30 : f32 to vector<7x256xf32>
    %55 = arith.mulf %54, %51 : vector<7x256xf32>
    %56 = arith.select %53, %51, %55 : vector<7x256xi1>, vector<7x256xf32>
    %57 = arith.truncf %56 : vector<7x256xf32> to vector<7x256xbf16>
    %c0_31 = arith.constant 0 : index
    %c0_32 = arith.constant 0 : index
    %c0_33 = arith.constant 0 : index
    %c0_34 = arith.constant 0 : index
    %58 = vector.load %arg5[%c0_31, %c0_32, %c0_33, %c0_34] : memref<1x1x7x256xbf16, #tpu.memory_space<vmem>>, vector<1x1x7x256xbf16>
    %59 = vector.shape_cast %58 : vector<1x1x7x256xbf16> to vector<7x256xbf16>
    %60 = vector.shape_cast %57 : vector<7x256xbf16> to vector<1x1x7x256xbf16>
    tpu.vector_store %arg5[%c0_31, %c0_32, %c0_33, %c0_34], %60 {strides = array<i32>} : memref<1x1x7x256xbf16, #tpu.memory_space<vmem>>, vector<1x1x7x256xbf16>,
    return
  }
  func.func @transform_0(%arg0: i32, %arg1: i32) -> (i32, i32, i32, i32) {
    %c0_i32 = arith.constant 0 : i32
    %c0_i32_0 = arith.constant 0 : i32
    %c0_i32_1 = arith.constant 0 : i32
    %c0_i32_2 = arith.constant 0 : i32
    return %arg0, %c0_i32, %c0_i32_0, %c0_i32_1 : i32, i32, i32, i32
  }
  func.func @transform_1(%arg0: i32, %arg1: i32) -> (i32, i32) {
    %c0_i32 = arith.constant 0 : i32
    %c0_i32_0 = arith.constant 0 : i32
    %c0_i32_1 = arith.constant 0 : i32
    return %c0_i32, %c0_i32_0 : i32, i32
  }
  func.func @transform_2(%arg0: i32, %arg1: i32) -> (i32, i32) {
    %c0_i32 = arith.constant 0 : i32
    %c0_i32_0 = arith.constant 0 : i32
    %c0_i32_1 = arith.constant 0 : i32
    return %c0_i32, %c0_i32_0 : i32, i32
  }
  func.func @transform_3(%arg0: i32, %arg1: i32) -> (i32, i32, i32, i32) {
    %c0_i32 = arith.constant 0 : i32
    %c0_i32_0 = arith.constant 0 : i32
    %c0_i32_1 = arith.constant 0 : i32
    return %arg0, %arg1, %c0_i32, %c0_i32_0 : i32, i32, i32, i32
  }
}

module attributes {stable_mosaic.version = 11 : i64} {
  func.func @_conv_same_kernel(%arg0: i32, %arg1: i32, %arg2: memref<1x16x9x256xbf16, #tpu.memory_space<vmem>>, %arg3: memref<2304x256xbf16, #tpu.memory_space<vmem>>, %arg4: memref<1x256xf32, #tpu.memory_space<vmem>>, %arg5: memref<1x1x7x256xbf16, #tpu.memory_space<vmem>>) attributes {dimension_semantics = [#tpu.dimension_semantics<parallel>, #tpu.dimension_semantics<parallel>], iteration_bounds = array<i64: 2, 14>, scalar_prefetch = 0 : i64, scratch_operands = 0 : i64, tpu.core_type = #tpu.core_type<tc>, window_params = [{transform_indices = @transform_0, window_bounds = array<i64: 1, 16, 9, 256>}, {pipeline_mode = #tpu.pipeline_mode<synchronous>, transform_indices = @transform_1, window_bounds = array<i64: 2304, 256>}, {pipeline_mode = #tpu.pipeline_mode<synchronous>, transform_indices = @transform_2, window_bounds = array<i64: 1, 256>}, {transform_indices = @transform_3, window_bounds = array<i64: 1, 1, 7, 256>}]} {
    %cst = arith.constant 0.000000e+00 : f32
    %0 = vector.broadcast %cst : f32 to vector<7x256xf32>
    %c0_i32 = arith.constant 0 : i32
    %1 = arith.addi %arg1, %c0_i32 : i32
    %c0 = arith.constant 0 : index
    %2 = arith.index_cast %1 : i32 to index
    %c0_0 = arith.constant 0 : index
    %c0_1 = arith.constant 0 : index
    %3 = vector.load %arg2[%c0, %2, %c0_0, %c0_1] : memref<1x16x9x256xbf16, #tpu.memory_space<vmem>>, vector<1x1x9x256xbf16>
    %4 = vector.shape_cast %3 : vector<1x1x9x256xbf16> to vector<9x256xbf16>
    %5 = vector.extract_strided_slice %4 {offsets = [0, 0], sizes = [7, 256], strides = [1, 1]} : vector<9x256xbf16> to vector<7x256xbf16>
    %c0_2 = arith.constant 0 : index
    %c0_3 = arith.constant 0 : index
    %6 = vector.load %arg3[%c0_2, %c0_3] : memref<2304x256xbf16, #tpu.memory_space<vmem>>, vector<256x256xbf16>
    %cst_4 = arith.constant dense<0.000000e+00> : vector<7x256xf32>
    %7 = tpu.matmul %5, %6, %cst_4 {dimension_numbers = #tpu.dot_dimension_numbers<[1], [0], [0], [1], [0, 0, 1, 1], [], []>} : vector<7x256xbf16>, vector<256x256xbf16>, vector<7x256xf32> -> vector<7x256xf32>
    %8 = arith.addf %0, %7 : vector<7x256xf32>
    %9 = vector.extract_strided_slice %4 {offsets = [1, 0], sizes = [7, 256], strides = [1, 1]} : vector<9x256xbf16> to vector<7x256xbf16>
    %c256 = arith.constant 256 : index
    %c0_5 = arith.constant 0 : index
    %10 = vector.load %arg3[%c256, %c0_5] : memref<2304x256xbf16, #tpu.memory_space<vmem>>, vector<256x256xbf16>
    %cst_6 = arith.constant dense<0.000000e+00> : vector<7x256xf32>
    %11 = tpu.matmul %9, %10, %cst_6 {dimension_numbers = #tpu.dot_dimension_numbers<[1], [0], [0], [1], [0, 0, 1, 1], [], []>} : vector<7x256xbf16>, vector<256x256xbf16>, vector<7x256xf32> -> vector<7x256xf32>
    %12 = arith.addf %8, %11 : vector<7x256xf32>
    %13 = vector.extract_strided_slice %4 {offsets = [2, 0], sizes = [7, 256], strides = [1, 1]} : vector<9x256xbf16> to vector<7x256xbf16>
    %c512 = arith.constant 512 : index
    %c0_7 = arith.constant 0 : index
    %14 = vector.load %arg3[%c512, %c0_7] : memref<2304x256xbf16, #tpu.memory_space<vmem>>, vector<256x256xbf16>
    %cst_8 = arith.constant dense<0.000000e+00> : vector<7x256xf32>
    %15 = tpu.matmul %13, %14, %cst_8 {dimension_numbers = #tpu.dot_dimension_numbers<[1], [0], [0], [1], [0, 0, 1, 1], [], []>} : vector<7x256xbf16>, vector<256x256xbf16>, vector<7x256xf32> -> vector<7x256xf32>
    %16 = arith.addf %12, %15 : vector<7x256xf32>
    %c1_i32 = arith.constant 1 : i32
    %17 = arith.addi %arg1, %c1_i32 : i32
    %c0_9 = arith.constant 0 : index
    %18 = arith.index_cast %17 : i32 to index
    %c0_10 = arith.constant 0 : index
    %c0_11 = arith.constant 0 : index
    %19 = vector.load %arg2[%c0_9, %18, %c0_10, %c0_11] : memref<1x16x9x256xbf16, #tpu.memory_space<vmem>>, vector<1x1x9x256xbf16>
    %20 = vector.shape_cast %19 : vector<1x1x9x256xbf16> to vector<9x256xbf16>
    %21 = vector.extract_strided_slice %20 {offsets = [0, 0], sizes = [7, 256], strides = [1, 1]} : vector<9x256xbf16> to vector<7x256xbf16>
    %c768 = arith.constant 768 : index
    %c0_12 = arith.constant 0 : index
    %22 = vector.load %arg3[%c768, %c0_12] : memref<2304x256xbf16, #tpu.memory_space<vmem>>, vector<256x256xbf16>
    %cst_13 = arith.constant dense<0.000000e+00> : vector<7x256xf32>
    %23 = tpu.matmul %21, %22, %cst_13 {dimension_numbers = #tpu.dot_dimension_numbers<[1], [0], [0], [1], [0, 0, 1, 1], [], []>} : vector<7x256xbf16>, vector<256x256xbf16>, vector<7x256xf32> -> vector<7x256xf32>
    %24 = arith.addf %16, %23 : vector<7x256xf32>
    %25 = vector.extract_strided_slice %20 {offsets = [1, 0], sizes = [7, 256], strides = [1, 1]} : vector<9x256xbf16> to vector<7x256xbf16>
    %c1024 = arith.constant 1024 : index
    %c0_14 = arith.constant 0 : index
    %26 = vector.load %arg3[%c1024, %c0_14] : memref<2304x256xbf16, #tpu.memory_space<vmem>>, vector<256x256xbf16>
    %cst_15 = arith.constant dense<0.000000e+00> : vector<7x256xf32>
    %27 = tpu.matmul %25, %26, %cst_15 {dimension_numbers = #tpu.dot_dimension_numbers<[1], [0], [0], [1], [0, 0, 1, 1], [], []>} : vector<7x256xbf16>, vector<256x256xbf16>, vector<7x256xf32> -> vector<7x256xf32>
    %28 = arith.addf %24, %27 : vector<7x256xf32>
    %29 = vector.extract_strided_slice %20 {offsets = [2, 0], sizes = [7, 256], strides = [1, 1]} : vector<9x256xbf16> to vector<7x256xbf16>
    %c1280 = arith.constant 1280 : index
    %c0_16 = arith.constant 0 : index
    %30 = vector.load %arg3[%c1280, %c0_16] : memref<2304x256xbf16, #tpu.memory_space<vmem>>, vector<256x256xbf16>
    %cst_17 = arith.constant dense<0.000000e+00> : vector<7x256xf32>
    %31 = tpu.matmul %29, %30, %cst_17 {dimension_numbers = #tpu.dot_dimension_numbers<[1], [0], [0], [1], [0, 0, 1, 1], [], []>} : vector<7x256xbf16>, vector<256x256xbf16>, vector<7x256xf32> -> vector<7x256xf32>
    %32 = arith.addf %28, %31 : vector<7x256xf32>
    %c2_i32 = arith.constant 2 : i32
    %33 = arith.addi %arg1, %c2_i32 : i32
    %c0_18 = arith.constant 0 : index
    %34 = arith.index_cast %33 : i32 to index
    %c0_19 = arith.constant 0 : index
    %c0_20 = arith.constant 0 : index
    %35 = vector.load %arg2[%c0_18, %34, %c0_19, %c0_20] : memref<1x16x9x256xbf16, #tpu.memory_space<vmem>>, vector<1x1x9x256xbf16>
    %36 = vector.shape_cast %35 : vector<1x1x9x256xbf16> to vector<9x256xbf16>
    %37 = vector.extract_strided_slice %36 {offsets = [0, 0], sizes = [7, 256], strides = [1, 1]} : vector<9x256xbf16> to vector<7x256xbf16>
    %c1536 = arith.constant 1536 : index
    %c0_21 = arith.constant 0 : index
    %38 = vector.load %arg3[%c1536, %c0_21] : memref<2304x256xbf16, #tpu.memory_space<vmem>>, vector<256x256xbf16>
    %cst_22 = arith.constant dense<0.000000e+00> : vector<7x256xf32>
    %39 = tpu.matmul %37, %38, %cst_22 {dimension_numbers = #tpu.dot_dimension_numbers<[1], [0], [0], [1], [0, 0, 1, 1], [], []>} : vector<7x256xbf16>, vector<256x256xbf16>, vector<7x256xf32> -> vector<7x256xf32>
    %40 = arith.addf %32, %39 : vector<7x256xf32>
    %41 = vector.extract_strided_slice %36 {offsets = [1, 0], sizes = [7, 256], strides = [1, 1]} : vector<9x256xbf16> to vector<7x256xbf16>
    %c1792 = arith.constant 1792 : index
    %c0_23 = arith.constant 0 : index
    %42 = vector.load %arg3[%c1792, %c0_23] : memref<2304x256xbf16, #tpu.memory_space<vmem>>, vector<256x256xbf16>
    %cst_24 = arith.constant dense<0.000000e+00> : vector<7x256xf32>
    %43 = tpu.matmul %41, %42, %cst_24 {dimension_numbers = #tpu.dot_dimension_numbers<[1], [0], [0], [1], [0, 0, 1, 1], [], []>} : vector<7x256xbf16>, vector<256x256xbf16>, vector<7x256xf32> -> vector<7x256xf32>
    %44 = arith.addf %40, %43 : vector<7x256xf32>
    %45 = vector.extract_strided_slice %36 {offsets = [2, 0], sizes = [7, 256], strides = [1, 1]} : vector<9x256xbf16> to vector<7x256xbf16>
    %c2048 = arith.constant 2048 : index
    %c0_25 = arith.constant 0 : index
    %46 = vector.load %arg3[%c2048, %c0_25] : memref<2304x256xbf16, #tpu.memory_space<vmem>>, vector<256x256xbf16>
    %cst_26 = arith.constant dense<0.000000e+00> : vector<7x256xf32>
    %47 = tpu.matmul %45, %46, %cst_26 {dimension_numbers = #tpu.dot_dimension_numbers<[1], [0], [0], [1], [0, 0, 1, 1], [], []>} : vector<7x256xbf16>, vector<256x256xbf16>, vector<7x256xf32> -> vector<7x256xf32>
    %48 = arith.addf %44, %47 : vector<7x256xf32>
    %c0_27 = arith.constant 0 : index
    %c0_28 = arith.constant 0 : index
    %49 = vector.load %arg4[%c0_27, %c0_28] : memref<1x256xf32, #tpu.memory_space<vmem>>, vector<1x256xf32>
    %50 = vector.broadcast %49 : vector<1x256xf32> to vector<7x256xf32>
    %51 = arith.addf %48, %50 : vector<7x256xf32>
    %cst_29 = arith.constant 0.000000e+00 : f32
    %52 = vector.broadcast %cst_29 : f32 to vector<7x256xf32>
    %53 = arith.cmpf oge, %51, %52 : vector<7x256xf32>
    %cst_30 = arith.constant 0.00999999977 : f32
    %54 = vector.broadcast %cst_30 : f32 to vector<7x256xf32>
    %55 = arith.mulf %54, %51 : vector<7x256xf32>
    %56 = arith.select %53, %51, %55 : vector<7x256xi1>, vector<7x256xf32>
    %57 = arith.truncf %56 : vector<7x256xf32> to vector<7x256xbf16>
    %c0_31 = arith.constant 0 : index
    %c0_32 = arith.constant 0 : index
    %c0_33 = arith.constant 0 : index
    %c0_34 = arith.constant 0 : index
    %58 = vector.load %arg5[%c0_31, %c0_32, %c0_33, %c0_34] : memref<1x1x7x256xbf16, #tpu.memory_space<vmem>>, vector<1x1x7x256xbf16>
    %59 = vector.shape_cast %58 : vector<1x1x7x256xbf16> to vector<7x256xbf16>
    %60 = vector.shape_cast %57 : vector<7x256xbf16> to vector<1x1x7x256xbf16>
    tpu.vector_store %arg5[%c0_31, %c0_32, %c0_33, %c0_34], %60 {strides = array<i32>} : memref<1x1x7x256xbf16, #tpu.memory_space<vmem>>, vector<1x1x7x256xbf16>,
    return
  }
  func.func @transform_0(%arg0: i32, %arg1: i32) -> (i32, i32, i32, i32) {
    %c0_i32 = arith.constant 0 : i32
    %c0_i32_0 = arith.constant 0 : i32
    %c0_i32_1 = arith.constant 0 : i32
    %c0_i32_2 = arith.constant 0 : i32
    return %arg0, %c0_i32, %c0_i32_0, %c0_i32_1 : i32, i32, i32, i32
  }
  func.func @transform_1(%arg0: i32, %arg1: i32) -> (i32, i32) {
    %c0_i32 = arith.constant 0 : i32
    %c0_i32_0 = arith.constant 0 : i32
    %c0_i32_1 = arith.constant 0 : i32
    return %c0_i32, %c0_i32_0 : i32, i32
  }
  func.func @transform_2(%arg0: i32, %arg1: i32) -> (i32, i32) {
    %c0_i32 = arith.constant 0 : i32
    %c0_i32_0 = arith.constant 0 : i32
    %c0_i32_1 = arith.constant 0 : i32
    return %c0_i32, %c0_i32_0 : i32, i32
  }
  func.func @transform_3(%arg0: i32, %arg1: i32) -> (i32, i32, i32, i32) {
    %c0_i32 = arith.constant 0 : i32
    %c0_i32_0 = arith.constant 0 : i32
    %c0_i32_1 = arith.constant 0 : i32
    return %arg0, %arg1, %c0_i32, %c0_i32_0 : i32, i32, i32, i32
  }
}

module attributes {stable_mosaic.version = 11 : i64} {
  func.func @_conv_same_kernel(%arg0: i32, %arg1: i32, %arg2: memref<1x8x7x256xbf16, #tpu.memory_space<vmem>>, %arg3: memref<1024x256xbf16, #tpu.memory_space<vmem>>, %arg4: memref<1x256xf32, #tpu.memory_space<vmem>>, %arg5: memref<1x1x6x256xbf16, #tpu.memory_space<vmem>>) attributes {dimension_semantics = [#tpu.dimension_semantics<parallel>, #tpu.dimension_semantics<parallel>], iteration_bounds = array<i64: 2, 7>, scalar_prefetch = 0 : i64, scratch_operands = 0 : i64, tpu.core_type = #tpu.core_type<tc>, window_params = [{transform_indices = @transform_0, window_bounds = array<i64: 1, 8, 7, 256>}, {pipeline_mode = #tpu.pipeline_mode<synchronous>, transform_indices = @transform_1, window_bounds = array<i64: 1024, 256>}, {pipeline_mode = #tpu.pipeline_mode<synchronous>, transform_indices = @transform_2, window_bounds = array<i64: 1, 256>}, {transform_indices = @transform_3, window_bounds = array<i64: 1, 1, 6, 256>}]} {
    %cst = arith.constant 0.000000e+00 : f32
    %0 = vector.broadcast %cst : f32 to vector<6x256xf32>
    %c0_i32 = arith.constant 0 : i32
    %1 = arith.addi %arg1, %c0_i32 : i32
    %c0 = arith.constant 0 : index
    %2 = arith.index_cast %1 : i32 to index
    %c0_0 = arith.constant 0 : index
    %c0_1 = arith.constant 0 : index
    %3 = vector.load %arg2[%c0, %2, %c0_0, %c0_1] : memref<1x8x7x256xbf16, #tpu.memory_space<vmem>>, vector<1x1x7x256xbf16>
    %4 = vector.shape_cast %3 : vector<1x1x7x256xbf16> to vector<7x256xbf16>
    %5 = vector.extract_strided_slice %4 {offsets = [0, 0], sizes = [6, 256], strides = [1, 1]} : vector<7x256xbf16> to vector<6x256xbf16>
    %c0_2 = arith.constant 0 : index
    %c0_3 = arith.constant 0 : index
    %6 = vector.load %arg3[%c0_2, %c0_3] : memref<1024x256xbf16, #tpu.memory_space<vmem>>, vector<256x256xbf16>
    %cst_4 = arith.constant dense<0.000000e+00> : vector<6x256xf32>
    %7 = tpu.matmul %5, %6, %cst_4 {dimension_numbers = #tpu.dot_dimension_numbers<[1], [0], [0], [1], [0, 0, 1, 1], [], []>} : vector<6x256xbf16>, vector<256x256xbf16>, vector<6x256xf32> -> vector<6x256xf32>
    %8 = arith.addf %0, %7 : vector<6x256xf32>
    %9 = vector.extract_strided_slice %4 {offsets = [1, 0], sizes = [6, 256], strides = [1, 1]} : vector<7x256xbf16> to vector<6x256xbf16>
    %c256 = arith.constant 256 : index
    %c0_5 = arith.constant 0 : index
    %10 = vector.load %arg3[%c256, %c0_5] : memref<1024x256xbf16, #tpu.memory_space<vmem>>, vector<256x256xbf16>
    %cst_6 = arith.constant dense<0.000000e+00> : vector<6x256xf32>
    %11 = tpu.matmul %9, %10, %cst_6 {dimension_numbers = #tpu.dot_dimension_numbers<[1], [0], [0], [1], [0, 0, 1, 1], [], []>} : vector<6x256xbf16>, vector<256x256xbf16>, vector<6x256xf32> -> vector<6x256xf32>
    %12 = arith.addf %8, %11 : vector<6x256xf32>
    %c1_i32 = arith.constant 1 : i32
    %13 = arith.addi %arg1, %c1_i32 : i32
    %c0_7 = arith.constant 0 : index
    %14 = arith.index_cast %13 : i32 to index
    %c0_8 = arith.constant 0 : index
    %c0_9 = arith.constant 0 : index
    %15 = vector.load %arg2[%c0_7, %14, %c0_8, %c0_9] : memref<1x8x7x256xbf16, #tpu.memory_space<vmem>>, vector<1x1x7x256xbf16>
    %16 = vector.shape_cast %15 : vector<1x1x7x256xbf16> to vector<7x256xbf16>
    %17 = vector.extract_strided_slice %16 {offsets = [0, 0], sizes = [6, 256], strides = [1, 1]} : vector<7x256xbf16> to vector<6x256xbf16>
    %c512 = arith.constant 512 : index
    %c0_10 = arith.constant 0 : index
    %18 = vector.load %arg3[%c512, %c0_10] : memref<1024x256xbf16, #tpu.memory_space<vmem>>, vector<256x256xbf16>
    %cst_11 = arith.constant dense<0.000000e+00> : vector<6x256xf32>
    %19 = tpu.matmul %17, %18, %cst_11 {dimension_numbers = #tpu.dot_dimension_numbers<[1], [0], [0], [1], [0, 0, 1, 1], [], []>} : vector<6x256xbf16>, vector<256x256xbf16>, vector<6x256xf32> -> vector<6x256xf32>
    %20 = arith.addf %12, %19 : vector<6x256xf32>
    %21 = vector.extract_strided_slice %16 {offsets = [1, 0], sizes = [6, 256], strides = [1, 1]} : vector<7x256xbf16> to vector<6x256xbf16>
    %c768 = arith.constant 768 : index
    %c0_12 = arith.constant 0 : index
    %22 = vector.load %arg3[%c768, %c0_12] : memref<1024x256xbf16, #tpu.memory_space<vmem>>, vector<256x256xbf16>
    %cst_13 = arith.constant dense<0.000000e+00> : vector<6x256xf32>
    %23 = tpu.matmul %21, %22, %cst_13 {dimension_numbers = #tpu.dot_dimension_numbers<[1], [0], [0], [1], [0, 0, 1, 1], [], []>} : vector<6x256xbf16>, vector<256x256xbf16>, vector<6x256xf32> -> vector<6x256xf32>
    %24 = arith.addf %20, %23 : vector<6x256xf32>
    %c0_14 = arith.constant 0 : index
    %c0_15 = arith.constant 0 : index
    %25 = vector.load %arg4[%c0_14, %c0_15] : memref<1x256xf32, #tpu.memory_space<vmem>>, vector<1x256xf32>
    %26 = vector.broadcast %25 : vector<1x256xf32> to vector<6x256xf32>
    %27 = arith.addf %24, %26 : vector<6x256xf32>
    %cst_16 = arith.constant 0.000000e+00 : f32
    %28 = vector.broadcast %cst_16 : f32 to vector<6x256xf32>
    %29 = arith.cmpf oge, %27, %28 : vector<6x256xf32>
    %cst_17 = arith.constant 0.00999999977 : f32
    %30 = vector.broadcast %cst_17 : f32 to vector<6x256xf32>
    %31 = arith.mulf %30, %27 : vector<6x256xf32>
    %32 = arith.select %29, %27, %31 : vector<6x256xi1>, vector<6x256xf32>
    %33 = arith.truncf %32 : vector<6x256xf32> to vector<6x256xbf16>
    %c0_18 = arith.constant 0 : index
    %c0_19 = arith.constant 0 : index
    %c0_20 = arith.constant 0 : index
    %c0_21 = arith.constant 0 : index
    %34 = vector.load %arg5[%c0_18, %c0_19, %c0_20, %c0_21] : memref<1x1x6x256xbf16, #tpu.memory_space<vmem>>, vector<1x1x6x256xbf16>
    %35 = vector.shape_cast %34 : vector<1x1x6x256xbf16> to vector<6x256xbf16>
    %36 = vector.shape_cast %33 : vector<6x256xbf16> to vector<1x1x6x256xbf16>
    tpu.vector_store %arg5[%c0_18, %c0_19, %c0_20, %c0_21], %36 {strides = array<i32>} : memref<1x1x6x256xbf16, #tpu.memory_space<vmem>>, vector<1x1x6x256xbf16>,
    return
  }
  func.func @transform_0(%arg0: i32, %arg1: i32) -> (i32, i32, i32, i32) {
    %c0_i32 = arith.constant 0 : i32
    %c0_i32_0 = arith.constant 0 : i32
    %c0_i32_1 = arith.constant 0 : i32
    %c0_i32_2 = arith.constant 0 : i32
    return %arg0, %c0_i32, %c0_i32_0, %c0_i32_1 : i32, i32, i32, i32
  }
  func.func @transform_1(%arg0: i32, %arg1: i32) -> (i32, i32) {
    %c0_i32 = arith.constant 0 : i32
    %c0_i32_0 = arith.constant 0 : i32
    %c0_i32_1 = arith.constant 0 : i32
    return %c0_i32, %c0_i32_0 : i32, i32
  }
  func.func @transform_2(%arg0: i32, %arg1: i32) -> (i32, i32) {
    %c0_i32 = arith.constant 0 : i32
    %c0_i32_0 = arith.constant 0 : i32
    %c0_i32_1 = arith.constant 0 : i32
    return %c0_i32, %c0_i32_0 : i32, i32
  }
  func.func @transform_3(%arg0: i32, %arg1: i32) -> (i32, i32, i32, i32) {
    %c0_i32 = arith.constant 0 : i32
    %c0_i32_0 = arith.constant 0 : i32
    %c0_i32_1 = arith.constant 0 : i32
    return %arg0, %arg1, %c0_i32, %c0_i32_0 : i32, i32, i32, i32
  }
}

module attributes {stable_mosaic.version = 11 : i64} {
  func.func @_matmul_bias_act_kernel(%arg0: i32, %arg1: i32, %arg2: memref<16x256xbf16, #tpu.memory_space<vmem>>, %arg3: memref<256x256xbf16, #tpu.memory_space<vmem>>, %arg4: memref<1x256xf32, #tpu.memory_space<vmem>>, %arg5: memref<16x256xf32, #tpu.memory_space<vmem>>) attributes {dimension_semantics = [#tpu.dimension_semantics<parallel>, #tpu.dimension_semantics<parallel>], iteration_bounds = array<i64: 1, 4>, scalar_prefetch = 0 : i64, scratch_operands = 0 : i64, tpu.core_type = #tpu.core_type<tc>, window_params = [{transform_indices = @transform_0, window_bounds = array<i64: 16, 256>}, {transform_indices = @transform_1, window_bounds = array<i64: 256, 256>}, {transform_indices = @transform_2, window_bounds = array<i64: 1, 256>}, {transform_indices = @transform_3, window_bounds = array<i64: 16, 256>}]} {
    %c0 = arith.constant 0 : index
    %c0_0 = arith.constant 0 : index
    %0 = vector.load %arg2[%c0, %c0_0] : memref<16x256xbf16, #tpu.memory_space<vmem>>, vector<16x256xbf16>
    %c0_1 = arith.constant 0 : index
    %c0_2 = arith.constant 0 : index
    %1 = vector.load %arg3[%c0_1, %c0_2] : memref<256x256xbf16, #tpu.memory_space<vmem>>, vector<256x256xbf16>
    %cst = arith.constant dense<0.000000e+00> : vector<16x256xf32>
    %2 = tpu.matmul %0, %1, %cst {dimension_numbers = #tpu.dot_dimension_numbers<[1], [0], [0], [1], [0, 0, 1, 1], [], []>} : vector<16x256xbf16>, vector<256x256xbf16>, vector<16x256xf32> -> vector<16x256xf32>
    %c0_3 = arith.constant 0 : index
    %c0_4 = arith.constant 0 : index
    %3 = vector.load %arg4[%c0_3, %c0_4] : memref<1x256xf32, #tpu.memory_space<vmem>>, vector<1x256xf32>
    %4 = vector.broadcast %3 : vector<1x256xf32> to vector<16x256xf32>
    %5 = arith.addf %2, %4 : vector<16x256xf32>
    %c0_5 = arith.constant 0 : index
    %c0_6 = arith.constant 0 : index
    %6 = vector.load %arg5[%c0_5, %c0_6] : memref<16x256xf32, #tpu.memory_space<vmem>>, vector<16x256xf32>
    tpu.vector_store %arg5[%c0_5, %c0_6], %5 {strides = array<i32>} : memref<16x256xf32, #tpu.memory_space<vmem>>, vector<16x256xf32>,
    return
  }
  func.func @transform_0(%arg0: i32, %arg1: i32) -> (i32, i32) {
    %c0_i32 = arith.constant 0 : i32
    %c0_i32_0 = arith.constant 0 : i32
    return %arg0, %c0_i32 : i32, i32
  }
  func.func @transform_1(%arg0: i32, %arg1: i32) -> (i32, i32) {
    %c0_i32 = arith.constant 0 : i32
    %c0_i32_0 = arith.constant 0 : i32
    return %c0_i32, %arg1 : i32, i32
  }
  func.func @transform_2(%arg0: i32, %arg1: i32) -> (i32, i32) {
    %c0_i32 = arith.constant 0 : i32
    %c0_i32_0 = arith.constant 0 : i32
    return %c0_i32, %arg1 : i32, i32
  }
  func.func @transform_3(%arg0: i32, %arg1: i32) -> (i32, i32) {
    %c0_i32 = arith.constant 0 : i32
    return %arg0, %arg1 : i32, i32
  }
}

module attributes {stable_mosaic.version = 11 : i64} {
  func.func @_bilstm_kernel(%arg0: i32, %arg1: i32, %arg2: memref<1x1x2x512xf32, #tpu.memory_space<vmem>>, %arg3: memref<1x128x512xbf16, #tpu.memory_space<vmem>>, %arg4: memref<1x1x2x128xf32, #tpu.memory_space<vmem>>, %arg5: memref<2x128xf32, #tpu.memory_space<vmem>>, %arg6: memref<2x128xf32, #tpu.memory_space<vmem>>) attributes {dimension_semantics = [#tpu.dimension_semantics<parallel>, #tpu.dimension_semantics<arbitrary>], iteration_bounds = array<i64: 2, 6>, scalar_prefetch = 0 : i64, scratch_operands = 2 : i64, tpu.core_type = #tpu.core_type<tc>, window_params = [{transform_indices = @transform_0, window_bounds = array<i64: 1, 1, 2, 512>}, {transform_indices = @transform_1, window_bounds = array<i64: 1, 128, 512>}, {transform_indices = @transform_2, window_bounds = array<i64: 1, 1, 2, 128>}]} {
    %c0_i32 = arith.constant 0 : i32
    %0 = arith.cmpi eq, %arg1, %c0_i32 : i32
    %1 = arith.extui %0 : i1 to i32
    %c0_i32_0 = arith.constant 0 : i32
    %2 = arith.cmpi ne, %1, %c0_i32_0 : i32
    scf.if %2 {
      %cst_22 = arith.constant 0.000000e+00 : f32
      %42 = vector.broadcast %cst_22 : f32 to vector<2x128xf32>
      %c0_23 = arith.constant 0 : index
      %c0_24 = arith.constant 0 : index
      %43 = vector.load %arg5[%c0_23, %c0_24] : memref<2x128xf32, #tpu.memory_space<vmem>>, vector<2x128xf32>
      tpu.vector_store %arg5[%c0_23, %c0_24], %42 {strides = array<i32>} : memref<2x128xf32, #tpu.memory_space<vmem>>, vector<2x128xf32>,
      %cst_25 = arith.constant 0.000000e+00 : f32
      %44 = vector.broadcast %cst_25 : f32 to vector<2x128xf32>
      %c0_26 = arith.constant 0 : index
      %c0_27 = arith.constant 0 : index
      %45 = vector.load %arg6[%c0_26, %c0_27] : memref<2x128xf32, #tpu.memory_space<vmem>>, vector<2x128xf32>
      tpu.vector_store %arg6[%c0_26, %c0_27], %44 {strides = array<i32>} : memref<2x128xf32, #tpu.memory_space<vmem>>, vector<2x128xf32>,
    } else {
    }
    %c0 = arith.constant 0 : index
    %c0_1 = arith.constant 0 : index
    %c0_2 = arith.constant 0 : index
    %c0_3 = arith.constant 0 : index
    %3 = vector.load %arg2[%c0, %c0_1, %c0_2, %c0_3] : memref<1x1x2x512xf32, #tpu.memory_space<vmem>>, vector<1x1x2x512xf32>
    %4 = vector.shape_cast %3 : vector<1x1x2x512xf32> to vector<2x512xf32>
    %c0_4 = arith.constant 0 : index
    %c0_5 = arith.constant 0 : index
    %5 = vector.load %arg5[%c0_4, %c0_5] : memref<2x128xf32, #tpu.memory_space<vmem>>, vector<2x128xf32>
    %6 = arith.truncf %5 : vector<2x128xf32> to vector<2x128xbf16>
    %c0_6 = arith.constant 0 : index
    %c0_7 = arith.constant 0 : index
    %c0_8 = arith.constant 0 : index
    %7 = vector.load %arg3[%c0_6, %c0_7, %c0_8] : memref<1x128x512xbf16, #tpu.memory_space<vmem>>, vector<1x128x512xbf16>
    %8 = vector.shape_cast %7 : vector<1x128x512xbf16> to vector<128x512xbf16>
    %cst = arith.constant dense<0.000000e+00> : vector<2x512xf32>
    %9 = tpu.matmul %6, %8, %cst {dimension_numbers = #tpu.dot_dimension_numbers<[1], [0], [0], [1], [0, 0, 1, 1], [], []>} : vector<2x128xbf16>, vector<128x512xbf16>, vector<2x512xf32> -> vector<2x512xf32>
    %10 = arith.addf %4, %9 : vector<2x512xf32>
    %11 = vector.extract_strided_slice %10 {offsets = [0, 0], sizes = [2, 128], strides = [1, 1]} : vector<2x512xf32> to vector<2x128xf32>
    %12 = arith.negf %11 : vector<2x128xf32>
    %13 = math.exp %12 : vector<2x128xf32>
    %cst_9 = arith.constant 1.000000e+00 : f32
    %14 = vector.broadcast %cst_9 : f32 to vector<2x128xf32>
    %15 = arith.addf %14, %13 : vector<2x128xf32>
    %16 = arith.divf %14, %15 : vector<2x128xf32>
    %17 = vector.extract_strided_slice %10 {offsets = [0, 128], sizes = [2, 128], strides = [1, 1]} : vector<2x512xf32> to vector<2x128xf32>
    %18 = arith.negf %17 : vector<2x128xf32>
    %19 = math.exp %18 : vector<2x128xf32>
    %cst_10 = arith.constant 1.000000e+00 : f32
    %20 = vector.broadcast %cst_10 : f32 to vector<2x128xf32>
    %21 = arith.addf %20, %19 : vector<2x128xf32>
    %22 = arith.divf %20, %21 : vector<2x128xf32>
    %23 = vector.extract_strided_slice %10 {offsets = [0, 256], sizes = [2, 128], strides = [1, 1]} : vector<2x512xf32> to vector<2x128xf32>
    %24 = math.tanh %23 : vector<2x128xf32>
    %25 = vector.extract_strided_slice %10 {offsets = [0, 384], sizes = [2, 128], strides = [1, 1]} : vector<2x512xf32> to vector<2x128xf32>
    %26 = arith.negf %25 : vector<2x128xf32>
    %27 = math.exp %26 : vector<2x128xf32>
    %cst_11 = arith.constant 1.000000e+00 : f32
    %28 = vector.broadcast %cst_11 : f32 to vector<2x128xf32>
    %29 = arith.addf %28, %27 : vector<2x128xf32>
    %30 = arith.divf %28, %29 : vector<2x128xf32>
    %c0_12 = arith.constant 0 : index
    %c0_13 = arith.constant 0 : index
    %31 = vector.load %arg6[%c0_12, %c0_13] : memref<2x128xf32, #tpu.memory_space<vmem>>, vector<2x128xf32>
    %32 = arith.mulf %22, %31 : vector<2x128xf32>
    %33 = arith.mulf %16, %24 : vector<2x128xf32>
    %34 = arith.addf %32, %33 : vector<2x128xf32>
    %35 = math.tanh %34 : vector<2x128xf32>
    %36 = arith.mulf %30, %35 : vector<2x128xf32>
    %c0_14 = arith.constant 0 : index
    %c0_15 = arith.constant 0 : index
    %37 = vector.load %arg6[%c0_14, %c0_15] : memref<2x128xf32, #tpu.memory_space<vmem>>, vector<2x128xf32>
    tpu.vector_store %arg6[%c0_14, %c0_15], %34 {strides = array<i32>} : memref<2x128xf32, #tpu.memory_space<vmem>>, vector<2x128xf32>,
    %c0_16 = arith.constant 0 : index
    %c0_17 = arith.constant 0 : index
    %38 = vector.load %arg5[%c0_16, %c0_17] : memref<2x128xf32, #tpu.memory_space<vmem>>, vector<2x128xf32>
    tpu.vector_store %arg5[%c0_16, %c0_17], %36 {strides = array<i32>} : memref<2x128xf32, #tpu.memory_space<vmem>>, vector<2x128xf32>,
    %c0_18 = arith.constant 0 : index
    %c0_19 = arith.constant 0 : index
    %c0_20 = arith.constant 0 : index
    %c0_21 = arith.constant 0 : index
    %39 = vector.load %arg4[%c0_18, %c0_19, %c0_20, %c0_21] : memref<1x1x2x128xf32, #tpu.memory_space<vmem>>, vector<1x1x2x128xf32>
    %40 = vector.shape_cast %39 : vector<1x1x2x128xf32> to vector<2x128xf32>
    %41 = vector.shape_cast %36 : vector<2x128xf32> to vector<1x1x2x128xf32>
    tpu.vector_store %arg4[%c0_18, %c0_19, %c0_20, %c0_21], %41 {strides = array<i32>} : memref<1x1x2x128xf32, #tpu.memory_space<vmem>>, vector<1x1x2x128xf32>,
    return
  }
  func.func @transform_0(%arg0: i32, %arg1: i32) -> (i32, i32, i32, i32) {
    %c2_i32 = arith.constant 2 : i32
    %0 = arith.muli %c2_i32, %arg1 : i32
    %c5_i32 = arith.constant 5 : i32
    %1 = arith.subi %c5_i32, %0 : i32
    %2 = arith.muli %arg0, %1 : i32
    %3 = arith.addi %arg1, %2 : i32
    %c0_i32 = arith.constant 0 : i32
    %c0_i32_0 = arith.constant 0 : i32
    %c0_i32_1 = arith.constant 0 : i32
    return %arg0, %3, %c0_i32, %c0_i32_0 : i32, i32, i32, i32
  }
  func.func @transform_1(%arg0: i32, %arg1: i32) -> (i32, i32, i32) {
    %c0_i32 = arith.constant 0 : i32
    %c0_i32_0 = arith.constant 0 : i32
    %c0_i32_1 = arith.constant 0 : i32
    return %arg0, %c0_i32, %c0_i32_0 : i32, i32, i32
  }
  func.func @transform_2(%arg0: i32, %arg1: i32) -> (i32, i32, i32, i32) {
    %c2_i32 = arith.constant 2 : i32
    %0 = arith.muli %c2_i32, %arg1 : i32
    %c5_i32 = arith.constant 5 : i32
    %1 = arith.subi %c5_i32, %0 : i32
    %2 = arith.muli %arg0, %1 : i32
    %3 = arith.addi %arg1, %2 : i32
    %c0_i32 = arith.constant 0 : i32
    %c0_i32_0 = arith.constant 0 : i32
    %c0_i32_1 = arith.constant 0 : i32
    return %arg0, %3, %c0_i32, %c0_i32_0 : i32, i32, i32, i32
  }
}

module attributes {stable_mosaic.version = 11 : i64} {
  func.func @_dense_head_kernel(%arg0: memref<12x256xbf16, #tpu.memory_space<vmem>>, %arg1: memref<256x512xbf16, #tpu.memory_space<vmem>>, %arg2: memref<1x512xf32, #tpu.memory_space<vmem>>, %arg3: memref<512x512xbf16, #tpu.memory_space<vmem>>, %arg4: memref<1x512xf32, #tpu.memory_space<vmem>>, %arg5: memref<512x128xbf16, #tpu.memory_space<vmem>>, %arg6: memref<1x128xf32, #tpu.memory_space<vmem>>, %arg7: memref<12x128xf32, #tpu.memory_space<vmem>>) attributes {dimension_semantics = [], scalar_prefetch = 0 : i64, scratch_operands = 0 : i64, tpu.core_type = #tpu.core_type<tc>} {
    %c0 = arith.constant 0 : index
    %c0_0 = arith.constant 0 : index
    %0 = vector.load %arg0[%c0, %c0_0] : memref<12x256xbf16, #tpu.memory_space<vmem>>, vector<12x256xbf16>
    %c0_1 = arith.constant 0 : index
    %c0_2 = arith.constant 0 : index
    %1 = vector.load %arg1[%c0_1, %c0_2] : memref<256x512xbf16, #tpu.memory_space<vmem>>, vector<256x512xbf16>
    %cst = arith.constant dense<0.000000e+00> : vector<12x512xf32>
    %2 = tpu.matmul %0, %1, %cst {dimension_numbers = #tpu.dot_dimension_numbers<[1], [0], [0], [1], [0, 0, 1, 1], [], []>} : vector<12x256xbf16>, vector<256x512xbf16>, vector<12x512xf32> -> vector<12x512xf32>
    %c0_3 = arith.constant 0 : index
    %c0_4 = arith.constant 0 : index
    %3 = vector.load %arg2[%c0_3, %c0_4] : memref<1x512xf32, #tpu.memory_space<vmem>>, vector<1x512xf32>
    %4 = vector.broadcast %3 : vector<1x512xf32> to vector<12x512xf32>
    %5 = arith.addf %2, %4 : vector<12x512xf32>
    %cst_5 = arith.constant 0.000000e+00 : f32
    %6 = vector.broadcast %cst_5 : f32 to vector<12x512xf32>
    %7 = arith.cmpf oge, %5, %6 : vector<12x512xf32>
    %cst_6 = arith.constant 0.00999999977 : f32
    %8 = vector.broadcast %cst_6 : f32 to vector<12x512xf32>
    %9 = arith.mulf %8, %5 : vector<12x512xf32>
    %10 = arith.select %7, %5, %9 : vector<12x512xi1>, vector<12x512xf32>
    %11 = arith.truncf %10 : vector<12x512xf32> to vector<12x512xbf16>
    %c0_7 = arith.constant 0 : index
    %c0_8 = arith.constant 0 : index
    %12 = vector.load %arg3[%c0_7, %c0_8] : memref<512x512xbf16, #tpu.memory_space<vmem>>, vector<512x512xbf16>
    %cst_9 = arith.constant dense<0.000000e+00> : vector<12x512xf32>
    %13 = tpu.matmul %11, %12, %cst_9 {dimension_numbers = #tpu.dot_dimension_numbers<[1], [0], [0], [1], [0, 0, 1, 1], [], []>} : vector<12x512xbf16>, vector<512x512xbf16>, vector<12x512xf32> -> vector<12x512xf32>
    %c0_10 = arith.constant 0 : index
    %c0_11 = arith.constant 0 : index
    %14 = vector.load %arg4[%c0_10, %c0_11] : memref<1x512xf32, #tpu.memory_space<vmem>>, vector<1x512xf32>
    %15 = vector.broadcast %14 : vector<1x512xf32> to vector<12x512xf32>
    %16 = arith.addf %13, %15 : vector<12x512xf32>
    %cst_12 = arith.constant 0.000000e+00 : f32
    %17 = vector.broadcast %cst_12 : f32 to vector<12x512xf32>
    %18 = arith.cmpf oge, %16, %17 : vector<12x512xf32>
    %cst_13 = arith.constant 0.00999999977 : f32
    %19 = vector.broadcast %cst_13 : f32 to vector<12x512xf32>
    %20 = arith.mulf %19, %16 : vector<12x512xf32>
    %21 = arith.select %18, %16, %20 : vector<12x512xi1>, vector<12x512xf32>
    %22 = arith.truncf %21 : vector<12x512xf32> to vector<12x512xbf16>
    %c0_14 = arith.constant 0 : index
    %c0_15 = arith.constant 0 : index
    %23 = vector.load %arg5[%c0_14, %c0_15] : memref<512x128xbf16, #tpu.memory_space<vmem>>, vector<512x128xbf16>
    %cst_16 = arith.constant dense<0.000000e+00> : vector<12x128xf32>
    %24 = tpu.matmul %22, %23, %cst_16 {dimension_numbers = #tpu.dot_dimension_numbers<[1], [0], [0], [1], [0, 0, 1, 1], [], []>} : vector<12x512xbf16>, vector<512x128xbf16>, vector<12x128xf32> -> vector<12x128xf32>
    %c0_17 = arith.constant 0 : index
    %c0_18 = arith.constant 0 : index
    %25 = vector.load %arg6[%c0_17, %c0_18] : memref<1x128xf32, #tpu.memory_space<vmem>>, vector<1x128xf32>
    %26 = vector.broadcast %25 : vector<1x128xf32> to vector<12x128xf32>
    %27 = arith.addf %24, %26 : vector<12x128xf32>
    %28 = tpu.iota {dimensions = array<i32: 1>} : vector<12x128xi32>
    %c2_i32 = arith.constant 2 : i32
    %29 = vector.broadcast %c2_i32 : i32 to vector<12x128xi32>
    %30 = arith.cmpi slt, %28, %29 : vector<12x128xi32>
    %cst_19 = arith.constant 0xFF800000 : f32
    %31 = vector.broadcast %cst_19 : f32 to vector<12x128xf32>
    %32 = arith.select %30, %27, %31 : vector<12x128xi1>, vector<12x128xf32>
    %cst_20 = arith.constant dense<0xFF800000> : vector<12xf32>
    %33 = vector.multi_reduction <maximumf>, %32, %cst_20 [1] : vector<12x128xf32> to vector<12xf32>
    %34 = vector.shape_cast %33 : vector<12xf32> to vector<12x1xf32>
    %35 = vector.broadcast %34 : vector<12x1xf32> to vector<12x128xf32>
    %36 = arith.subf %32, %35 : vector<12x128xf32>
    %37 = math.exp %36 : vector<12x128xf32>
    %cst_21 = arith.constant dense<0.000000e+00> : vector<12xf32>
    %38 = vector.multi_reduction <add>, %37, %cst_21 [1] : vector<12x128xf32> to vector<12xf32>
    %39 = vector.shape_cast %38 : vector<12xf32> to vector<12x1xf32>
    %40 = math.log %39 : vector<12x1xf32>
    %41 = vector.broadcast %40 : vector<12x1xf32> to vector<12x128xf32>
    %42 = arith.subf %36, %41 : vector<12x128xf32>
    %c0_22 = arith.constant 0 : index
    %c0_23 = arith.constant 0 : index
    %43 = vector.load %arg7[%c0_22, %c0_23] : memref<12x128xf32, #tpu.memory_space<vmem>>, vector<12x128xf32>
    tpu.vector_store %arg7[%c0_22, %c0_23], %42 {strides = array<i32>} : memref<12x128xf32, #tpu.memory_space<vmem>>, vector<12x128xf32>,
    return
  }
}

</mosaic_0001>

<bundles_post_ra>
// kernel: ocr_forward.10
= control target key start
LH: loop header
LB: loop body
LE: loop exit
PB: predicated region body
PF: predicated region fallthrough
CT: control target
= control target key end

     0   :  { %s873_s12 = smov 0   ;;  %s875_s13 = smov 0   ;;  %s957_s0 = inlined_call_operand.vmem [shape: bf16[1920,9], index: 0, kind: input, shape index: {}]   ;;  %s958_s1 = inlined_call_operand.vmem [shape: bf16[9,128], index: 1, kind: input, shape index: {}]   ;;  %s959_s2 = inlined_call_operand.vmem [shape: f32[1,128], index: 2, kind: input, shape index: {}]   ;;  %s960_s3 = inlined_call_operand.vmem [shape: bf16[1920,128], index: 3, kind: output, shape index: {}]  }
   0x1   :  { %s877_s14 = smov 0  }
   0x2 LB: > { %s25_s15 = sadd.s32 1, %s846_s13  ;;  %p661_p0 = scmp.ge.s32.totalorder %s850_s14, 1  ;;  %s850_s14 = sphi %s877_s14, %s13_s14   ;;  %s846_s13 = sphi %s875_s13, %s962_s13   ;;  %s842_s12 = sphi %s873_s12, %s961_s12  }
   0x3   : > { %p27_p1 = scmp.ge.s32.totalorder %s25_s15, 15  ;;  %p169_p2 = scmp.lt.s32.totalorder %s850_s14, 16 }
   0x5   : > { %s964_s15 = smov (%p27_p1, %s25_s15), 0  ;;  %p170_p3 = pnand %p661_p0, %p169_p2 }
   0x6   : > { %s662_s18 = sshll.u32 (!%p170_p3), %s842_s12, 4 }
   0x7   : > { %173 = sbr.rel (%p170_p3) target bundleno = 237 (0xed), region = 32  ;;  %p204_p4 = scmp.lt.s32.totalorder (!%p170_p3), %s662_s18, 239 }
   0xc   : > { %v819_v0 = vld [vmem:[%s958_s1] sm:$0x1f]   ;;  %vm321_vm0 = vcmask 1043456   ;;  %vm322_vm1 = vcmask 1044480   ;;  %v852_v1 = vmov 65535   ;;  %s966_s18 = smov (!%p204_p4, %s662_s18), 239 }
   0xd   : > { %v323_v2 = vsel %vm321_vm0, 4294967295, %v852_v1  ;;  %s663_s19 = sshll.u32 %s966_s18, 2  ;;  %vm296_vm2 = vcmask 72704   ;;  %v913_v13 = vld [vmem:[%s959_s2] ss:$0 sm:$0xff] }
   0xe   : > { %v324_v3 = vsel %vm322_vm1, %v323_v2, 0  ;;  %s207_s22 = scalar_lea.vmem %s957_s0, %s663_s19  ;;  %s928_s27 = scalar_lea.vmem %s960_s3, %s663_s19 }
   0xf   : > { %v326_v4 = vand.u32 %v819_v0, %v324_v3  ;;  %v820_v5 = vld [vmem:[%s207_s22] sm:$0xff]   ;;  %v822_v7 = vld [vmem:[%s207_s22 + $0x8] sm:$0xff]   ;;  %v824_v9 = vld [vmem:[%s207_s22 + $0x10] sm:$0xff]  }
  0x10   : > { %v821_v6 = vld [vmem:[%s207_s22 + $0x20] sm:$0xff]   ;;  %776 = vmatprep.mubr.msk.bf16.mxu0 %vm296_vm2, %v820_v5  ;;  %v823_v8 = vld [vmem:[%s207_s22 + $0x28] sm:$0xff]   ;;  %v825_v10 = vld [vmem:[%s207_s22 + $0x30] sm:$0xff]  }
  0x11   : > { %774 = vmatprep.subr.bf16.mxu0 %v326_v4  ;;  %792 = vmatprep.subr.bf16.mxu1 %v326_v4  ;;  %v826_v11 = vld [vmem:[%s207_s22 + $0x18] sm:$0xff]  }
  0x12   : > { %775 = vmatpush3.bf16.msra.mxu0 %v326_v4  ;;  %793 = vmatpush3.bf16.msra.mxu1 %v326_v4  ;;  %v827_v12 = vld [vmem:[%s207_s22 + $0x38] sm:$0xff]  }
  0x13   : > { %784 = vmatprep.mubr.msk.bf16.mxu1 %vm296_vm2, %v821_v6 }
  0x15   : > { %777 = vmatmul.mubr.msk.bf16.vlgmr.msra.gmra.mxu0 %vm296_vm2, %v822_v7  ;;  %785 = vmatmul.mubr.msk.bf16.vlgmr.msra.gmra.mxu1 %vm296_vm2, %v823_v8 }
  0x16   : > { %780 = vmatprep.mubr.msk.bf16.mxu0 %vm296_vm2, %v824_v9  ;;  %788 = vmatprep.mubr.msk.bf16.mxu1 %vm296_vm2, %v825_v10 }
  0x1d   : > { %781 = vmatmul.mubr.msk.bf16.gmra.mxu0 %vm296_vm2, %v826_v11  ;;  %789 = vmatmul.mubr.msk.bf16.gmra.mxu1 %vm296_vm2, %v827_v12 }
  0xd5   : > { %v778_v14 = vpop.f32.mrf.mxu0  ;;  %v786_v16 = vpop.f32.mrf.mxu1 }
  0xd6   : > { %v371_v15 = vadd.f32 %v778_v14, %v913_v13  ;;  %v403_v17 = vadd.f32 %v786_v16, %v913_v13 }
  0xd7   : > { %v362_v18 = vpop.f32.mrf.mxu0  ;;  %v394_v21 = vpop.f32.mrf.mxu1 }
  0xd8   : > { %vm427_vm3 = vcmp.ge.f32.partialorder %v371_v15, 0.0  ;;  %v443_v19 = vmul.f32 0.01, %v371_v15  ;;  %v363_v20 = vadd.f32 %v913_v13, %v362_v18  ;;  %vm435_vm4 = vcmp.ge.f32.partialorder %v403_v17, 0.0 }
  0xd9   : > { %v451_v22 = vmul.f32 0.01, %v403_v17  ;;  %v395_v23 = vadd.f32 %v913_v13, %v394_v21  ;;  %v779_v24 = vpop.f32.mrf.mxu0  ;;  %v787_v28 = vpop.f32.mrf.mxu1 }
  0xda   : > { %v459_v25 = vsel %vm427_vm3, %v371_v15, %v443_v19  ;;  %vm425_vm5 = vcmp.ge.f32.partialorder %v363_v20, 0.0  ;;  %v441_v26 = vmul.f32 0.01, %v363_v20  ;;  %v374_v27 = vadd.f32 %v779_v24, %v913_v13 }
  0xdb   : > { %v467_v29 = vsel %vm435_vm4, %v403_v17, %v451_v22  ;;  %vm433_vm6 = vcmp.ge.f32.partialorder %v395_v23, 0.0  ;;  %v449_v30 = vmul.f32 0.01, %v395_v23  ;;  %v406_v31 = vadd.f32 %v787_v28, %v913_v13  ;;  %v365_v32 = vpop.f32.mrf.mxu0  ;;  %v397_v36 = vpop.f32.mrf.mxu1 }
  0xdc   : > { %v457_v33 = vsel %vm425_vm5, %v363_v20, %v441_v26  ;;  %vm428_vm7 = vcmp.ge.f32.partialorder %v374_v27, 0.0  ;;  %v444_v34 = vmul.f32 0.01, %v374_v27  ;;  %v366_v35 = vadd.f32 %v913_v13, %v365_v32 }
  0xdd   : > { %v465_v37 = vsel %vm433_vm6, %v395_v23, %v449_v30  ;;  %vm436_vm8 = vcmp.ge.f32.partialorder %v406_v31, 0.0  ;;  %v452_v38 = vmul.f32 0.01, %v406_v31  ;;  %v398_v39 = vadd.f32 %v913_v13, %v397_v36  ;;  %v782_v40 = vpop.f32.mrf.mxu0  ;;  %v790_v44 = vpop.f32.mrf.mxu1 }
  0xde   : > { %v460_v41 = vsel %vm428_vm7, %v374_v27, %v444_v34  ;;  %vm426_vm9 = vcmp.ge.f32.partialorder %v366_v35, 0.0  ;;  %v442_v42 = vmul.f32 0.01, %v366_v35  ;;  %v387_v43 = vadd.f32 %v782_v40, %v913_v13 }
  0xdf   : > { %v726_v45 = vpack.c.bf16 %v460_v41, %v459_v25  ;;  %v468_v46 = vsel %vm436_vm8, %v406_v31, %v452_v38  ;;  %vm434_vm10 = vcmp.ge.f32.partialorder %v398_v39, 0.0  ;;  %v450_v47 = vmul.f32 0.01, %v398_v39  ;;  %v378_v48 = vpop.f32.mrf.mxu0  ;;  %v410_v52 = vpop.f32.mrf.mxu1 }
  0xe0   : > { %v746_v49 = vpack.c.bf16 %v468_v46, %v467_v29  ;;  %v458_v50 = vsel %vm426_vm9, %v366_v35, %v442_v42  ;;  %vm431_vm11 = vcmp.ge.f32.partialorder %v387_v43, 0.0  ;;  %v447_v51 = vmul.f32 0.01, %v387_v43 }
  0xe1   : > { %758 = vst [vmem:[%s928_s27 + $0x8] sm:$0xff] %v726_v45   ;;  %v721_v53 = vpack.c.bf16 %v458_v50, %v457_v33  ;;  %v466_v54 = vsel %vm434_vm10, %v398_v39, %v450_v47  ;;  %v419_v55 = vadd.f32 %v790_v44, %v913_v13  ;;  %v379_v56 = vadd.f32 %v913_v13, %v378_v48  ;;  %v783_v57 = vpop.f32.mrf.mxu0  ;;  %v791_v61 = vpop.f32.mrf.mxu1 }
  0xe2   : > { %762 = vst [vmem:[%s928_s27 + $0x28] sm:$0xff] %v746_v49   ;;  %v741_v58 = vpack.c.bf16 %v466_v54, %v465_v37  ;;  %v411_v59 = vadd.f32 %v913_v13, %v410_v52  ;;  %v390_v60 = vadd.f32 %v783_v57, %v913_v13  ;;  %v463_v62 = vsel %vm431_vm11, %v387_v43, %v447_v51 }
  0xe3   : > { %722 = vst [vmem:[%s928_s27] sm:$0xff] %v721_v53   ;;  %v381_v63 = vpop.f32.mrf.mxu0  ;;  %vm439_vm12 = vcmp.ge.f32.partialorder %v419_v55, 0.0  ;;  %v455_v0 = vmul.f32 0.01, %v419_v55  ;;  %v413_v2 = vpop.f32.mrf.mxu1  ;;  %vm429_vm14 = vcmp.ge.f32.partialorder %v379_v56, 0.0  ;;  %v445_v3 = vmul.f32 0.01, %v379_v56 }
  0xe4   : > { %761 = vst [vmem:[%s928_s27 + $0x20] sm:$0xff] %v741_v58   ;;  %vm432_vm13 = vcmp.ge.f32.partialorder %v390_v60, 0.0  ;;  %v448_v1 = vmul.f32 0.01, %v390_v60  ;;  %v422_v4 = vadd.f32 %v791_v61, %v913_v13  ;;  %v382_v5 = vadd.f32 %v913_v13, %v381_v63 }
  0xe5   : > { %vm437_vm15 = vcmp.ge.f32.partialorder %v411_v59, 0.0  ;;  %v453_v6 = vmul.f32 0.01, %v411_v59  ;;  %v414_v8 = vadd.f32 %v913_v13, %v413_v2  ;;  %v471_v14 = vsel %vm439_vm12, %v419_v55, %v455_v0 }
  0xe6   : > { %v464_v7 = vsel %vm432_vm13, %v390_v60, %v448_v1  ;;  %vm440_vm0 = vcmp.ge.f32.partialorder %v422_v4, 0.0  ;;  %v456_v10 = vmul.f32 0.01, %v422_v4  ;;  %vm430_vm1 = vcmp.ge.f32.partialorder %v382_v5, 0.0 }
  0xe7   : > { %v736_v9 = vpack.c.bf16 %v464_v7, %v463_v62  ;;  %v446_v11 = vmul.f32 0.01, %v382_v5  ;;  %vm438_vm2 = vcmp.ge.f32.partialorder %v414_v8, 0.0  ;;  %v454_v12 = vmul.f32 0.01, %v414_v8 }
  0xe8   : > { %v461_v15 = vsel %vm429_vm14, %v379_v56, %v445_v3  ;;  %v472_v16 = vsel %vm440_vm0, %v422_v4, %v456_v10  ;;  %v469_v17 = vsel %vm437_vm15, %v411_v59, %v453_v6 }
  0xe9   : > { %760 = vst [vmem:[%s928_s27 + $0x18] sm:$0xff] %v736_v9   ;;  %v756_v18 = vpack.c.bf16 %v472_v16, %v471_v14  ;;  %v462_v19 = vsel %vm430_vm1, %v382_v5, %v446_v11  ;;  %v470_v13 = vsel %vm438_vm2, %v414_v8, %v454_v12 }
  0xea   : > { %v731_v20 = vpack.c.bf16 %v462_v19, %v461_v15  ;;  %v751_v21 = vpack.c.bf16 %v470_v13, %v469_v17 }
  0xeb   : > { %764 = vst [vmem:[%s928_s27 + $0x38] sm:$0xff] %v756_v18  }
  0xec   : > { %759 = vst [vmem:[%s928_s27 + $0x10] sm:$0xff] %v731_v20   ;;  %763 = vst [vmem:[%s928_s27 + $0x30] sm:$0xff] %v751_v21  }
  0xed PF: > { %s13_s14 = sadd.s32 1, %s850_s14   ;;  %s961_s12 = smov %s846_s13 }
  0xee   : > { %p10_p5 = scmp.ge.s32.totalorder %s13_s14, 17   ;;  %s962_s13 = smov %s964_s15 }
  0xf0   :  { %12 = sbr.rel (!%p10_p5) target bundleno = 2 (0x2), region = 68 }

// kernel: ocr_forward.11
= control target key start
LH: loop header
LB: loop body
LE: loop exit
PB: predicated region body
PF: predicated region fallthrough
CT: control target
= control target key end

     0   :  { %s1828_s12 = smov 0   ;;  %s1830_s13 = smov 0   ;;  %s2107_s0 = inlined_call_operand.vmem [shape: bf16[896,576], index: 0, kind: input, shape index: {}]   ;;  %s2108_s1 = inlined_call_operand.vmem [shape: bf16[576,128], index: 1, kind: input, shape index: {}]   ;;  %s2109_s2 = inlined_call_operand.vmem [shape: f32[1,128], index: 2, kind: input, shape index: {}]   ;;  %s2110_s3 = inlined_call_operand.vmem [shape: bf16[896,128], index: 3, kind: output, shape index: {}]  }
   0x1   :  { %s1832_s14 = smov 0  }
   0x2 LB: > { %s25_s15 = sadd.s32 1, %s1802_s13  ;;  %p1324_p0 = scmp.ge.s32.totalorder %s1806_s14, 1  ;;  %s1806_s14 = sphi %s1832_s14, %s13_s14   ;;  %s1802_s13 = sphi %s1830_s13, %s2114_s13   ;;  %s1798_s12 = sphi %s1828_s12, %s2113_s12  }
   0x3   : > { %p27_p1 = scmp.ge.s32.totalorder %s25_s15, 7  ;;  %p170_p2 = scmp.lt.s32.totalorder %s1806_s14, 8 }
   0x5   : > { %s2116_s15 = smov (%p27_p1, %s25_s15), 0  ;;  %p171_p3 = pnand %p1324_p0, %p170_p2 }
   0x7   : > { %174 = sbr.rel (%p171_p3) target bundleno = 327 (0x147), region = 32 }
   0xc   : > { %v1692_v0 = vld [vmem:[%s2108_s1 + $0x78] sm:$0xff]   ;;  %v1696_v4 = vld [vmem:[%s2108_s1 + $0x70] sm:$0xff]   ;;  %v1700_v8 = vld [vmem:[%s2108_s1 + $0x68] sm:$0xff]   ;;  %s1325_s23 = sshll.u32 %s1798_s12, 4  ;;  %vm772_vm0 = vcmask 523264  }
   0xd   : > { %v1693_v1 = vld [vmem:[%s2108_s1 + $0xf8] sm:$0xff]   ;;  %1495 = vmatprep.subr.bf16.mxu0 %v1692_v0  ;;  %v1697_v5 = vld [vmem:[%s2108_s1 + $0xf0] sm:$0xff]   ;;  %v1701_v9 = vld [vmem:[%s2108_s1 + $0xe8] sm:$0xff]   ;;  %p206_p4 = scmp.lt.s32.totalorder %s1325_s23, 111 }
   0xe   : > { %v1694_v2 = vld [vmem:[%s2108_s1 + $0x38] sm:$0xff]   ;;  %1559 = vmatprep.subr.bf16.mxu1 %v1693_v1  ;;  %v1698_v6 = vld [vmem:[%s2108_s1 + $0x30] sm:$0xff]   ;;  %v1702_v10 = vld [vmem:[%s2108_s1 + $0x28] sm:$0xff]  }
   0xf   : > { %v1695_v3 = vld [vmem:[%s2108_s1 + $0xb8] sm:$0xff]   ;;  %1496 = vmatpush3.bf16.msra.mxu0 %v1694_v2  ;;  %v1699_v7 = vld [vmem:[%s2108_s1 + $0xb0] sm:$0xff]   ;;  %v1703_v11 = vld [vmem:[%s2108_s1 + $0xa8] sm:$0xff]   ;;  %s2118_s23 = smov (!%p206_p4, %s1325_s23), 111 }
  0x10   : > { %1560 = vmatpush3.bf16.msra.mxu1 %v1695_v3  ;;  %1497 = vmatprep.subr.bf16.mxu0 %v1696_v4  ;;  %v1704_v12 = vld [vmem:[%s2108_s1 + $0x60] sm:$0xff]   ;;  %v1708_v16 = vld [vmem:[%s2108_s1 + $0x58] sm:$0xff]   ;;  %v1712_v20 = vld [vmem:[%s2108_s1 + $0x50] sm:$0xff]   ;;  %s1667_s22 = smul.u32 20, %s2118_s23  ;;  %s1328_s26 = sshll.u32 %s2118_s23, 2 }
  0x11   : > { %1561 = vmatprep.subr.bf16.mxu1 %v1697_v5  ;;  %v1705_v13 = vld [vmem:[%s2108_s1 + $0xe0] sm:$0xff]   ;;  %v1709_v17 = vld [vmem:[%s2108_s1 + $0xd8] sm:$0xff]   ;;  %v1713_v21 = vld [vmem:[%s2108_s1 + $0xd0] sm:$0xff]   ;;  %s2079_s29 = scalar_lea.vmem %s2110_s3, %s1328_s26 }
  0x12   : > { %v1706_v14 = vld [vmem:[%s2108_s1 + $0x20] sm:$0xff]   ;;  %v1710_v18 = vld [vmem:[%s2108_s1 + $0x18] sm:$0xff]   ;;  %v1714_v22 = vld [vmem:[%s2108_s1 + $0x10] sm:$0xff]   ;;  %s1945_s6 = scalar_lea.vmem %s2107_s0, %s1667_s22 }
  0x13   : > { %1498 = vmatpush3.bf16.msra.mxu0 %v1698_v6  ;;  %v1707_v15 = vld [vmem:[%s2108_s1 + $0xa0] sm:$0xff]   ;;  %v1711_v19 = vld [vmem:[%s2108_s1 + $0x98] sm:$0xff]   ;;  %v1715_v23 = vld [vmem:[%s2108_s1 + $0x90] sm:$0xff]  }
  0x14   : > { %1562 = vmatpush3.bf16.msra.mxu1 %v1699_v7  ;;  %1499 = vmatprep.subr.bf16.mxu0 %v1700_v8  ;;  %v1716_v24 = vld [vmem:[%s2108_s1 + $0x48] sm:$0xff]   ;;  %v1720_v28 = vld [vmem:[%s2108_s1 + $0x40] sm:$0xff]   ;;  %v1730_v36 = vld [vmem:[%s2108_s1 + $0x118] sm:$0xff]  }
  0x15   : > { %1563 = vmatprep.subr.bf16.mxu1 %v1701_v9  ;;  %v1717_v25 = vld [vmem:[%s2108_s1 + $0xc8] sm:$0xff]   ;;  %v1721_v29 = vld [vmem:[%s2108_s1 + $0xc0] sm:$0xff]   ;;  %v1743_v42 = vld [vmem:[%s2108_s1 + $0x110] sm:$0xff]  }
  0x16   : > { %v1718_v26 = vld [vmem:[%s2108_s1 + $0x8] sm:$0xff]   ;;  %v1722_v30 = vld [vmem:[%s2108_s1] sm:$0xff]   ;;  %v1739_v43 = vld [vmem:[%s1945_s6 + $0x5c] ss:$20 sps:$4 sm:$0xff]  }
  0x17   : > { %1500 = vmatpush3.bf16.msra.mxu0 %v1702_v10  ;;  %v1719_v27 = vld [vmem:[%s2108_s1 + $0x88] sm:$0xff]   ;;  %v1723_v31 = vld [vmem:[%s2108_s1 + $0x80] sm:$0xff]   ;;  %v1744_v47 = vld [vmem:[%s1945_s6 + $0x7c] ss:$20 sps:$4 sm:$0xff]  }
  0x18   : > { %1564 = vmatpush3.bf16.msra.mxu1 %v1703_v11  ;;  %1501 = vmatprep.subr.bf16.mxu0 %v1704_v12  ;;  %v1724_v32 = vld [vmem:[%s1945_s6] ss:$20 sps:$4 sm:$0xff]   ;;  %v1726_v33 = vld [vmem:[%s1945_s6 + $0x4] ss:$20 sps:$4 sm:$0xff]   ;;  %v1727_v34 = vld [vmem:[%s1945_s6 + $0x8] ss:$20 sps:$4 sm:$0xff]  }
  0x19   : > { %1565 = vmatprep.subr.bf16.mxu1 %v1705_v13  ;;  %v1729_v35 = vld [vmem:[%s1945_s6 + $0xc] ss:$20 sps:$4 sm:$0xff]   ;;  %829 = vmatprep.mubr.bf16.mxu0 %v1726_v33  ;;  %v1733_v38 = vld [vmem:[%s1945_s6 + $0x34] ss:$20 sps:$4 sm:$0xff]   ;;  %v1736_v40 = vld [vmem:[%s1945_s6 + $0x30] ss:$20 sps:$4 sm:$0xff]  }
  0x1a   : > { %926 = vmatprep.mubr.bf16.mxu1 %v1729_v35  ;;  %v1731_v37 = vld [vmem:[%s1945_s6 + $0x2c] ss:$20 sps:$4 sm:$0xff]   ;;  %v1735_v39 = vld [vmem:[%s1945_s6 + $0x28] ss:$20 sps:$4 sm:$0xff]   ;;  %v1741_v44 = vld [vmem:[%s1945_s6 + $0x50] ss:$20 sps:$4 sm:$0xff]  }
  0x1b   : > { %1502 = vmatpush3.bf16.msra.mxu0 %v1706_v14  ;;  %v1737_v41 = vld [vmem:[%s1945_s6 + $0x54] ss:$20 sps:$4 sm:$0xff]   ;;  %v1742_v45 = vld [vmem:[%s1945_s6 + $0x58] ss:$20 sps:$4 sm:$0xff]   ;;  %v1769_v49 = vld [vmem:[%s2108_s1 + $0x100] sm:$0xff]  }
  0x1c   : > { %1566 = vmatpush3.bf16.msra.mxu1 %v1707_v15  ;;  %1503 = vmatprep.subr.bf16.mxu0 %v1708_v16  ;;  %v1756_v46 = vld [vmem:[%s2108_s1 + $0x108] sm:$0xff]   ;;  %v1746_v48 = vld [vmem:[%s1945_s6 + $0x84] ss:$20 sps:$4 sm:$0xff]   ;;  %v1749_v51 = vld [vmem:[%s1945_s6 + $0x80] ss:$20 sps:$4 sm:$0xff]  }
  0x1d   : > { %1567 = vmatprep.subr.bf16.mxu1 %v1709_v17  ;;  %v1748_v50 = vld [vmem:[%s1945_s6 + $0x78] ss:$20 sps:$4 sm:$0xff]   ;;  %v1754_v54 = vld [vmem:[%s1945_s6 + $0xa0] ss:$20 sps:$4 sm:$0xff]   ;;  %v1755_v55 = vld [vmem:[%s1945_s6 + $0xa8] ss:$20 sps:$4 sm:$0xff]  }
  0x1e   : > { %v1750_v52 = vld [vmem:[%s1945_s6 + $0xa4] ss:$20 sps:$4 sm:$0xff]   ;;  %v1752_v53 = vld [vmem:[%s1945_s6 + $0xac] ss:$20 sps:$4 sm:$0xff]   ;;  %v1759_v57 = vld [vmem:[%s1945_s6 + $0xd4] ss:$20 sps:$4 sm:$0xff]  }
  0x1f   : > { %1504 = vmatpush3.bf16.msra.mxu0 %v1710_v18  ;;  %v1757_v56 = vld [vmem:[%s1945_s6 + $0xcc] ss:$20 sps:$4 sm:$0xff]   ;;  %v1761_v58 = vld [vmem:[%s1945_s6 + $0xc8] ss:$20 sps:$4 sm:$0xff]   ;;  %v1762_v59 = vld [vmem:[%s1945_s6 + $0xd0] ss:$20 sps:$4 sm:$0xff]  }
  0x20   : > { %1568 = vmatpush3.bf16.msra.mxu1 %v1711_v19  ;;  %1505 = vmatprep.subr.bf16.mxu0 %v1712_v20  ;;  %v1763_v60 = vld [vmem:[%s1945_s6 + $0xf4] ss:$20 sps:$4 sm:$0xff]   ;;  %v1765_v61 = vld [vmem:[%s1945_s6 + $0xfc] ss:$20 sps:$4 sm:$0xff]   ;;  %v1768_v63 = vld [vmem:[%s1945_s6 + $0xf8] ss:$20 sps:$4 sm:$0xff]  }
  0x21   : > { %1569 = vmatprep.subr.bf16.mxu1 %v1713_v21  ;;  %v1767_v62 = vld [vmem:[%s1945_s6 + $0xf0] ss:$20 sps:$4 sm:$0xff]   ;;  %v1774_v2 = vld [vmem:[%s1945_s6 + $0x118] ss:$20 sps:$4 sm:$0xff]   ;;  %v1775_v3 = vld [vmem:[%s1945_s6 + $0x120] ss:$20 sps:$4 sm:$0xff]  }
  0x22   : > { %v1770_v0 = vld [vmem:[%s1945_s6 + $0x11c] ss:$20 sps:$4 sm:$0xff]   ;;  %v1772_v1 = vld [vmem:[%s1945_s6 + $0x124] ss:$20 sps:$4 sm:$0xff]   ;;  %v1780_v8 = vld [vmem:[%s1945_s6 + $0x60] ss:$20 sps:$4 sm:$0xff]  }
  0x23   : > { %1506 = vmatpush3.bf16.msra.mxu0 %v1714_v22  ;;  %v1776_v4 = vld [vmem:[%s1945_s6 + $0x10] ss:$20 sps:$4 sm:$0xff]   ;;  %v1778_v6 = vld [vmem:[%s1945_s6 + $0x38] ss:$20 sps:$4 sm:$0xff]   ;;  %v1781_v9 = vld [vmem:[%s1945_s6 + $0x100] ss:$20 sps:$4 sm:$0xff]  }
  0x24   : > { %1570 = vmatpush3.bf16.msra.mxu1 %v1715_v23  ;;  %1507 = vmatprep.subr.bf16.mxu0 %v1716_v24  ;;  %v1777_v5 = vld [vmem:[%s1945_s6 + $0xb0] ss:$20 sps:$4 sm:$0xff]   ;;  %v1779_v7 = vld [vmem:[%s1945_s6 + $0xd8] ss:$20 sps:$4 sm:$0xff]   ;;  %v1782_v10 = vld [vmem:[%s1945_s6 + $0x88] ss:$20 sps:$4 sm:$0xff]  }
  0x25   : > { %1571 = vmatprep.subr.bf16.mxu1 %v1717_v25  ;;  %v1783_v11 = vld [vmem:[%s1945_s6 + $0x128] ss:$20 sps:$4 sm:$0xff]   ;;  %v2016_v14 = vld [vmem:[%s2109_s2] ss:$0 sm:$0xff] }
  0x27   : > { %1508 = vmatpush3.bf16.msra.mxu0 %v1718_v26 }
  0x28   : > { %1572 = vmatpush3.bf16.msra.mxu1 %v1719_v27  ;;  %1509 = vmatprep.subr.bf16.mxu0 %v1720_v28 }
  0x29   : > { %1573 = vmatprep.subr.bf16.mxu1 %v1721_v29 }
  0x2b   : > { %1510 = vmatpush3.bf16.msra.mxu0 %v1722_v30 }
  0x2c   : > { %1574 = vmatpush3.bf16.msra.mxu1 %v1723_v31  ;;  %1635 = vmatprep.subr.bf16.mxu0 %v1730_v36 }
  0x2d   : > { %1659 = vmatprep.subr.bf16.mxu1 %v1730_v36 }
  0x2e   : > { %830 = vmatmul.mubr.bf16.vlgmr.msra.gmra.mxu0 %v1724_v32 }
  0x2f   : > { %927 = vmatmul.mubr.bf16.vlgmr.msra.gmra.mxu1 %v1727_v34  ;;  %1636 = vmatpush3.bf16.msra.mxu0 %v1730_v36 }
  0x30   : > { %1663 = vmatpush3.bf16.msra.mxu1 %v1730_v36  ;;  %837 = vmatprep.mubr.bf16.mxu0 %v1731_v37 }
  0x31   : > { %934 = vmatprep.mubr.bf16.mxu1 %v1733_v38  ;;  %1637 = vmatprep.subr.bf16.mxu0 %v1743_v42 }
  0x32   : > { %1660 = vmatprep.subr.bf16.mxu1 %v1743_v42 }
  0x33   : > { %1638 = vmatpush3.bf16.msra.mxu0 %v1743_v42 }
  0x34   : > { %1664 = vmatpush3.bf16.msra.mxu1 %v1743_v42  ;;  %1639 = vmatprep.subr.bf16.mxu0 %v1756_v46 }
  0x35   : > { %1661 = vmatprep.subr.bf16.mxu1 %v1756_v46 }
  0x36   : > { %838 = vmatmul.mubr.bf16.gmra.mxu0 %v1735_v39 }
  0x37   : > { %935 = vmatmul.mubr.bf16.gmra.mxu1 %v1736_v40  ;;  %845 = vmatprep.mubr.bf16.mxu0 %v1737_v41 }
  0x38   : > { %942 = vmatprep.mubr.bf16.mxu1 %v1739_v43  ;;  %1640 = vmatpush3.bf16.msra.mxu0 %v1756_v46 }
  0x39   : > { %1665 = vmatpush3.bf16.msra.mxu1 %v1756_v46  ;;  %1641 = vmatprep.subr.bf16.mxu0 %v1769_v49 }
  0x3a   : > { %1662 = vmatprep.subr.bf16.mxu1 %v1769_v49 }
  0x3c   : > { %1642 = vmatpush3.bf16.msra.mxu0 %v1769_v49 }
  0x3d   : > { %1666 = vmatpush3.bf16.msra.mxu1 %v1769_v49 }
  0x3e   : > { %846 = vmatmul.mubr.bf16.gmra.mxu0 %v1741_v44 }
  0x3f   : > { %943 = vmatmul.mubr.bf16.gmra.mxu1 %v1742_v45  ;;  %853 = vmatprep.mubr.bf16.mxu0 %v1744_v47 }
  0x40   : > { %950 = vmatprep.mubr.bf16.mxu1 %v1746_v48 }
  0x46   : > { %854 = vmatmul.mubr.bf16.gmra.mxu0 %v1748_v50 }
  0x47   : > { %951 = vmatmul.mubr.bf16.gmra.mxu1 %v1749_v51  ;;  %861 = vmatprep.mubr.bf16.mxu0 %v1750_v52 }
  0x48   : > { %958 = vmatprep.mubr.bf16.mxu1 %v1752_v53 }
  0x4e   : > { %862 = vmatmul.mubr.bf16.gmra.mxu0 %v1754_v54 }
  0x4f   : > { %959 = vmatmul.mubr.bf16.gmra.mxu1 %v1755_v55  ;;  %869 = vmatprep.mubr.bf16.mxu0 %v1757_v56 }
  0x50   : > { %966 = vmatprep.mubr.bf16.mxu1 %v1759_v57 }
  0x56   : > { %870 = vmatmul.mubr.bf16.gmra.mxu0 %v1761_v58 }
  0x57   : > { %967 = vmatmul.mubr.bf16.gmra.mxu1 %v1762_v59  ;;  %877 = vmatprep.mubr.bf16.mxu0 %v1763_v60 }
  0x58   : > { %974 = vmatprep.mubr.bf16.mxu1 %v1765_v61 }
  0x5e   : > { %878 = vmatmul.mubr.bf16.gmra.mxu0 %v1767_v62 }
  0x5f   : > { %975 = vmatmul.mubr.bf16.gmra.mxu1 %v1768_v63  ;;  %885 = vmatprep.mubr.bf16.mxu0 %v1770_v0 }
  0x60   : > { %982 = vmatprep.mubr.bf16.mxu1 %v1772_v1 }
  0x66   : > { %886 = vmatmul.mubr.bf16.gmra.mxu0 %v1774_v2 }
  0x67   : > { %983 = vmatmul.mubr.bf16.gmra.mxu1 %v1775_v3  ;;  %1643 = vmatprep.mubr.msk.bf16.mxu0 %vm772_vm0, %v1776_v4 }
  0x68   : > { %1651 = vmatprep.mubr.msk.bf16.mxu1 %vm772_vm0, %v1777_v5 }
  0x6e   : > { %1644 = vmatmul.mubr.msk.bf16.vlgmr.msra.gmra.mxu0 %vm772_vm0, %v1778_v6 }
  0x6f   : > { %1652 = vmatmul.mubr.msk.bf16.vlgmr.msra.gmra.mxu1 %vm772_vm0, %v1779_v7  ;;  %1647 = vmatprep.mubr.msk.bf16.mxu0 %vm772_vm0, %v1780_v8 }
  0x70   : > { %1655 = vmatprep.mubr.msk.bf16.mxu1 %vm772_vm0, %v1781_v9 }
  0x76   : > { %1648 = vmatmul.mubr.msk.bf16.gmra.mxu0 %vm772_vm0, %v1782_v10 }
  0x77   : > { %1656 = vmatmul.mubr.msk.bf16.gmra.mxu1 %vm772_vm0, %v1783_v11 }
  0xee   : > { %v1511_v12 = vpop.f32.mrf.mxu0 }
  0xef   : > { %v1575_v13 = vpop.f32.mrf.mxu1 }
  0xf0   : > { %v1512_v15 = vpop.f32.mrf.mxu0 }
  0xf1   : > { %v1513_v16 = vadd.f32 %v1512_v15, %v1511_v12  ;;  %v1576_v17 = vpop.f32.mrf.mxu1 }
  0xf2   : > { %v1514_v18 = vpop.f32.mrf.mxu0  ;;  %v1577_v20 = vadd.f32 %v1576_v17, %v1575_v13 }
  0xf3   : > { %v832_v19 = vadd.f32 %v1513_v16, %v2016_v14  ;;  %v1578_v21 = vpop.f32.mrf.mxu1 }
  0xf4   : > { %v1515_v22 = vpop.f32.mrf.mxu0 }
  0xf5   : > { %v1579_v23 = vpop.f32.mrf.mxu1  ;;  %v2019_v24 = vadd.f32 %v1577_v20, %v832_v19  ;;  %v1516_v3 = vadd.f32 %v1515_v22, %v1514_v18 }
  0xf6   : > { %v1517_v25 = vpop.f32.mrf.mxu0  ;;  %v1580_v13 = vadd.f32 %v1579_v23, %v1578_v21 }
  0xf7   : > { %2111 = vst [vmem:[#allocation2_spill] sm:$0xff] %v2019_v24  ;;  %v1581_v26 = vpop.f32.mrf.mxu1  ;;  %v835_v12 = vadd.f32 %v1516_v3, %v2016_v14 }
  0xf8   : > { %v1518_v27 = vpop.f32.mrf.mxu0 }
  0xf9   : > { %v1582_v28 = vpop.f32.mrf.mxu1  ;;  %v1519_v4 = vadd.f32 %v1518_v27, %v1517_v25 }
  0xfa   : > { %v1520_v29 = vpop.f32.mrf.mxu0  ;;  %v1583_v19 = vadd.f32 %v1582_v28, %v1581_v26  ;;  %v2040_v28 = vadd.f32 %v1580_v13, %v835_v12 }
  0xfb   : > { %v1584_v30 = vpop.f32.mrf.mxu1  ;;  %v840_v15 = vadd.f32 %v1519_v4, %v2016_v14 }
  0xfc   : > { %v1521_v31 = vpop.f32.mrf.mxu0 }
  0xfd   : > { %v1585_v32 = vpop.f32.mrf.mxu1  ;;  %v1522_v5 = vadd.f32 %v1521_v31, %v1520_v29  ;;  %v937_v24 = vadd.f32 %v1583_v19, %v840_v15 }
  0xfe   : > { %v1523_v33 = vpop.f32.mrf.mxu0  ;;  %v1586_v20 = vadd.f32 %v1585_v32, %v1584_v30 }
  0xff   : > { %v1587_v34 = vpop.f32.mrf.mxu1  ;;  %v843_v16 = vadd.f32 %v1522_v5, %v2016_v14 }
 0x100   : > { %v1524_v35 = vpop.f32.mrf.mxu0 }
 0x101   : > { %v1588_v36 = vpop.f32.mrf.mxu1  ;;  %v1525_v7 = vadd.f32 %v1524_v35, %v1523_v33  ;;  %v940_v26 = vadd.f32 %v1586_v20, %v843_v16 }
 0x102   : > { %v1526_v37 = vpop.f32.mrf.mxu0 }
 0x103   : > { %v2021_v38 = vpop.f32.mrf.mxu1  ;;  %v848_v18 = vadd.f32 %v1525_v7, %v2016_v14 }
 0x104   : > { %v1527_v39 = vpop.f32.mrf.mxu0 }
 0x105   : > { %v1591_v40 = vpop.f32.mrf.mxu1  ;;  %v1528_v27 = vadd.f32 %v1527_v39, %v1526_v37 }
 0x106   : > { %v1529_v41 = vpop.f32.mrf.mxu0  ;;  %v2043_v30 = vadd.f32 %v1591_v40, %v2021_v38 }
 0x107   : > { %v1593_v42 = vpop.f32.mrf.mxu1 }
 0x108   : > { %v1530_v43 = vpop.f32.mrf.mxu0 }
 0x109   : > { %v1594_v44 = vpop.f32.mrf.mxu1  ;;  %v1531_v9 = vadd.f32 %v1530_v43, %v1529_v41  ;;  %v1589_v41 = vadd.f32 %v1588_v36, %v1587_v34  ;;  %v2049_v34 = vadd.f32 %v1528_v27, %v2016_v14 }
 0x10a   : > { %v1532_v45 = vpop.f32.mrf.mxu0  ;;  %v1595_v4 = vadd.f32 %v1594_v44, %v1593_v42 }
 0x10b   : > { %v2023_v46 = vpop.f32.mrf.mxu1  ;;  %v856_v29 = vadd.f32 %v1531_v9, %v2016_v14 }
 0x10c   : > { %v1533_v47 = vpop.f32.mrf.mxu0 }
 0x10d   : > { %v2025_v48 = vpop.f32.mrf.mxu1  ;;  %v1534_v22 = vadd.f32 %v1533_v47, %v1532_v45  ;;  %v2046_v45 = vadd.f32 %v1589_v41, %v848_v18  ;;  %v2053_v47 = vadd.f32 %v1595_v4, %v856_v29 }
 0x10e   : > { %v1535_v49 = vpop.f32.mrf.mxu0  ;;  %v1598_v38 = vadd.f32 %v2025_v48, %v2023_v46 }
 0x10f   : > { %v2027_v50 = vpop.f32.mrf.mxu1  ;;  %v859_v32 = vadd.f32 %v1534_v22, %v2016_v14 }
 0x110   : > { %v1536_v51 = vpop.f32.mrf.mxu0 }
 0x111   : > { %v2029_v52 = vpop.f32.mrf.mxu1  ;;  %v1537_v31 = vadd.f32 %v1536_v51, %v1535_v49  ;;  %v2065_v7 = vadd.f32 %v1598_v38, %v859_v32 }
 0x112   : > { %v1538_v53 = vpop.f32.mrf.mxu0 }
 0x113   : > { %v2031_v54 = vpop.f32.mrf.mxu1  ;;  %v864_v36 = vadd.f32 %v1537_v31, %v2016_v14 }
 0x114   : > { %v1539_v55 = vpop.f32.mrf.mxu0 }
 0x115   : > { %v2033_v56 = vpop.f32.mrf.mxu1  ;;  %v1540_v43 = vadd.f32 %v1539_v55, %v1538_v53  ;;  %v1601_v55 = vadd.f32 %v2029_v52, %v2027_v50 }
 0x116   : > { %v1541_v57 = vpop.f32.mrf.mxu0 }
 0x117   : > { %v1605_v58 = vpop.f32.mrf.mxu1  ;;  %v867_v40 = vadd.f32 %v1540_v43, %v2016_v14  ;;  %v961_v16 = vadd.f32 %v1601_v55, %v864_v36 }
 0x118   : > { %v1542_v59 = vpop.f32.mrf.mxu0 }
 0x119   : > { %v1606_v60 = vpop.f32.mrf.mxu1  ;;  %v1543_v33 = vadd.f32 %v1542_v59, %v1541_v57 }
 0x11a   : > { %v1544_v61 = vpop.f32.mrf.mxu0  ;;  %v1607_v57 = vadd.f32 %v1606_v60, %v1605_v58 }
 0x11b   : > { %v1608_v62 = vpop.f32.mrf.mxu1  ;;  %v872_v42 = vadd.f32 %v1543_v33, %v2016_v14 }
 0x11c   : > { %v1545_v63 = vpop.f32.mrf.mxu0 }
 0x11d   : > { %v1609_v0 = vpop.f32.mrf.mxu1  ;;  %v1546_v21 = vadd.f32 %v1545_v63, %v1544_v61  ;;  %v969_v15 = vadd.f32 %v1607_v57, %v872_v42 }
 0x11e   : > { %v1547_v1 = vpop.f32.mrf.mxu0 }
 0x11f   : > { %v1611_v2 = vpop.f32.mrf.mxu1  ;;  %v875_v49 = vadd.f32 %v1546_v21, %v2016_v14 }
 0x120   : > { %v1548_v6 = vpop.f32.mrf.mxu0 }
 0x121   : > { %v1612_v8 = vpop.f32.mrf.mxu1  ;;  %v1549_v23 = vadd.f32 %v1548_v6, %v1547_v1  ;;  %v1604_v1 = vadd.f32 %v2033_v56, %v2031_v54  ;;  %v1610_v6 = vadd.f32 %v1609_v0, %v1608_v62 }
 0x122   : > { %v1550_v10 = vpop.f32.mrf.mxu0  ;;  %v1613_v46 = vadd.f32 %v1612_v8, %v1611_v2  ;;  %v2112_v8 = vld [vmem:[#allocation2_spill] sm:$0xff] }
 0x123   : > { %v1614_v11 = vpop.f32.mrf.mxu1  ;;  %v880_v51 = vadd.f32 %v1549_v23, %v2016_v14  ;;  %v972_v52 = vadd.f32 %v1610_v6, %v875_v49  ;;  %v964_v58 = vadd.f32 %v1604_v1, %v867_v40 }
 0x124   : > { %v1551_v17 = vpop.f32.mrf.mxu0 }
 0x125   : > { %v1615_v25 = vpop.f32.mrf.mxu1  ;;  %v1552_v59 = vadd.f32 %v1551_v17, %v1550_v10  ;;  %v977_v60 = vadd.f32 %v1613_v46, %v880_v51 }
 0x126   : > { %v1553_v35 = vpop.f32.mrf.mxu0  ;;  %v2070_v17 = vadd.f32 %v1615_v25, %v1614_v11 }
 0x127   : > { %v1617_v3 = vpop.f32.mrf.mxu1  ;;  %v2068_v10 = vadd.f32 %v1552_v59, %v2016_v14 }
 0x128   : > { %v1554_v5 = vpop.f32.mrf.mxu0 }
 0x129   : > { %v1555_v37 = vadd.f32 %v1554_v5, %v1553_v35  ;;  %v1618_v39 = vpop.f32.mrf.mxu1 }
 0x12a   : > { %v1556_v44 = vpop.f32.mrf.mxu0  ;;  %v1619_v9 = vadd.f32 %v1618_v39, %v1617_v3 }
 0x12b   : > { %v1620_v53 = vpop.f32.mrf.mxu1  ;;  %v888_v61 = vadd.f32 %v1555_v37, %v2016_v14 }
 0x12c   : > { %v1557_v63 = vpop.f32.mrf.mxu0 }
 0x12d   : > { %v1621_v48 = vpop.f32.mrf.mxu1  ;;  %v1558_v12 = vadd.f32 %v1557_v63, %v1556_v44  ;;  %v985_v62 = vadd.f32 %v1619_v9, %v888_v61 }
 0x12e   : > { %v1645_v13 = vpop.f32.mrf.mxu0  ;;  %v1622_v0 = vadd.f32 %v1621_v48, %v1620_v53 }
 0x12f   : > { %v1034_v19 = vadd.f32 %v1645_v13, %v937_v24  ;;  %v1653_v50 = vpop.f32.mrf.mxu1  ;;  %v891_v24 = vadd.f32 %v1558_v12, %v2016_v14 }
 0x130   : > { %v1066_v54 = vadd.f32 %v1653_v50, %v969_v15  ;;  %v1025_v56 = vpop.f32.mrf.mxu0  ;;  %v948_v15 = vadd.f32 %v2043_v30, %v2049_v34 }
 0x131   : > { %vm1090_vm1 = vcmp.ge.f32.partialorder %v1034_v19, 0.0  ;;  %v1106_v2 = vmul.f32 0.01, %v1034_v19  ;;  %v1026_v20 = vadd.f32 %v1025_v56, %v2112_v8  ;;  %v1057_v18 = vpop.f32.mrf.mxu1  ;;  %v988_v13 = vadd.f32 %v1622_v0, %v891_v24 }
 0x132   : > { %vm1098_vm2 = vcmp.ge.f32.partialorder %v1066_v54, 0.0  ;;  %v1114_v22 = vmul.f32 0.01, %v1066_v54  ;;  %v1058_v27 = vadd.f32 %v1057_v18, %v961_v16  ;;  %v1646_v29 = vpop.f32.mrf.mxu0 }
 0x133   : > { %v1122_v31 = vsel %vm1090_vm1, %v1034_v19, %v1106_v2  ;;  %vm1088_vm3 = vcmp.ge.f32.partialorder %v1026_v20, 0.0  ;;  %v1104_v11 = vmul.f32 0.01, %v1026_v20  ;;  %v1037_v25 = vadd.f32 %v1646_v29, %v940_v26  ;;  %v1654_v33 = vpop.f32.mrf.mxu1 }
 0x134   : > { %v1130_v35 = vsel %vm1098_vm2, %v1066_v54, %v1114_v22  ;;  %vm1096_vm4 = vcmp.ge.f32.partialorder %v1058_v27, 0.0  ;;  %v1112_v41 = vmul.f32 0.01, %v1058_v27  ;;  %v1069_v43 = vadd.f32 %v1654_v33, %v972_v52  ;;  %v1028_v21 = vpop.f32.mrf.mxu0 }
 0x135   : > { %v1120_v23 = vsel %vm1088_vm3, %v1026_v20, %v1104_v11  ;;  %vm1091_vm5 = vcmp.ge.f32.partialorder %v1037_v25, 0.0  ;;  %v1107_v3 = vmul.f32 0.01, %v1037_v25  ;;  %v1029_v14 = vadd.f32 %v1028_v21, %v2040_v28  ;;  %v1060_v4 = vpop.f32.mrf.mxu1 }
 0x136   : > { %v1128_v5 = vsel %vm1096_vm4, %v1058_v27, %v1112_v41  ;;  %vm1099_vm6 = vcmp.ge.f32.partialorder %v1069_v43, 0.0  ;;  %v1115_v32 = vmul.f32 0.01, %v1069_v43  ;;  %v1061_v37 = vadd.f32 %v1060_v4, %v964_v58  ;;  %v1649_v39 = vpop.f32.mrf.mxu0 }
 0x137   : > { %v1123_v26 = vsel %vm1091_vm5, %v1037_v25, %v1107_v3  ;;  %vm1089_vm7 = vcmp.ge.f32.partialorder %v1029_v14, 0.0  ;;  %v1105_v36 = vmul.f32 0.01, %v1029_v14  ;;  %v1050_v42 = vadd.f32 %v1649_v39, %v2053_v47  ;;  %v1657_v44 = vpop.f32.mrf.mxu1 }
 0x138   : > { %v1456_v38 = vpack.c.bf16 %v1123_v26, %v1122_v31  ;;  %v1131_v28 = vsel %vm1099_vm6, %v1069_v43, %v1115_v32  ;;  %vm1097_vm8 = vcmp.ge.f32.partialorder %v1061_v37, 0.0  ;;  %v1113_v40 = vmul.f32 0.01, %v1061_v37  ;;  %v1041_v49 = vpop.f32.mrf.mxu0 }
 0x139   : > { %v1476_v51 = vpack.c.bf16 %v1131_v28, %v1130_v35  ;;  %v1121_v53 = vsel %vm1089_vm7, %v1029_v14, %v1105_v36  ;;  %vm1094_vm9 = vcmp.ge.f32.partialorder %v1050_v42, 0.0  ;;  %v1110_v55 = vmul.f32 0.01, %v1050_v42  ;;  %v1073_v57 = vpop.f32.mrf.mxu1 }
 0x13a   : > { %1488 = vst [vmem:[%s2079_s29 + $0x8] sm:$0xff] %v1456_v38   ;;  %v1451_v59 = vpack.c.bf16 %v1121_v53, %v1120_v23  ;;  %v1129_v61 = vsel %vm1097_vm8, %v1061_v37, %v1113_v40  ;;  %v1082_v63 = vadd.f32 %v1657_v44, %v985_v62  ;;  %v1042_v47 = vadd.f32 %v1041_v49, %v2046_v45  ;;  %v1650_v1 = vpop.f32.mrf.mxu0 }
 0x13b   : > { %1492 = vst [vmem:[%s2079_s29 + $0x28] sm:$0xff] %v1476_v51   ;;  %v1471_v6 = vpack.c.bf16 %v1129_v61, %v1128_v5  ;;  %v1074_v46 = vadd.f32 %v1073_v57, %v977_v60  ;;  %v1053_v48 = vadd.f32 %v1650_v1, %v2065_v7  ;;  %v1658_v9 = vpop.f32.mrf.mxu1  ;;  %v1126_v12 = vsel %vm1094_vm9, %v1050_v42, %v1110_v55 }
 0x13c   : > { %1452 = vst [vmem:[%s2079_s29] sm:$0xff] %v1451_v59   ;;  %v1044_v16 = vpop.f32.mrf.mxu0  ;;  %v980_v19 = vadd.f32 %v2070_v17, %v2068_v10  ;;  %vm1102_vm10 = vcmp.ge.f32.partialorder %v1082_v63, 0.0  ;;  %v1118_v45 = vmul.f32 0.01, %v1082_v63  ;;  %vm1092_vm12 = vcmp.ge.f32.partialorder %v1042_v47, 0.0 }
 0x13d   : > { %1491 = vst [vmem:[%s2079_s29 + $0x20] sm:$0xff] %v1471_v6   ;;  %vm1095_vm11 = vcmp.ge.f32.partialorder %v1053_v48, 0.0  ;;  %v1111_v50 = vmul.f32 0.01, %v1053_v48  ;;  %v1076_v52 = vpop.f32.mrf.mxu1  ;;  %v1108_v58 = vmul.f32 0.01, %v1042_v47  ;;  %v1085_v7 = vadd.f32 %v1658_v9, %v988_v13 }
 0x13e   : > { %v1045_v60 = vadd.f32 %v1044_v16, %v948_v15  ;;  %vm1100_vm13 = vcmp.ge.f32.partialorder %v1074_v46, 0.0  ;;  %v1116_v54 = vmul.f32 0.01, %v1074_v46  ;;  %v1077_v62 = vadd.f32 %v1076_v52, %v980_v19 }
 0x13f   : > { %v1127_v56 = vsel %vm1095_vm11, %v1053_v48, %v1111_v50  ;;  %vm1103_vm14 = vcmp.ge.f32.partialorder %v1085_v7, 0.0  ;;  %v1119_v34 = vmul.f32 0.01, %v1085_v7  ;;  %v1134_v0 = vsel %vm1102_vm10, %v1082_v63, %v1118_v45 }
 0x140   : > { %v1466_v30 = vpack.c.bf16 %v1127_v56, %v1126_v12  ;;  %vm1093_vm15 = vcmp.ge.f32.partialorder %v1045_v60, 0.0  ;;  %v1109_v10 = vmul.f32 0.01, %v1045_v60  ;;  %vm1101_vm0 = vcmp.ge.f32.partialorder %v1077_v62, 0.0 }
 0x141   : > { %v1117_v17 = vmul.f32 0.01, %v1077_v62  ;;  %v1124_v2 = vsel %vm1092_vm12, %v1042_v47, %v1108_v58  ;;  %v1135_v8 = vsel %vm1103_vm14, %v1085_v7, %v1119_v34  ;;  %v1132_v20 = vsel %vm1100_vm13, %v1074_v46, %v1116_v54 }
 0x142   : > { %1490 = vst [vmem:[%s2079_s29 + $0x18] sm:$0xff] %v1466_v30   ;;  %v1486_v18 = vpack.c.bf16 %v1135_v8, %v1134_v0  ;;  %v1125_v24 = vsel %vm1093_vm15, %v1045_v60, %v1109_v10 }
 0x143   : > { %v1133_v22 = vsel %vm1101_vm0, %v1077_v62, %v1117_v17  ;;  %v1461_v27 = vpack.c.bf16 %v1125_v24, %v1124_v2 }
 0x144   : > { %v1481_v29 = vpack.c.bf16 %v1133_v22, %v1132_v20  ;;  %1494 = vst [vmem:[%s2079_s29 + $0x38] sm:$0xff] %v1486_v18  }
 0x145   : > { %1489 = vst [vmem:[%s2079_s29 + $0x10] sm:$0xff] %v1461_v27  }
 0x146   : > { %1493 = vst [vmem:[%s2079_s29 + $0x30] sm:$0xff] %v1481_v29  }
 0x147 PF: > { %s13_s14 = sadd.s32 1, %s1806_s14   ;;  %s2113_s12 = smov %s1802_s13 }
 0x148   : > { %p10_p5 = scmp.ge.s32.totalorder %s13_s14, 9   ;;  %s2114_s13 = smov %s2116_s15 }
 0x14a   :  { %12 = sbr.rel (!%p10_p5) target bundleno = 2 (0x2), region = 68 }

// kernel: ocr_forward.12
= control target key start
LH: loop header
LB: loop body
LE: loop exit
PB: predicated region body
PF: predicated region fallthrough
CT: control target
= control target key end

     0   :  { %s1464_s12 = smov 0   ;;  %s1466_s13 = smov 0   ;;  %s1713_s0 = inlined_call_operand.vmem [shape: bf16[2,30,17,64], index: 0, kind: input, shape index: {}]   ;;  %s1714_s1 = inlined_call_operand.vmem [shape: bf16[576,128], index: 1, kind: input, shape index: {}]   ;;  %s1715_s2 = inlined_call_operand.vmem [shape: f32[1,128], index: 2, kind: input, shape index: {}]   ;;  %s1716_s3 = inlined_call_operand.vmem [shape: bf16[2,28,15,128], index: 3, kind: output, shape index: {}]  }
   0x1   :  { %s1468_s14 = smov 0   ;;  %s1470_s15 = smov 0  }
   0x2   :  { %s1472_s16 = smov 0  }
   0x3 LB: > { %s22_s17 = sadd.s32 1, %s1432_s14  ;;  %s25_s18 = sadd.s32 1, %s1436_s15  ;;  %s1440_s16 = sphi %s1472_s16, %s13_s16   ;;  %s1436_s15 = sphi %s1470_s15, %s1720_s15   ;;  %s1432_s14 = sphi %s1468_s14, %s1719_s14   ;;  %s1428_s13 = sphi %s1466_s13, %s1718_s13   ;;  %s1424_s12 = sphi %s1464_s12, %s1717_s12  }
   0x4   : > { %p23_p0 = scmp.ge.s32.totalorder %s22_s17, 28  ;;  %p1093_p1 = scmp.ge.s32.totalorder %s1440_s16, 1 }
   0x5   : > { %p151_p2 = scmp.lt.s32.totalorder %s1440_s16, 57 }
   0x6   : > { %s1722_s17 = smov (%p23_p0, %s22_s17), 0  ;;  %s1724_s18 = smov (!%p23_p0, %s25_s18), %s1436_s15 }
   0x7   : > { %p152_p3 = pnand %p1093_p1, %p151_p2  ;;  %p27_p4 = scmp.ge.s32.totalorder %s1724_s18, 2 }
   0x8   : > { %p179_p5 = scmp.lt.s32.totalorder (!%p152_p3), %s1428_s13, 1  ;;  %s1160_s27 = smul.u32 (!%p152_p3), 12, %s1424_s12 }
   0x9   : > { %s1726_s18 = smov (%p27_p4, %s1724_s18), 0  ;;  %155 = sbr.rel (%p152_p3) target bundleno = 303 (0x12f), region = 32 }
   0xa   : > { %p186_p6 = scmp.lt.s32.totalorder (!%p152_p3), %s1424_s12, 27 }
   0xe   : > { %v1360_v0 = vld [vmem:[%s1714_s1 + $0x38] sm:$0xff]   ;;  %v1442_v1 = vmov 0.0   ;;  %v1362_v3 = vld [vmem:[%s1714_s1 + $0x30] sm:$0xff]   ;;  %vm1443_vm0 = vmmov 0   ;;  %s1728_s13 = smov (!%p179_p5, %s1428_s13), 1  ;;  %v1364_v5 = vld [vmem:[%s1714_s1 + $0x28] sm:$0xff]  }
   0xf   : > { %1208 = vmatprep.subr.bf16.mxu0 %v1442_v1  ;;  %1220 = vmatprep.subr.bf16.mxu1 %v1442_v1  ;;  %v1361_v2 = vld [vmem:[%s1714_s1 + $0x18] sm:$0xff]   ;;  %v1363_v4 = vld [vmem:[%s1714_s1 + $0x10] sm:$0xff]   ;;  %s1316_s30 = smul.u32 360, %s1728_s13  ;;  %v1365_v6 = vld [vmem:[%s1714_s1 + $0x8] sm:$0xff]   ;;  %vm252_vm1 = vcmask 523264   ;;  %vm375_vm2 = vcmask 1046528  }
  0x10   : > { %1209 = vmatpush3.bf16.msra.mxu0 %v1360_v0  ;;  %1216 = vmatprep.mubr.msk.bf16.mxu0 %vm1443_vm0, %v1442_v1  ;;  %v1366_v7 = vld [vmem:[%s1714_s1 + $0x20] sm:$0xff]   ;;  %v1369_v13 = vld [vmem:[%s1714_s1 + $0x58] sm:$0xff]   ;;  %v1371_v16 = vld [vmem:[%s1714_s1 + $0x50] sm:$0xff]   ;;  %s1730_s12 = smov (!%p186_p6, %s1424_s12), 27  ;;  %vm989_vm4 = vcmask 1043456  }
  0x11   : > { %1221 = vmatpush3.bf16.msra.mxu1 %v1361_v2  ;;  %1210 = vmatprep.subr.bf16.mxu0 %v1442_v1  ;;  %s183_s8 = scalar_lea.vmem %s1713_s0, %s1316_s30  ;;  %v1367_v9 = vld [vmem:[%s1714_s1] sm:$0xff]   ;;  %v1370_v14 = vld [vmem:[%s1714_s1 + $0x78] sm:$0xff]   ;;  %v1372_v17 = vld [vmem:[%s1714_s1 + $0x70] sm:$0xff]   ;;  %s1095_s20 = sshll.u32 %s1730_s12, 1  ;;  %vm990_vm5 = vsmask.f32 3328 }
  0x12   : > { %1222 = vmatprep.subr.bf16.mxu1 %v1442_v1  ;;  %1228 = vmatprep.mubr.msk.bf16.mxu1 %vm1443_vm0, %v1442_v1  ;;  %s1538_s11 = scalar_lea.vmem %s183_s8, %s1160_s27  ;;  %v1373_v19 = vld [vmem:[%s1714_s1 + $0x48] sm:$0xff]   ;;  %v1375_v21 = vld [vmem:[%s1714_s1 + $0x40] sm:$0xff]   ;;  %v1378_v25 = vld [vmem:[%s1714_s1 + $0x98] sm:$0xff]  }
  0x13   : > { %v1368_v8 = vld [vmem:[%s1538_s11] sm:$0xff]   ;;  %v1377_v18 = vld [vmem:[%s1538_s11 + $0x8] ss:$0 sps:$4 sm:$0x11]   ;;  %v1379_v26 = vld [vmem:[%s1538_s11 + $0xc] sm:$0xff]  }
  0x14   : > { %1211 = vmatpush3.bf16.msra.mxu0 %v1362_v3  ;;  %v222_v10 = vshrl.u32 %v1368_v8, 16  ;;  %v224_v11 = vshll.u32 %v1368_v8, 16  ;;  %v1374_v20 = vld [vmem:[%s1714_s1 + $0x68] sm:$0xff]   ;;  %v376_v22 = vrot.slane %v1368_v8, 1  ;;  %v1376_v23 = vld [vmem:[%s1714_s1 + $0x60] sm:$0xff]   ;;  %v377_v24 = vrot.slane %v1377_v18, 1  ;;  %vm991_vm7 = vmand %vm989_vm4, %vm990_vm5 }
  0x15   : > { %1223 = vmatpush3.bf16.msra.mxu1 %v1363_v4  ;;  %1212 = vmatprep.subr.bf16.mxu0 %v1442_v1  ;;  %v1380_v28 = vld [vmem:[%s1714_s1 + $0xb8] sm:$0xff]   ;;  %v1381_v29 = vld [vmem:[%s1714_s1 + $0x90] sm:$0xff]   ;;  %v1383_v31 = vld [vmem:[%s1714_s1 + $0x88] sm:$0xff]   ;;  %v549_v32 = vshll.u32 %v1379_v26, 16  ;;  %v547_v35 = vshrl.u32 %v1379_v26, 16  ;;  %v634_v39 = vrot.slane %v1379_v26, 1 }
  0x16   : > { %1224 = vmatprep.subr.bf16.mxu1 %v1442_v1  ;;  %v226_v12 = vrot.slane %v224_v11, 1  ;;  %v378_v27 = vsel %vm375_vm2, %v376_v22, %v377_v24  ;;  %v1382_v30 = vld [vmem:[%s1714_s1 + $0xb0] sm:$0xff]   ;;  %v1384_v33 = vld [vmem:[%s1714_s1 + $0xa8] sm:$0xff]   ;;  %v1385_v37 = vld [vmem:[%s1714_s1 + $0x80] sm:$0xff]  }
  0x17   : > { %v1388_v34 = vld [vmem:[%s1538_s11 + $0x14] ss:$0 sps:$4 sm:$0x11]   ;;  %v551_v36 = vrot.slane %v549_v32, 1  ;;  %v1386_v38 = vld [vmem:[%s1714_s1 + $0xa0] sm:$0xff]   ;;  %v1387_v42 = vld [vmem:[%s1714_s1 + $0xd8] sm:$0xff]  }
  0x18   : > { %1213 = vmatpush3.bf16.msra.mxu0 %v1364_v5  ;;  %v227_v15 = vor.u32 %v226_v12, %v222_v10  ;;  %v635_v40 = vrot.slane %v1388_v34, 1  ;;  %v1389_v44 = vld [vmem:[%s1714_s1 + $0xf8] sm:$0xff]   ;;  %v1390_v46 = vld [vmem:[%s1714_s1 + $0xd0] sm:$0xff]   ;;  %v1392_v49 = vld [vmem:[%s1714_s1 + $0xc8] sm:$0xff]  }
  0x19   : > { %1225 = vmatpush3.bf16.msra.mxu1 %v1365_v6  ;;  %1214 = vmatprep.subr.bf16.mxu0 %v1442_v1  ;;  %v552_v41 = vor.u32 %v551_v36, %v547_v35  ;;  %v1396_v45 = vld [vmem:[%s1538_s11 + $0x18] sm:$0xff]   ;;  %v1391_v47 = vld [vmem:[%s1714_s1 + $0xf0] sm:$0xff]   ;;  %v1393_v50 = vld [vmem:[%s1714_s1 + $0xe8] sm:$0xff]  }
  0x1a   : > { %1226 = vmatprep.subr.bf16.mxu1 %v1442_v1  ;;  %v636_v43 = vsel %vm375_vm2, %v634_v39, %v635_v40  ;;  %v807_v48 = vshll.u32 %v1396_v45, 16  ;;  %v805_v51 = vshrl.u32 %v1396_v45, 16  ;;  %v1394_v53 = vld [vmem:[%s1714_s1 + $0xc0] sm:$0xff]   ;;  %v1397_v56 = vld [vmem:[%s1714_s1 + $0x118] sm:$0xff]   ;;  %v1398_v57 = vld [vmem:[%s1714_s1 + $0x110] sm:$0xff]   ;;  %v892_v61 = vrot.slane %v1396_v45, 1 }
  0x1b   : > { %v1395_v54 = vld [vmem:[%s1714_s1 + $0xe0] sm:$0xff]   ;;  %v1399_v58 = vld [vmem:[%s1714_s1 + $0x108] sm:$0xff]  }
  0x1c   : > { %1215 = vmatpush3.bf16.msra.mxu0 %v1366_v7  ;;  %v809_v52 = vrot.slane %v807_v48, 1  ;;  %v1401_v59 = vld [vmem:[%s1538_s11 + $0x20] ss:$0 sps:$4 sm:$0x11]   ;;  %s1317_s11 = smul.u32 56, %s1728_s13 }
  0x1d   : > { %1227 = vmatpush3.bf16.msra.mxu1 %v1367_v9  ;;  %1232 = vmatprep.subr.bf16.mxu0 %v1442_v1  ;;  %v1400_v60 = vld [vmem:[%s1714_s1 + $0x100] sm:$0xff]   ;;  %v893_v62 = vrot.slane %v1401_v59, 1 }
  0x1e   : > { %1244 = vmatprep.subr.bf16.mxu1 %v1442_v1  ;;  %v810_v55 = vor.u32 %v809_v52, %v805_v51  ;;  %s190_s23 = sadd.s32 %s1317_s11, %s1095_s20 }
  0x1f   : > { %1217 = vmatmul.mubr.msk.bf16.vlgmr.msra.gmra.mxu0 %vm252_vm1, %v227_v15  ;;  %v894_v63 = vsel %vm375_vm2, %v892_v61, %v893_v62  ;;  %s1096_s24 = sshll.u32 %s190_s23, 2 }
  0x20   : > { %1229 = vmatmul.mubr.msk.bf16.vlgmr.msra.gmra.mxu1 %vm252_vm1, %v1368_v8  ;;  %1233 = vmatpush3.bf16.msra.mxu0 %v1369_v13  ;;  %s192_s25 = scalar_lea.vmem %s1716_s3, %s1096_s24 }
  0x21   : > { %1245 = vmatpush3.bf16.msra.mxu1 %v1370_v14  ;;  %1234 = vmatprep.subr.bf16.mxu0 %v1442_v1  ;;  %v992_v59 = vld [vmem:[%s192_s25 + $0x4] sm:$0xf] }
  0x22   : > { %1246 = vmatprep.subr.bf16.mxu1 %v1442_v1  ;;  %1240 = vmatprep.mubr.msk.bf16.mxu0 %vm1443_vm0, %v1442_v1 }
  0x23   : > { %1252 = vmatprep.mubr.msk.bf16.mxu1 %vm1443_vm0, %v1442_v1 }
  0x24   : > { %1235 = vmatpush3.bf16.msra.mxu0 %v1371_v16 }
  0x25   : > { %1247 = vmatpush3.bf16.msra.mxu1 %v1372_v17  ;;  %1236 = vmatprep.subr.bf16.mxu0 %v1442_v1 }
  0x26   : > { %1248 = vmatprep.subr.bf16.mxu1 %v1442_v1 }
  0x28   : > { %1237 = vmatpush3.bf16.msra.mxu0 %v1373_v19 }
  0x29   : > { %1249 = vmatpush3.bf16.msra.mxu1 %v1374_v20  ;;  %1238 = vmatprep.subr.bf16.mxu0 %v1442_v1 }
  0x2a   : > { %1250 = vmatprep.subr.bf16.mxu1 %v1442_v1 }
  0x2c   : > { %1239 = vmatpush3.bf16.msra.mxu0 %v1375_v21 }
  0x2d   : > { %1251 = vmatpush3.bf16.msra.mxu1 %v1376_v23  ;;  %1256 = vmatprep.subr.bf16.mxu0 %v1442_v1 }
  0x2e   : > { %1268 = vmatprep.subr.bf16.mxu1 %v1442_v1 }
  0x2f   : > { %1241 = vmatmul.mubr.msk.bf16.vlgmr.msra.gmra.mxu0 %vm252_vm1, %v378_v27 }
  0x30   : > { %1253 = vmatmul.mubr.msk.bf16.vlgmr.msra.gmra.mxu1 %vm252_vm1, %v1379_v26  ;;  %1257 = vmatpush3.bf16.msra.mxu0 %v1378_v25 }
  0x31   : > { %1269 = vmatpush3.bf16.msra.mxu1 %v1380_v28  ;;  %1258 = vmatprep.subr.bf16.mxu0 %v1442_v1 }
  0x32   : > { %1270 = vmatprep.subr.bf16.mxu1 %v1442_v1  ;;  %1264 = vmatprep.mubr.msk.bf16.mxu0 %vm1443_vm0, %v1442_v1 }
  0x33   : > { %1276 = vmatprep.mubr.msk.bf16.mxu1 %vm1443_vm0, %v1442_v1 }
  0x34   : > { %1259 = vmatpush3.bf16.msra.mxu0 %v1381_v29 }
  0x35   : > { %1271 = vmatpush3.bf16.msra.mxu1 %v1382_v30  ;;  %1260 = vmatprep.subr.bf16.mxu0 %v1442_v1 }
  0x36   : > { %1272 = vmatprep.subr.bf16.mxu1 %v1442_v1 }
  0x38   : > { %1261 = vmatpush3.bf16.msra.mxu0 %v1383_v31 }
  0x39   : > { %1273 = vmatpush3.bf16.msra.mxu1 %v1384_v33  ;;  %1262 = vmatprep.subr.bf16.mxu0 %v1442_v1 }
  0x3a   : > { %1274 = vmatprep.subr.bf16.mxu1 %v1442_v1 }
  0x3c   : > { %1263 = vmatpush3.bf16.msra.mxu0 %v1385_v37 }
  0x3d   : > { %1275 = vmatpush3.bf16.msra.mxu1 %v1386_v38  ;;  %1280 = vmatprep.subr.bf16.mxu0 %v1442_v1 }
  0x3e   : > { %1292 = vmatprep.subr.bf16.mxu1 %v1442_v1 }
  0x3f   : > { %1265 = vmatmul.mubr.msk.bf16.vlgmr.msra.gmra.mxu0 %vm252_vm1, %v552_v41 }
  0x40   : > { %1277 = vmatmul.mubr.msk.bf16.vlgmr.msra.gmra.mxu1 %vm252_vm1, %v636_v43  ;;  %1281 = vmatpush3.bf16.msra.mxu0 %v1387_v42 }
  0x41   : > { %1293 = vmatpush3.bf16.msra.mxu1 %v1389_v44  ;;  %1282 = vmatprep.subr.bf16.mxu0 %v1442_v1 }
  0x42   : > { %1294 = vmatprep.subr.bf16.mxu1 %v1442_v1  ;;  %1288 = vmatprep.mubr.msk.bf16.mxu0 %vm1443_vm0, %v1442_v1 }
  0x43   : > { %1300 = vmatprep.mubr.msk.bf16.mxu1 %vm1443_vm0, %v1442_v1 }
  0x44   : > { %1283 = vmatpush3.bf16.msra.mxu0 %v1390_v46  ;;  %v1155_v46 = vld [vmem:[%s1715_s2] ss:$0 sm:$0xff] }
  0x45   : > { %1295 = vmatpush3.bf16.msra.mxu1 %v1391_v47  ;;  %1284 = vmatprep.subr.bf16.mxu0 %v1442_v1 }
  0x46   : > { %1296 = vmatprep.subr.bf16.mxu1 %v1442_v1 }
  0x48   : > { %1285 = vmatpush3.bf16.msra.mxu0 %v1392_v49 }
  0x49   : > { %1297 = vmatpush3.bf16.msra.mxu1 %v1393_v50  ;;  %1286 = vmatprep.subr.bf16.mxu0 %v1442_v1 }
  0x4a   : > { %1298 = vmatprep.subr.bf16.mxu1 %v1442_v1 }
  0x4c   : > { %1287 = vmatpush3.bf16.msra.mxu0 %v1394_v53 }
  0x4d   : > { %1299 = vmatpush3.bf16.msra.mxu1 %v1395_v54  ;;  %1304 = vmatprep.subr.bf16.mxu0 %v1442_v1 }
  0x4f   : > { %1289 = vmatmul.mubr.msk.bf16.vlgmr.msra.gmra.mxu0 %vm252_vm1, %v1396_v45 }
  0x50   : > { %1301 = vmatmul.mubr.msk.bf16.vlgmr.msra.gmra.mxu1 %vm252_vm1, %v810_v55  ;;  %1305 = vmatpush3.bf16.msra.mxu0 %v1397_v56 }
  0x51   : > { %1312 = vmatprep.mubr.msk.bf16.mxu0 %vm1443_vm0, %v1442_v1  ;;  %1306 = vmatprep.subr.bf16.mxu0 %v1442_v1 }
  0x54   : > { %1307 = vmatpush3.bf16.msra.mxu0 %v1398_v57 }
  0x55   : > { %1308 = vmatprep.subr.bf16.mxu0 %v1442_v1 }
  0x58   : > { %1309 = vmatpush3.bf16.msra.mxu0 %v1399_v58 }
  0x59   : > { %1310 = vmatprep.subr.bf16.mxu0 %v1442_v1 }
  0x5c   : > { %1311 = vmatpush3.bf16.msra.mxu0 %v1400_v60 }
  0x5f   : > { %1313 = vmatmul.mubr.msk.bf16.vlgmr.msra.gmra.mxu0 %vm252_vm1, %v894_v63 }
  0xdf   : > { %v290_v0 = vpop.f32.mrf.mxu0 }
  0xe0   : > { %v357_v2 = vpop.f32.mrf.mxu1 }
  0xe1   : > { %v1218_v3 = vpop.f32.mrf.mxu0  ;;  %v358_v24 = vadd.f32 %v357_v2, %v290_v0 }
  0xe2   : > { %v1230_v4 = vpop.f32.mrf.mxu1 }
  0xe3   : > { %v293_v5 = vpop.f32.mrf.mxu0 }
  0xe4   : > { %v360_v6 = vpop.f32.mrf.mxu1 }
  0xe5   : > { %v1219_v7 = vpop.f32.mrf.mxu0  ;;  %v361_v28 = vadd.f32 %v360_v6, %v293_v5 }
  0xe6   : > { %v1231_v8 = vpop.f32.mrf.mxu1 }
  0xef   : > { %v440_v9 = vpop.f32.mrf.mxu0 }
  0xf0   : > { %v530_v10 = vpop.f32.mrf.mxu1  ;;  %v447_v25 = vadd.f32 %v440_v9, %v358_v24 }
  0xf1   : > { %v1242_v11 = vpop.f32.mrf.mxu0 }
  0xf2   : > { %v1254_v12 = vpop.f32.mrf.mxu1  ;;  %v537_v31 = vadd.f32 %v530_v10, %v447_v25 }
  0xf3   : > { %v443_v13 = vpop.f32.mrf.mxu0 }
  0xf4   : > { %v533_v14 = vpop.f32.mrf.mxu1  ;;  %v448_v32 = vadd.f32 %v443_v13, %v361_v28 }
  0xf5   : > { %v1243_v1 = vpop.f32.mrf.mxu0 }
  0xf6   : > { %v1255_v15 = vpop.f32.mrf.mxu1  ;;  %v538_v38 = vadd.f32 %v533_v14, %v448_v32 }
  0xff   : > { %v614_v16 = vpop.f32.mrf.mxu0 }
 0x100   : > { %v698_v17 = vpop.f32.mrf.mxu1  ;;  %v621_v35 = vadd.f32 %v614_v16, %v537_v31 }
 0x101   : > { %v1266_v18 = vpop.f32.mrf.mxu0 }
 0x102   : > { %v1278_v19 = vpop.f32.mrf.mxu1  ;;  %v705_v39 = vadd.f32 %v698_v17, %v621_v35 }
 0x103   : > { %v617_v20 = vpop.f32.mrf.mxu0 }
 0x104   : > { %v701_v21 = vpop.f32.mrf.mxu1  ;;  %v622_v40 = vadd.f32 %v617_v20, %v538_v38 }
 0x105   : > { %v1267_v22 = vpop.f32.mrf.mxu0 }
 0x106   : > { %v1279_v23 = vpop.f32.mrf.mxu1  ;;  %v706_v42 = vadd.f32 %v701_v21, %v622_v40 }
 0x10f   : > { %v788_v26 = vpop.f32.mrf.mxu0 }
 0x110   : > { %v872_v27 = vpop.f32.mrf.mxu1  ;;  %v795_v41 = vadd.f32 %v788_v26, %v705_v39 }
 0x111   : > { %v1290_v29 = vpop.f32.mrf.mxu0 }
 0x112   : > { %v1302_v30 = vpop.f32.mrf.mxu1  ;;  %v879_v43 = vadd.f32 %v872_v27, %v795_v41 }
 0x113   : > { %v791_v33 = vpop.f32.mrf.mxu0 }
 0x114   : > { %v875_v34 = vpop.f32.mrf.mxu1  ;;  %v796_v44 = vadd.f32 %v791_v33, %v706_v42 }
 0x115   : > { %v1291_v36 = vpop.f32.mrf.mxu0 }
 0x116   : > { %v1303_v37 = vpop.f32.mrf.mxu1  ;;  %v880_v49 = vadd.f32 %v875_v34, %v796_v44 }
 0x11f   : > { %v956_v45 = vpop.f32.mrf.mxu0 }
 0x120   : > { %v963_v47 = vadd.f32 %v956_v45, %v879_v43 }
 0x121   : > { %v1314_v48 = vpop.f32.mrf.mxu0 }
 0x122   : > { %v972_v50 = vadd.f32 %v1155_v46, %v963_v47 }
 0x123   : > { %v959_v51 = vpop.f32.mrf.mxu0 }
 0x124   : > { %vm974_vm3 = vcmp.ge.f32.partialorder %v972_v50, 0.0  ;;  %v976_v52 = vmul.f32 0.01, %v972_v50  ;;  %v964_v53 = vadd.f32 %v959_v51, %v880_v49 }
 0x125   : > { %v1315_v54 = vpop.f32.mrf.mxu0 }
 0x126   : > { %v978_v55 = vsel %vm974_vm3, %v972_v50, %v976_v52  ;;  %v973_v56 = vadd.f32 %v1155_v46, %v964_v53 }
 0x127   : > { %v1161_v57 = vpack.c.bf16 %v978_v55, %v978_v55 }
 0x128   : > { %vm975_vm6 = vcmp.ge.f32.partialorder %v973_v56, 0.0  ;;  %v977_v58 = vmul.f32 0.01, %v973_v56 }
 0x129   : > { %988 = vst [vmem:[%s192_s25] sm:$0xf] %v1161_v57 }
 0x12a   : > { %v979_v60 = vsel %vm975_vm6, %v973_v56, %v977_v58 }
 0x12b   : > { %v1162_v61 = vpack.c.bf16 %v979_v60, %v979_v60 }
 0x12d   : > { %v993_v62 = vsel %vm991_vm7, %v1162_v61, %v992_v59 }
 0x12e   : > { %994 = vst [vmem:[%s192_s25 + $0x4] sm:$0xf] %v993_v62 }
 0x12f PF: > { %s13_s16 = sadd.s32 1, %s1440_s16   ;;  %s1717_s12 = smov %s1432_s14 }
 0x130   : > { %p10_p7 = scmp.ge.s32.totalorder %s13_s16, 58   ;;  %s1718_s13 = smov %s1436_s15 }
 0x131   : > { %s1719_s14 = smov %s1722_s17  ;;  %s1720_s15 = smov %s1726_s18 }
 0x132   :  { %12 = sbr.rel (!%p10_p7) target bundleno = 3 (0x3), region = 65 }

// kernel: ocr_forward.13
= control target key start
LH: loop header
LB: loop body
LE: loop exit
PB: predicated region body
PF: predicated region fallthrough
CT: control target
= control target key end

     0   :  { %s1907_s12 = smov 0   ;;  %s1909_s13 = smov 0   ;;  %s2312_s0 = inlined_call_operand.vmem [shape: bf16[2,30,17,128], index: 0, kind: input, shape index: {}]   ;;  %s2313_s1 = inlined_call_operand.vmem [shape: bf16[1152,128], index: 1, kind: input, shape index: {}]   ;;  %s2314_s2 = inlined_call_operand.vmem [shape: f32[1,128], index: 2, kind: input, shape index: {}]   ;;  %s2315_s3 = inlined_call_operand.vmem [shape: bf16[2,28,15,128], index: 3, kind: output, shape index: {}]  }
   0x1   :  { %s1911_s14 = smov 0   ;;  %s1913_s15 = smov 0  }
   0x2   :  { %s1915_s16 = smov 0  }
   0x3 LB: > { %s22_s17 = sadd.s32 1, %s1875_s14  ;;  %s25_s18 = sadd.s32 1, %s1879_s15  ;;  %s1883_s16 = sphi %s1915_s16, %s13_s16   ;;  %s1879_s15 = sphi %s1913_s15, %s2319_s15   ;;  %s1875_s14 = sphi %s1911_s14, %s2318_s14   ;;  %s1871_s13 = sphi %s1909_s13, %s2317_s13   ;;  %s1867_s12 = sphi %s1907_s12, %s2316_s12  }
   0x4   : > { %p23_p0 = scmp.ge.s32.totalorder %s22_s17, 28  ;;  %p1365_p1 = scmp.ge.s32.totalorder %s1883_s16, 1 }
   0x5   : > { %p151_p2 = scmp.lt.s32.totalorder %s1883_s16, 57 }
   0x6   : > { %s2321_s17 = smov (%p23_p0, %s22_s17), 0  ;;  %s2323_s18 = smov (!%p23_p0, %s25_s18), %s1879_s15 }
   0x7   : > { %p152_p3 = pnand %p1365_p1, %p151_p2  ;;  %p27_p4 = scmp.ge.s32.totalorder %s2323_s18, 2 }
   0x8   : > { %p179_p5 = scmp.lt.s32.totalorder (!%p152_p3), %s1871_s13, 1  ;;  %s1459_s7 = smul.u32 (!%p152_p3), 12, %s1867_s12 }
   0x9   : > { %s2325_s18 = smov (%p27_p4, %s2323_s18), 0  ;;  %155 = sbr.rel (%p152_p3) target bundleno = 383 (0x17f), region = 32 }
   0xa   : > { %p186_p6 = scmp.lt.s32.totalorder (!%p152_p3), %s1867_s12, 27 }
   0xe   : > { %v1767_v0 = vld [vmem:[%s2313_s1 + $0x78] sm:$0xff]   ;;  %v1885_v1 = vmov 0.0   ;;  %v1769_v3 = vld [vmem:[%s2313_s1 + $0x70] sm:$0xff]   ;;  %vm1886_vm0 = vmmov 0   ;;  %s2327_s13 = smov (!%p179_p5, %s1871_s13), 1  ;;  %v1771_v5 = vld [vmem:[%s2313_s1 + $0x68] sm:$0xff]  }
   0xf   : > { %1543 = vmatprep.subr.bf16.mxu0 %v1885_v1  ;;  %1563 = vmatprep.subr.bf16.mxu1 %v1885_v1  ;;  %v1768_v2 = vld [vmem:[%s2313_s1 + $0x38] sm:$0xff]   ;;  %v1770_v4 = vld [vmem:[%s2313_s1 + $0x30] sm:$0xff]   ;;  %v1772_v6 = vld [vmem:[%s2313_s1 + $0x28] sm:$0xff]   ;;  %s1723_s4 = smul.u32 360, %s2327_s13  ;;  %vm443_vm1 = vcmask 1046528   ;;  %s2329_s12 = smov (!%p186_p6, %s1867_s12), 27 }
  0x10   : > { %1544 = vmatpush3.bf16.msra.mxu0 %v1767_v0  ;;  %1559 = vmatprep.mubr.msk.bf16.mxu0 %vm1886_vm0, %v1885_v1  ;;  %v1773_v7 = vld [vmem:[%s2313_s1 + $0x60] sm:$0xff]   ;;  %v1775_v9 = vld [vmem:[%s2313_s1 + $0x58] sm:$0xff]   ;;  %v1777_v12 = vld [vmem:[%s2313_s1 + $0x50] sm:$0xff]   ;;  %s1724_s5 = smul.u32 56, %s2327_s13  ;;  %s1367_s6 = sshll.u32 %s2329_s12, 1  ;;  %vm1261_vm3 = vcmask 1043456  }
  0x11   : > { %1564 = vmatpush3.bf16.msra.mxu1 %v1768_v2  ;;  %1545 = vmatprep.subr.bf16.mxu0 %v1885_v1  ;;  %v1774_v8 = vld [vmem:[%s2313_s1 + $0x20] sm:$0xff]   ;;  %s183_s19 = scalar_lea.vmem %s2312_s0, %s1723_s4  ;;  %v1776_v10 = vld [vmem:[%s2313_s1 + $0x18] sm:$0xff]   ;;  %v1778_v13 = vld [vmem:[%s2313_s1 + $0x10] sm:$0xff]   ;;  %vm1262_vm4 = vsmask.f32 3328 }
  0x12   : > { %1565 = vmatprep.subr.bf16.mxu1 %v1885_v1  ;;  %1579 = vmatprep.mubr.msk.bf16.mxu1 %vm1886_vm0, %v1885_v1  ;;  %s1989_s22 = scalar_lea.vmem %s183_s19, %s1459_s7  ;;  %v1779_v15 = vld [vmem:[%s2313_s1 + $0x48] sm:$0xff]   ;;  %v1781_v19 = vld [vmem:[%s2313_s1 + $0x40] sm:$0xff]   ;;  %v1784_v22 = vld [vmem:[%s2313_s1 + $0xb8] sm:$0xff]   ;;  %s190_s9 = sadd.s32 %s1724_s5, %s1367_s6 }
  0x13   : > { %v1997_v11 = vld [vmem:[%s1989_s22] sm:$0xff]   ;;  %v1780_v16 = vld [vmem:[%s2313_s1 + $0x8] sm:$0xff]   ;;  %v1785_v23 = vld [vmem:[%s2313_s1 + $0xf8] sm:$0xff]   ;;  %s1368_s10 = sshll.u32 %s190_s9, 2 }
  0x14   : > { %1546 = vmatpush3.bf16.msra.mxu0 %v1769_v3  ;;  %v240_v14 = vshll.u32 %v1997_v11, 16  ;;  %v238_v17 = vshrl.u32 %v1997_v11, 16  ;;  %v1782_v20 = vld [vmem:[%s2313_s1] sm:$0xff]   ;;  %v1786_v24 = vld [vmem:[%s2313_s1 + $0xb0] sm:$0xff]   ;;  %v1788_v26 = vld [vmem:[%s2313_s1 + $0xa8] sm:$0xff]   ;;  %v444_v37 = vrot.slane %v1997_v11, 1  ;;  %s192_s11 = scalar_lea.vmem %s2315_s3, %s1368_s10 }
  0x15   : > { %1566 = vmatpush3.bf16.msra.mxu1 %v1770_v4  ;;  %1547 = vmatprep.subr.bf16.mxu0 %v1885_v1  ;;  %v1787_v25 = vld [vmem:[%s2313_s1 + $0xf0] sm:$0xff]   ;;  %v1789_v27 = vld [vmem:[%s2313_s1 + $0xe8] sm:$0xff]   ;;  %v1790_v28 = vld [vmem:[%s2313_s1 + $0xa0] sm:$0xff]  }
  0x16   : > { %1567 = vmatprep.subr.bf16.mxu1 %v1885_v1  ;;  %v242_v18 = vrot.slane %v240_v14, 1  ;;  %v1791_v29 = vld [vmem:[%s2313_s1 + $0xe0] sm:$0xff]   ;;  %v1792_v30 = vld [vmem:[%s2313_s1 + $0x98] sm:$0xff]   ;;  %v1794_v32 = vld [vmem:[%s2313_s1 + $0x90] sm:$0xff]  }
  0x17   : > { %v1793_v31 = vld [vmem:[%s2313_s1 + $0xd8] sm:$0xff]   ;;  %v1795_v33 = vld [vmem:[%s2313_s1 + $0xd0] sm:$0xff]   ;;  %v1800_v34 = vld [vmem:[%s1989_s22 + $0x8] ss:$0 sps:$4 sm:$0x11]  }
  0x18   : > { %1548 = vmatpush3.bf16.msra.mxu0 %v1771_v5  ;;  %v243_v21 = vor.u32 %v242_v18, %v238_v17  ;;  %v1796_v35 = vld [vmem:[%s2313_s1 + $0x88] sm:$0xff]   ;;  %v1798_v38 = vld [vmem:[%s2313_s1 + $0x80] sm:$0xff]   ;;  %v445_v39 = vrot.slane %v1800_v34, 1  ;;  %v1801_v41 = vld [vmem:[%s2313_s1 + $0x138] sm:$0xff]  }
  0x19   : > { %1568 = vmatpush3.bf16.msra.mxu1 %v1772_v6  ;;  %1549 = vmatprep.subr.bf16.mxu0 %v1885_v1  ;;  %v1797_v36 = vld [vmem:[%s2313_s1 + $0xc8] sm:$0xff]   ;;  %v1799_v40 = vld [vmem:[%s2313_s1 + $0xc0] sm:$0xff]   ;;  %v1803_v44 = vld [vmem:[%s2313_s1 + $0x178] sm:$0xff]  }
  0x1a   : > { %1569 = vmatprep.subr.bf16.mxu1 %v1885_v1  ;;  %v446_v42 = vsel %vm443_vm1, %v444_v37, %v445_v39  ;;  %v2101_v43 = vld [vmem:[%s1989_s22 + $0xc] sm:$0xff]   ;;  %v1808_v49 = vld [vmem:[%s2313_s1 + $0x120] sm:$0xff]   ;;  %v2137_v51 = vld [vmem:[%s1989_s22 + $0x18] sm:$0xff]  }
  0x1b   : > { %v1804_v45 = vld [vmem:[%s2313_s1 + $0x130] sm:$0xff]   ;;  %v1806_v47 = vld [vmem:[%s2313_s1 + $0x128] sm:$0xff]   ;;  %v1809_v50 = vld [vmem:[%s2313_s1 + $0x160] sm:$0xff]   ;;  %v1142_v53 = vrot.slane %v2137_v51, 1  ;;  %v678_v60 = vshll.u32 %v2101_v43, 16  ;;  %v676_v0 = vshrl.u32 %v2101_v43, 16 }
  0x1c   : > { %1550 = vmatpush3.bf16.msra.mxu0 %v1773_v7  ;;  %v1805_v46 = vld [vmem:[%s2313_s1 + $0x170] sm:$0xff]   ;;  %v1807_v48 = vld [vmem:[%s2313_s1 + $0x168] sm:$0xff]   ;;  %v1844_v52 = vld [vmem:[%s1989_s22 + $0x20] ss:$0 sps:$4 sm:$0x11]   ;;  %v793_v5 = vrot.slane %v2101_v43, 1 }
  0x1d   : > { %1570 = vmatpush3.bf16.msra.mxu1 %v1774_v8  ;;  %1551 = vmatprep.subr.bf16.mxu0 %v1885_v1  ;;  %v1810_v54 = vld [vmem:[%s2313_s1 + $0x118] sm:$0xff]   ;;  %v1143_v56 = vrot.slane %v1844_v52, 1  ;;  %v1812_v58 = vld [vmem:[%s2313_s1 + $0x110] sm:$0xff]   ;;  %v1814_v61 = vld [vmem:[%s2313_s1 + $0x108] sm:$0xff]   ;;  %v680_v2 = vrot.slane %v678_v60, 1 }
  0x1e   : > { %1571 = vmatprep.subr.bf16.mxu1 %v1885_v1  ;;  %v1811_v55 = vld [vmem:[%s2313_s1 + $0x158] sm:$0xff]   ;;  %v1813_v59 = vld [vmem:[%s2313_s1 + $0x150] sm:$0xff]   ;;  %v1815_v62 = vld [vmem:[%s2313_s1 + $0x148] sm:$0xff]  }
  0x1f   : > { %v2151_v57 = vsel %vm443_vm1, %v1142_v53, %v1143_v56  ;;  %v1819_v63 = vld [vmem:[%s1989_s22 + $0x14] ss:$0 sps:$4 sm:$0x11]   ;;  %v1816_v3 = vld [vmem:[%s2313_s1 + $0x100] sm:$0xff]   ;;  %v681_v7 = vor.u32 %v680_v2, %v676_v0  ;;  %v1818_v8 = vld [vmem:[%s2313_s1 + $0x1b8] sm:$0xff]  }
  0x20   : > { %1552 = vmatpush3.bf16.msra.mxu0 %v1775_v9  ;;  %v1817_v4 = vld [vmem:[%s2313_s1 + $0x140] sm:$0xff]   ;;  %v794_v6 = vrot.slane %v1819_v63, 1  ;;  %v1824_v14 = vld [vmem:[%s2313_s1 + $0x1e8] sm:$0xff]   ;;  %v1827_v17 = vld [vmem:[%s2313_s1 + $0x198] sm:$0xff]  }
  0x21   : > { %1572 = vmatpush3.bf16.msra.mxu1 %v1776_v10  ;;  %1553 = vmatprep.subr.bf16.mxu0 %v1885_v1  ;;  %v1820_v10 = vld [vmem:[%s2313_s1 + $0x1f8] sm:$0xff]   ;;  %v1841_v34 = vld [vmem:[%s2313_s1 + $0x210] sm:$0xff]   ;;  %vm1263_vm6 = vmand %vm1261_vm3, %vm1262_vm4 }
  0x22   : > { %1573 = vmatprep.subr.bf16.mxu1 %v1885_v1  ;;  %v795_v9 = vsel %vm443_vm1, %v793_v5, %v794_v6  ;;  %v1828_v18 = vld [vmem:[%s2313_s1 + $0x1d8] sm:$0xff]  }
  0x24   : > { %1554 = vmatpush3.bf16.msra.mxu0 %v1777_v12  ;;  %v1822_v12 = vld [vmem:[%s2313_s1 + $0x1f0] sm:$0xff]  }
  0x25   : > { %1574 = vmatpush3.bf16.msra.mxu1 %v1778_v13  ;;  %1555 = vmatprep.subr.bf16.mxu0 %v1885_v1  ;;  %v1823_v13 = vld [vmem:[%s2313_s1 + $0x1a8] sm:$0xff]  }
  0x26   : > { %1575 = vmatprep.subr.bf16.mxu1 %v1885_v1 }
  0x28   : > { %1556 = vmatpush3.bf16.msra.mxu0 %v1779_v15  ;;  %v1825_v15 = vld [vmem:[%s2313_s1 + $0x1a0] sm:$0xff]  }
  0x29   : > { %1576 = vmatpush3.bf16.msra.mxu1 %v1780_v16  ;;  %1557 = vmatprep.subr.bf16.mxu0 %v1885_v1  ;;  %v1826_v16 = vld [vmem:[%s2313_s1 + $0x1e0] sm:$0xff]  }
  0x2a   : > { %1577 = vmatprep.subr.bf16.mxu1 %v1885_v1 }
  0x2c   : > { %1558 = vmatpush3.bf16.msra.mxu0 %v1781_v19  ;;  %v1829_v19 = vld [vmem:[%s2313_s1 + $0x190] sm:$0xff]  }
  0x2d   : > { %1578 = vmatpush3.bf16.msra.mxu1 %v1782_v20  ;;  %1583 = vmatprep.subr.bf16.mxu0 %v1885_v1  ;;  %v1830_v20 = vld [vmem:[%s2313_s1 + $0x1d0] sm:$0xff]  }
  0x2e   : > { %1603 = vmatprep.subr.bf16.mxu1 %v1885_v1 }
  0x2f   : > { %1560 = vmatmul.mubr.bf16.vlgmr.msra.gmra.mxu0 %v243_v21  ;;  %v1831_v21 = vld [vmem:[%s2313_s1 + $0x188] sm:$0xff]  }
  0x30   : > { %1580 = vmatmul.mubr.bf16.vlgmr.msra.gmra.mxu1 %v1997_v11  ;;  %1584 = vmatpush3.bf16.msra.mxu0 %v1784_v22  ;;  %v1821_v11 = vld [vmem:[%s2313_s1 + $0x1b0] sm:$0xff]   ;;  %v1027_v22 = vshll.u32 %v2137_v51, 16 }
  0x31   : > { %1604 = vmatpush3.bf16.msra.mxu1 %v1785_v23  ;;  %1585 = vmatprep.subr.bf16.mxu0 %v1885_v1  ;;  %v1832_v23 = vld [vmem:[%s2313_s1 + $0x1c8] sm:$0xff]  }
  0x32   : > { %1605 = vmatprep.subr.bf16.mxu1 %v1885_v1  ;;  %1599 = vmatprep.mubr.msk.bf16.mxu0 %vm1886_vm0, %v1885_v1 }
  0x33   : > { %1619 = vmatprep.mubr.msk.bf16.mxu1 %vm1886_vm0, %v1885_v1 }
  0x34   : > { %1586 = vmatpush3.bf16.msra.mxu0 %v1786_v24  ;;  %v1833_v24 = vld [vmem:[%s2313_s1 + $0x180] sm:$0xff]  }
  0x35   : > { %1606 = vmatpush3.bf16.msra.mxu1 %v1787_v25  ;;  %1587 = vmatprep.subr.bf16.mxu0 %v1885_v1  ;;  %v1025_v25 = vshrl.u32 %v2137_v51, 16 }
  0x36   : > { %1607 = vmatprep.subr.bf16.mxu1 %v1885_v1 }
  0x38   : > { %1588 = vmatpush3.bf16.msra.mxu0 %v1788_v26  ;;  %v1029_v26 = vrot.slane %v1027_v22, 1 }
  0x39   : > { %1608 = vmatpush3.bf16.msra.mxu1 %v1789_v27  ;;  %1589 = vmatprep.subr.bf16.mxu0 %v1885_v1  ;;  %v1834_v27 = vld [vmem:[%s2313_s1 + $0x1c0] sm:$0xff]  }
  0x3a   : > { %1609 = vmatprep.subr.bf16.mxu1 %v1885_v1 }
  0x3c   : > { %1590 = vmatpush3.bf16.msra.mxu0 %v1790_v28  ;;  %v1836_v28 = vld [vmem:[%s2313_s1 + $0x238] sm:$0xff]  }
  0x3d   : > { %1610 = vmatpush3.bf16.msra.mxu1 %v1791_v29  ;;  %1591 = vmatprep.subr.bf16.mxu0 %v1885_v1  ;;  %v1030_v29 = vor.u32 %v1029_v26, %v1025_v25 }
  0x3e   : > { %1611 = vmatprep.subr.bf16.mxu1 %v1885_v1 }
  0x40   : > { %1592 = vmatpush3.bf16.msra.mxu0 %v1792_v30  ;;  %v1837_v30 = vld [vmem:[%s2313_s1 + $0x230] sm:$0xff]  }
  0x41   : > { %1612 = vmatpush3.bf16.msra.mxu1 %v1793_v31  ;;  %1593 = vmatprep.subr.bf16.mxu0 %v1885_v1  ;;  %v1838_v31 = vld [vmem:[%s2313_s1 + $0x228] sm:$0xff]  }
  0x42   : > { %1613 = vmatprep.subr.bf16.mxu1 %v1885_v1 }
  0x44   : > { %1594 = vmatpush3.bf16.msra.mxu0 %v1794_v32  ;;  %v1839_v32 = vld [vmem:[%s2313_s1 + $0x220] sm:$0xff]  }
  0x45   : > { %1614 = vmatpush3.bf16.msra.mxu1 %v1795_v33  ;;  %1595 = vmatprep.subr.bf16.mxu0 %v1885_v1  ;;  %v1840_v33 = vld [vmem:[%s2313_s1 + $0x218] sm:$0xff]  }
  0x46   : > { %1615 = vmatprep.subr.bf16.mxu1 %v1885_v1 }
  0x48   : > { %1596 = vmatpush3.bf16.msra.mxu0 %v1796_v35  ;;  %v1842_v35 = vld [vmem:[%s2313_s1 + $0x208] sm:$0xff]  }
  0x49   : > { %1616 = vmatpush3.bf16.msra.mxu1 %v1797_v36  ;;  %1597 = vmatprep.subr.bf16.mxu0 %v1885_v1  ;;  %v1843_v36 = vld [vmem:[%s2313_s1 + $0x200] sm:$0xff]  }
  0x4a   : > { %1617 = vmatprep.subr.bf16.mxu1 %v1885_v1 }
  0x4c   : > { %1598 = vmatpush3.bf16.msra.mxu0 %v1798_v38 }
  0x4d   : > { %1618 = vmatpush3.bf16.msra.mxu1 %v1799_v40  ;;  %1623 = vmatprep.subr.bf16.mxu0 %v1885_v1 }
  0x4e   : > { %1643 = vmatprep.subr.bf16.mxu1 %v1885_v1 }
  0x4f   : > { %1600 = vmatmul.mubr.bf16.vlgmr.msra.gmra.mxu0 %v446_v42 }
  0x50   : > { %1624 = vmatpush3.bf16.msra.mxu0 %v1801_v41  ;;  %1620 = vmatmul.mubr.bf16.vlgmr.msra.gmra.mxu1 %v2101_v43 }
  0x51   : > { %1644 = vmatpush3.bf16.msra.mxu1 %v1803_v44  ;;  %1625 = vmatprep.subr.bf16.mxu0 %v1885_v1 }
  0x52   : > { %1645 = vmatprep.subr.bf16.mxu1 %v1885_v1  ;;  %1639 = vmatprep.mubr.msk.bf16.mxu0 %vm1886_vm0, %v1885_v1 }
  0x53   : > { %1659 = vmatprep.mubr.msk.bf16.mxu1 %vm1886_vm0, %v1885_v1 }
  0x54   : > { %1626 = vmatpush3.bf16.msra.mxu0 %v1804_v45 }
  0x55   : > { %1646 = vmatpush3.bf16.msra.mxu1 %v1805_v46  ;;  %1627 = vmatprep.subr.bf16.mxu0 %v1885_v1 }
  0x56   : > { %1647 = vmatprep.subr.bf16.mxu1 %v1885_v1 }
  0x58   : > { %1628 = vmatpush3.bf16.msra.mxu0 %v1806_v47 }
  0x59   : > { %1648 = vmatpush3.bf16.msra.mxu1 %v1807_v48  ;;  %1629 = vmatprep.subr.bf16.mxu0 %v1885_v1 }
  0x5a   : > { %1649 = vmatprep.subr.bf16.mxu1 %v1885_v1 }
  0x5c   : > { %1630 = vmatpush3.bf16.msra.mxu0 %v1808_v49 }
  0x5d   : > { %1650 = vmatpush3.bf16.msra.mxu1 %v1809_v50  ;;  %1631 = vmatprep.subr.bf16.mxu0 %v1885_v1 }
  0x5e   : > { %1651 = vmatprep.subr.bf16.mxu1 %v1885_v1 }
  0x60   : > { %1632 = vmatpush3.bf16.msra.mxu0 %v1810_v54 }
  0x61   : > { %1652 = vmatpush3.bf16.msra.mxu1 %v1811_v55  ;;  %1633 = vmatprep.subr.bf16.mxu0 %v1885_v1 }
  0x62   : > { %1653 = vmatprep.subr.bf16.mxu1 %v1885_v1 }
  0x64   : > { %1634 = vmatpush3.bf16.msra.mxu0 %v1812_v58 }
  0x65   : > { %1654 = vmatpush3.bf16.msra.mxu1 %v1813_v59  ;;  %1635 = vmatprep.subr.bf16.mxu0 %v1885_v1 }
  0x66   : > { %1655 = vmatprep.subr.bf16.mxu1 %v1885_v1 }
  0x68   : > { %1636 = vmatpush3.bf16.msra.mxu0 %v1814_v61 }
  0x69   : > { %1656 = vmatpush3.bf16.msra.mxu1 %v1815_v62  ;;  %1637 = vmatprep.subr.bf16.mxu0 %v1885_v1 }
  0x6a   : > { %1657 = vmatprep.subr.bf16.mxu1 %v1885_v1 }
  0x6c   : > { %1638 = vmatpush3.bf16.msra.mxu0 %v1816_v3 }
  0x6d   : > { %1658 = vmatpush3.bf16.msra.mxu1 %v1817_v4  ;;  %1663 = vmatprep.subr.bf16.mxu0 %v1885_v1 }
  0x6e   : > { %1683 = vmatprep.subr.bf16.mxu1 %v1885_v1 }
  0x6f   : > { %1640 = vmatmul.mubr.bf16.vlgmr.msra.gmra.mxu0 %v681_v7 }
  0x70   : > { %1664 = vmatpush3.bf16.msra.mxu0 %v1818_v8  ;;  %1660 = vmatmul.mubr.bf16.vlgmr.msra.gmra.mxu1 %v795_v9 }
  0x71   : > { %1684 = vmatpush3.bf16.msra.mxu1 %v1820_v10  ;;  %1665 = vmatprep.subr.bf16.mxu0 %v1885_v1 }
  0x72   : > { %1685 = vmatprep.subr.bf16.mxu1 %v1885_v1  ;;  %1679 = vmatprep.mubr.msk.bf16.mxu0 %vm1886_vm0, %v1885_v1 }
  0x73   : > { %1699 = vmatprep.mubr.msk.bf16.mxu1 %vm1886_vm0, %v1885_v1 }
  0x74   : > { %1666 = vmatpush3.bf16.msra.mxu0 %v1821_v11 }
  0x75   : > { %1686 = vmatpush3.bf16.msra.mxu1 %v1822_v12  ;;  %1667 = vmatprep.subr.bf16.mxu0 %v1885_v1 }
  0x76   : > { %1687 = vmatprep.subr.bf16.mxu1 %v1885_v1 }
  0x78   : > { %1668 = vmatpush3.bf16.msra.mxu0 %v1823_v13 }
  0x79   : > { %1688 = vmatpush3.bf16.msra.mxu1 %v1824_v14  ;;  %1669 = vmatprep.subr.bf16.mxu0 %v1885_v1 }
  0x7a   : > { %1689 = vmatprep.subr.bf16.mxu1 %v1885_v1 }
  0x7c   : > { %1670 = vmatpush3.bf16.msra.mxu0 %v1825_v15 }
  0x7d   : > { %1690 = vmatpush3.bf16.msra.mxu1 %v1826_v16  ;;  %1671 = vmatprep.subr.bf16.mxu0 %v1885_v1 }
  0x7e   : > { %1691 = vmatprep.subr.bf16.mxu1 %v1885_v1 }
  0x80   : > { %1672 = vmatpush3.bf16.msra.mxu0 %v1827_v17 }
  0x81   : > { %1692 = vmatpush3.bf16.msra.mxu1 %v1828_v18  ;;  %1673 = vmatprep.subr.bf16.mxu0 %v1885_v1 }
  0x82   : > { %1693 = vmatprep.subr.bf16.mxu1 %v1885_v1 }
  0x84   : > { %1674 = vmatpush3.bf16.msra.mxu0 %v1829_v19  ;;  %v1454_v19 = vld [vmem:[%s2314_s2] ss:$0 sm:$0xff] }
  0x85   : > { %1694 = vmatpush3.bf16.msra.mxu1 %v1830_v20  ;;  %1675 = vmatprep.subr.bf16.mxu0 %v1885_v1 }
  0x86   : > { %1695 = vmatprep.subr.bf16.mxu1 %v1885_v1 }
  0x88   : > { %1676 = vmatpush3.bf16.msra.mxu0 %v1831_v21 }
  0x89   : > { %1696 = vmatpush3.bf16.msra.mxu1 %v1832_v23  ;;  %1677 = vmatprep.subr.bf16.mxu0 %v1885_v1 }
  0x8a   : > { %1697 = vmatprep.subr.bf16.mxu1 %v1885_v1 }
  0x8c   : > { %1678 = vmatpush3.bf16.msra.mxu0 %v1833_v24 }
  0x8d   : > { %1698 = vmatpush3.bf16.msra.mxu1 %v1834_v27  ;;  %1703 = vmatprep.subr.bf16.mxu0 %v1885_v1 }
  0x8f   : > { %1680 = vmatmul.mubr.bf16.vlgmr.msra.gmra.mxu0 %v2137_v51 }
  0x90   : > { %1704 = vmatpush3.bf16.msra.mxu0 %v1836_v28  ;;  %1700 = vmatmul.mubr.bf16.vlgmr.msra.gmra.mxu1 %v1030_v29 }
  0x91   : > { %1705 = vmatprep.subr.bf16.mxu0 %v1885_v1  ;;  %1719 = vmatprep.mubr.msk.bf16.mxu0 %vm1886_vm0, %v1885_v1 }
  0x94   : > { %1706 = vmatpush3.bf16.msra.mxu0 %v1837_v30 }
  0x95   : > { %1707 = vmatprep.subr.bf16.mxu0 %v1885_v1 }
  0x98   : > { %1708 = vmatpush3.bf16.msra.mxu0 %v1838_v31 }
  0x99   : > { %1709 = vmatprep.subr.bf16.mxu0 %v1885_v1 }
  0x9c   : > { %1710 = vmatpush3.bf16.msra.mxu0 %v1839_v32  ;;  %v1264_v32 = vld [vmem:[%s192_s11 + $0x4] sm:$0xf] }
  0x9d   : > { %1711 = vmatprep.subr.bf16.mxu0 %v1885_v1 }
  0xa0   : > { %1712 = vmatpush3.bf16.msra.mxu0 %v1840_v33 }
  0xa1   : > { %1713 = vmatprep.subr.bf16.mxu0 %v1885_v1 }
  0xa4   : > { %1714 = vmatpush3.bf16.msra.mxu0 %v1841_v34 }
  0xa5   : > { %1715 = vmatprep.subr.bf16.mxu0 %v1885_v1 }
  0xa8   : > { %1716 = vmatpush3.bf16.msra.mxu0 %v1842_v35 }
  0xa9   : > { %1717 = vmatprep.subr.bf16.mxu0 %v1885_v1 }
  0xac   : > { %1718 = vmatpush3.bf16.msra.mxu0 %v1843_v36 }
  0xaf   : > { %1720 = vmatmul.mubr.bf16.vlgmr.msra.gmra.mxu0 %v2151_v57 }
  0xef   : > { %v327_v37 = vpop.f32.mrf.mxu0 }
  0xf0   : > { %v417_v38 = vpop.f32.mrf.mxu1 }
  0xf1   : > { %v418_v39 = vadd.f32 %v417_v38, %v327_v37  ;;  %v1561_v40 = vpop.f32.mrf.mxu0 }
  0xf2   : > { %v1581_v41 = vpop.f32.mrf.mxu1 }
  0xf3   : > { %v330_v42 = vpop.f32.mrf.mxu0 }
  0xf4   : > { %v420_v43 = vpop.f32.mrf.mxu1 }
  0xf5   : > { %v421_v44 = vadd.f32 %v420_v43, %v330_v42  ;;  %v1562_v45 = vpop.f32.mrf.mxu0 }
  0xf6   : > { %v1582_v46 = vpop.f32.mrf.mxu1 }
 0x10f   : > { %v530_v47 = vpop.f32.mrf.mxu0 }
 0x110   : > { %v537_v48 = vadd.f32 %v530_v47, %v418_v39  ;;  %v650_v49 = vpop.f32.mrf.mxu1 }
 0x111   : > { %v1601_v50 = vpop.f32.mrf.mxu0 }
 0x112   : > { %v657_v51 = vadd.f32 %v650_v49, %v537_v48  ;;  %v1621_v52 = vpop.f32.mrf.mxu1 }
 0x113   : > { %v533_v1 = vpop.f32.mrf.mxu0 }
 0x114   : > { %v538_v53 = vadd.f32 %v533_v1, %v421_v44  ;;  %v653_v54 = vpop.f32.mrf.mxu1 }
 0x115   : > { %v1602_v55 = vpop.f32.mrf.mxu0 }
 0x116   : > { %v658_v56 = vadd.f32 %v653_v54, %v538_v53  ;;  %v1622_v57 = vpop.f32.mrf.mxu1 }
 0x12f   : > { %v765_v58 = vpop.f32.mrf.mxu0 }
 0x130   : > { %v879_v59 = vpop.f32.mrf.mxu1  ;;  %v772_v11 = vadd.f32 %v765_v58, %v657_v51 }
 0x131   : > { %v1641_v60 = vpop.f32.mrf.mxu0 }
 0x132   : > { %v1661_v61 = vpop.f32.mrf.mxu1  ;;  %v886_v12 = vadd.f32 %v879_v59, %v772_v11 }
 0x133   : > { %v768_v62 = vpop.f32.mrf.mxu0 }
 0x134   : > { %v882_v63 = vpop.f32.mrf.mxu1  ;;  %v773_v13 = vadd.f32 %v768_v62, %v658_v56 }
 0x135   : > { %v1642_v0 = vpop.f32.mrf.mxu0 }
 0x136   : > { %v1662_v2 = vpop.f32.mrf.mxu1  ;;  %v887_v15 = vadd.f32 %v882_v63, %v773_v13 }
 0x14f   : > { %v999_v3 = vpop.f32.mrf.mxu0 }
 0x150   : > { %v1114_v4 = vpop.f32.mrf.mxu1  ;;  %v1006_v14 = vadd.f32 %v999_v3, %v886_v12 }
 0x151   : > { %v1681_v5 = vpop.f32.mrf.mxu0 }
 0x152   : > { %v1701_v6 = vpop.f32.mrf.mxu1  ;;  %v1121_v16 = vadd.f32 %v1114_v4, %v1006_v14 }
 0x153   : > { %v1002_v7 = vpop.f32.mrf.mxu0 }
 0x154   : > { %v1117_v8 = vpop.f32.mrf.mxu1  ;;  %v1007_v17 = vadd.f32 %v1002_v7, %v887_v15 }
 0x155   : > { %v1682_v9 = vpop.f32.mrf.mxu0 }
 0x156   : > { %v1702_v10 = vpop.f32.mrf.mxu1  ;;  %v1122_v22 = vadd.f32 %v1117_v8, %v1007_v17 }
 0x16f   : > { %v1228_v18 = vpop.f32.mrf.mxu0 }
 0x170   : > { %v1235_v20 = vadd.f32 %v1228_v18, %v1121_v16 }
 0x171   : > { %v1721_v21 = vpop.f32.mrf.mxu0 }
 0x172   : > { %v1244_v23 = vadd.f32 %v1454_v19, %v1235_v20 }
 0x173   : > { %v1231_v24 = vpop.f32.mrf.mxu0 }
 0x174   : > { %vm1246_vm2 = vcmp.ge.f32.partialorder %v1244_v23, 0.0  ;;  %v1248_v25 = vmul.f32 0.01, %v1244_v23  ;;  %v1236_v26 = vadd.f32 %v1231_v24, %v1122_v22 }
 0x175   : > { %v1722_v27 = vpop.f32.mrf.mxu0 }
 0x176   : > { %v1250_v28 = vsel %vm1246_vm2, %v1244_v23, %v1248_v25  ;;  %v1245_v29 = vadd.f32 %v1454_v19, %v1236_v26 }
 0x177   : > { %v1460_v30 = vpack.c.bf16 %v1250_v28, %v1250_v28 }
 0x178   : > { %vm1247_vm5 = vcmp.ge.f32.partialorder %v1245_v29, 0.0  ;;  %v1249_v31 = vmul.f32 0.01, %v1245_v29 }
 0x179   : > { %1260 = vst [vmem:[%s192_s11] sm:$0xf] %v1460_v30 }
 0x17a   : > { %v1251_v33 = vsel %vm1247_vm5, %v1245_v29, %v1249_v31 }
 0x17b   : > { %v1461_v34 = vpack.c.bf16 %v1251_v33, %v1251_v33 }
 0x17d   : > { %v1265_v35 = vsel %vm1263_vm6, %v1461_v34, %v1264_v32 }
 0x17e   : > { %1266 = vst [vmem:[%s192_s11 + $0x4] sm:$0xf] %v1265_v35 }
 0x17f PF: > { %s13_s16 = sadd.s32 1, %s1883_s16   ;;  %s2316_s12 = smov %s1875_s14 }
 0x180   : > { %p10_p7 = scmp.ge.s32.totalorder %s13_s16, 58   ;;  %s2317_s13 = smov %s1879_s15 }
 0x181   : > { %s2318_s14 = smov %s2321_s17  ;;  %s2319_s15 = smov %s2325_s18 }
 0x182   :  { %12 = sbr.rel (!%p10_p7) target bundleno = 3 (0x3), region = 65 }

// kernel: ocr_forward.14
= control target key start
LH: loop header
LB: loop body
LE: loop exit
PB: predicated region body
PF: predicated region fallthrough
CT: control target
= control target key end

     0   :  { %s2136_s12 = smov 0   ;;  %s2138_s13 = smov 0   ;;  %s2670_s0 = inlined_call_operand.vmem [shape: bf16[2,16,9,128], index: 0, kind: input, shape index: {}]   ;;  %s2671_s1 = inlined_call_operand.vmem [shape: bf16[1152,256], index: 1, kind: input, shape index: {}]   ;;  %s2672_s2 = inlined_call_operand.vmem [shape: f32[1,256], index: 2, kind: input, shape index: {}]   ;;  %s2673_s3 = inlined_call_operand.vmem [shape: bf16[2,14,7,256], index: 3, kind: output, shape index: {}]  }
   0x1   :  { %s2140_s14 = smov 0   ;;  %s2142_s15 = smov 0  }
   0x2   :  { %s2144_s16 = smov 0  }
   0x3 LB: > { %s22_s17 = sadd.s32 1, %s2105_s14  ;;  %s25_s18 = sadd.s32 1, %s2109_s15  ;;  %s2113_s16 = sphi %s2144_s16, %s13_s16   ;;  %s2109_s15 = sphi %s2142_s15, %s2677_s15   ;;  %s2105_s14 = sphi %s2140_s14, %s2676_s14   ;;  %s2101_s13 = sphi %s2138_s13, %s2675_s13   ;;  %s2097_s12 = sphi %s2136_s12, %s2674_s12  }
   0x4   : > { %p23_p0 = scmp.ge.s32.totalorder %s22_s17, 14  ;;  %p1642_p1 = scmp.ge.s32.totalorder %s2113_s16, 1 }
   0x5   : > { %p151_p2 = scmp.lt.s32.totalorder %s2113_s16, 29 }
   0x6   : > { %s2679_s17 = smov (%p23_p0, %s22_s17), 0  ;;  %s2681_s18 = smov (!%p23_p0, %s25_s18), %s2109_s15 }
   0x7   : > { %p152_p3 = pnand %p1642_p1, %p151_p2  ;;  %p27_p4 = scmp.ge.s32.totalorder %s2681_s18, 2 }
   0x8   : > { %p179_p5 = scmp.lt.s32.totalorder (!%p152_p3), %s2101_s13, 1  ;;  %s1809_s23 = sshll.u32 (!%p152_p3), %s2097_s12, 3 }
   0x9   : > { %s2683_s18 = smov (%p27_p4, %s2681_s18), 0  ;;  %155 = sbr.rel (%p152_p3) target bundleno = 382 (0x17e), region = 32 }
   0xa   : > { %p186_p6 = scmp.lt.s32.totalorder (!%p152_p3), %s2097_s12, 13 }
   0xe   : > { %v1853_v0 = vld [vmem:[%s2671_s1 + $0xf4] ss:$8 sps:$4 sm:$0xff]   ;;  %v2115_v2 = vmov 0   ;;  %v1857_v3 = vld [vmem:[%s2671_s1 + $0xf0] ss:$8 sps:$4 sm:$0xff]   ;;  %s2685_s13 = smov (!%p179_p5, %s2101_s13), 1 }
   0xf   : > { %v1855_v1 = vld [vmem:[%s2671_s1 + $0x74] ss:$8 sps:$4 sm:$0xff]   ;;  %354 = vmatprep.mubr.bf16.mxu0 %v2115_v2  ;;  %475 = vmatprep.mubr.bf16.mxu1 %v2115_v2  ;;  %v1858_v4 = vld [vmem:[%s2671_s1 + $0x70] ss:$8 sps:$4 sm:$0xff]   ;;  %v1859_v5 = vld [vmem:[%s2671_s1 + $0xe4] ss:$8 sps:$4 sm:$0xff]  }
  0x10   : > { %322 = vmatprep.subr.bf16.mxu0 %v1853_v0  ;;  %443 = vmatprep.subr.bf16.mxu1 %v1855_v1  ;;  %v1861_v6 = vld [vmem:[%s2671_s1 + $0x64] ss:$8 sps:$4 sm:$0xff]   ;;  %v1863_v7 = vld [vmem:[%s2671_s1 + $0xe0] ss:$8 sps:$4 sm:$0xff]   ;;  %v1865_v9 = vld [vmem:[%s2671_s1 + $0xd4] ss:$8 sps:$4 sm:$0xff]  }
  0x11   : > { %323 = vmatpush1.bf16.msra.mxu0 %v1857_v3  ;;  %444 = vmatpush1.bf16.msra.mxu1 %v1858_v4  ;;  %v1864_v8 = vld [vmem:[%s2671_s1 + $0x60] ss:$8 sps:$4 sm:$0xff]   ;;  %v1867_v10 = vld [vmem:[%s2671_s1 + $0x54] ss:$8 sps:$4 sm:$0xff]   ;;  %v1869_v11 = vld [vmem:[%s2671_s1 + $0xd0] ss:$8 sps:$4 sm:$0xff]  }
  0x12   : > { %324 = vmatprep.subr.bf16.mxu0 %v1859_v5  ;;  %445 = vmatprep.subr.bf16.mxu1 %v1861_v6  ;;  %v1870_v12 = vld [vmem:[%s2671_s1 + $0x50] ss:$8 sps:$4 sm:$0xff]   ;;  %v1871_v13 = vld [vmem:[%s2671_s1 + $0xc4] ss:$8 sps:$4 sm:$0xff]   ;;  %v1875_v15 = vld [vmem:[%s2671_s1 + $0xc0] ss:$8 sps:$4 sm:$0xff]  }
  0x13   : > { %v1873_v14 = vld [vmem:[%s2671_s1 + $0x44] ss:$8 sps:$4 sm:$0xff]   ;;  %v1876_v16 = vld [vmem:[%s2671_s1 + $0x40] ss:$8 sps:$4 sm:$0xff]   ;;  %v1877_v17 = vld [vmem:[%s2671_s1 + $0xb4] ss:$8 sps:$4 sm:$0xff]  }
  0x14   : > { %s1808_s6 = sshll.u32 %s2685_s13, 7  ;;  %v1879_v18 = vld [vmem:[%s2671_s1 + $0x34] ss:$8 sps:$4 sm:$0xff]   ;;  %v1881_v19 = vld [vmem:[%s2671_s1 + $0xb0] ss:$8 sps:$4 sm:$0xff]   ;;  %s2687_s12 = smov (!%p186_p6, %s2097_s12), 13 }
  0x15   : > { %325 = vmatpush1.bf16.msra.mxu0 %v1863_v7  ;;  %446 = vmatpush1.bf16.msra.mxu1 %v1864_v8  ;;  %v1882_v20 = vld [vmem:[%s2671_s1 + $0x30] ss:$8 sps:$4 sm:$0xff]   ;;  %s183_s22 = scalar_lea.vmem %s2670_s0, %s1808_s6  ;;  %v1883_v21 = vld [vmem:[%s2671_s1 + $0xa4] ss:$8 sps:$4 sm:$0xff]   ;;  %v1887_v23 = vld [vmem:[%s2671_s1 + $0xa0] ss:$8 sps:$4 sm:$0xff]  }
  0x16   : > { %326 = vmatprep.subr.bf16.mxu0 %v1865_v9  ;;  %447 = vmatprep.subr.bf16.mxu1 %v1867_v10  ;;  %v1885_v22 = vld [vmem:[%s2671_s1 + $0x24] ss:$8 sps:$4 sm:$0xff]   ;;  %s2247_s28 = scalar_lea.vmem %s183_s22, %s1809_s23  ;;  %v1888_v24 = vld [vmem:[%s2671_s1 + $0x20] ss:$8 sps:$4 sm:$0xff]   ;;  %v1889_v25 = vld [vmem:[%s2671_s1 + $0x94] ss:$8 sps:$4 sm:$0xff]  }
  0x17   : > { %v1891_v26 = vld [vmem:[%s2671_s1 + $0x14] ss:$8 sps:$4 sm:$0xff]   ;;  %v2262_v27 = vld [vmem:[%s2247_s28] sm:$0xf]  ;;  %v1893_v29 = vld [vmem:[%s2671_s1 + $0x90] ss:$8 sps:$4 sm:$0xff]  }
  0x18   : > { %v1649_v28 = vcombine.low %v2262_v27, %v2262_v27  ;;  %v1894_v30 = vld [vmem:[%s2671_s1 + $0x10] ss:$8 sps:$4 sm:$0xff]   ;;  %v1895_v32 = vld [vmem:[%s2671_s1 + $0x84] ss:$8 sps:$4 sm:$0xff]   ;;  %v1899_v34 = vld [vmem:[%s2671_s1 + $0x80] ss:$8 sps:$4 sm:$0xff]  }
  0x19   : > { %327 = vmatpush1.bf16.msra.mxu0 %v1869_v11  ;;  %448 = vmatpush1.bf16.msra.mxu1 %v1870_v12  ;;  %v1897_v33 = vld [vmem:[%s2671_s1 + $0x4] ss:$8 sps:$4 sm:$0xff]   ;;  %v1900_v37 = vld [vmem:[%s2671_s1] ss:$8 sps:$4 sm:$0xff]   ;;  %v1904_v38 = vld [vmem:[%s2671_s1 + $0x174] ss:$8 sps:$4 sm:$0xff]  }
  0x1a   : > { %328 = vmatprep.subr.bf16.mxu0 %v1871_v13  ;;  %449 = vmatprep.subr.bf16.mxu1 %v1873_v14  ;;  %v237_v31 = vshll.u32 %v1649_v28, 16  ;;  %v235_v35 = vshrl.u32 %v1649_v28, 16  ;;  %v1907_v39 = vld [vmem:[%s2671_s1 + $0x1f4] ss:$8 sps:$4 sm:$0xff]   ;;  %v1902_v41 = vld [vmem:[%s2671_s1 + $0x170] ss:$8 sps:$4 sm:$0xff]  }
  0x1b   : > { %v1905_v42 = vld [vmem:[%s2671_s1 + $0x1f0] ss:$8 sps:$4 sm:$0xff]   ;;  %v1910_v43 = vld [vmem:[%s2671_s1 + $0x164] ss:$8 sps:$4 sm:$0xff]   ;;  %v1908_v45 = vld [vmem:[%s2671_s1 + $0x160] ss:$8 sps:$4 sm:$0xff]  }
  0x1c   : > { %v239_v36 = vrot.slane %v237_v31, 1  ;;  %v1913_v44 = vld [vmem:[%s2671_s1 + $0x1e4] ss:$8 sps:$4 sm:$0xff]   ;;  %v1911_v46 = vld [vmem:[%s2671_s1 + $0x1e0] ss:$8 sps:$4 sm:$0xff]   ;;  %s1811_s26 = smul.u32 28, %s2685_s13 }
  0x1d   : > { %329 = vmatpush1.bf16.msra.mxu0 %v1875_v15  ;;  %450 = vmatpush1.bf16.msra.mxu1 %v1876_v16  ;;  %v1916_v47 = vld [vmem:[%s2671_s1 + $0x154] ss:$8 sps:$4 sm:$0xff]   ;;  %v1914_v49 = vld [vmem:[%s2671_s1 + $0x150] ss:$8 sps:$4 sm:$0xff]   ;;  %v1922_v51 = vld [vmem:[%s2671_s1 + $0x144] ss:$8 sps:$4 sm:$0xff]  }
  0x1e   : > { %330 = vmatprep.subr.bf16.mxu0 %v1877_v17  ;;  %451 = vmatprep.subr.bf16.mxu1 %v1879_v18  ;;  %v240_v40 = vor.u32 %v239_v36, %v235_v35  ;;  %v1919_v48 = vld [vmem:[%s2671_s1 + $0x1d4] ss:$8 sps:$4 sm:$0xff]   ;;  %v1917_v50 = vld [vmem:[%s2671_s1 + $0x1d0] ss:$8 sps:$4 sm:$0xff]   ;;  %v1925_v52 = vld [vmem:[%s2671_s1 + $0x1c4] ss:$8 sps:$4 sm:$0xff]  }
  0x1f   : > { %v1920_v53 = vld [vmem:[%s2671_s1 + $0x140] ss:$8 sps:$4 sm:$0xff]   ;;  %v1928_v55 = vld [vmem:[%s2671_s1 + $0x134] ss:$8 sps:$4 sm:$0xff]   ;;  %v1926_v57 = vld [vmem:[%s2671_s1 + $0x130] ss:$8 sps:$4 sm:$0xff]  }
  0x20   : > { %v1923_v54 = vld [vmem:[%s2671_s1 + $0x1c0] ss:$8 sps:$4 sm:$0xff]   ;;  %v1931_v56 = vld [vmem:[%s2671_s1 + $0x1b4] ss:$8 sps:$4 sm:$0xff]   ;;  %v1929_v58 = vld [vmem:[%s2671_s1 + $0x1b0] ss:$8 sps:$4 sm:$0xff]  }
  0x21   : > { %331 = vmatpush1.bf16.msra.mxu0 %v1881_v19  ;;  %452 = vmatpush1.bf16.msra.mxu1 %v1882_v20  ;;  %v1934_v59 = vld [vmem:[%s2671_s1 + $0x124] ss:$8 sps:$4 sm:$0xff]   ;;  %v1932_v61 = vld [vmem:[%s2671_s1 + $0x120] ss:$8 sps:$4 sm:$0xff]   ;;  %v1940_v63 = vld [vmem:[%s2671_s1 + $0x114] ss:$8 sps:$4 sm:$0xff]  }
  0x22   : > { %332 = vmatprep.subr.bf16.mxu0 %v1883_v21  ;;  %453 = vmatprep.subr.bf16.mxu1 %v1885_v22  ;;  %v1937_v60 = vld [vmem:[%s2671_s1 + $0x1a4] ss:$8 sps:$4 sm:$0xff]   ;;  %v1935_v62 = vld [vmem:[%s2671_s1 + $0x1a0] ss:$8 sps:$4 sm:$0xff]   ;;  %v1943_v0 = vld [vmem:[%s2671_s1 + $0x194] ss:$8 sps:$4 sm:$0xff]  }
  0x23   : > { %v1938_v1 = vld [vmem:[%s2671_s1 + $0x110] ss:$8 sps:$4 sm:$0xff]   ;;  %v1946_v4 = vld [vmem:[%s2671_s1 + $0x104] ss:$8 sps:$4 sm:$0xff]   ;;  %v1944_v7 = vld [vmem:[%s2671_s1 + $0x100] ss:$8 sps:$4 sm:$0xff]  }
  0x24   : > { %v1941_v3 = vld [vmem:[%s2671_s1 + $0x190] ss:$8 sps:$4 sm:$0xff]   ;;  %v198_v5 = vld [vmem:[%s2247_s28 + $0x4] sm:$0x1]  ;;  %v1947_v8 = vld [vmem:[%s2671_s1 + $0x180] ss:$8 sps:$4 sm:$0xff]  }
  0x25   : > { %333 = vmatpush1.bf16.msra.mxu0 %v1887_v23  ;;  %454 = vmatpush1.bf16.msra.mxu1 %v1888_v24  ;;  %v1949_v6 = vld [vmem:[%s2671_s1 + $0x184] ss:$8 sps:$4 sm:$0xff]   ;;  %v1682_v9 = vcombine.low %v2262_v27, %v198_v5  ;;  %v1953_v10 = vld [vmem:[%s2671_s1 + $0x274] ss:$8 sps:$4 sm:$0xff]   ;;  %v1951_v12 = vld [vmem:[%s2671_s1 + $0x270] ss:$8 sps:$4 sm:$0xff]  }
  0x26   : > { %334 = vmatprep.subr.bf16.mxu0 %v1889_v25  ;;  %455 = vmatprep.subr.bf16.mxu1 %v1891_v26  ;;  %v1958_v11 = vld [vmem:[%s2671_s1 + $0x2f4] ss:$8 sps:$4 sm:$0xff]   ;;  %v2395_v14 = vld [vmem:[%s2247_s28 + $0x8] sm:$0xf]  ;;  %v1956_v15 = vld [vmem:[%s2671_s1 + $0x2f0] ss:$8 sps:$4 sm:$0xff]  }
  0x27   : > { %v503_v13 = vrot.slane %v1682_v9, 1  ;;  %v1961_v16 = vld [vmem:[%s2671_s1 + $0x264] ss:$8 sps:$4 sm:$0xff]   ;;  %v1959_v18 = vld [vmem:[%s2671_s1 + $0x260] ss:$8 sps:$4 sm:$0xff]   ;;  %s1645_s27 = sshll.u32 %s2687_s12, 1 }
  0x28   : > { %v1964_v17 = vld [vmem:[%s2671_s1 + $0x2e4] ss:$8 sps:$4 sm:$0xff]   ;;  %v1962_v19 = vld [vmem:[%s2671_s1 + $0x2e0] ss:$8 sps:$4 sm:$0xff]   ;;  %v1967_v20 = vld [vmem:[%s2671_s1 + $0x254] ss:$8 sps:$4 sm:$0xff]   ;;  %s190_s29 = sadd.s32 %s1811_s26, %s1645_s27 }
  0x29   : > { %335 = vmatpush1.bf16.msra.mxu0 %v1893_v29  ;;  %456 = vmatpush1.bf16.msra.mxu1 %v1894_v30  ;;  %v1970_v21 = vld [vmem:[%s2671_s1 + $0x2d4] ss:$8 sps:$4 sm:$0xff]   ;;  %v1965_v22 = vld [vmem:[%s2671_s1 + $0x250] ss:$8 sps:$4 sm:$0xff]   ;;  %v1973_v24 = vld [vmem:[%s2671_s1 + $0x244] ss:$8 sps:$4 sm:$0xff]  }
  0x2a   : > { %336 = vmatprep.subr.bf16.mxu0 %v1895_v32  ;;  %457 = vmatprep.subr.bf16.mxu1 %v1897_v33  ;;  %v1968_v23 = vld [vmem:[%s2671_s1 + $0x2d0] ss:$8 sps:$4 sm:$0xff]   ;;  %v1976_v25 = vld [vmem:[%s2671_s1 + $0x2c4] ss:$8 sps:$4 sm:$0xff]   ;;  %v1971_v26 = vld [vmem:[%s2671_s1 + $0x240] ss:$8 sps:$4 sm:$0xff]  }
  0x2b   : > { %v1979_v28 = vld [vmem:[%s2671_s1 + $0x234] ss:$8 sps:$4 sm:$0xff]   ;;  %v1977_v30 = vld [vmem:[%s2671_s1 + $0x230] ss:$8 sps:$4 sm:$0xff]   ;;  %v1985_v32 = vld [vmem:[%s2671_s1 + $0x224] ss:$8 sps:$4 sm:$0xff]  }
  0x2c   : > { %v1982_v29 = vld [vmem:[%s2671_s1 + $0x2b4] ss:$8 sps:$4 sm:$0xff]   ;;  %v1980_v31 = vld [vmem:[%s2671_s1 + $0x2b0] ss:$8 sps:$4 sm:$0xff]   ;;  %v1988_v33 = vld [vmem:[%s2671_s1 + $0x2a4] ss:$8 sps:$4 sm:$0xff]  }
  0x2d   : > { %337 = vmatpush1.bf16.msra.mxu0 %v1899_v34  ;;  %458 = vmatpush1.bf16.msra.mxu1 %v1900_v37  ;;  %v1718_v34 = vcombine.low %v2395_v14, %v2395_v14  ;;  %v1983_v35 = vld [vmem:[%s2671_s1 + $0x220] ss:$8 sps:$4 sm:$0xff]   ;;  %v1991_v37 = vld [vmem:[%s2671_s1 + $0x214] ss:$8 sps:$4 sm:$0xff]   ;;  %v2554_v9 = vld [vmem:[%s2247_s28 + $0x10] sm:$0xf] }
  0x2e   : > { %585 = vmatprep.subr.bf16.mxu0 %v1904_v38  ;;  %730 = vmatprep.subr.bf16.mxu1 %v1907_v39  ;;  %v1986_v36 = vld [vmem:[%s2671_s1 + $0x2a0] ss:$8 sps:$4 sm:$0xff]   ;;  %v1994_v38 = vld [vmem:[%s2671_s1 + $0x294] ss:$8 sps:$4 sm:$0xff]   ;;  %v1701_v39 = vld [vmem:[%s2247_s28 + $0xc] sm:$0x1] }
  0x2f   : > { %v2027_v5 = vld [vmem:[%s2671_s1 + $0x334] ss:$8 sps:$4 sm:$0xff]   ;;  %vm1534_vm0 = vcmask 1043456   ;;  %vm1535_vm1 = vsmask.f32 3328  ;;  %s1646_s30 = sshll.u32 %s190_s29, 2 }
  0x30   : > { %355 = vmatmul.mubr.bf16.vlgmr.msra.gmra.mxu0 %v240_v40  ;;  %476 = vmatmul.mubr.bf16.vlgmr.msra.gmra.mxu1 %v2262_v27  ;;  %v1974_v27 = vld [vmem:[%s2671_s1 + $0x2c0] ss:$8 sps:$4 sm:$0xff]   ;;  %v795_v40 = vshll.u32 %v1718_v34, 16  ;;  %vm1537_vm2 = vcmask 1047556   ;;  %vm1538_vm3 = vsmask.f32 7424  ;;  %vm1536_vm4 = vmand %vm1534_vm0, %vm1535_vm1  ;;  %s192_s4 = scalar_lea.vmem %s2673_s3, %s1646_s30 }
  0x31   : > { %586 = vmatpush1.bf16.msra.mxu0 %v1902_v41  ;;  %731 = vmatpush1.bf16.msra.mxu1 %v1905_v42  ;;  %v1989_v41 = vld [vmem:[%s2671_s1 + $0x210] ss:$8 sps:$4 sm:$0xff]   ;;  %vm1539_vm6 = vmand %vm1537_vm2, %vm1538_vm3 }
  0x32   : > { %587 = vmatprep.subr.bf16.mxu0 %v1910_v43  ;;  %732 = vmatprep.subr.bf16.mxu1 %v1913_v44  ;;  %v1992_v42 = vld [vmem:[%s2671_s1 + $0x290] ss:$8 sps:$4 sm:$0xff]   ;;  %v1997_v43 = vld [vmem:[%s2671_s1 + $0x204] ss:$8 sps:$4 sm:$0xff]   ;;  %vm1540_vm8 = vmor %vm1539_vm6, %vm1536_vm4 }
  0x33   : > { %617 = vmatprep.mubr.bf16.mxu0 %v2115_v2  ;;  %762 = vmatprep.mubr.bf16.mxu1 %v2115_v2  ;;  %v2000_v44 = vld [vmem:[%s2671_s1 + $0x284] ss:$8 sps:$4 sm:$0xff]  }
  0x35   : > { %588 = vmatpush1.bf16.msra.mxu0 %v1908_v45  ;;  %733 = vmatpush1.bf16.msra.mxu1 %v1911_v46  ;;  %v793_v45 = vshrl.u32 %v1718_v34, 16  ;;  %v797_v46 = vrot.slane %v795_v40, 1  ;;  %v2065_v34 = vld [vmem:[%s2671_s1 + $0x434] ss:$8 sps:$4 sm:$0xff]   ;;  %v2069_v40 = vld [vmem:[%s2671_s1 + $0x410] ss:$8 sps:$4 sm:$0xff]  }
  0x36   : > { %589 = vmatprep.subr.bf16.mxu0 %v1916_v47  ;;  %734 = vmatprep.subr.bf16.mxu1 %v1919_v48  ;;  %v1735_v47 = vcombine.low %v2395_v14, %v1701_v39  ;;  %v1995_v48 = vld [vmem:[%s2671_s1 + $0x200] ss:$8 sps:$4 sm:$0xff]   ;;  %v1754_v39 = vld [vmem:[%s2247_s28 + $0x14] sm:$0x1] }
  0x39   : > { %590 = vmatpush1.bf16.msra.mxu0 %v1914_v49  ;;  %735 = vmatpush1.bf16.msra.mxu1 %v1917_v50  ;;  %v1998_v49 = vld [vmem:[%s2671_s1 + $0x280] ss:$8 sps:$4 sm:$0xff]   ;;  %v2003_v50 = vld [vmem:[%s2671_s1 + $0x374] ss:$8 sps:$4 sm:$0xff]  }
  0x3a   : > { %591 = vmatprep.subr.bf16.mxu0 %v1922_v51  ;;  %736 = vmatprep.subr.bf16.mxu1 %v1925_v52  ;;  %v2006_v51 = vld [vmem:[%s2671_s1 + $0x3f4] ss:$8 sps:$4 sm:$0xff]   ;;  %v942_v52 = vrot.slane %v1735_v47, 1 }
  0x3d   : > { %592 = vmatpush1.bf16.msra.mxu0 %v1920_v53  ;;  %737 = vmatpush1.bf16.msra.mxu1 %v1923_v54  ;;  %v798_v53 = vor.u32 %v797_v46, %v793_v45  ;;  %v2001_v54 = vld [vmem:[%s2671_s1 + $0x370] ss:$8 sps:$4 sm:$0xff]  }
  0x3e   : > { %593 = vmatprep.subr.bf16.mxu0 %v1928_v55  ;;  %738 = vmatprep.subr.bf16.mxu1 %v1931_v56  ;;  %v2004_v55 = vld [vmem:[%s2671_s1 + $0x3f0] ss:$8 sps:$4 sm:$0xff]   ;;  %v2009_v56 = vld [vmem:[%s2671_s1 + $0x364] ss:$8 sps:$4 sm:$0xff]  }
  0x41   : > { %594 = vmatpush1.bf16.msra.mxu0 %v1926_v57  ;;  %739 = vmatpush1.bf16.msra.mxu1 %v1929_v58  ;;  %v2012_v57 = vld [vmem:[%s2671_s1 + $0x3e4] ss:$8 sps:$4 sm:$0xff]   ;;  %v2007_v58 = vld [vmem:[%s2671_s1 + $0x360] ss:$8 sps:$4 sm:$0xff]  }
  0x42   : > { %595 = vmatprep.subr.bf16.mxu0 %v1934_v59  ;;  %740 = vmatprep.subr.bf16.mxu1 %v1937_v60  ;;  %v2010_v59 = vld [vmem:[%s2671_s1 + $0x3e0] ss:$8 sps:$4 sm:$0xff]   ;;  %v2015_v60 = vld [vmem:[%s2671_s1 + $0x354] ss:$8 sps:$4 sm:$0xff]  }
  0x45   : > { %596 = vmatpush1.bf16.msra.mxu0 %v1932_v61  ;;  %741 = vmatpush1.bf16.msra.mxu1 %v1935_v62  ;;  %v2018_v61 = vld [vmem:[%s2671_s1 + $0x3d4] ss:$8 sps:$4 sm:$0xff]   ;;  %v2013_v62 = vld [vmem:[%s2671_s1 + $0x350] ss:$8 sps:$4 sm:$0xff]  }
  0x46   : > { %597 = vmatprep.subr.bf16.mxu0 %v1940_v63  ;;  %742 = vmatprep.subr.bf16.mxu1 %v1943_v0  ;;  %v2016_v63 = vld [vmem:[%s2671_s1 + $0x3d0] ss:$8 sps:$4 sm:$0xff]   ;;  %v2021_v0 = vld [vmem:[%s2671_s1 + $0x344] ss:$8 sps:$4 sm:$0xff]  }
  0x49   : > { %598 = vmatpush1.bf16.msra.mxu0 %v1938_v1  ;;  %743 = vmatpush1.bf16.msra.mxu1 %v1941_v3  ;;  %v2024_v1 = vld [vmem:[%s2671_s1 + $0x3c4] ss:$8 sps:$4 sm:$0xff]   ;;  %v2019_v3 = vld [vmem:[%s2671_s1 + $0x340] ss:$8 sps:$4 sm:$0xff]  }
  0x4a   : > { %599 = vmatprep.subr.bf16.mxu0 %v1946_v4  ;;  %744 = vmatprep.subr.bf16.mxu1 %v1949_v6  ;;  %v2022_v4 = vld [vmem:[%s2671_s1 + $0x3c0] ss:$8 sps:$4 sm:$0xff]   ;;  %v2030_v6 = vld [vmem:[%s2671_s1 + $0x3b4] ss:$8 sps:$4 sm:$0xff]  }
  0x4d   : > { %600 = vmatpush1.bf16.msra.mxu0 %v1944_v7  ;;  %745 = vmatpush1.bf16.msra.mxu1 %v1947_v8  ;;  %v2025_v7 = vld [vmem:[%s2671_s1 + $0x330] ss:$8 sps:$4 sm:$0xff]  }
  0x4e   : > { %880 = vmatprep.subr.bf16.mxu0 %v1953_v10  ;;  %1024 = vmatprep.subr.bf16.mxu1 %v1958_v11  ;;  %v2028_v8 = vld [vmem:[%s2671_s1 + $0x3b0] ss:$8 sps:$4 sm:$0xff]   ;;  %v2033_v10 = vld [vmem:[%s2671_s1 + $0x324] ss:$8 sps:$4 sm:$0xff]  }
  0x4f   : > { %v2036_v11 = vld [vmem:[%s2671_s1 + $0x3a4] ss:$8 sps:$4 sm:$0xff]  }
  0x50   : > { %618 = vmatmul.mubr.bf16.vlgmr.msra.gmra.mxu0 %v503_v13  ;;  %763 = vmatmul.mubr.bf16.vlgmr.msra.gmra.mxu1 %v2395_v14  ;;  %v2031_v13 = vld [vmem:[%s2671_s1 + $0x320] ss:$8 sps:$4 sm:$0xff]  }
  0x51   : > { %881 = vmatpush1.bf16.msra.mxu0 %v1951_v12  ;;  %1025 = vmatpush1.bf16.msra.mxu1 %v1956_v15  ;;  %v1771_v12 = vcombine.low %v2554_v9, %v2554_v9  ;;  %v2034_v14 = vld [vmem:[%s2671_s1 + $0x3a0] ss:$8 sps:$4 sm:$0xff]   ;;  %v2039_v15 = vld [vmem:[%s2671_s1 + $0x314] ss:$8 sps:$4 sm:$0xff]  }
  0x52   : > { %882 = vmatprep.subr.bf16.mxu0 %v1961_v16  ;;  %1026 = vmatprep.subr.bf16.mxu1 %v1964_v17  ;;  %v2042_v16 = vld [vmem:[%s2671_s1 + $0x394] ss:$8 sps:$4 sm:$0xff]  }
  0x53   : > { %912 = vmatprep.mubr.bf16.mxu0 %v2115_v2  ;;  %1056 = vmatprep.mubr.bf16.mxu1 %v2115_v2  ;;  %v1234_v17 = vshll.u32 %v1771_v12, 16 }
  0x55   : > { %883 = vmatpush1.bf16.msra.mxu0 %v1959_v18  ;;  %1027 = vmatpush1.bf16.msra.mxu1 %v1962_v19  ;;  %v2037_v18 = vld [vmem:[%s2671_s1 + $0x310] ss:$8 sps:$4 sm:$0xff]  }
  0x56   : > { %884 = vmatprep.subr.bf16.mxu0 %v1967_v20  ;;  %1028 = vmatprep.subr.bf16.mxu1 %v1970_v21  ;;  %v2040_v19 = vld [vmem:[%s2671_s1 + $0x390] ss:$8 sps:$4 sm:$0xff]   ;;  %v2045_v20 = vld [vmem:[%s2671_s1 + $0x304] ss:$8 sps:$4 sm:$0xff]  }
  0x57   : > { %v2048_v21 = vld [vmem:[%s2671_s1 + $0x384] ss:$8 sps:$4 sm:$0xff]  }
  0x59   : > { %885 = vmatpush1.bf16.msra.mxu0 %v1965_v22  ;;  %1029 = vmatpush1.bf16.msra.mxu1 %v1968_v23  ;;  %v1232_v22 = vshrl.u32 %v1771_v12, 16  ;;  %v1236_v23 = vrot.slane %v1234_v17, 1 }
  0x5a   : > { %886 = vmatprep.subr.bf16.mxu0 %v1973_v24  ;;  %1030 = vmatprep.subr.bf16.mxu1 %v1976_v25  ;;  %v2043_v24 = vld [vmem:[%s2671_s1 + $0x300] ss:$8 sps:$4 sm:$0xff]  }
  0x5b   : > { %v2046_v25 = vld [vmem:[%s2671_s1 + $0x380] ss:$8 sps:$4 sm:$0xff]  }
  0x5d   : > { %887 = vmatpush1.bf16.msra.mxu0 %v1971_v26  ;;  %1031 = vmatpush1.bf16.msra.mxu1 %v1974_v27  ;;  %v2053_v26 = vld [vmem:[%s2671_s1 + $0x474] ss:$8 sps:$4 sm:$0xff]   ;;  %v1237_v27 = vor.u32 %v1236_v23, %v1232_v22 }
  0x5e   : > { %888 = vmatprep.subr.bf16.mxu0 %v1979_v28  ;;  %1032 = vmatprep.subr.bf16.mxu1 %v1982_v29  ;;  %v2051_v28 = vld [vmem:[%s2671_s1 + $0x470] ss:$8 sps:$4 sm:$0xff]   ;;  %v2056_v29 = vld [vmem:[%s2671_s1 + $0x464] ss:$8 sps:$4 sm:$0xff]  }
  0x61   : > { %889 = vmatpush1.bf16.msra.mxu0 %v1977_v30  ;;  %1033 = vmatpush1.bf16.msra.mxu1 %v1980_v31  ;;  %v2054_v30 = vld [vmem:[%s2671_s1 + $0x460] ss:$8 sps:$4 sm:$0xff]   ;;  %v2059_v31 = vld [vmem:[%s2671_s1 + $0x454] ss:$8 sps:$4 sm:$0xff]  }
  0x62   : > { %890 = vmatprep.subr.bf16.mxu0 %v1985_v32  ;;  %1034 = vmatprep.subr.bf16.mxu1 %v1988_v33  ;;  %v2057_v32 = vld [vmem:[%s2671_s1 + $0x450] ss:$8 sps:$4 sm:$0xff]   ;;  %v2062_v33 = vld [vmem:[%s2671_s1 + $0x444] ss:$8 sps:$4 sm:$0xff]  }
  0x65   : > { %891 = vmatpush1.bf16.msra.mxu0 %v1983_v35  ;;  %1035 = vmatpush1.bf16.msra.mxu1 %v1986_v36  ;;  %v2063_v35 = vld [vmem:[%s2671_s1 + $0x430] ss:$8 sps:$4 sm:$0xff]   ;;  %v2068_v36 = vld [vmem:[%s2671_s1 + $0x424] ss:$8 sps:$4 sm:$0xff]  }
  0x66   : > { %892 = vmatprep.subr.bf16.mxu0 %v1991_v37  ;;  %1036 = vmatprep.subr.bf16.mxu1 %v1994_v38  ;;  %v2066_v37 = vld [vmem:[%s2671_s1 + $0x420] ss:$8 sps:$4 sm:$0xff]   ;;  %v2071_v38 = vld [vmem:[%s2671_s1 + $0x414] ss:$8 sps:$4 sm:$0xff]  }
  0x69   : > { %893 = vmatpush1.bf16.msra.mxu0 %v1989_v41  ;;  %1037 = vmatpush1.bf16.msra.mxu1 %v1992_v42  ;;  %v2074_v41 = vld [vmem:[%s2671_s1 + $0x404] ss:$8 sps:$4 sm:$0xff]   ;;  %v1788_v42 = vcombine.low %v2554_v9, %v1754_v39 }
  0x6a   : > { %894 = vmatprep.subr.bf16.mxu0 %v1997_v43  ;;  %1038 = vmatprep.subr.bf16.mxu1 %v2000_v44  ;;  %v2072_v43 = vld [vmem:[%s2671_s1 + $0x400] ss:$8 sps:$4 sm:$0xff]  }
  0x6b   : > { %v1381_v44 = vrot.slane %v1788_v42, 1 }
  0x6d   : > { %895 = vmatpush1.bf16.msra.mxu0 %v1995_v48  ;;  %1039 = vmatpush1.bf16.msra.mxu1 %v1998_v49 }
  0x6e   : > { %1169 = vmatprep.subr.bf16.mxu0 %v2003_v50  ;;  %1319 = vmatprep.subr.bf16.mxu1 %v2006_v51 }
  0x70   : > { %913 = vmatmul.mubr.bf16.vlgmr.msra.gmra.mxu0 %v798_v53  ;;  %1057 = vmatmul.mubr.bf16.vlgmr.msra.gmra.mxu1 %v942_v52 }
  0x71   : > { %1170 = vmatpush1.bf16.msra.mxu0 %v2001_v54  ;;  %1320 = vmatpush1.bf16.msra.mxu1 %v2004_v55 }
  0x72   : > { %1171 = vmatprep.subr.bf16.mxu0 %v2009_v56  ;;  %1321 = vmatprep.subr.bf16.mxu1 %v2012_v57 }
  0x73   : > { %1201 = vmatprep.mubr.bf16.mxu0 %v2115_v2  ;;  %1351 = vmatprep.mubr.bf16.mxu1 %v2115_v2 }
  0x75   : > { %1172 = vmatpush1.bf16.msra.mxu0 %v2007_v58  ;;  %1322 = vmatpush1.bf16.msra.mxu1 %v2010_v59 }
  0x76   : > { %1173 = vmatprep.subr.bf16.mxu0 %v2015_v60  ;;  %1323 = vmatprep.subr.bf16.mxu1 %v2018_v61 }
  0x79   : > { %1174 = vmatpush1.bf16.msra.mxu0 %v2013_v62  ;;  %1324 = vmatpush1.bf16.msra.mxu1 %v2016_v63 }
  0x7a   : > { %1175 = vmatprep.subr.bf16.mxu0 %v2021_v0  ;;  %1325 = vmatprep.subr.bf16.mxu1 %v2024_v1 }
  0x7d   : > { %1176 = vmatpush1.bf16.msra.mxu0 %v2019_v3  ;;  %1326 = vmatpush1.bf16.msra.mxu1 %v2022_v4 }
  0x7e   : > { %1177 = vmatprep.subr.bf16.mxu0 %v2027_v5  ;;  %1327 = vmatprep.subr.bf16.mxu1 %v2030_v6 }
  0x81   : > { %1178 = vmatpush1.bf16.msra.mxu0 %v2025_v7  ;;  %1328 = vmatpush1.bf16.msra.mxu1 %v2028_v8 }
  0x82   : > { %1179 = vmatprep.subr.bf16.mxu0 %v2033_v10  ;;  %1329 = vmatprep.subr.bf16.mxu1 %v2036_v11 }
  0x85   : > { %1180 = vmatpush1.bf16.msra.mxu0 %v2031_v13  ;;  %1330 = vmatpush1.bf16.msra.mxu1 %v2034_v14 }
  0x86   : > { %1181 = vmatprep.subr.bf16.mxu0 %v2039_v15  ;;  %1331 = vmatprep.subr.bf16.mxu1 %v2042_v16 }
  0x89   : > { %1182 = vmatpush1.bf16.msra.mxu0 %v2037_v18  ;;  %1332 = vmatpush1.bf16.msra.mxu1 %v2040_v19 }
  0x8a   : > { %1183 = vmatprep.subr.bf16.mxu0 %v2045_v20  ;;  %1333 = vmatprep.subr.bf16.mxu1 %v2048_v21  ;;  %v1508_v20 = vlaneseq }
  0x8c   : > { %v1509_v23 = vshrl.u32 %v1508_v20, 7 }
  0x8d   : > { %1184 = vmatpush1.bf16.msra.mxu0 %v2043_v24  ;;  %1334 = vmatpush1.bf16.msra.mxu1 %v2046_v25 }
  0x8e   : > { %1463 = vmatprep.subr.bf16.mxu0 %v2053_v26 }
  0x90   : > { %1202 = vmatmul.mubr.bf16.vlgmr.msra.gmra.mxu0 %v2554_v9  ;;  %1352 = vmatmul.mubr.bf16.vlgmr.msra.gmra.mxu1 %v1237_v27  ;;  %v1510_v27 = vsub.s32 0, %v1509_v23 }
  0x91   : > { %1464 = vmatpush1.bf16.msra.mxu0 %v2051_v28  ;;  %1495 = vmatprep.mubr.bf16.mxu0 %v2115_v2  ;;  %v2060_v2 = vld [vmem:[%s2671_s1 + $0x440] ss:$8 sps:$4 sm:$0xff]  }
  0x92   : > { %1465 = vmatprep.subr.bf16.mxu0 %v2056_v29  ;;  %v1506_v28 = vld [vmem:[%s2672_s2] sm:$0x3] }
  0x95   : > { %1466 = vmatpush1.bf16.msra.mxu0 %v2054_v30  ;;  %v1514_v30 = vsub.s32 1, %v1509_v23 }
  0x96   : > { %1467 = vmatprep.subr.bf16.mxu0 %v2059_v31 }
  0x99   : > { %1468 = vmatpush1.bf16.msra.mxu0 %v2057_v32  ;;  %v1511_v32 = vrot.slane %v1506_v28, %v1510_v27 }
  0x9a   : > { %1469 = vmatprep.subr.bf16.mxu0 %v2062_v33 }
  0x9d   : > { %1470 = vmatpush1.bf16.msra.mxu0 %v2060_v2 }
  0x9e   : > { %1471 = vmatprep.subr.bf16.mxu0 %v2065_v34 }
  0xa1   : > { %1472 = vmatpush1.bf16.msra.mxu0 %v2063_v35  ;;  %v1515_v35 = vrot.slane %v1506_v28, %v1514_v30 }
  0xa2   : > { %1473 = vmatprep.subr.bf16.mxu0 %v2068_v36 }
  0xa5   : > { %1474 = vmatpush1.bf16.msra.mxu0 %v2066_v37 }
  0xa6   : > { %1475 = vmatprep.subr.bf16.mxu0 %v2071_v38 }
  0xa9   : > { %1476 = vmatpush1.bf16.msra.mxu0 %v2069_v40 }
  0xaa   : > { %1477 = vmatprep.subr.bf16.mxu0 %v2074_v41 }
  0xad   : > { %1478 = vmatpush1.bf16.msra.mxu0 %v2072_v43 }
  0xb0   : > { %1496 = vmatmul.mubr.bf16.vlgmr.msra.gmra.mxu0 %v1381_v44 }
  0xf0   : > { %v356_v45 = vpop.f32.mrf.mxu0  ;;  %v477_v46 = vpop.f32.mrf.mxu1 }
  0xf1   : > { %v478_v47 = vadd.f32 %v477_v46, %v356_v45  ;;  %v1541_v46 = vld [vmem:[%s192_s4] sm:$0xff] }
  0xf2   : > { %v358_v48 = vpop.f32.mrf.mxu0  ;;  %v479_v49 = vpop.f32.mrf.mxu1 }
  0xf3   : > { %v480_v50 = vadd.f32 %v479_v49, %v358_v48 }
  0xf4   : > { %v360_v51 = vpop.f32.mrf.mxu0  ;;  %v481_v52 = vpop.f32.mrf.mxu1 }
  0xf6   : > { %v361_v53 = vpop.f32.mrf.mxu0  ;;  %v482_v54 = vpop.f32.mrf.mxu1 }
 0x110   : > { %v619_v55 = vpop.f32.mrf.mxu0  ;;  %v764_v56 = vpop.f32.mrf.mxu1 }
 0x111   : > { %v626_v57 = vadd.f32 %v619_v55, %v478_v47 }
 0x112   : > { %v621_v58 = vpop.f32.mrf.mxu0  ;;  %v766_v59 = vpop.f32.mrf.mxu1 }
 0x113   : > { %v627_v60 = vadd.f32 %v621_v58, %v480_v50  ;;  %v771_v61 = vadd.f32 %v764_v56, %v626_v57 }
 0x114   : > { %v623_v62 = vpop.f32.mrf.mxu0  ;;  %v768_v63 = vpop.f32.mrf.mxu1 }
 0x115   : > { %v772_v0 = vadd.f32 %v766_v59, %v627_v60 }
 0x116   : > { %v624_v1 = vpop.f32.mrf.mxu0  ;;  %v769_v3 = vpop.f32.mrf.mxu1 }
 0x130   : > { %v914_v4 = vpop.f32.mrf.mxu0  ;;  %v1058_v5 = vpop.f32.mrf.mxu1 }
 0x131   : > { %v921_v21 = vadd.f32 %v914_v4, %v771_v61 }
 0x132   : > { %v916_v6 = vpop.f32.mrf.mxu0  ;;  %v1060_v7 = vpop.f32.mrf.mxu1 }
 0x133   : > { %v922_v22 = vadd.f32 %v916_v6, %v772_v0  ;;  %v1065_v24 = vadd.f32 %v1058_v5, %v921_v21 }
 0x134   : > { %v918_v8 = vpop.f32.mrf.mxu0  ;;  %v1062_v9 = vpop.f32.mrf.mxu1 }
 0x135   : > { %v1066_v25 = vadd.f32 %v1060_v7, %v922_v22 }
 0x136   : > { %v919_v10 = vpop.f32.mrf.mxu0  ;;  %v1063_v11 = vpop.f32.mrf.mxu1 }
 0x150   : > { %v1203_v12 = vpop.f32.mrf.mxu0  ;;  %v1353_v13 = vpop.f32.mrf.mxu1 }
 0x151   : > { %v1210_v26 = vadd.f32 %v1203_v12, %v1065_v24 }
 0x152   : > { %v1205_v14 = vpop.f32.mrf.mxu0  ;;  %v1355_v15 = vpop.f32.mrf.mxu1 }
 0x153   : > { %v1211_v29 = vadd.f32 %v1205_v14, %v1066_v25  ;;  %v1360_v31 = vadd.f32 %v1353_v13, %v1210_v26 }
 0x154   : > { %v1207_v16 = vpop.f32.mrf.mxu0  ;;  %v1357_v17 = vpop.f32.mrf.mxu1 }
 0x155   : > { %v1361_v2 = vadd.f32 %v1355_v15, %v1211_v29 }
 0x156   : > { %v1208_v18 = vpop.f32.mrf.mxu0  ;;  %v1358_v19 = vpop.f32.mrf.mxu1 }
 0x170   : > { %v1497_v33 = vpop.f32.mrf.mxu0 }
 0x171   : > { %v1504_v34 = vadd.f32 %v1497_v33, %v1360_v31 }
 0x172   : > { %v1499_v36 = vpop.f32.mrf.mxu0 }
 0x173   : > { %v1518_v37 = vadd.f32 %v1511_v32, %v1504_v34  ;;  %v1505_v38 = vadd.f32 %v1499_v36, %v1361_v2 }
 0x174   : > { %v1501_v39 = vpop.f32.mrf.mxu0 }
 0x175   : > { %v1522_v40 = vmul.f32 0.01, %v1518_v37  ;;  %v1519_v41 = vadd.f32 %v1515_v35, %v1505_v38  ;;  %vm1520_vm5 = vcmp.ge.f32.partialorder %v1518_v37, 0.0 }
 0x176   : > { %v1502_v42 = vpop.f32.mrf.mxu0 }
 0x177   : > { %vm1521_vm7 = vcmp.ge.f32.partialorder %v1519_v41, 0.0  ;;  %v1523_v43 = vmul.f32 0.01, %v1519_v41  ;;  %v1524_v44 = vsel %vm1520_vm5, %v1518_v37, %v1522_v40 }
 0x179   : > { %v1525_v45 = vsel %vm1521_vm7, %v1519_v41, %v1523_v43 }
 0x17a   : > { %v1810_v47 = vpack.c.bf16 %v1525_v45, %v1524_v44 }
 0x17c   : > { %v1542_v48 = vsel %vm1540_vm8, %v1810_v47, %v1541_v46 }
 0x17d   : > { %1543 = vst [vmem:[%s192_s4] sm:$0xff] %v1542_v48 }
 0x17e PF: > { %s13_s16 = sadd.s32 1, %s2113_s16   ;;  %s2674_s12 = smov %s2105_s14 }
 0x17f   : > { %p10_p7 = scmp.ge.s32.totalorder %s13_s16, 30   ;;  %s2675_s13 = smov %s2109_s15 }
 0x180   : > { %s2676_s14 = smov %s2679_s17  ;;  %s2677_s15 = smov %s2683_s18 }
 0x181   :  { %12 = sbr.rel (!%p10_p7) target bundleno = 3 (0x3), region = 65 }

// kernel: ocr_forward.16
= control target key start
LH: loop header
LB: loop body
LE: loop exit
PB: predicated region body
PF: predicated region fallthrough
CT: control target
= control target key end

     0   :  { %s1752_s12 = smov 0   ;;  %s1754_s13 = smov 0   ;;  %s2213_s0 = inlined_call_operand.vmem [shape: bf16[2,8,7,256], index: 0, kind: input, shape index: {}]   ;;  %s2214_s1 = inlined_call_operand.vmem [shape: bf16[1024,256], index: 1, kind: input, shape index: {}]   ;;  %s2215_s2 = inlined_call_operand.vmem [shape: f32[1,256], index: 2, kind: input, shape index: {}]   ;;  %s2216_s3 = inlined_call_operand.vmem [shape: bf16[2,7,6,256], index: 3, kind: output, shape index: {}]  }
   0x1   :  { %s1756_s14 = smov 0   ;;  %s1758_s15 = smov 0  }
   0x2   :  { %s1760_s16 = smov 0  }
   0x3 LB: > { %s22_s17 = sadd.s32 1, %s1722_s14  ;;  %s25_s18 = sadd.s32 1, %s1726_s15  ;;  %s1730_s16 = sphi %s1760_s16, %s13_s16   ;;  %s1726_s15 = sphi %s1758_s15, %s2220_s15   ;;  %s1722_s14 = sphi %s1756_s14, %s2219_s14   ;;  %s1718_s13 = sphi %s1754_s13, %s2218_s13   ;;  %s1714_s12 = sphi %s1752_s12, %s2217_s12  }
   0x4   : > { %p23_p0 = scmp.ge.s32.totalorder %s22_s17, 7  ;;  %p1308_p1 = scmp.ge.s32.totalorder %s1730_s16, 1 }
   0x5   : > { %p151_p2 = scmp.lt.s32.totalorder %s1730_s16, 15 }
   0x6   : > { %s2222_s17 = smov (%p23_p0, %s22_s17), 0  ;;  %s2224_s18 = smov (!%p23_p0, %s25_s18), %s1726_s15 }
   0x7   : > { %p152_p3 = pnand %p1308_p1, %p151_p2  ;;  %p27_p4 = scmp.ge.s32.totalorder %s2224_s18, 2 }
   0x8   : > { %p179_p5 = scmp.lt.s32.totalorder (!%p152_p3), %s1718_s13, 1  ;;  %s1453_s25 = sshll.u32 (!%p152_p3), %s1714_s12, 3 }
   0x9   : > { %s2226_s18 = smov (%p27_p4, %s2224_s18), 0  ;;  %155 = sbr.rel (%p152_p3) target bundleno = 350 (0x15e), region = 32 }
   0xa   : > { %p186_p6 = scmp.lt.s32.totalorder (!%p152_p3), %s1714_s12, 6 }
   0xe   : > { %v1496_v0 = vld [vmem:[%s2214_s1 + $0x174] ss:$8 sps:$4 sm:$0xff]   ;;  %v1500_v2 = vld [vmem:[%s2214_s1 + $0x170] ss:$8 sps:$4 sm:$0xff]   ;;  %v1502_v4 = vld [vmem:[%s2214_s1 + $0x164] ss:$8 sps:$4 sm:$0xff]  }
   0xf   : > { %v1498_v1 = vld [vmem:[%s2214_s1 + $0x74] ss:$8 sps:$4 sm:$0xff]   ;;  %442 = vmatprep.subr.bf16.mxu0 %v1496_v0  ;;  %v1501_v3 = vld [vmem:[%s2214_s1 + $0x70] ss:$8 sps:$4 sm:$0xff]   ;;  %v1504_v5 = vld [vmem:[%s2214_s1 + $0x64] ss:$8 sps:$4 sm:$0xff]  }
  0x10   : > { %645 = vmatprep.subr.bf16.mxu1 %v1498_v1  ;;  %443 = vmatpush1.bf16.msra.mxu0 %v1500_v2  ;;  %v1506_v6 = vld [vmem:[%s2214_s1 + $0x160] ss:$8 sps:$4 sm:$0xff]   ;;  %v1508_v8 = vld [vmem:[%s2214_s1 + $0x154] ss:$8 sps:$4 sm:$0xff]   ;;  %v1512_v10 = vld [vmem:[%s2214_s1 + $0x150] ss:$8 sps:$4 sm:$0xff]  }
  0x11   : > { %646 = vmatpush1.bf16.msra.mxu1 %v1501_v3  ;;  %444 = vmatprep.subr.bf16.mxu0 %v1502_v4  ;;  %v1507_v7 = vld [vmem:[%s2214_s1 + $0x60] ss:$8 sps:$4 sm:$0xff]   ;;  %v1510_v9 = vld [vmem:[%s2214_s1 + $0x54] ss:$8 sps:$4 sm:$0xff]   ;;  %v1513_v11 = vld [vmem:[%s2214_s1 + $0x50] ss:$8 sps:$4 sm:$0xff]  }
  0x12   : > { %647 = vmatprep.subr.bf16.mxu1 %v1504_v5  ;;  %v1514_v12 = vld [vmem:[%s2214_s1 + $0x144] ss:$8 sps:$4 sm:$0xff]   ;;  %v1518_v14 = vld [vmem:[%s2214_s1 + $0x140] ss:$8 sps:$4 sm:$0xff]   ;;  %v1520_v16 = vld [vmem:[%s2214_s1 + $0x134] ss:$8 sps:$4 sm:$0xff]  }
  0x13   : > { %v1516_v13 = vld [vmem:[%s2214_s1 + $0x44] ss:$8 sps:$4 sm:$0xff]   ;;  %v1519_v15 = vld [vmem:[%s2214_s1 + $0x40] ss:$8 sps:$4 sm:$0xff]   ;;  %v1522_v17 = vld [vmem:[%s2214_s1 + $0x34] ss:$8 sps:$4 sm:$0xff]  }
  0x14   : > { %445 = vmatpush1.bf16.msra.mxu0 %v1506_v6  ;;  %v1524_v18 = vld [vmem:[%s2214_s1 + $0x130] ss:$8 sps:$4 sm:$0xff]   ;;  %v1526_v20 = vld [vmem:[%s2214_s1 + $0x124] ss:$8 sps:$4 sm:$0xff]   ;;  %v1530_v22 = vld [vmem:[%s2214_s1 + $0x120] ss:$8 sps:$4 sm:$0xff]  }
  0x15   : > { %648 = vmatpush1.bf16.msra.mxu1 %v1507_v7  ;;  %446 = vmatprep.subr.bf16.mxu0 %v1508_v8  ;;  %v1525_v19 = vld [vmem:[%s2214_s1 + $0x30] ss:$8 sps:$4 sm:$0xff]   ;;  %v1528_v21 = vld [vmem:[%s2214_s1 + $0x24] ss:$8 sps:$4 sm:$0xff]   ;;  %v1531_v23 = vld [vmem:[%s2214_s1 + $0x20] ss:$8 sps:$4 sm:$0xff]  }
  0x16   : > { %649 = vmatprep.subr.bf16.mxu1 %v1510_v9  ;;  %v1532_v24 = vld [vmem:[%s2214_s1 + $0x114] ss:$8 sps:$4 sm:$0xff]   ;;  %v1536_v26 = vld [vmem:[%s2214_s1 + $0x110] ss:$8 sps:$4 sm:$0xff]   ;;  %v1538_v28 = vld [vmem:[%s2214_s1 + $0x104] ss:$8 sps:$4 sm:$0xff]  }
  0x17   : > { %v1534_v25 = vld [vmem:[%s2214_s1 + $0x14] ss:$8 sps:$4 sm:$0xff]   ;;  %v1537_v27 = vld [vmem:[%s2214_s1 + $0x10] ss:$8 sps:$4 sm:$0xff]   ;;  %v1540_v29 = vld [vmem:[%s2214_s1 + $0x4] ss:$8 sps:$4 sm:$0xff]  }
  0x18   : > { %447 = vmatpush1.bf16.msra.mxu0 %v1512_v10  ;;  %v1542_v30 = vld [vmem:[%s2214_s1 + $0x100] ss:$8 sps:$4 sm:$0xff]   ;;  %v1544_v32 = vld [vmem:[%s2214_s1 + $0x1f4] ss:$8 sps:$4 sm:$0xff]   ;;  %s2228_s13 = smov (!%p179_p5, %s1718_s13), 1  ;;  %s2230_s12 = smov (!%p186_p6, %s1714_s12), 6 }
  0x19   : > { %650 = vmatpush1.bf16.msra.mxu1 %v1513_v11  ;;  %448 = vmatprep.subr.bf16.mxu0 %v1514_v12  ;;  %v1543_v31 = vld [vmem:[%s2214_s1] ss:$8 sps:$4 sm:$0xff]   ;;  %v1546_v33 = vld [vmem:[%s2214_s1 + $0xf4] ss:$8 sps:$4 sm:$0xff]   ;;  %v1548_v34 = vld [vmem:[%s2214_s1 + $0x1f0] ss:$8 sps:$4 sm:$0xff]  }
  0x1a   : > { %651 = vmatprep.subr.bf16.mxu1 %v1516_v13  ;;  %v1549_v35 = vld [vmem:[%s2214_s1 + $0xf0] ss:$8 sps:$4 sm:$0xff]   ;;  %v1550_v36 = vld [vmem:[%s2214_s1 + $0x1e4] ss:$8 sps:$4 sm:$0xff]   ;;  %s1452_s8 = sshll.u32 %s2228_s13, 6  ;;  %s1455_s27 = smul.u32 14, %s2228_s13 }
  0x1b   : > { %v1552_v37 = vld [vmem:[%s2214_s1 + $0xe4] ss:$8 sps:$4 sm:$0xff]   ;;  %v1554_v38 = vld [vmem:[%s2214_s1 + $0x1e0] ss:$8 sps:$4 sm:$0xff]   ;;  %v1556_v40 = vld [vmem:[%s2214_s1 + $0x1d4] ss:$8 sps:$4 sm:$0xff]   ;;  %s183_s24 = scalar_lea.vmem %s2213_s0, %s1452_s8 }
  0x1c   : > { %449 = vmatpush1.bf16.msra.mxu0 %v1518_v14  ;;  %v1555_v39 = vld [vmem:[%s2214_s1 + $0xe0] ss:$8 sps:$4 sm:$0xff]   ;;  %v1558_v41 = vld [vmem:[%s2214_s1 + $0xd4] ss:$8 sps:$4 sm:$0xff]   ;;  %v1560_v42 = vld [vmem:[%s2214_s1 + $0x1d0] ss:$8 sps:$4 sm:$0xff]   ;;  %s1927_s5 = scalar_lea.vmem %s183_s24, %s1453_s25 }
  0x1d   : > { %652 = vmatpush1.bf16.msra.mxu1 %v1519_v15  ;;  %450 = vmatprep.subr.bf16.mxu0 %v1520_v16  ;;  %v1561_v43 = vld [vmem:[%s2214_s1 + $0xd0] ss:$8 sps:$4 sm:$0xff]   ;;  %v1562_v44 = vld [vmem:[%s2214_s1 + $0x1c4] ss:$8 sps:$4 sm:$0xff]   ;;  %v1566_v47 = vld [vmem:[%s2214_s1 + $0x1c0] ss:$8 sps:$4 sm:$0xff]  }
  0x1e   : > { %653 = vmatprep.subr.bf16.mxu1 %v1522_v17  ;;  %v1564_v45 = vld [vmem:[%s2214_s1 + $0xc4] ss:$8 sps:$4 sm:$0xff]   ;;  %v1567_v49 = vld [vmem:[%s2214_s1 + $0xc0] ss:$8 sps:$4 sm:$0xff]   ;;  %v1568_v50 = vld [vmem:[%s2214_s1 + $0x1b4] ss:$8 sps:$4 sm:$0xff]  }
  0x1f   : > { %v196_v46 = vld [vmem:[%s1927_s5] sm:$0xff]  ;;  %v1570_v51 = vld [vmem:[%s2214_s1 + $0xb4] ss:$8 sps:$4 sm:$0xff]   ;;  %v1572_v54 = vld [vmem:[%s2214_s1 + $0x1b0] ss:$8 sps:$4 sm:$0xff]   ;;  %s1311_s28 = sshll.u32 %s2230_s12, 1 }
  0x20   : > { %451 = vmatpush1.bf16.msra.mxu0 %v1524_v18  ;;  %v1316_v48 = vcombine.high %v196_v46, %v196_v46  ;;  %v1573_v55 = vld [vmem:[%s2214_s1 + $0xb0] ss:$8 sps:$4 sm:$0xff]   ;;  %v1574_v57 = vld [vmem:[%s2214_s1 + $0x1a4] ss:$8 sps:$4 sm:$0xff]   ;;  %v1578_v60 = vld [vmem:[%s2214_s1 + $0x1a0] ss:$8 sps:$4 sm:$0xff]   ;;  %v1315_v62 = vcombine.low %v196_v46, %v196_v46  ;;  %s190_s29 = sadd.s32 %s1455_s27, %s1311_s28 }
  0x21   : > { %654 = vmatpush1.bf16.msra.mxu1 %v1525_v19  ;;  %452 = vmatprep.subr.bf16.mxu0 %v1526_v20  ;;  %v1576_v58 = vld [vmem:[%s2214_s1 + $0xa4] ss:$8 sps:$4 sm:$0xff]   ;;  %v1579_v61 = vld [vmem:[%s2214_s1 + $0xa0] ss:$8 sps:$4 sm:$0xff]   ;;  %v1580_v63 = vld [vmem:[%s2214_s1 + $0x194] ss:$8 sps:$4 sm:$0xff]  }
  0x22   : > { %655 = vmatprep.subr.bf16.mxu1 %v1528_v21  ;;  %v274_v52 = vshrl.u32 %v1316_v48, 16  ;;  %v276_v53 = vshll.u32 %v1316_v48, 16  ;;  %677 = vmatprep.mubr.bf16.mxu1 %v1316_v48  ;;  %v1582_v0 = vld [vmem:[%s2214_s1 + $0x94] ss:$8 sps:$4 sm:$0xff]   ;;  %v1584_v1 = vld [vmem:[%s2214_s1 + $0x190] ss:$8 sps:$4 sm:$0xff]  }
  0x23   : > { %v1585_v2 = vld [vmem:[%s2214_s1 + $0x90] ss:$8 sps:$4 sm:$0xff]   ;;  %v269_v3 = vshll.u32 %v1315_v62, 16  ;;  %v1586_v4 = vld [vmem:[%s2214_s1 + $0x184] ss:$8 sps:$4 sm:$0xff]   ;;  %v267_v8 = vshrl.u32 %v1315_v62, 16 }
  0x24   : > { %453 = vmatpush1.bf16.msra.mxu0 %v1530_v22  ;;  %v278_v56 = vrot.slane %v276_v53, 1  ;;  %v1588_v5 = vld [vmem:[%s2214_s1 + $0x84] ss:$8 sps:$4 sm:$0xff]   ;;  %v1590_v6 = vld [vmem:[%s2214_s1 + $0x180] ss:$8 sps:$4 sm:$0xff]   ;;  %s1312_s30 = sshll.u32 %s190_s29, 2 }
  0x25   : > { %656 = vmatpush1.bf16.msra.mxu1 %v1531_v23  ;;  %454 = vmatprep.subr.bf16.mxu0 %v1532_v24  ;;  %v1591_v7 = vld [vmem:[%s2214_s1 + $0x80] ss:$8 sps:$4 sm:$0xff]   ;;  %v271_v9 = vrot.slane %v269_v3, 1  ;;  %v1596_v10 = vld [vmem:[%s2214_s1 + $0x274] ss:$8 sps:$4 sm:$0xff]   ;;  %s192_s4 = scalar_lea.vmem %s2216_s3, %s1312_s30 }
  0x26   : > { %657 = vmatprep.subr.bf16.mxu1 %v1534_v25  ;;  %v279_v59 = vor.u32 %v278_v56, %v274_v52  ;;  %v1599_v11 = vld [vmem:[%s2214_s1 + $0x374] ss:$8 sps:$4 sm:$0xff]   ;;  %v1594_v13 = vld [vmem:[%s2214_s1 + $0x270] ss:$8 sps:$4 sm:$0xff]   ;;  %v1602_v15 = vld [vmem:[%s2214_s1 + $0x264] ss:$8 sps:$4 sm:$0xff]  }
  0x27   : > { %v272_v12 = vor.u32 %v271_v9, %v267_v8  ;;  %v1597_v14 = vld [vmem:[%s2214_s1 + $0x370] ss:$8 sps:$4 sm:$0xff]   ;;  %v1605_v16 = vld [vmem:[%s2214_s1 + $0x364] ss:$8 sps:$4 sm:$0xff]   ;;  %v1600_v17 = vld [vmem:[%s2214_s1 + $0x260] ss:$8 sps:$4 sm:$0xff]  }
  0x28   : > { %455 = vmatpush1.bf16.msra.mxu0 %v1536_v26  ;;  %474 = vmatprep.mubr.bf16.mxu0 %v279_v59  ;;  %v1603_v18 = vld [vmem:[%s2214_s1 + $0x360] ss:$8 sps:$4 sm:$0xff]   ;;  %v1608_v19 = vld [vmem:[%s2214_s1 + $0x254] ss:$8 sps:$4 sm:$0xff]   ;;  %v1606_v21 = vld [vmem:[%s2214_s1 + $0x250] ss:$8 sps:$4 sm:$0xff]  }
  0x29   : > { %658 = vmatpush1.bf16.msra.mxu1 %v1537_v27  ;;  %456 = vmatprep.subr.bf16.mxu0 %v1538_v28  ;;  %v1611_v20 = vld [vmem:[%s2214_s1 + $0x354] ss:$8 sps:$4 sm:$0xff]   ;;  %v1609_v22 = vld [vmem:[%s2214_s1 + $0x350] ss:$8 sps:$4 sm:$0xff]   ;;  %v1614_v23 = vld [vmem:[%s2214_s1 + $0x244] ss:$8 sps:$4 sm:$0xff]  }
  0x2a   : > { %659 = vmatprep.subr.bf16.mxu1 %v1540_v29  ;;  %v1617_v24 = vld [vmem:[%s2214_s1 + $0x344] ss:$8 sps:$4 sm:$0xff]   ;;  %v1612_v25 = vld [vmem:[%s2214_s1 + $0x240] ss:$8 sps:$4 sm:$0xff]   ;;  %v1620_v27 = vld [vmem:[%s2214_s1 + $0x234] ss:$8 sps:$4 sm:$0xff]  }
  0x2b   : > { %v1615_v26 = vld [vmem:[%s2214_s1 + $0x340] ss:$8 sps:$4 sm:$0xff]   ;;  %v1623_v28 = vld [vmem:[%s2214_s1 + $0x334] ss:$8 sps:$4 sm:$0xff]   ;;  %v1618_v29 = vld [vmem:[%s2214_s1 + $0x230] ss:$8 sps:$4 sm:$0xff]  }
  0x2c   : > { %457 = vmatpush1.bf16.msra.mxu0 %v1542_v30  ;;  %v1621_v30 = vld [vmem:[%s2214_s1 + $0x330] ss:$8 sps:$4 sm:$0xff]   ;;  %v1636_v46 = vld [vmem:[%s2214_s1 + $0x200] ss:$8 sps:$4 sm:$0xff]   ;;  %v1644_v48 = vld [vmem:[%s2214_s1 + $0x2f4] ss:$8 sps:$4 sm:$0xff]  }
  0x2d   : > { %660 = vmatpush1.bf16.msra.mxu1 %v1543_v31  ;;  %458 = vmatprep.subr.bf16.mxu0 %v1544_v32  ;;  %v1626_v31 = vld [vmem:[%s2214_s1 + $0x224] ss:$8 sps:$4 sm:$0xff]   ;;  %v1645_v52 = vld [vmem:[%s2214_s1 + $0x3f0] ss:$8 sps:$4 sm:$0xff]   ;;  %v1651_v56 = vld [vmem:[%s2214_s1 + $0x3e0] ss:$8 sps:$4 sm:$0xff]  }
  0x2e   : > { %661 = vmatprep.subr.bf16.mxu1 %v1546_v33  ;;  %v1629_v32 = vld [vmem:[%s2214_s1 + $0x324] ss:$8 sps:$4 sm:$0xff]   ;;  %v1624_v33 = vld [vmem:[%s2214_s1 + $0x220] ss:$8 sps:$4 sm:$0xff]   ;;  %v1654_v59 = vld [vmem:[%s2214_s1 + $0x2d0] ss:$8 sps:$4 sm:$0xff]  }
  0x2f   : > { %v1650_v53 = vld [vmem:[%s2214_s1 + $0x2e4] ss:$8 sps:$4 sm:$0xff]   ;;  %v1666_v3 = vld [vmem:[%s2214_s1 + $0x2b0] ss:$8 sps:$4 sm:$0xff]   ;;  %v1672_v8 = vld [vmem:[%s2214_s1 + $0x2a0] ss:$8 sps:$4 sm:$0xff]  }
  0x30   : > { %459 = vmatpush2.bf16.msra.mxu0 %v1548_v34  ;;  %v1627_v34 = vld [vmem:[%s2214_s1 + $0x320] ss:$8 sps:$4 sm:$0xff]  }
  0x31   : > { %662 = vmatpush2.bf16.msra.mxu1 %v1549_v35  ;;  %460 = vmatprep.subr.bf16.mxu0 %v1550_v36  ;;  %v1632_v35 = vld [vmem:[%s2214_s1 + $0x214] ss:$8 sps:$4 sm:$0xff]   ;;  %v1675_v9 = vld [vmem:[%s2214_s1 + $0x3a0] ss:$8 sps:$4 sm:$0xff]  }
  0x32   : > { %663 = vmatprep.subr.bf16.mxu1 %v1552_v37  ;;  %v1635_v36 = vld [vmem:[%s2214_s1 + $0x314] ss:$8 sps:$4 sm:$0xff]   ;;  %v2069_v37 = vld [vmem:[%s1927_s5 + $0x8] sm:$0xff] }
  0x34   : > { %461 = vmatpush2.bf16.msra.mxu0 %v1554_v38  ;;  %v1384_v38 = vcombine.high %v2069_v37, %v2069_v37 }
  0x35   : > { %664 = vmatpush2.bf16.msra.mxu1 %v1555_v39  ;;  %462 = vmatprep.subr.bf16.mxu0 %v1556_v40  ;;  %v1630_v39 = vld [vmem:[%s2214_s1 + $0x210] ss:$8 sps:$4 sm:$0xff]  }
  0x36   : > { %665 = vmatprep.subr.bf16.mxu1 %v1558_v41  ;;  %v1633_v40 = vld [vmem:[%s2214_s1 + $0x310] ss:$8 sps:$4 sm:$0xff]   ;;  %v1638_v41 = vld [vmem:[%s2214_s1 + $0x204] ss:$8 sps:$4 sm:$0xff]  }
  0x38   : > { %463 = vmatpush2.bf16.msra.mxu0 %v1560_v42  ;;  %v1641_v42 = vld [vmem:[%s2214_s1 + $0x304] ss:$8 sps:$4 sm:$0xff]  }
  0x39   : > { %666 = vmatpush2.bf16.msra.mxu1 %v1561_v43  ;;  %464 = vmatprep.subr.bf16.mxu0 %v1562_v44  ;;  %v973_v43 = vshrl.u32 %v1384_v38, 16  ;;  %v975_v44 = vshll.u32 %v1384_v38, 16 }
  0x3a   : > { %667 = vmatprep.subr.bf16.mxu1 %v1564_v45 }
  0x3b   : > { %v977_v45 = vrot.slane %v975_v44, 1 }
  0x3c   : > { %465 = vmatpush2.bf16.msra.mxu0 %v1566_v47  ;;  %v1639_v47 = vld [vmem:[%s2214_s1 + $0x300] ss:$8 sps:$4 sm:$0xff]  }
  0x3d   : > { %668 = vmatpush2.bf16.msra.mxu1 %v1567_v49  ;;  %466 = vmatprep.subr.bf16.mxu0 %v1568_v50  ;;  %v1647_v49 = vld [vmem:[%s2214_s1 + $0x3f4] ss:$8 sps:$4 sm:$0xff]   ;;  %v978_v50 = vor.u32 %v977_v45, %v973_v43 }
  0x3e   : > { %669 = vmatprep.subr.bf16.mxu1 %v1570_v51  ;;  %v1642_v51 = vld [vmem:[%s2214_s1 + $0x2f0] ss:$8 sps:$4 sm:$0xff]  }
  0x40   : > { %467 = vmatpush2.bf16.msra.mxu0 %v1572_v54  ;;  %v1653_v54 = vld [vmem:[%s2214_s1 + $0x3e4] ss:$8 sps:$4 sm:$0xff]  }
  0x41   : > { %670 = vmatpush2.bf16.msra.mxu1 %v1573_v55  ;;  %468 = vmatprep.subr.bf16.mxu0 %v1574_v57  ;;  %v1648_v55 = vld [vmem:[%s2214_s1 + $0x2e0] ss:$8 sps:$4 sm:$0xff]   ;;  %v1656_v57 = vld [vmem:[%s2214_s1 + $0x2d4] ss:$8 sps:$4 sm:$0xff]  }
  0x42   : > { %671 = vmatprep.subr.bf16.mxu1 %v1576_v58  ;;  %v1659_v58 = vld [vmem:[%s2214_s1 + $0x3d4] ss:$8 sps:$4 sm:$0xff]  }
  0x44   : > { %469 = vmatpush2.bf16.msra.mxu0 %v1578_v60  ;;  %v1657_v60 = vld [vmem:[%s2214_s1 + $0x3d0] ss:$8 sps:$4 sm:$0xff]  }
  0x45   : > { %672 = vmatpush2.bf16.msra.mxu1 %v1579_v61  ;;  %470 = vmatprep.subr.bf16.mxu0 %v1580_v63  ;;  %v1662_v61 = vld [vmem:[%s2214_s1 + $0x2c4] ss:$8 sps:$4 sm:$0xff]   ;;  %v1660_v63 = vld [vmem:[%s2214_s1 + $0x2c0] ss:$8 sps:$4 sm:$0xff]  }
  0x46   : > { %673 = vmatprep.subr.bf16.mxu1 %v1582_v0  ;;  %v1663_v0 = vld [vmem:[%s2214_s1 + $0x3c0] ss:$8 sps:$4 sm:$0xff]  }
  0x48   : > { %471 = vmatpush2.bf16.msra.mxu0 %v1584_v1  ;;  %v1668_v1 = vld [vmem:[%s2214_s1 + $0x2b4] ss:$8 sps:$4 sm:$0xff]  }
  0x49   : > { %674 = vmatpush2.bf16.msra.mxu1 %v1585_v2  ;;  %472 = vmatprep.subr.bf16.mxu0 %v1586_v4  ;;  %v1671_v2 = vld [vmem:[%s2214_s1 + $0x3b4] ss:$8 sps:$4 sm:$0xff]   ;;  %v1669_v4 = vld [vmem:[%s2214_s1 + $0x3b0] ss:$8 sps:$4 sm:$0xff]  }
  0x4a   : > { %675 = vmatprep.subr.bf16.mxu1 %v1588_v5  ;;  %v1674_v5 = vld [vmem:[%s2214_s1 + $0x2a4] ss:$8 sps:$4 sm:$0xff]  }
  0x4c   : > { %473 = vmatpush2.bf16.msra.mxu0 %v1590_v6  ;;  %v1677_v6 = vld [vmem:[%s2214_s1 + $0x3a4] ss:$8 sps:$4 sm:$0xff]  }
  0x4d   : > { %676 = vmatpush2.bf16.msra.mxu1 %v1591_v7  ;;  %890 = vmatprep.subr.bf16.mxu0 %v1596_v10  ;;  %v1383_v7 = vcombine.low %v2069_v37, %v2069_v37  ;;  %v1680_v10 = vld [vmem:[%s2214_s1 + $0x294] ss:$8 sps:$4 sm:$0xff]  }
  0x4e   : > { %1141 = vmatprep.subr.bf16.mxu1 %v1599_v11  ;;  %v1683_v11 = vld [vmem:[%s2214_s1 + $0x394] ss:$8 sps:$4 sm:$0xff]  }
  0x4f   : > { %475 = vmatmul.mubr.bf16.vlgmr.msra.gmra.mxu0 %v272_v12  ;;  %v968_v12 = vshll.u32 %v1383_v7, 16 }
  0x50   : > { %678 = vmatmul.mubr.bf16.vlgmr.msra.gmra.mxu1 %v1315_v62  ;;  %891 = vmatpush1.bf16.msra.mxu0 %v1594_v13  ;;  %v1665_v62 = vld [vmem:[%s2214_s1 + $0x3c4] ss:$8 sps:$4 sm:$0xff]   ;;  %v1678_v13 = vld [vmem:[%s2214_s1 + $0x290] ss:$8 sps:$4 sm:$0xff]  }
  0x51   : > { %1142 = vmatpush1.bf16.msra.mxu1 %v1597_v14  ;;  %892 = vmatprep.subr.bf16.mxu0 %v1602_v15  ;;  %v1681_v14 = vld [vmem:[%s2214_s1 + $0x390] ss:$8 sps:$4 sm:$0xff]   ;;  %v1686_v15 = vld [vmem:[%s2214_s1 + $0x284] ss:$8 sps:$4 sm:$0xff]  }
  0x52   : > { %1143 = vmatprep.subr.bf16.mxu1 %v1605_v16  ;;  %922 = vmatprep.mubr.bf16.mxu0 %v1384_v38  ;;  %v1689_v16 = vld [vmem:[%s2214_s1 + $0x384] ss:$8 sps:$4 sm:$0xff]  }
  0x53   : > { %1173 = vmatprep.mubr.bf16.mxu1 %v978_v50 }
  0x54   : > { %893 = vmatpush1.bf16.msra.mxu0 %v1600_v17  ;;  %v966_v17 = vshrl.u32 %v1383_v7, 16 }
  0x55   : > { %1144 = vmatpush1.bf16.msra.mxu1 %v1603_v18  ;;  %894 = vmatprep.subr.bf16.mxu0 %v1608_v19  ;;  %v970_v18 = vrot.slane %v968_v12, 1  ;;  %v1684_v19 = vld [vmem:[%s2214_s1 + $0x280] ss:$8 sps:$4 sm:$0xff]  }
  0x56   : > { %1145 = vmatprep.subr.bf16.mxu1 %v1611_v20  ;;  %v1687_v20 = vld [vmem:[%s2214_s1 + $0x380] ss:$8 sps:$4 sm:$0xff]  }
  0x58   : > { %895 = vmatpush1.bf16.msra.mxu0 %v1606_v21  ;;  %v971_v21 = vor.u32 %v970_v18, %v966_v17 }
  0x59   : > { %1146 = vmatpush1.bf16.msra.mxu1 %v1609_v22  ;;  %896 = vmatprep.subr.bf16.mxu0 %v1614_v23 }
  0x5a   : > { %1147 = vmatprep.subr.bf16.mxu1 %v1617_v24 }
  0x5c   : > { %897 = vmatpush1.bf16.msra.mxu0 %v1612_v25 }
  0x5d   : > { %1148 = vmatpush1.bf16.msra.mxu1 %v1615_v26  ;;  %898 = vmatprep.subr.bf16.mxu0 %v1620_v27 }
  0x5e   : > { %1149 = vmatprep.subr.bf16.mxu1 %v1623_v28 }
  0x60   : > { %899 = vmatpush1.bf16.msra.mxu0 %v1618_v29 }
  0x61   : > { %1150 = vmatpush1.bf16.msra.mxu1 %v1621_v30  ;;  %900 = vmatprep.subr.bf16.mxu0 %v1626_v31  ;;  %v1186_v31 = vlaneseq }
  0x62   : > { %1151 = vmatprep.subr.bf16.mxu1 %v1629_v32 }
  0x63   : > { %v1187_v32 = vshrl.u32 %v1186_v31, 7 }
  0x64   : > { %901 = vmatpush1.bf16.msra.mxu0 %v1624_v33 }
  0x65   : > { %1152 = vmatpush1.bf16.msra.mxu1 %v1627_v34  ;;  %902 = vmatprep.subr.bf16.mxu0 %v1632_v35  ;;  %v1188_v33 = vsub.s32 0, %v1187_v32  ;;  %v1184_v34 = vld [vmem:[%s2215_s2] sm:$0x3]  ;;  %v1192_v35 = vsub.s32 1, %v1187_v32 }
  0x66   : > { %1153 = vmatprep.subr.bf16.mxu1 %v1635_v36 }
  0x67   : > { %v1193_v45 = vrot.slane %v1184_v34, %v1192_v35 }
  0x68   : > { %903 = vmatpush1.bf16.msra.mxu0 %v1630_v39 }
  0x69   : > { %1154 = vmatpush1.bf16.msra.mxu1 %v1633_v40  ;;  %904 = vmatprep.subr.bf16.mxu0 %v1638_v41  ;;  %v1189_v40 = vrot.slane %v1184_v34, %v1188_v33 }
  0x6a   : > { %1155 = vmatprep.subr.bf16.mxu1 %v1641_v42 }
  0x6c   : > { %905 = vmatpush1.bf16.msra.mxu0 %v1636_v46 }
  0x6d   : > { %1156 = vmatpush1.bf16.msra.mxu1 %v1639_v47  ;;  %906 = vmatprep.subr.bf16.mxu0 %v1644_v48 }
  0x6e   : > { %1157 = vmatprep.subr.bf16.mxu1 %v1647_v49 }
  0x70   : > { %907 = vmatpush2.bf16.msra.mxu0 %v1642_v51 }
  0x71   : > { %1158 = vmatpush2.bf16.msra.mxu1 %v1645_v52  ;;  %908 = vmatprep.subr.bf16.mxu0 %v1650_v53 }
  0x72   : > { %1159 = vmatprep.subr.bf16.mxu1 %v1653_v54 }
  0x74   : > { %909 = vmatpush2.bf16.msra.mxu0 %v1648_v55 }
  0x75   : > { %1160 = vmatpush2.bf16.msra.mxu1 %v1651_v56  ;;  %910 = vmatprep.subr.bf16.mxu0 %v1656_v57 }
  0x76   : > { %1161 = vmatprep.subr.bf16.mxu1 %v1659_v58 }
  0x78   : > { %911 = vmatpush2.bf16.msra.mxu0 %v1654_v59 }
  0x79   : > { %1162 = vmatpush2.bf16.msra.mxu1 %v1657_v60  ;;  %912 = vmatprep.subr.bf16.mxu0 %v1662_v61 }
  0x7a   : > { %1163 = vmatprep.subr.bf16.mxu1 %v1665_v62 }
  0x7c   : > { %913 = vmatpush2.bf16.msra.mxu0 %v1660_v63 }
  0x7d   : > { %1164 = vmatpush2.bf16.msra.mxu1 %v1663_v0  ;;  %914 = vmatprep.subr.bf16.mxu0 %v1668_v1 }
  0x7e   : > { %1165 = vmatprep.subr.bf16.mxu1 %v1671_v2 }
  0x80   : > { %915 = vmatpush2.bf16.msra.mxu0 %v1666_v3 }
  0x81   : > { %1166 = vmatpush2.bf16.msra.mxu1 %v1669_v4  ;;  %916 = vmatprep.subr.bf16.mxu0 %v1674_v5 }
  0x82   : > { %1167 = vmatprep.subr.bf16.mxu1 %v1677_v6 }
  0x84   : > { %917 = vmatpush2.bf16.msra.mxu0 %v1672_v8 }
  0x85   : > { %1168 = vmatpush2.bf16.msra.mxu1 %v1675_v9  ;;  %918 = vmatprep.subr.bf16.mxu0 %v1680_v10 }
  0x86   : > { %1169 = vmatprep.subr.bf16.mxu1 %v1683_v11 }
  0x88   : > { %919 = vmatpush2.bf16.msra.mxu0 %v1678_v13 }
  0x89   : > { %1170 = vmatpush2.bf16.msra.mxu1 %v1681_v14  ;;  %920 = vmatprep.subr.bf16.mxu0 %v1686_v15 }
  0x8a   : > { %1171 = vmatprep.subr.bf16.mxu1 %v1689_v16 }
  0x8c   : > { %921 = vmatpush2.bf16.msra.mxu0 %v1684_v19 }
  0x8d   : > { %1172 = vmatpush2.bf16.msra.mxu1 %v1687_v20 }
  0x8f   : > { %923 = vmatmul.mubr.bf16.vlgmr.msra.gmra.mxu0 %v1383_v7 }
  0x90   : > { %1174 = vmatmul.mubr.bf16.vlgmr.msra.gmra.mxu1 %v971_v21 }
 0x10f   : > { %v476_v22 = vpop.f32.mrf.mxu0 }
 0x110   : > { %v679_v23 = vpop.f32.mrf.mxu1 }
 0x111   : > { %v680_v24 = vadd.f32 %v679_v23, %v476_v22  ;;  %v478_v25 = vpop.f32.mrf.mxu0 }
 0x112   : > { %v681_v26 = vpop.f32.mrf.mxu1 }
 0x113   : > { %v480_v27 = vpop.f32.mrf.mxu0  ;;  %v682_v38 = vadd.f32 %v681_v26, %v478_v25 }
 0x114   : > { %v683_v28 = vpop.f32.mrf.mxu1 }
 0x115   : > { %v481_v29 = vpop.f32.mrf.mxu0 }
 0x116   : > { %v684_v30 = vpop.f32.mrf.mxu1 }
 0x14f   : > { %v924_v36 = vpop.f32.mrf.mxu0 }
 0x150   : > { %v1175_v37 = vpop.f32.mrf.mxu1  ;;  %v931_v39 = vadd.f32 %v924_v36, %v680_v24 }
 0x151   : > { %v926_v41 = vpop.f32.mrf.mxu0 }
 0x152   : > { %v1177_v42 = vpop.f32.mrf.mxu1  ;;  %v1182_v43 = vadd.f32 %v1175_v37, %v931_v39  ;;  %v932_v44 = vadd.f32 %v926_v41, %v682_v38 }
 0x153   : > { %v928_v46 = vpop.f32.mrf.mxu0 }
 0x154   : > { %v1179_v47 = vpop.f32.mrf.mxu1  ;;  %v1196_v48 = vadd.f32 %v1189_v40, %v1182_v43  ;;  %v1183_v49 = vadd.f32 %v1177_v42, %v932_v44 }
 0x155   : > { %v929_v50 = vpop.f32.mrf.mxu0 }
 0x156   : > { %v1180_v51 = vpop.f32.mrf.mxu1  ;;  %v1200_v52 = vmul.f32 0.01, %v1196_v48  ;;  %v1197_v53 = vadd.f32 %v1193_v45, %v1183_v49  ;;  %vm1198_vm0 = vcmp.ge.f32.partialorder %v1196_v48, 0.0 }
 0x158   : > { %vm1199_vm1 = vcmp.ge.f32.partialorder %v1197_v53, 0.0  ;;  %v1201_v54 = vmul.f32 0.01, %v1197_v53  ;;  %v1202_v55 = vsel %vm1198_vm0, %v1196_v48, %v1200_v52 }
 0x15a   : > { %v1203_v56 = vsel %vm1199_vm1, %v1197_v53, %v1201_v54 }
 0x15b   : > { %v1454_v57 = vpack.c.bf16 %v1203_v56, %v1202_v55 }
 0x15d   : > { %1212 = vst [vmem:[%s192_s4] sm:$0x77] %v1454_v57 }
 0x15e PF: > { %s13_s16 = sadd.s32 1, %s1730_s16   ;;  %s2217_s12 = smov %s1722_s14 }
 0x15f   : > { %p10_p7 = scmp.ge.s32.totalorder %s13_s16, 16   ;;  %s2218_s13 = smov %s1726_s15 }
 0x160   : > { %s2219_s14 = smov %s2222_s17  ;;  %s2220_s15 = smov %s2226_s18 }
 0x161   :  { %12 = sbr.rel (!%p10_p7) target bundleno = 3 (0x3), region = 64 }

// kernel: ocr_forward.17
= control target key start
LH: loop header
LB: loop body
LE: loop exit
PB: predicated region body
PF: predicated region fallthrough
CT: control target
= control target key end

     0   :  { %s981_s12 = smov 0   ;;  %s983_s13 = smov 0   ;;  %s1169_s0 = inlined_call_operand.vmem [shape: bf16[16,256], index: 0, kind: input, shape index: {}]   ;;  %s1170_s1 = inlined_call_operand.vmem [shape: bf16[256,1024], index: 1, kind: input, shape index: {}]   ;;  %s1171_s2 = inlined_call_operand.vmem [shape: f32[1,1024], index: 2, kind: input, shape index: {}]   ;;  %s1172_s3 = inlined_call_operand.vmem [shape: f32[16,1024], index: 3, kind: output, shape index: {}]  }
   0x1   :  { %s985_s14 = smov 0   ;;  %s987_s15 = smov 0  }
   0x2   :  { %s989_s16 = smov 0  }
   0x3 LB: > { %s22_s17 = sadd.s32 1, %s955_s15  ;;  %s777_s18 = sadd.s32 4294967295, %s959_s16   ;;  %s959_s16 = sphi %s989_s16, %s13_s16   ;;  %s955_s15 = sphi %s987_s15, %s1177_s15   ;;  %s951_s14 = sphi %s985_s14, %s1176_s14   ;;  %s947_s13 = sphi %s983_s13, %s1175_s13   ;;  %s943_s12 = sphi %s981_s12, %s1174_s12  }
   0x4   : > { %p23_p0 = scmp.ge.s32.totalorder %s22_s17, 4  ;;  %p65_p1 = scmp.ne.s32.totalorder %s947_s13, %s943_s12 }
   0x5   : > { %p66_p2 = scmp.eq.s32.totalorder %s959_s16, 0  ;;  %p123_p4 = scmp.eq.s32.totalorder %s777_s18, 3 }
   0x6   : > { %s1179_s17 = smov (%p23_p0, %s22_s17), 0  ;;  %s58_s20 = sadd.s32 1, %s947_s13 }
   0x7   : > { %p67_p3 = por %p66_p2, %p65_p1  ;;  %s55_s19 = ssub.s32 %s955_s15, %s1179_s17 }
   0x8   : > { %p56_p5 = scmp.eq.s32.totalorder %s55_s19, 0  ;;  %p1016_p6 = por %p123_p4, %p65_p1 }
   0x9   : > { %p781_p7 = scmp.ge.s32.totalorder %s959_s16, 4 }
   0xa   : > { %s1021_s22 = scalar_select %p56_p5, %s947_s13, %s58_s20  }
   0xb   : > { %155 = sbr.rel (%p781_p7) target bundleno = 52 (0x34), region = 20 }
  0x10   : > { %158 = sbr.rel (!%p67_p3) target bundleno = 52 (0x34), region = 24  ;;  %s160_s23 = sand.u32 (%p67_p3), 1, %s947_s13  }
  0x11   : > { %s828_s24 = sshll.u32 (%p67_p3), %s955_s15, 3  ;;  %s782_s25 = sshll.u32 (%p67_p3), %s160_s23, 8 }
  0x12   : > { %s1029_s28 = scalar_lea.vmem (%p67_p3), %s1170_s1, %s828_s24  ;;  %s1034_s29 = scalar_lea.vmem (%p67_p3), [#allocation2], %s782_s25 }
  0x13   : > { %v256_v0 = vld [vmem:[%s1029_s28] sm:$0xff] (%p67_p3) }
  0x14   : > { %v258_v1 = vld [vmem:[%s1029_s28 + $0x20] sm:$0xff] (%p67_p3)  ;;  %257 = vst [vmem:[%s1034_s29] sm:$0xff] (%p67_p3), %v256_v0 }
  0x15   : > { %v260_v2 = vld [vmem:[%s1029_s28 + $0x40] sm:$0xff]  ;;  %259 = vst [vmem:[%s1034_s29 + $0x8] sm:$0xff] %v258_v1 }
  0x16   : > { %261 = vst [vmem:[%s1034_s29 + $0x10] sm:$0xff] %v260_v2  ;;  %v262_v3 = vld [vmem:[%s1029_s28 + $0x60] sm:$0xff] }
  0x17   : > { %v264_v4 = vld [vmem:[%s1029_s28 + $0x80] sm:$0xff]  ;;  %263 = vst [vmem:[%s1034_s29 + $0x18] sm:$0xff] %v262_v3 }
  0x18   : > { %v266_v5 = vld [vmem:[%s1029_s28 + $0xa0] sm:$0xff]  ;;  %265 = vst [vmem:[%s1034_s29 + $0x20] sm:$0xff] %v264_v4 }
  0x19   : > { %267 = vst [vmem:[%s1034_s29 + $0x28] sm:$0xff] %v266_v5  ;;  %v268_v6 = vld [vmem:[%s1029_s28 + $0xc0] sm:$0xff] }
  0x1a   : > { %v270_v7 = vld [vmem:[%s1029_s28 + $0xe0] sm:$0xff]  ;;  %269 = vst [vmem:[%s1034_s29 + $0x30] sm:$0xff] %v268_v6 }
  0x1b   : > { %v272_v8 = vld [vmem:[%s1029_s28 + $0x100] sm:$0xff]  ;;  %271 = vst [vmem:[%s1034_s29 + $0x38] sm:$0xff] %v270_v7 }
  0x1c   : > { %273 = vst [vmem:[%s1034_s29 + $0x40] sm:$0xff] %v272_v8  ;;  %v274_v9 = vld [vmem:[%s1029_s28 + $0x120] sm:$0xff] }
  0x1d   : > { %v276_v10 = vld [vmem:[%s1029_s28 + $0x140] sm:$0xff]  ;;  %275 = vst [vmem:[%s1034_s29 + $0x48] sm:$0xff] %v274_v9 }
  0x1e   : > { %v278_v11 = vld [vmem:[%s1029_s28 + $0x160] sm:$0xff]  ;;  %277 = vst [vmem:[%s1034_s29 + $0x50] sm:$0xff] %v276_v10 }
  0x1f   : > { %279 = vst [vmem:[%s1034_s29 + $0x58] sm:$0xff] %v278_v11  ;;  %v280_v12 = vld [vmem:[%s1029_s28 + $0x180] sm:$0xff] }
  0x20   : > { %v282_v13 = vld [vmem:[%s1029_s28 + $0x1a0] sm:$0xff]  ;;  %281 = vst [vmem:[%s1034_s29 + $0x60] sm:$0xff] %v280_v12 }
  0x21   : > { %v284_v14 = vld [vmem:[%s1029_s28 + $0x1c0] sm:$0xff]  ;;  %283 = vst [vmem:[%s1034_s29 + $0x68] sm:$0xff] %v282_v13 }
  0x22   : > { %285 = vst [vmem:[%s1034_s29 + $0x70] sm:$0xff] %v284_v14  ;;  %v286_v15 = vld [vmem:[%s1029_s28 + $0x1e0] sm:$0xff] }
  0x23   : > { %v288_v16 = vld [vmem:[%s1029_s28 + $0x200] sm:$0xff]  ;;  %287 = vst [vmem:[%s1034_s29 + $0x78] sm:$0xff] %v286_v15 }
  0x24   : > { %v290_v17 = vld [vmem:[%s1029_s28 + $0x220] sm:$0xff]  ;;  %289 = vst [vmem:[%s1034_s29 + $0x80] sm:$0xff] %v288_v16 }
  0x25   : > { %291 = vst [vmem:[%s1034_s29 + $0x88] sm:$0xff] %v290_v17  ;;  %v292_v18 = vld [vmem:[%s1029_s28 + $0x240] sm:$0xff] }
  0x26   : > { %v294_v19 = vld [vmem:[%s1029_s28 + $0x260] sm:$0xff]  ;;  %293 = vst [vmem:[%s1034_s29 + $0x90] sm:$0xff] %v292_v18 }
  0x27   : > { %v296_v20 = vld [vmem:[%s1029_s28 + $0x280] sm:$0xff]  ;;  %295 = vst [vmem:[%s1034_s29 + $0x98] sm:$0xff] %v294_v19 }
  0x28   : > { %297 = vst [vmem:[%s1034_s29 + $0xa0] sm:$0xff] %v296_v20  ;;  %v298_v21 = vld [vmem:[%s1029_s28 + $0x2a0] sm:$0xff] }
  0x29   : > { %v300_v22 = vld [vmem:[%s1029_s28 + $0x2c0] sm:$0xff]  ;;  %299 = vst [vmem:[%s1034_s29 + $0xa8] sm:$0xff] %v298_v21 }
  0x2a   : > { %v302_v23 = vld [vmem:[%s1029_s28 + $0x2e0] sm:$0xff]  ;;  %301 = vst [vmem:[%s1034_s29 + $0xb0] sm:$0xff] %v300_v22 }
  0x2b   : > { %303 = vst [vmem:[%s1034_s29 + $0xb8] sm:$0xff] %v302_v23  ;;  %v304_v24 = vld [vmem:[%s1029_s28 + $0x300] sm:$0xff] }
  0x2c   : > { %v306_v25 = vld [vmem:[%s1029_s28 + $0x320] sm:$0xff]  ;;  %305 = vst [vmem:[%s1034_s29 + $0xc0] sm:$0xff] %v304_v24 }
  0x2d   : > { %v308_v26 = vld [vmem:[%s1029_s28 + $0x340] sm:$0xff]  ;;  %307 = vst [vmem:[%s1034_s29 + $0xc8] sm:$0xff] %v306_v25 }
  0x2e   : > { %309 = vst [vmem:[%s1034_s29 + $0xd0] sm:$0xff] %v308_v26  ;;  %v310_v27 = vld [vmem:[%s1029_s28 + $0x360] sm:$0xff] }
  0x2f   : > { %v312_v28 = vld [vmem:[%s1029_s28 + $0x380] sm:$0xff]  ;;  %311 = vst [vmem:[%s1034_s29 + $0xd8] sm:$0xff] %v310_v27 }
  0x30   : > { %v314_v29 = vld [vmem:[%s1029_s28 + $0x3a0] sm:$0xff]  ;;  %313 = vst [vmem:[%s1034_s29 + $0xe0] sm:$0xff] %v312_v28 }
  0x31   : > { %315 = vst [vmem:[%s1034_s29 + $0xe8] sm:$0xff] %v314_v29  ;;  %v316_v30 = vld [vmem:[%s1029_s28 + $0x3c0] sm:$0xff] }
  0x32   : > { %v318_v31 = vld [vmem:[%s1029_s28 + $0x3e0] sm:$0xff]  ;;  %317 = vst [vmem:[%s1034_s29 + $0xf0] sm:$0xff] %v316_v30 }
  0x33   : > { %319 = vst [vmem:[%s1034_s29 + $0xf8] sm:$0xff] %v318_v31 }
  0x34 PF: > { %p785_p8 = scmp.ge.s32.totalorder %s959_s16, 1  ;;  %p332_p9 = scmp.lt.s32.totalorder %s959_s16, 5 }
  0x36   : > { %p333_p10 = pnand %p785_p8, %p332_p9 }
  0x37   : > { %s339_s30 = sand.u32 (!%p333_p10), 1, %s943_s12   ;;  %s788_s10 = sshll.u32 (!%p333_p10), %s951_s14, 1 }
  0x38   : > { %336 = sbr.rel (%p333_p10) target bundleno = 336 (0x150), region = 66  ;;  %s786_s4 = sshll.u32 (!%p333_p10), %s339_s30, 8 }
  0x39   : > { %s1105_s7 = scalar_lea.vmem (!%p333_p10), [#allocation2], %s786_s4  ;;  %p380_p11 = scmp.lt.s32.totalorder (!%p333_p10), %s788_s10, 7 }
  0x3a   : > { %s787_s20 = sshll.u32 (!%p333_p10), %s339_s30, 5 }
  0x3b   : > { %s370_s23 = scalar_lea.vmem (!%p333_p10), [#allocation3], %s787_s20 }
  0x3d   : > { %v920_v32 = vld [vmem:[%s1169_s0 + $0x4] ss:$8 sps:$4 sm:$0xff]   ;;  %v870_v33 = vld [vmem:[%s1105_s7 + $0x74] ss:$8 sps:$4 sm:$0xff]   ;;  %v872_v34 = vld [vmem:[%s1105_s7 + $0x70] ss:$8 sps:$4 sm:$0xff]   ;;  %v422_v2 = vlaneseq }
  0x3e   : > { %634 = vmatprep.mubr.bf16.mxu0 %v920_v32  ;;  %602 = vmatprep.subr.bf16.mxu0 %v870_v33  ;;  %v873_v35 = vld [vmem:[%s1105_s7 + $0x64] ss:$8 sps:$4 sm:$0xff]   ;;  %v875_v36 = vld [vmem:[%s1105_s7 + $0x60] ss:$8 sps:$4 sm:$0xff]   ;;  %v876_v37 = vld [vmem:[%s1105_s7 + $0x54] ss:$8 sps:$4 sm:$0xff]  }
  0x3f   : > { %603 = vmatpush1.bf16.msra.mxu0 %v872_v34  ;;  %v878_v38 = vld [vmem:[%s1105_s7 + $0x50] ss:$8 sps:$4 sm:$0xff]   ;;  %v879_v39 = vld [vmem:[%s1105_s7 + $0x44] ss:$8 sps:$4 sm:$0xff]   ;;  %v881_v40 = vld [vmem:[%s1105_s7 + $0x40] ss:$8 sps:$4 sm:$0xff]  }
  0x40   : > { %604 = vmatprep.subr.bf16.mxu0 %v873_v35  ;;  %v882_v41 = vld [vmem:[%s1105_s7 + $0x34] ss:$8 sps:$4 sm:$0xff]   ;;  %v884_v42 = vld [vmem:[%s1105_s7 + $0x30] ss:$8 sps:$4 sm:$0xff]   ;;  %v885_v43 = vld [vmem:[%s1105_s7 + $0x24] ss:$8 sps:$4 sm:$0xff]  }
  0x41   : > { %v887_v44 = vld [vmem:[%s1105_s7 + $0x20] ss:$8 sps:$4 sm:$0xff]   ;;  %v888_v45 = vld [vmem:[%s1105_s7 + $0x14] ss:$8 sps:$4 sm:$0xff]   ;;  %v890_v46 = vld [vmem:[%s1105_s7 + $0x10] ss:$8 sps:$4 sm:$0xff]  }
  0x42   : > { %v891_v47 = vld [vmem:[%s1105_s7 + $0x4] ss:$8 sps:$4 sm:$0xff]   ;;  %v893_v48 = vld [vmem:[%s1105_s7] ss:$8 sps:$4 sm:$0xff]   ;;  %v894_v49 = vld [vmem:[%s1105_s7 + $0xf4] ss:$8 sps:$4 sm:$0xff]  }
  0x43   : > { %605 = vmatpush1.bf16.msra.mxu0 %v875_v36  ;;  %v896_v50 = vld [vmem:[%s1105_s7 + $0xf0] ss:$8 sps:$4 sm:$0xff]   ;;  %v897_v51 = vld [vmem:[%s1105_s7 + $0xe4] ss:$8 sps:$4 sm:$0xff]   ;;  %v899_v52 = vld [vmem:[%s1105_s7 + $0xe0] ss:$8 sps:$4 sm:$0xff]  }
  0x44   : > { %606 = vmatprep.subr.bf16.mxu0 %v876_v37  ;;  %v900_v53 = vld [vmem:[%s1105_s7 + $0xd4] ss:$8 sps:$4 sm:$0xff]   ;;  %v902_v54 = vld [vmem:[%s1105_s7 + $0xd0] ss:$8 sps:$4 sm:$0xff]   ;;  %v903_v55 = vld [vmem:[%s1105_s7 + $0xc4] ss:$8 sps:$4 sm:$0xff]  }
  0x45   : > { %v905_v56 = vld [vmem:[%s1105_s7 + $0xc0] ss:$8 sps:$4 sm:$0xff]   ;;  %v906_v57 = vld [vmem:[%s1105_s7 + $0xb4] ss:$8 sps:$4 sm:$0xff]   ;;  %v908_v58 = vld [vmem:[%s1105_s7 + $0xb0] ss:$8 sps:$4 sm:$0xff]  }
  0x46   : > { %v909_v59 = vld [vmem:[%s1105_s7 + $0xa4] ss:$8 sps:$4 sm:$0xff]   ;;  %v911_v60 = vld [vmem:[%s1105_s7 + $0xa0] ss:$8 sps:$4 sm:$0xff]   ;;  %v912_v61 = vld [vmem:[%s1105_s7 + $0x94] ss:$8 sps:$4 sm:$0xff]  }
  0x47   : > { %607 = vmatpush1.bf16.msra.mxu0 %v878_v38  ;;  %v914_v62 = vld [vmem:[%s1105_s7 + $0x90] ss:$8 sps:$4 sm:$0xff]   ;;  %v915_v63 = vld [vmem:[%s1105_s7 + $0x84] ss:$8 sps:$4 sm:$0xff]   ;;  %v917_v0 = vld [vmem:[%s1105_s7 + $0x80] ss:$8 sps:$4 sm:$0xff]  }
  0x48   : > { %608 = vmatprep.subr.bf16.mxu0 %v879_v39  ;;  %v918_v1 = vld [vmem:[%s1169_s0] ss:$8 sps:$4 sm:$0xff]   ;;  %s1181_s10 = smov (!%p380_p11, %s788_s10), 7  ;;  %v423_v3 = vshrl.u32 %v422_v2, 7  ;;  %s829_s12 = sshll.u32 (%p1016_p6), %s951_s14, 4 }
  0x49   : > { %s382_s19 = scalar_lea.vmem %s1171_s2, %s1181_s10  ;;  %s661_s26 = scalar_lea.vmem (%p1016_p6), %s1172_s3, %s829_s12 }
  0x4a   : > { %v424_v4 = vsub.s32 0, %v423_v3  ;;  %v420_v5 = vld [vmem:[%s382_s19] sm:$0x3]  ;;  %v428_v6 = vsub.s32 1, %v423_v3 }
  0x4b   : > { %609 = vmatpush1.bf16.msra.mxu0 %v881_v40 }
  0x4c   : > { %610 = vmatprep.subr.bf16.mxu0 %v882_v41  ;;  %v425_v7 = vrot.slane %v420_v5, %v424_v4  ;;  %v429_v8 = vrot.slane %v420_v5, %v428_v6 }
  0x4f   : > { %611 = vmatpush1.bf16.msra.mxu0 %v884_v42 }
  0x50   : > { %612 = vmatprep.subr.bf16.mxu0 %v885_v43 }
  0x53   : > { %613 = vmatpush1.bf16.msra.mxu0 %v887_v44 }
  0x54   : > { %614 = vmatprep.subr.bf16.mxu0 %v888_v45 }
  0x57   : > { %615 = vmatpush1.bf16.msra.mxu0 %v890_v46 }
  0x58   : > { %616 = vmatprep.subr.bf16.mxu0 %v891_v47 }
  0x5b   : > { %617 = vmatpush1.bf16.msra.mxu0 %v893_v48 }
  0x5c   : > { %618 = vmatprep.subr.bf16.mxu0 %v894_v49 }
  0x5f   : > { %619 = vmatpush2.bf16.msra.mxu0 %v896_v50 }
  0x60   : > { %620 = vmatprep.subr.bf16.mxu0 %v897_v51 }
  0x63   : > { %621 = vmatpush2.bf16.msra.mxu0 %v899_v52 }
  0x64   : > { %622 = vmatprep.subr.bf16.mxu0 %v900_v53 }
  0x67   : > { %623 = vmatpush2.bf16.msra.mxu0 %v902_v54 }
  0x68   : > { %624 = vmatprep.subr.bf16.mxu0 %v903_v55 }
  0x6b   : > { %625 = vmatpush2.bf16.msra.mxu0 %v905_v56 }
  0x6c   : > { %626 = vmatprep.subr.bf16.mxu0 %v906_v57 }
  0x6f   : > { %627 = vmatpush2.bf16.msra.mxu0 %v908_v58 }
  0x70   : > { %628 = vmatprep.subr.bf16.mxu0 %v909_v59 }
  0x73   : > { %629 = vmatpush2.bf16.msra.mxu0 %v911_v60 }
  0x74   : > { %630 = vmatprep.subr.bf16.mxu0 %v912_v61 }
  0x77   : > { %631 = vmatpush2.bf16.msra.mxu0 %v914_v62 }
  0x78   : > { %632 = vmatprep.subr.bf16.mxu0 %v915_v63 }
  0x7b   : > { %633 = vmatpush2.bf16.msra.mxu0 %v917_v0 }
  0x7e   : > { %635 = vmatmul.mubr.bf16.vlgmr.msra.gmra.mxu0 %v918_v1 }
 0x13e   : > { %v636_v9 = vpop.f32.mrf.mxu0 }
 0x13f   : > { %v637_v10 = vadd.f32 %v636_v9, %v425_v7 }
 0x140   : > { %v638_v11 = vpop.f32.mrf.mxu0 }
 0x141   : > { %645 = vst [vmem:[%s370_s23] sm:$0xff] %v637_v10  ;;  %v639_v12 = vadd.f32 %v638_v11, %v429_v8 }
 0x142   : > { %v640_v13 = vpop.f32.mrf.mxu0 }
 0x143   : > { %646 = vst [vmem:[%s370_s23 + $0x8] sm:$0xff] %v639_v12  ;;  %v641_v14 = vadd.f32 %v640_v13, %v425_v7  ;;  %655 = sbr.rel (!%p1016_p6) target bundleno = 336 (0x150), region = 74 }
 0x144   : > { %v642_v15 = vpop.f32.mrf.mxu0 }
 0x145   : > { %647 = vst [vmem:[%s370_s23 + $0x10] sm:$0xff] %v641_v14  ;;  %v643_v16 = vadd.f32 %v642_v15, %v429_v8 }
 0x147   : > { %648 = vst [vmem:[%s370_s23 + $0x18] sm:$0xff] %v643_v16 }
 0x148   : > { %v674_v17 = vld [vmem:[%s370_s23] sm:$0xff] }
 0x149   : > { %675 = vst [vmem:[%s661_s26] sm:$0xff] %v674_v17 }
 0x14a   : > { %v676_v18 = vld [vmem:[%s370_s23 + $0x8] sm:$0xff] }
 0x14b   : > { %677 = vst [vmem:[%s661_s26 + $0x8] sm:$0xff] %v676_v18 }
 0x14c   : > { %v678_v19 = vld [vmem:[%s370_s23 + $0x10] sm:$0xff] }
 0x14d   : > { %679 = vst [vmem:[%s661_s26 + $0x40] sm:$0xff] %v678_v19 }
 0x14e   : > { %v680_v20 = vld [vmem:[%s370_s23 + $0x18] sm:$0xff] }
 0x14f   : > { %681 = vst [vmem:[%s661_s26 + $0x48] sm:$0xff] %v680_v20 }
 0x150 PF: > { %s13_s16 = sadd.s32 1, %s959_s16   ;;  %s1174_s12 = smov %s947_s13 }
 0x151   : > { %p10_p12 = scmp.ge.s32.totalorder %s13_s16, 6   ;;  %s1175_s13 = smov %s1021_s22 }
 0x152   : > { %s1176_s14 = smov %s955_s15  ;;  %s1177_s15 = smov %s1179_s17 }
 0x153   :  { %12 = sbr.rel (!%p10_p12) target bundleno = 3 (0x3), region = 134 }

// kernel: ocr_forward.15
= control target key start
LH: loop header
LB: loop body
LE: loop exit
PB: predicated region body
PF: predicated region fallthrough
CT: control target
= control target key end

     0   :  { %s3417_s12 = smov 0   ;;  %s3419_s13 = smov 0   ;;  %s4408_s0 = inlined_call_operand.vmem [shape: bf16[2,16,9,256], index: 0, kind: input, shape index: {}]   ;;  %s4409_s1 = inlined_call_operand.vmem [shape: bf16[2304,256], index: 1, kind: input, shape index: {}]   ;;  %s4410_s2 = inlined_call_operand.vmem [shape: f32[1,256], index: 2, kind: input, shape index: {}]   ;;  %s4411_s3 = inlined_call_operand.vmem [shape: bf16[2,14,7,256], index: 3, kind: output, shape index: {}]  }
   0x1   :  { %s3421_s14 = smov 0   ;;  %s3423_s15 = smov 0  }
   0x2   :  { %s3425_s16 = smov 0  }
   0x3 LB: > { %s22_s17 = sadd.s32 1, %s3387_s14  ;;  %s25_s18 = sadd.s32 1, %s3391_s15  ;;  %s3395_s16 = sphi %s3425_s16, %s13_s16   ;;  %s3391_s15 = sphi %s3423_s15, %s4415_s15   ;;  %s3387_s14 = sphi %s3421_s14, %s4414_s14   ;;  %s3383_s13 = sphi %s3419_s13, %s4413_s13   ;;  %s3379_s12 = sphi %s3417_s12, %s4412_s12  }
   0x4   : > { %p23_p0 = scmp.ge.s32.totalorder %s22_s17, 14  ;;  %p2553_p1 = scmp.ge.s32.totalorder %s3395_s16, 1 }
   0x5   : > { %p151_p2 = scmp.lt.s32.totalorder %s3395_s16, 29 }
   0x6   : > { %s4417_s17 = smov (%p23_p0, %s22_s17), 0  ;;  %s4419_s18 = smov (!%p23_p0, %s25_s18), %s3391_s15 }
   0x7   : > { %p152_p3 = pnand %p2553_p1, %p151_p2  ;;  %p27_p4 = scmp.ge.s32.totalorder %s4419_s18, 2 }
   0x8   : > { %p179_p5 = scmp.lt.s32.totalorder (!%p152_p3), %s3383_s13, 1  ;;  %s2870_s25 = sshll.u32 (!%p152_p3), %s3379_s12, 4 }
   0x9   : > { %s4421_s18 = smov (%p27_p4, %s4419_s18), 0  ;;  %155 = sbr.rel (%p152_p3) target bundleno = 541 (0x21d), region = 32 }
   0xa   : > { %p186_p6 = scmp.lt.s32.totalorder (!%p152_p3), %s3379_s12, 13 }
   0xe   : > { %v2913_v0 = vld [vmem:[%s4409_s1 + $0x174] ss:$8 sps:$4 sm:$0xff]   ;;  %v2917_v2 = vld [vmem:[%s4409_s1 + $0x170] ss:$8 sps:$4 sm:$0xff]   ;;  %v2919_v4 = vld [vmem:[%s4409_s1 + $0x164] ss:$8 sps:$4 sm:$0xff]  }
   0xf   : > { %v2915_v1 = vld [vmem:[%s4409_s1 + $0x74] ss:$8 sps:$4 sm:$0xff]   ;;  %443 = vmatprep.subr.bf16.mxu0 %v2913_v0  ;;  %v2918_v3 = vld [vmem:[%s4409_s1 + $0x70] ss:$8 sps:$4 sm:$0xff]   ;;  %v2921_v5 = vld [vmem:[%s4409_s1 + $0x64] ss:$8 sps:$4 sm:$0xff]  }
  0x10   : > { %646 = vmatprep.subr.bf16.mxu1 %v2915_v1  ;;  %444 = vmatpush1.bf16.msra.mxu0 %v2917_v2  ;;  %v2923_v6 = vld [vmem:[%s4409_s1 + $0x160] ss:$8 sps:$4 sm:$0xff]   ;;  %v2925_v8 = vld [vmem:[%s4409_s1 + $0x154] ss:$8 sps:$4 sm:$0xff]   ;;  %v2929_v10 = vld [vmem:[%s4409_s1 + $0x150] ss:$8 sps:$4 sm:$0xff]  }
  0x11   : > { %647 = vmatpush1.bf16.msra.mxu1 %v2918_v3  ;;  %445 = vmatprep.subr.bf16.mxu0 %v2919_v4  ;;  %v2924_v7 = vld [vmem:[%s4409_s1 + $0x60] ss:$8 sps:$4 sm:$0xff]   ;;  %v2927_v9 = vld [vmem:[%s4409_s1 + $0x54] ss:$8 sps:$4 sm:$0xff]   ;;  %v2930_v11 = vld [vmem:[%s4409_s1 + $0x50] ss:$8 sps:$4 sm:$0xff]  }
  0x12   : > { %648 = vmatprep.subr.bf16.mxu1 %v2921_v5  ;;  %v2931_v12 = vld [vmem:[%s4409_s1 + $0x144] ss:$8 sps:$4 sm:$0xff]   ;;  %v2935_v14 = vld [vmem:[%s4409_s1 + $0x140] ss:$8 sps:$4 sm:$0xff]   ;;  %v2937_v16 = vld [vmem:[%s4409_s1 + $0x134] ss:$8 sps:$4 sm:$0xff]  }
  0x13   : > { %v2933_v13 = vld [vmem:[%s4409_s1 + $0x44] ss:$8 sps:$4 sm:$0xff]   ;;  %v2936_v15 = vld [vmem:[%s4409_s1 + $0x40] ss:$8 sps:$4 sm:$0xff]   ;;  %v2939_v17 = vld [vmem:[%s4409_s1 + $0x34] ss:$8 sps:$4 sm:$0xff]  }
  0x14   : > { %446 = vmatpush1.bf16.msra.mxu0 %v2923_v6  ;;  %v2941_v18 = vld [vmem:[%s4409_s1 + $0x130] ss:$8 sps:$4 sm:$0xff]   ;;  %v2943_v20 = vld [vmem:[%s4409_s1 + $0x124] ss:$8 sps:$4 sm:$0xff]   ;;  %v2947_v22 = vld [vmem:[%s4409_s1 + $0x120] ss:$8 sps:$4 sm:$0xff]  }
  0x15   : > { %649 = vmatpush1.bf16.msra.mxu1 %v2924_v7  ;;  %447 = vmatprep.subr.bf16.mxu0 %v2925_v8  ;;  %v2942_v19 = vld [vmem:[%s4409_s1 + $0x30] ss:$8 sps:$4 sm:$0xff]   ;;  %v2945_v21 = vld [vmem:[%s4409_s1 + $0x24] ss:$8 sps:$4 sm:$0xff]   ;;  %v2948_v23 = vld [vmem:[%s4409_s1 + $0x20] ss:$8 sps:$4 sm:$0xff]  }
  0x16   : > { %650 = vmatprep.subr.bf16.mxu1 %v2927_v9  ;;  %v2949_v24 = vld [vmem:[%s4409_s1 + $0x114] ss:$8 sps:$4 sm:$0xff]   ;;  %v2953_v26 = vld [vmem:[%s4409_s1 + $0x110] ss:$8 sps:$4 sm:$0xff]   ;;  %v2955_v28 = vld [vmem:[%s4409_s1 + $0x104] ss:$8 sps:$4 sm:$0xff]  }
  0x17   : > { %v2951_v25 = vld [vmem:[%s4409_s1 + $0x14] ss:$8 sps:$4 sm:$0xff]   ;;  %v2954_v27 = vld [vmem:[%s4409_s1 + $0x10] ss:$8 sps:$4 sm:$0xff]   ;;  %v2957_v29 = vld [vmem:[%s4409_s1 + $0x4] ss:$8 sps:$4 sm:$0xff]  }
  0x18   : > { %448 = vmatpush1.bf16.msra.mxu0 %v2929_v10  ;;  %v2959_v30 = vld [vmem:[%s4409_s1 + $0x100] ss:$8 sps:$4 sm:$0xff]   ;;  %v2961_v32 = vld [vmem:[%s4409_s1 + $0x1f4] ss:$8 sps:$4 sm:$0xff]   ;;  %s4423_s13 = smov (!%p179_p5, %s3383_s13), 1  ;;  %s4425_s12 = smov (!%p186_p6, %s3379_s12), 13 }
  0x19   : > { %651 = vmatpush1.bf16.msra.mxu1 %v2930_v11  ;;  %449 = vmatprep.subr.bf16.mxu0 %v2931_v12  ;;  %v2960_v31 = vld [vmem:[%s4409_s1] ss:$8 sps:$4 sm:$0xff]   ;;  %v2963_v33 = vld [vmem:[%s4409_s1 + $0xf4] ss:$8 sps:$4 sm:$0xff]   ;;  %v2965_v34 = vld [vmem:[%s4409_s1 + $0x1f0] ss:$8 sps:$4 sm:$0xff]  }
  0x1a   : > { %652 = vmatprep.subr.bf16.mxu1 %v2933_v13  ;;  %v2966_v35 = vld [vmem:[%s4409_s1 + $0xf0] ss:$8 sps:$4 sm:$0xff]   ;;  %v2967_v36 = vld [vmem:[%s4409_s1 + $0x1e4] ss:$8 sps:$4 sm:$0xff]   ;;  %s2869_s8 = sshll.u32 %s4423_s13, 8  ;;  %vm2445_vm0 = vcmask 1043456  }
  0x1b   : > { %v2969_v37 = vld [vmem:[%s4409_s1 + $0xe4] ss:$8 sps:$4 sm:$0xff]   ;;  %v2971_v38 = vld [vmem:[%s4409_s1 + $0x1e0] ss:$8 sps:$4 sm:$0xff]   ;;  %v2973_v40 = vld [vmem:[%s4409_s1 + $0x1d4] ss:$8 sps:$4 sm:$0xff]   ;;  %s183_s24 = scalar_lea.vmem %s4408_s0, %s2869_s8 }
  0x1c   : > { %450 = vmatpush1.bf16.msra.mxu0 %v2935_v14  ;;  %v2972_v39 = vld [vmem:[%s4409_s1 + $0xe0] ss:$8 sps:$4 sm:$0xff]   ;;  %v2975_v41 = vld [vmem:[%s4409_s1 + $0xd4] ss:$8 sps:$4 sm:$0xff]   ;;  %v2977_v42 = vld [vmem:[%s4409_s1 + $0x1d0] ss:$8 sps:$4 sm:$0xff]   ;;  %s3592_s5 = scalar_lea.vmem %s183_s24, %s2870_s25 }
  0x1d   : > { %653 = vmatpush1.bf16.msra.mxu1 %v2936_v15  ;;  %451 = vmatprep.subr.bf16.mxu0 %v2937_v16  ;;  %v2978_v43 = vld [vmem:[%s4409_s1 + $0xd0] ss:$8 sps:$4 sm:$0xff]   ;;  %v2979_v44 = vld [vmem:[%s4409_s1 + $0x1c4] ss:$8 sps:$4 sm:$0xff]   ;;  %v2983_v47 = vld [vmem:[%s4409_s1 + $0x1c0] ss:$8 sps:$4 sm:$0xff]  }
  0x1e   : > { %654 = vmatprep.subr.bf16.mxu1 %v2939_v17  ;;  %v2981_v45 = vld [vmem:[%s4409_s1 + $0xc4] ss:$8 sps:$4 sm:$0xff]   ;;  %v2984_v49 = vld [vmem:[%s4409_s1 + $0xc0] ss:$8 sps:$4 sm:$0xff]   ;;  %v2985_v50 = vld [vmem:[%s4409_s1 + $0x1b4] ss:$8 sps:$4 sm:$0xff]  }
  0x1f   : > { %v3601_v46 = vld [vmem:[%s3592_s5] sm:$0xff]  ;;  %v2987_v51 = vld [vmem:[%s4409_s1 + $0xb4] ss:$8 sps:$4 sm:$0xff]   ;;  %v2989_v54 = vld [vmem:[%s4409_s1 + $0x1b0] ss:$8 sps:$4 sm:$0xff]   ;;  %s2872_s24 = smul.u32 28, %s4423_s13 }
  0x20   : > { %452 = vmatpush1.bf16.msra.mxu0 %v2941_v18  ;;  %v2561_v48 = vcombine.high %v3601_v46, %v3601_v46  ;;  %v2990_v55 = vld [vmem:[%s4409_s1 + $0xb0] ss:$8 sps:$4 sm:$0xff]   ;;  %v2991_v57 = vld [vmem:[%s4409_s1 + $0x1a4] ss:$8 sps:$4 sm:$0xff]   ;;  %v2995_v60 = vld [vmem:[%s4409_s1 + $0x1a0] ss:$8 sps:$4 sm:$0xff]   ;;  %v2560_v62 = vcombine.low %v3601_v46, %v3601_v46 }
  0x21   : > { %655 = vmatpush1.bf16.msra.mxu1 %v2942_v19  ;;  %453 = vmatprep.subr.bf16.mxu0 %v2943_v20  ;;  %v2993_v58 = vld [vmem:[%s4409_s1 + $0xa4] ss:$8 sps:$4 sm:$0xff]   ;;  %v2996_v61 = vld [vmem:[%s4409_s1 + $0xa0] ss:$8 sps:$4 sm:$0xff]   ;;  %v2997_v63 = vld [vmem:[%s4409_s1 + $0x194] ss:$8 sps:$4 sm:$0xff]  }
  0x22   : > { %656 = vmatprep.subr.bf16.mxu1 %v2945_v21  ;;  %v275_v52 = vshrl.u32 %v2561_v48, 16  ;;  %v277_v53 = vshll.u32 %v2561_v48, 16  ;;  %678 = vmatprep.mubr.bf16.mxu1 %v2561_v48  ;;  %v2999_v0 = vld [vmem:[%s4409_s1 + $0x94] ss:$8 sps:$4 sm:$0xff]   ;;  %v3001_v1 = vld [vmem:[%s4409_s1 + $0x190] ss:$8 sps:$4 sm:$0xff]  }
  0x23   : > { %v3002_v2 = vld [vmem:[%s4409_s1 + $0x90] ss:$8 sps:$4 sm:$0xff]   ;;  %v270_v3 = vshll.u32 %v2560_v62, 16  ;;  %v3003_v4 = vld [vmem:[%s4409_s1 + $0x184] ss:$8 sps:$4 sm:$0xff]   ;;  %v268_v8 = vshrl.u32 %v2560_v62, 16 }
  0x24   : > { %454 = vmatpush1.bf16.msra.mxu0 %v2947_v22  ;;  %v279_v56 = vrot.slane %v277_v53, 1  ;;  %v3005_v5 = vld [vmem:[%s4409_s1 + $0x84] ss:$8 sps:$4 sm:$0xff]   ;;  %v3007_v6 = vld [vmem:[%s4409_s1 + $0x180] ss:$8 sps:$4 sm:$0xff]   ;;  %s2556_s25 = sshll.u32 %s4425_s12, 1 }
  0x25   : > { %657 = vmatpush1.bf16.msra.mxu1 %v2948_v23  ;;  %455 = vmatprep.subr.bf16.mxu0 %v2949_v24  ;;  %v3008_v7 = vld [vmem:[%s4409_s1 + $0x80] ss:$8 sps:$4 sm:$0xff]   ;;  %v272_v9 = vrot.slane %v270_v3, 1  ;;  %v3013_v10 = vld [vmem:[%s4409_s1 + $0x274] ss:$8 sps:$4 sm:$0xff]   ;;  %s190_s26 = sadd.s32 %s2872_s24, %s2556_s25  ;;  %vm2448_vm2 = vcmask 1047556  }
  0x26   : > { %658 = vmatprep.subr.bf16.mxu1 %v2951_v25  ;;  %v280_v59 = vor.u32 %v279_v56, %v275_v52  ;;  %v3016_v11 = vld [vmem:[%s4409_s1 + $0x374] ss:$8 sps:$4 sm:$0xff]   ;;  %v3011_v13 = vld [vmem:[%s4409_s1 + $0x270] ss:$8 sps:$4 sm:$0xff]   ;;  %v3019_v15 = vld [vmem:[%s4409_s1 + $0x264] ss:$8 sps:$4 sm:$0xff]  }
  0x27   : > { %v273_v12 = vor.u32 %v272_v9, %v268_v8  ;;  %v3014_v14 = vld [vmem:[%s4409_s1 + $0x370] ss:$8 sps:$4 sm:$0xff]   ;;  %v3022_v16 = vld [vmem:[%s4409_s1 + $0x364] ss:$8 sps:$4 sm:$0xff]   ;;  %v3017_v17 = vld [vmem:[%s4409_s1 + $0x260] ss:$8 sps:$4 sm:$0xff]  }
  0x28   : > { %456 = vmatpush1.bf16.msra.mxu0 %v2953_v26  ;;  %475 = vmatprep.mubr.bf16.mxu0 %v280_v59  ;;  %v3020_v18 = vld [vmem:[%s4409_s1 + $0x360] ss:$8 sps:$4 sm:$0xff]   ;;  %v3025_v19 = vld [vmem:[%s4409_s1 + $0x254] ss:$8 sps:$4 sm:$0xff]   ;;  %v3023_v21 = vld [vmem:[%s4409_s1 + $0x250] ss:$8 sps:$4 sm:$0xff]  }
  0x29   : > { %659 = vmatpush1.bf16.msra.mxu1 %v2954_v27  ;;  %457 = vmatprep.subr.bf16.mxu0 %v2955_v28  ;;  %v3028_v20 = vld [vmem:[%s4409_s1 + $0x354] ss:$8 sps:$4 sm:$0xff]   ;;  %v3026_v22 = vld [vmem:[%s4409_s1 + $0x350] ss:$8 sps:$4 sm:$0xff]   ;;  %v3031_v23 = vld [vmem:[%s4409_s1 + $0x244] ss:$8 sps:$4 sm:$0xff]  }
  0x2a   : > { %660 = vmatprep.subr.bf16.mxu1 %v2957_v29  ;;  %v3034_v24 = vld [vmem:[%s4409_s1 + $0x344] ss:$8 sps:$4 sm:$0xff]   ;;  %v3029_v25 = vld [vmem:[%s4409_s1 + $0x240] ss:$8 sps:$4 sm:$0xff]   ;;  %v3037_v27 = vld [vmem:[%s4409_s1 + $0x234] ss:$8 sps:$4 sm:$0xff]  }
  0x2b   : > { %v3032_v26 = vld [vmem:[%s4409_s1 + $0x340] ss:$8 sps:$4 sm:$0xff]   ;;  %v3040_v28 = vld [vmem:[%s4409_s1 + $0x334] ss:$8 sps:$4 sm:$0xff]   ;;  %v3035_v29 = vld [vmem:[%s4409_s1 + $0x230] ss:$8 sps:$4 sm:$0xff]  }
  0x2c   : > { %458 = vmatpush1.bf16.msra.mxu0 %v2959_v30  ;;  %v3038_v30 = vld [vmem:[%s4409_s1 + $0x330] ss:$8 sps:$4 sm:$0xff]   ;;  %v3056_v48 = vld [vmem:[%s4409_s1 + $0x300] ss:$8 sps:$4 sm:$0xff]   ;;  %v3067_v53 = vld [vmem:[%s4409_s1 + $0x2e4] ss:$8 sps:$4 sm:$0xff]  }
  0x2d   : > { %661 = vmatpush1.bf16.msra.mxu1 %v2960_v31  ;;  %459 = vmatprep.subr.bf16.mxu0 %v2961_v32  ;;  %v3043_v31 = vld [vmem:[%s4409_s1 + $0x224] ss:$8 sps:$4 sm:$0xff]   ;;  %v3062_v52 = vld [vmem:[%s4409_s1 + $0x3f0] ss:$8 sps:$4 sm:$0xff]   ;;  %v3068_v56 = vld [vmem:[%s4409_s1 + $0x3e0] ss:$8 sps:$4 sm:$0xff]  }
  0x2e   : > { %662 = vmatprep.subr.bf16.mxu1 %v2963_v33  ;;  %v3046_v32 = vld [vmem:[%s4409_s1 + $0x324] ss:$8 sps:$4 sm:$0xff]   ;;  %v3041_v33 = vld [vmem:[%s4409_s1 + $0x220] ss:$8 sps:$4 sm:$0xff]   ;;  %v3071_v59 = vld [vmem:[%s4409_s1 + $0x2d0] ss:$8 sps:$4 sm:$0xff]  }
  0x2f   : > { %v3083_v3 = vld [vmem:[%s4409_s1 + $0x2b0] ss:$8 sps:$4 sm:$0xff]   ;;  %v3092_v8 = vld [vmem:[%s4409_s1 + $0x3a0] ss:$8 sps:$4 sm:$0xff]   ;;  %v3097_v9 = vld [vmem:[%s4409_s1 + $0x294] ss:$8 sps:$4 sm:$0xff]  }
  0x30   : > { %460 = vmatpush2.bf16.msra.mxu0 %v2965_v34  ;;  %v3044_v34 = vld [vmem:[%s4409_s1 + $0x320] ss:$8 sps:$4 sm:$0xff]   ;;  %vm2446_vm1 = vsmask.f32 3328  ;;  %s2557_s27 = sshll.u32 %s190_s26, 2 }
  0x31   : > { %663 = vmatpush2.bf16.msra.mxu1 %v2966_v35  ;;  %461 = vmatprep.subr.bf16.mxu0 %v2967_v36  ;;  %v3049_v35 = vld [vmem:[%s4409_s1 + $0x214] ss:$8 sps:$4 sm:$0xff]   ;;  %vm2449_vm3 = vsmask.f32 7424  ;;  %vm2447_vm4 = vmand %vm2445_vm0, %vm2446_vm1  ;;  %s192_s28 = scalar_lea.vmem %s4411_s3, %s2557_s27 }
  0x32   : > { %664 = vmatprep.subr.bf16.mxu1 %v2969_v37  ;;  %v3052_v36 = vld [vmem:[%s4409_s1 + $0x314] ss:$8 sps:$4 sm:$0xff]   ;;  %v3047_v37 = vld [vmem:[%s4409_s1 + $0x210] ss:$8 sps:$4 sm:$0xff]   ;;  %vm2450_vm6 = vmand %vm2448_vm2, %vm2449_vm3 }
  0x33   : > { %vm2451_vm8 = vmor %vm2450_vm6, %vm2447_vm4 }
  0x34   : > { %462 = vmatpush2.bf16.msra.mxu0 %v2971_v38  ;;  %v3743_v38 = vld [vmem:[%s3592_s5 + $0x8] sm:$0x11] }
  0x35   : > { %665 = vmatpush2.bf16.msra.mxu1 %v2972_v39  ;;  %463 = vmatprep.subr.bf16.mxu0 %v2973_v40  ;;  %v3050_v39 = vld [vmem:[%s4409_s1 + $0x310] ss:$8 sps:$4 sm:$0xff]   ;;  %v2627_v40 = vcombine.high %v3601_v46, %v3743_v38 }
  0x36   : > { %666 = vmatprep.subr.bf16.mxu1 %v2975_v41  ;;  %v3055_v41 = vld [vmem:[%s4409_s1 + $0x204] ss:$8 sps:$4 sm:$0xff]  }
  0x38   : > { %464 = vmatpush2.bf16.msra.mxu0 %v2977_v42  ;;  %v3754_v42 = vld [vmem:[%s3592_s5 + $0x10] sm:$0xff] }
  0x39   : > { %667 = vmatpush2.bf16.msra.mxu1 %v2978_v43  ;;  %465 = vmatprep.subr.bf16.mxu0 %v2979_v44  ;;  %v3058_v43 = vld [vmem:[%s4409_s1 + $0x304] ss:$8 sps:$4 sm:$0xff]   ;;  %v725_v44 = vrot.slane %v2627_v40, 1  ;;  %v3129_v40 = vld [vmem:[%s4409_s1 + $0x440] ss:$8 sps:$4 sm:$0xff]  }
  0x3a   : > { %668 = vmatprep.subr.bf16.mxu1 %v2981_v45  ;;  %v3761_v45 = vcombine.high %v3754_v42, %v3754_v42 }
  0x3c   : > { %466 = vmatpush2.bf16.msra.mxu0 %v2983_v47  ;;  %v3053_v47 = vld [vmem:[%s4409_s1 + $0x200] ss:$8 sps:$4 sm:$0xff]  }
  0x3d   : > { %669 = vmatpush2.bf16.msra.mxu1 %v2984_v49  ;;  %467 = vmatprep.subr.bf16.mxu0 %v2985_v50  ;;  %v3061_v49 = vld [vmem:[%s4409_s1 + $0x2f4] ss:$8 sps:$4 sm:$0xff]  }
  0x3e   : > { %670 = vmatprep.subr.bf16.mxu1 %v2987_v51  ;;  %v3064_v50 = vld [vmem:[%s4409_s1 + $0x3f4] ss:$8 sps:$4 sm:$0xff]   ;;  %v3059_v51 = vld [vmem:[%s4409_s1 + $0x2f0] ss:$8 sps:$4 sm:$0xff]  }
  0x40   : > { %468 = vmatpush2.bf16.msra.mxu0 %v2989_v54  ;;  %v3070_v54 = vld [vmem:[%s4409_s1 + $0x3e4] ss:$8 sps:$4 sm:$0xff]  }
  0x41   : > { %671 = vmatpush2.bf16.msra.mxu1 %v2990_v55  ;;  %469 = vmatprep.subr.bf16.mxu0 %v2991_v57  ;;  %v3065_v55 = vld [vmem:[%s4409_s1 + $0x2e0] ss:$8 sps:$4 sm:$0xff]   ;;  %v3073_v57 = vld [vmem:[%s4409_s1 + $0x2d4] ss:$8 sps:$4 sm:$0xff]  }
  0x42   : > { %672 = vmatprep.subr.bf16.mxu1 %v2993_v58  ;;  %v3076_v58 = vld [vmem:[%s4409_s1 + $0x3d4] ss:$8 sps:$4 sm:$0xff]  }
  0x44   : > { %470 = vmatpush2.bf16.msra.mxu0 %v2995_v60  ;;  %v3074_v60 = vld [vmem:[%s4409_s1 + $0x3d0] ss:$8 sps:$4 sm:$0xff]  }
  0x45   : > { %673 = vmatpush2.bf16.msra.mxu1 %v2996_v61  ;;  %471 = vmatprep.subr.bf16.mxu0 %v2997_v63  ;;  %v3079_v61 = vld [vmem:[%s4409_s1 + $0x2c4] ss:$8 sps:$4 sm:$0xff]   ;;  %v3077_v63 = vld [vmem:[%s4409_s1 + $0x2c0] ss:$8 sps:$4 sm:$0xff]  }
  0x46   : > { %674 = vmatprep.subr.bf16.mxu1 %v2999_v0  ;;  %v3080_v0 = vld [vmem:[%s4409_s1 + $0x3c0] ss:$8 sps:$4 sm:$0xff]  }
  0x48   : > { %472 = vmatpush2.bf16.msra.mxu0 %v3001_v1  ;;  %v3085_v1 = vld [vmem:[%s4409_s1 + $0x2b4] ss:$8 sps:$4 sm:$0xff]  }
  0x49   : > { %675 = vmatpush2.bf16.msra.mxu1 %v3002_v2  ;;  %473 = vmatprep.subr.bf16.mxu0 %v3003_v4  ;;  %v3088_v2 = vld [vmem:[%s4409_s1 + $0x3b4] ss:$8 sps:$4 sm:$0xff]   ;;  %v3086_v4 = vld [vmem:[%s4409_s1 + $0x3b0] ss:$8 sps:$4 sm:$0xff]  }
  0x4a   : > { %676 = vmatprep.subr.bf16.mxu1 %v3005_v5  ;;  %v3091_v5 = vld [vmem:[%s4409_s1 + $0x2a4] ss:$8 sps:$4 sm:$0xff]  }
  0x4c   : > { %474 = vmatpush2.bf16.msra.mxu0 %v3007_v6  ;;  %v3094_v6 = vld [vmem:[%s4409_s1 + $0x3a4] ss:$8 sps:$4 sm:$0xff]  }
  0x4d   : > { %677 = vmatpush2.bf16.msra.mxu1 %v3008_v7  ;;  %888 = vmatprep.subr.bf16.mxu0 %v3013_v10  ;;  %v3089_v7 = vld [vmem:[%s4409_s1 + $0x2a0] ss:$8 sps:$4 sm:$0xff]   ;;  %v3100_v10 = vld [vmem:[%s4409_s1 + $0x394] ss:$8 sps:$4 sm:$0xff]  }
  0x4e   : > { %1136 = vmatprep.subr.bf16.mxu1 %v3016_v11  ;;  %v3095_v11 = vld [vmem:[%s4409_s1 + $0x290] ss:$8 sps:$4 sm:$0xff]  }
  0x4f   : > { %476 = vmatmul.mubr.bf16.vlgmr.msra.gmra.mxu0 %v273_v12  ;;  %v3098_v12 = vld [vmem:[%s4409_s1 + $0x390] ss:$8 sps:$4 sm:$0xff]  }
  0x50   : > { %679 = vmatmul.mubr.bf16.vlgmr.msra.gmra.mxu1 %v2560_v62  ;;  %889 = vmatpush1.bf16.msra.mxu0 %v3011_v13  ;;  %v3082_v62 = vld [vmem:[%s4409_s1 + $0x3c4] ss:$8 sps:$4 sm:$0xff]  }
  0x51   : > { %1137 = vmatpush1.bf16.msra.mxu1 %v3014_v14  ;;  %890 = vmatprep.subr.bf16.mxu0 %v3019_v15  ;;  %v3103_v13 = vld [vmem:[%s4409_s1 + $0x284] ss:$8 sps:$4 sm:$0xff]   ;;  %v1221_v15 = vshll.u32 %v3761_v45, 16 }
  0x52   : > { %1138 = vmatprep.subr.bf16.mxu1 %v3022_v16  ;;  %920 = vmatprep.mubr.bf16.mxu0 %v725_v44  ;;  %v3106_v14 = vld [vmem:[%s4409_s1 + $0x384] ss:$8 sps:$4 sm:$0xff]   ;;  %v2626_v16 = vcombine.low %v3601_v46, %v3743_v38  ;;  %v3116_v46 = vld [vmem:[%s4409_s1 + $0x574] ss:$8 sps:$4 sm:$0xff]  }
  0x53   : > { %1168 = vmatprep.mubr.bf16.mxu1 %v3761_v45  ;;  %v3131_v38 = vld [vmem:[%s4409_s1 + $0x444] ss:$8 sps:$4 sm:$0xff]   ;;  %v3140_v44 = vld [vmem:[%s4409_s1 + $0x534] ss:$8 sps:$4 sm:$0xff]  }
  0x54   : > { %891 = vmatpush1.bf16.msra.mxu0 %v3017_v17  ;;  %v3101_v17 = vld [vmem:[%s4409_s1 + $0x280] ss:$8 sps:$4 sm:$0xff]  }
  0x55   : > { %1139 = vmatpush1.bf16.msra.mxu1 %v3020_v18  ;;  %892 = vmatprep.subr.bf16.mxu0 %v3025_v19  ;;  %v3104_v18 = vld [vmem:[%s4409_s1 + $0x380] ss:$8 sps:$4 sm:$0xff]   ;;  %v3111_v19 = vld [vmem:[%s4409_s1 + $0x474] ss:$8 sps:$4 sm:$0xff]  }
  0x56   : > { %1140 = vmatprep.subr.bf16.mxu1 %v3028_v20  ;;  %v1219_v20 = vshrl.u32 %v3761_v45, 16  ;;  %v3135_v45 = vld [vmem:[%s4409_s1 + $0x430] ss:$8 sps:$4 sm:$0xff]  }
  0x58   : > { %893 = vmatpush1.bf16.msra.mxu0 %v3023_v21  ;;  %v1223_v21 = vrot.slane %v1221_v15, 1  ;;  %v3186_v15 = vld [vmem:[%s4409_s1 + $0x5b0] ss:$8 sps:$4 sm:$0xff]  }
  0x59   : > { %1141 = vmatpush1.bf16.msra.mxu1 %v3026_v22  ;;  %894 = vmatprep.subr.bf16.mxu0 %v3031_v23  ;;  %v724_v22 = vrot.slane %v2626_v16, 1  ;;  %v3878_v23 = vcombine.low %v3754_v42, %v3754_v42  ;;  %v3191_v16 = vld [vmem:[%s4409_s1 + $0x4a4] ss:$8 sps:$4 sm:$0xff]  }
  0x5a   : > { %1142 = vmatprep.subr.bf16.mxu1 %v3034_v24  ;;  %v3109_v24 = vld [vmem:[%s4409_s1 + $0x470] ss:$8 sps:$4 sm:$0xff]  }
  0x5c   : > { %895 = vmatpush1.bf16.msra.mxu0 %v3029_v25  ;;  %v3114_v25 = vld [vmem:[%s4409_s1 + $0x570] ss:$8 sps:$4 sm:$0xff]  }
  0x5d   : > { %1143 = vmatpush1.bf16.msra.mxu1 %v3032_v26  ;;  %896 = vmatprep.subr.bf16.mxu0 %v3037_v27  ;;  %v3119_v26 = vld [vmem:[%s4409_s1 + $0x464] ss:$8 sps:$4 sm:$0xff]  }
  0x5e   : > { %1144 = vmatprep.subr.bf16.mxu1 %v3040_v28  ;;  %v3122_v27 = vld [vmem:[%s4409_s1 + $0x564] ss:$8 sps:$4 sm:$0xff]   ;;  %v1224_v28 = vor.u32 %v1223_v21, %v1219_v20  ;;  %v3197_v20 = vld [vmem:[%s4409_s1 + $0x494] ss:$8 sps:$4 sm:$0xff]  }
  0x5f   : > { %v3200_v21 = vld [vmem:[%s4409_s1 + $0x594] ss:$8 sps:$4 sm:$0xff]  }
  0x60   : > { %897 = vmatpush1.bf16.msra.mxu0 %v3035_v29  ;;  %v3117_v29 = vld [vmem:[%s4409_s1 + $0x460] ss:$8 sps:$4 sm:$0xff]  }
  0x61   : > { %1145 = vmatpush1.bf16.msra.mxu1 %v3038_v30  ;;  %898 = vmatprep.subr.bf16.mxu0 %v3043_v31  ;;  %v3897_v30 = vld [vmem:[%s3592_s5 + $0x18] sm:$0x11]  ;;  %v3120_v31 = vld [vmem:[%s4409_s1 + $0x560] ss:$8 sps:$4 sm:$0xff]  }
  0x62   : > { %1146 = vmatprep.subr.bf16.mxu1 %v3046_v32  ;;  %v3125_v32 = vld [vmem:[%s4409_s1 + $0x454] ss:$8 sps:$4 sm:$0xff]  }
  0x64   : > { %899 = vmatpush1.bf16.msra.mxu0 %v3041_v33  ;;  %v2730_v33 = vcombine.high %v3754_v42, %v3897_v30 }
  0x65   : > { %1147 = vmatpush1.bf16.msra.mxu1 %v3044_v34  ;;  %900 = vmatprep.subr.bf16.mxu0 %v3049_v35  ;;  %v3128_v34 = vld [vmem:[%s4409_s1 + $0x554] ss:$8 sps:$4 sm:$0xff]  }
  0x66   : > { %1148 = vmatprep.subr.bf16.mxu1 %v3052_v36  ;;  %v1468_v35 = vrot.slane %v2730_v33, 1  ;;  %v3123_v36 = vld [vmem:[%s4409_s1 + $0x450] ss:$8 sps:$4 sm:$0xff]  }
  0x68   : > { %901 = vmatpush1.bf16.msra.mxu0 %v3047_v37  ;;  %v3126_v37 = vld [vmem:[%s4409_s1 + $0x550] ss:$8 sps:$4 sm:$0xff]  }
  0x69   : > { %1149 = vmatpush1.bf16.msra.mxu1 %v3050_v39  ;;  %902 = vmatprep.subr.bf16.mxu0 %v3055_v41  ;;  %v3134_v39 = vld [vmem:[%s4409_s1 + $0x544] ss:$8 sps:$4 sm:$0xff]   ;;  %v3132_v41 = vld [vmem:[%s4409_s1 + $0x540] ss:$8 sps:$4 sm:$0xff]  }
  0x6a   : > { %1150 = vmatprep.subr.bf16.mxu1 %v3058_v43  ;;  %v3137_v43 = vld [vmem:[%s4409_s1 + $0x434] ss:$8 sps:$4 sm:$0xff]  }
  0x6c   : > { %903 = vmatpush1.bf16.msra.mxu0 %v3053_v47  ;;  %v3138_v47 = vld [vmem:[%s4409_s1 + $0x530] ss:$8 sps:$4 sm:$0xff]  }
  0x6d   : > { %1151 = vmatpush1.bf16.msra.mxu1 %v3056_v48  ;;  %904 = vmatprep.subr.bf16.mxu0 %v3061_v49  ;;  %v3143_v48 = vld [vmem:[%s4409_s1 + $0x424] ss:$8 sps:$4 sm:$0xff]  }
  0x6e   : > { %1152 = vmatprep.subr.bf16.mxu1 %v3064_v50  ;;  %v3146_v49 = vld [vmem:[%s4409_s1 + $0x524] ss:$8 sps:$4 sm:$0xff]   ;;  %v3141_v50 = vld [vmem:[%s4409_s1 + $0x420] ss:$8 sps:$4 sm:$0xff]  }
  0x70   : > { %905 = vmatpush2.bf16.msra.mxu0 %v3059_v51  ;;  %v3144_v51 = vld [vmem:[%s4409_s1 + $0x520] ss:$8 sps:$4 sm:$0xff]  }
  0x71   : > { %1153 = vmatpush2.bf16.msra.mxu1 %v3062_v52  ;;  %906 = vmatprep.subr.bf16.mxu0 %v3067_v53  ;;  %v3149_v52 = vld [vmem:[%s4409_s1 + $0x414] ss:$8 sps:$4 sm:$0xff]  }
  0x72   : > { %1154 = vmatprep.subr.bf16.mxu1 %v3070_v54  ;;  %v3152_v53 = vld [vmem:[%s4409_s1 + $0x514] ss:$8 sps:$4 sm:$0xff]   ;;  %v3147_v54 = vld [vmem:[%s4409_s1 + $0x410] ss:$8 sps:$4 sm:$0xff]  }
  0x74   : > { %907 = vmatpush2.bf16.msra.mxu0 %v3065_v55  ;;  %v3150_v55 = vld [vmem:[%s4409_s1 + $0x510] ss:$8 sps:$4 sm:$0xff]  }
  0x75   : > { %1155 = vmatpush2.bf16.msra.mxu1 %v3068_v56  ;;  %908 = vmatprep.subr.bf16.mxu0 %v3073_v57  ;;  %v3155_v56 = vld [vmem:[%s4409_s1 + $0x404] ss:$8 sps:$4 sm:$0xff]  }
  0x76   : > { %1156 = vmatprep.subr.bf16.mxu1 %v3076_v58  ;;  %v3158_v57 = vld [vmem:[%s4409_s1 + $0x504] ss:$8 sps:$4 sm:$0xff]   ;;  %v3153_v58 = vld [vmem:[%s4409_s1 + $0x400] ss:$8 sps:$4 sm:$0xff]  }
  0x78   : > { %909 = vmatpush2.bf16.msra.mxu0 %v3071_v59  ;;  %v3156_v59 = vld [vmem:[%s4409_s1 + $0x500] ss:$8 sps:$4 sm:$0xff]  }
  0x79   : > { %1157 = vmatpush2.bf16.msra.mxu1 %v3074_v60  ;;  %910 = vmatprep.subr.bf16.mxu0 %v3079_v61  ;;  %v3161_v60 = vld [vmem:[%s4409_s1 + $0x4f4] ss:$8 sps:$4 sm:$0xff]  }
  0x7a   : > { %1158 = vmatprep.subr.bf16.mxu1 %v3082_v62  ;;  %v3164_v61 = vld [vmem:[%s4409_s1 + $0x5f4] ss:$8 sps:$4 sm:$0xff]   ;;  %v3159_v62 = vld [vmem:[%s4409_s1 + $0x4f0] ss:$8 sps:$4 sm:$0xff]  }
  0x7c   : > { %911 = vmatpush2.bf16.msra.mxu0 %v3077_v63  ;;  %v3162_v63 = vld [vmem:[%s4409_s1 + $0x5f0] ss:$8 sps:$4 sm:$0xff]  }
  0x7d   : > { %1159 = vmatpush2.bf16.msra.mxu1 %v3080_v0  ;;  %912 = vmatprep.subr.bf16.mxu0 %v3085_v1  ;;  %v3167_v0 = vld [vmem:[%s4409_s1 + $0x4e4] ss:$8 sps:$4 sm:$0xff]  }
  0x7e   : > { %1160 = vmatprep.subr.bf16.mxu1 %v3088_v2  ;;  %v3170_v1 = vld [vmem:[%s4409_s1 + $0x5e4] ss:$8 sps:$4 sm:$0xff]   ;;  %v3165_v2 = vld [vmem:[%s4409_s1 + $0x4e0] ss:$8 sps:$4 sm:$0xff]  }
  0x80   : > { %913 = vmatpush2.bf16.msra.mxu0 %v3083_v3  ;;  %v3168_v3 = vld [vmem:[%s4409_s1 + $0x5e0] ss:$8 sps:$4 sm:$0xff]  }
  0x81   : > { %1161 = vmatpush2.bf16.msra.mxu1 %v3086_v4  ;;  %914 = vmatprep.subr.bf16.mxu0 %v3091_v5  ;;  %v3173_v4 = vld [vmem:[%s4409_s1 + $0x4d4] ss:$8 sps:$4 sm:$0xff]  }
  0x82   : > { %1162 = vmatprep.subr.bf16.mxu1 %v3094_v6  ;;  %v3176_v5 = vld [vmem:[%s4409_s1 + $0x5d4] ss:$8 sps:$4 sm:$0xff]   ;;  %v3171_v6 = vld [vmem:[%s4409_s1 + $0x4d0] ss:$8 sps:$4 sm:$0xff]  }
  0x84   : > { %915 = vmatpush2.bf16.msra.mxu0 %v3089_v7  ;;  %v3174_v7 = vld [vmem:[%s4409_s1 + $0x5d0] ss:$8 sps:$4 sm:$0xff]  }
  0x85   : > { %1163 = vmatpush2.bf16.msra.mxu1 %v3092_v8  ;;  %916 = vmatprep.subr.bf16.mxu0 %v3097_v9  ;;  %v3179_v8 = vld [vmem:[%s4409_s1 + $0x4c4] ss:$8 sps:$4 sm:$0xff]  }
  0x86   : > { %1164 = vmatprep.subr.bf16.mxu1 %v3100_v10  ;;  %v3182_v9 = vld [vmem:[%s4409_s1 + $0x5c4] ss:$8 sps:$4 sm:$0xff]   ;;  %v3177_v10 = vld [vmem:[%s4409_s1 + $0x4c0] ss:$8 sps:$4 sm:$0xff]  }
  0x88   : > { %917 = vmatpush2.bf16.msra.mxu0 %v3095_v11  ;;  %v3180_v11 = vld [vmem:[%s4409_s1 + $0x5c0] ss:$8 sps:$4 sm:$0xff]  }
  0x89   : > { %1165 = vmatpush2.bf16.msra.mxu1 %v3098_v12  ;;  %918 = vmatprep.subr.bf16.mxu0 %v3103_v13  ;;  %v3185_v12 = vld [vmem:[%s4409_s1 + $0x4b4] ss:$8 sps:$4 sm:$0xff]  }
  0x8a   : > { %1166 = vmatprep.subr.bf16.mxu1 %v3106_v14  ;;  %v3188_v13 = vld [vmem:[%s4409_s1 + $0x5b4] ss:$8 sps:$4 sm:$0xff]   ;;  %v3183_v14 = vld [vmem:[%s4409_s1 + $0x4b0] ss:$8 sps:$4 sm:$0xff]  }
  0x8c   : > { %919 = vmatpush2.bf16.msra.mxu0 %v3101_v17  ;;  %v3194_v17 = vld [vmem:[%s4409_s1 + $0x5a4] ss:$8 sps:$4 sm:$0xff]  }
  0x8d   : > { %1167 = vmatpush2.bf16.msra.mxu1 %v3104_v18  ;;  %1387 = vmatprep.subr.bf16.mxu0 %v3111_v19  ;;  %v3189_v18 = vld [vmem:[%s4409_s1 + $0x4a0] ss:$8 sps:$4 sm:$0xff]  }
  0x8e   : > { %1631 = vmatprep.subr.bf16.mxu1 %v3116_v46  ;;  %v4046_v19 = vld [vmem:[%s3592_s5 + $0x20] sm:$0xff] }
  0x8f   : > { %921 = vmatmul.mubr.bf16.vlgmr.msra.gmra.mxu0 %v724_v22  ;;  %v3192_v46 = vld [vmem:[%s4409_s1 + $0x5a0] ss:$8 sps:$4 sm:$0xff]   ;;  %v2767_v22 = vcombine.high %v4046_v19, %v4046_v19 }
  0x90   : > { %1169 = vmatmul.mubr.bf16.vlgmr.msra.gmra.mxu1 %v3878_v23  ;;  %1388 = vmatpush1.bf16.msra.mxu0 %v3109_v24  ;;  %v3195_v24 = vld [vmem:[%s4409_s1 + $0x490] ss:$8 sps:$4 sm:$0xff]  }
  0x91   : > { %1632 = vmatpush1.bf16.msra.mxu1 %v3114_v25  ;;  %1389 = vmatprep.subr.bf16.mxu0 %v3119_v26  ;;  %v1214_v25 = vshll.u32 %v3878_v23, 16  ;;  %v3198_v26 = vld [vmem:[%s4409_s1 + $0x590] ss:$8 sps:$4 sm:$0xff]  }
  0x92   : > { %1633 = vmatprep.subr.bf16.mxu1 %v3122_v27  ;;  %1419 = vmatprep.mubr.bf16.mxu0 %v1224_v28  ;;  %v3203_v27 = vld [vmem:[%s4409_s1 + $0x484] ss:$8 sps:$4 sm:$0xff]  }
  0x93   : > { %1663 = vmatprep.mubr.bf16.mxu1 %v1468_v35  ;;  %v3206_v28 = vld [vmem:[%s4409_s1 + $0x584] ss:$8 sps:$4 sm:$0xff]   ;;  %v1216_v33 = vrot.slane %v1214_v25, 1  ;;  %v3204_v35 = vld [vmem:[%s4409_s1 + $0x580] ss:$8 sps:$4 sm:$0xff]  }
  0x94   : > { %1390 = vmatpush1.bf16.msra.mxu0 %v3117_v29  ;;  %v1964_v29 = vshll.u32 %v2767_v22, 16  ;;  %v3283_v25 = vld [vmem:[%s4409_s1 + $0x6b4] ss:$8 sps:$4 sm:$0xff]  }
  0x95   : > { %1634 = vmatpush1.bf16.msra.mxu1 %v3120_v31  ;;  %1391 = vmatprep.subr.bf16.mxu0 %v3125_v32  ;;  %v3201_v31 = vld [vmem:[%s4409_s1 + $0x480] ss:$8 sps:$4 sm:$0xff]   ;;  %v1212_v32 = vshrl.u32 %v3878_v23, 16  ;;  %v3214_v23 = vld [vmem:[%s4409_s1 + $0x774] ss:$8 sps:$4 sm:$0xff]  }
  0x96   : > { %1635 = vmatprep.subr.bf16.mxu1 %v3128_v34  ;;  %v2729_v34 = vcombine.low %v3754_v42, %v3897_v30  ;;  %v3207_v42 = vld [vmem:[%s4409_s1 + $0x670] ss:$8 sps:$4 sm:$0xff]  }
  0x98   : > { %1392 = vmatpush1.bf16.msra.mxu0 %v3123_v36  ;;  %v3209_v36 = vld [vmem:[%s4409_s1 + $0x674] ss:$8 sps:$4 sm:$0xff]   ;;  %v1467_v30 = vrot.slane %v2729_v34, 1  ;;  %v3290_v34 = vld [vmem:[%s4409_s1 + $0x7a0] ss:$8 sps:$4 sm:$0xff]  }
  0x99   : > { %1636 = vmatpush1.bf16.msra.mxu1 %v3126_v37  ;;  %1393 = vmatprep.subr.bf16.mxu0 %v3131_v38  ;;  %v1962_v37 = vshrl.u32 %v2767_v22, 16  ;;  %v1966_v38 = vrot.slane %v1964_v29, 1  ;;  %v3289_v29 = vld [vmem:[%s4409_s1 + $0x6a4] ss:$8 sps:$4 sm:$0xff]  }
  0x9a   : > { %1637 = vmatprep.subr.bf16.mxu1 %v3134_v39  ;;  %v1217_v39 = vor.u32 %v1216_v33, %v1212_v32  ;;  %v2766_v32 = vcombine.low %v4046_v19, %v4046_v19  ;;  %v3287_v33 = vld [vmem:[%s4409_s1 + $0x6a0] ss:$8 sps:$4 sm:$0xff]  }
  0x9c   : > { %1394 = vmatpush1.bf16.msra.mxu0 %v3129_v40  ;;  %v3212_v40 = vld [vmem:[%s4409_s1 + $0x770] ss:$8 sps:$4 sm:$0xff]  }
  0x9d   : > { %1638 = vmatpush1.bf16.msra.mxu1 %v3132_v41  ;;  %1395 = vmatprep.subr.bf16.mxu0 %v3137_v43  ;;  %v3217_v41 = vld [vmem:[%s4409_s1 + $0x664] ss:$8 sps:$4 sm:$0xff]  }
  0x9e   : > { %1639 = vmatprep.subr.bf16.mxu1 %v3140_v44  ;;  %v3220_v43 = vld [vmem:[%s4409_s1 + $0x764] ss:$8 sps:$4 sm:$0xff]   ;;  %v1967_v44 = vor.u32 %v1966_v38, %v1962_v37  ;;  %v3293_v37 = vld [vmem:[%s4409_s1 + $0x690] ss:$8 sps:$4 sm:$0xff]  }
  0x9f   : > { %v3296_v38 = vld [vmem:[%s4409_s1 + $0x790] ss:$8 sps:$4 sm:$0xff]  }
  0xa0   : > { %1396 = vmatpush1.bf16.msra.mxu0 %v3135_v45  ;;  %v3215_v45 = vld [vmem:[%s4409_s1 + $0x660] ss:$8 sps:$4 sm:$0xff]  }
  0xa1   : > { %1640 = vmatpush1.bf16.msra.mxu1 %v3138_v47  ;;  %1397 = vmatprep.subr.bf16.mxu0 %v3143_v48  ;;  %v3218_v47 = vld [vmem:[%s4409_s1 + $0x760] ss:$8 sps:$4 sm:$0xff]   ;;  %v3223_v48 = vld [vmem:[%s4409_s1 + $0x654] ss:$8 sps:$4 sm:$0xff]  }
  0xa2   : > { %1641 = vmatprep.subr.bf16.mxu1 %v3146_v49  ;;  %v3226_v49 = vld [vmem:[%s4409_s1 + $0x754] ss:$8 sps:$4 sm:$0xff]  }
  0xa4   : > { %1398 = vmatpush1.bf16.msra.mxu0 %v3141_v50  ;;  %v3221_v50 = vld [vmem:[%s4409_s1 + $0x650] ss:$8 sps:$4 sm:$0xff]  }
  0xa5   : > { %1642 = vmatpush1.bf16.msra.mxu1 %v3144_v51  ;;  %1399 = vmatprep.subr.bf16.mxu0 %v3149_v52  ;;  %v3224_v51 = vld [vmem:[%s4409_s1 + $0x750] ss:$8 sps:$4 sm:$0xff]   ;;  %v3229_v52 = vld [vmem:[%s4409_s1 + $0x644] ss:$8 sps:$4 sm:$0xff]  }
  0xa6   : > { %1643 = vmatprep.subr.bf16.mxu1 %v3152_v53  ;;  %v3232_v53 = vld [vmem:[%s4409_s1 + $0x744] ss:$8 sps:$4 sm:$0xff]  }
  0xa8   : > { %1400 = vmatpush1.bf16.msra.mxu0 %v3147_v54  ;;  %v3227_v54 = vld [vmem:[%s4409_s1 + $0x640] ss:$8 sps:$4 sm:$0xff]  }
  0xa9   : > { %1644 = vmatpush1.bf16.msra.mxu1 %v3150_v55  ;;  %1401 = vmatprep.subr.bf16.mxu0 %v3155_v56  ;;  %v3230_v55 = vld [vmem:[%s4409_s1 + $0x740] ss:$8 sps:$4 sm:$0xff]   ;;  %v3235_v56 = vld [vmem:[%s4409_s1 + $0x634] ss:$8 sps:$4 sm:$0xff]  }
  0xaa   : > { %1645 = vmatprep.subr.bf16.mxu1 %v3158_v57  ;;  %v3238_v57 = vld [vmem:[%s4409_s1 + $0x734] ss:$8 sps:$4 sm:$0xff]  }
  0xac   : > { %1402 = vmatpush1.bf16.msra.mxu0 %v3153_v58  ;;  %v3233_v58 = vld [vmem:[%s4409_s1 + $0x630] ss:$8 sps:$4 sm:$0xff]  }
  0xad   : > { %1646 = vmatpush1.bf16.msra.mxu1 %v3156_v59  ;;  %1403 = vmatprep.subr.bf16.mxu0 %v3161_v60  ;;  %v3236_v59 = vld [vmem:[%s4409_s1 + $0x730] ss:$8 sps:$4 sm:$0xff]   ;;  %v3241_v60 = vld [vmem:[%s4409_s1 + $0x624] ss:$8 sps:$4 sm:$0xff]  }
  0xae   : > { %1647 = vmatprep.subr.bf16.mxu1 %v3164_v61  ;;  %v3244_v61 = vld [vmem:[%s4409_s1 + $0x724] ss:$8 sps:$4 sm:$0xff]  }
  0xb0   : > { %1404 = vmatpush2.bf16.msra.mxu0 %v3159_v62  ;;  %v3239_v62 = vld [vmem:[%s4409_s1 + $0x620] ss:$8 sps:$4 sm:$0xff]  }
  0xb1   : > { %1648 = vmatpush2.bf16.msra.mxu1 %v3162_v63  ;;  %1405 = vmatprep.subr.bf16.mxu0 %v3167_v0  ;;  %v3242_v63 = vld [vmem:[%s4409_s1 + $0x720] ss:$8 sps:$4 sm:$0xff]   ;;  %v3247_v0 = vld [vmem:[%s4409_s1 + $0x614] ss:$8 sps:$4 sm:$0xff]  }
  0xb2   : > { %1649 = vmatprep.subr.bf16.mxu1 %v3170_v1  ;;  %v3250_v1 = vld [vmem:[%s4409_s1 + $0x714] ss:$8 sps:$4 sm:$0xff]  }
  0xb4   : > { %1406 = vmatpush2.bf16.msra.mxu0 %v3165_v2  ;;  %v3245_v2 = vld [vmem:[%s4409_s1 + $0x610] ss:$8 sps:$4 sm:$0xff]  }
  0xb5   : > { %1650 = vmatpush2.bf16.msra.mxu1 %v3168_v3  ;;  %1407 = vmatprep.subr.bf16.mxu0 %v3173_v4  ;;  %v3248_v3 = vld [vmem:[%s4409_s1 + $0x710] ss:$8 sps:$4 sm:$0xff]   ;;  %v3253_v4 = vld [vmem:[%s4409_s1 + $0x604] ss:$8 sps:$4 sm:$0xff]  }
  0xb6   : > { %1651 = vmatprep.subr.bf16.mxu1 %v3176_v5  ;;  %v3256_v5 = vld [vmem:[%s4409_s1 + $0x704] ss:$8 sps:$4 sm:$0xff]  }
  0xb8   : > { %1408 = vmatpush2.bf16.msra.mxu0 %v3171_v6  ;;  %v3251_v6 = vld [vmem:[%s4409_s1 + $0x600] ss:$8 sps:$4 sm:$0xff]  }
  0xb9   : > { %1652 = vmatpush2.bf16.msra.mxu1 %v3174_v7  ;;  %1409 = vmatprep.subr.bf16.mxu0 %v3179_v8  ;;  %v3254_v7 = vld [vmem:[%s4409_s1 + $0x700] ss:$8 sps:$4 sm:$0xff]   ;;  %v3259_v8 = vld [vmem:[%s4409_s1 + $0x6f4] ss:$8 sps:$4 sm:$0xff]  }
  0xba   : > { %1653 = vmatprep.subr.bf16.mxu1 %v3182_v9  ;;  %v3262_v9 = vld [vmem:[%s4409_s1 + $0x7f4] ss:$8 sps:$4 sm:$0xff]  }
  0xbc   : > { %1410 = vmatpush2.bf16.msra.mxu0 %v3177_v10  ;;  %v3257_v10 = vld [vmem:[%s4409_s1 + $0x6f0] ss:$8 sps:$4 sm:$0xff]  }
  0xbd   : > { %1654 = vmatpush2.bf16.msra.mxu1 %v3180_v11  ;;  %1411 = vmatprep.subr.bf16.mxu0 %v3185_v12  ;;  %v3260_v11 = vld [vmem:[%s4409_s1 + $0x7f0] ss:$8 sps:$4 sm:$0xff]   ;;  %v3265_v12 = vld [vmem:[%s4409_s1 + $0x6e4] ss:$8 sps:$4 sm:$0xff]  }
  0xbe   : > { %1655 = vmatprep.subr.bf16.mxu1 %v3188_v13  ;;  %v3268_v13 = vld [vmem:[%s4409_s1 + $0x7e4] ss:$8 sps:$4 sm:$0xff]  }
  0xc0   : > { %1412 = vmatpush2.bf16.msra.mxu0 %v3183_v14  ;;  %v3263_v14 = vld [vmem:[%s4409_s1 + $0x6e0] ss:$8 sps:$4 sm:$0xff]  }
  0xc1   : > { %1656 = vmatpush2.bf16.msra.mxu1 %v3186_v15  ;;  %1413 = vmatprep.subr.bf16.mxu0 %v3191_v16  ;;  %v3266_v15 = vld [vmem:[%s4409_s1 + $0x7e0] ss:$8 sps:$4 sm:$0xff]   ;;  %v3271_v16 = vld [vmem:[%s4409_s1 + $0x6d4] ss:$8 sps:$4 sm:$0xff]  }
  0xc2   : > { %1657 = vmatprep.subr.bf16.mxu1 %v3194_v17  ;;  %v3274_v17 = vld [vmem:[%s4409_s1 + $0x7d4] ss:$8 sps:$4 sm:$0xff]  }
  0xc4   : > { %1414 = vmatpush2.bf16.msra.mxu0 %v3189_v18  ;;  %v3269_v18 = vld [vmem:[%s4409_s1 + $0x6d0] ss:$8 sps:$4 sm:$0xff]  }
  0xc5   : > { %1658 = vmatpush2.bf16.msra.mxu1 %v3192_v46  ;;  %1415 = vmatprep.subr.bf16.mxu0 %v3197_v20  ;;  %v3272_v46 = vld [vmem:[%s4409_s1 + $0x7d0] ss:$8 sps:$4 sm:$0xff]   ;;  %v3277_v20 = vld [vmem:[%s4409_s1 + $0x6c4] ss:$8 sps:$4 sm:$0xff]  }
  0xc6   : > { %1659 = vmatprep.subr.bf16.mxu1 %v3200_v21  ;;  %v3280_v21 = vld [vmem:[%s4409_s1 + $0x7c4] ss:$8 sps:$4 sm:$0xff]  }
  0xc8   : > { %1416 = vmatpush2.bf16.msra.mxu0 %v3195_v24  ;;  %v3278_v24 = vld [vmem:[%s4409_s1 + $0x7c0] ss:$8 sps:$4 sm:$0xff]  }
  0xc9   : > { %1660 = vmatpush2.bf16.msra.mxu1 %v3198_v26  ;;  %1417 = vmatprep.subr.bf16.mxu0 %v3203_v27  ;;  %v3286_v26 = vld [vmem:[%s4409_s1 + $0x7b4] ss:$8 sps:$4 sm:$0xff]   ;;  %v3281_v27 = vld [vmem:[%s4409_s1 + $0x6b0] ss:$8 sps:$4 sm:$0xff]  }
  0xca   : > { %1661 = vmatprep.subr.bf16.mxu1 %v3206_v28  ;;  %v3284_v28 = vld [vmem:[%s4409_s1 + $0x7b0] ss:$8 sps:$4 sm:$0xff]  }
  0xcc   : > { %1418 = vmatpush2.bf16.msra.mxu0 %v3201_v31  ;;  %v3292_v31 = vld [vmem:[%s4409_s1 + $0x7a4] ss:$8 sps:$4 sm:$0xff]  }
  0xcd   : > { %1662 = vmatpush2.bf16.msra.mxu1 %v3204_v35  ;;  %1879 = vmatprep.subr.bf16.mxu0 %v3209_v36  ;;  %v3295_v35 = vld [vmem:[%s4409_s1 + $0x694] ss:$8 sps:$4 sm:$0xff]  }
  0xce   : > { %2130 = vmatprep.subr.bf16.mxu1 %v3214_v23  ;;  %v3298_v36 = vld [vmem:[%s4409_s1 + $0x794] ss:$8 sps:$4 sm:$0xff]   ;;  %v1957_v23 = vshll.u32 %v2766_v32, 16 }
  0xcf   : > { %1420 = vmatmul.mubr.bf16.vlgmr.msra.gmra.mxu0 %v1217_v39  ;;  %v3301_v39 = vld [vmem:[%s4409_s1 + $0x684] ss:$8 sps:$4 sm:$0xff]  }
  0xd0   : > { %1664 = vmatmul.mubr.bf16.vlgmr.msra.gmra.mxu1 %v1467_v30  ;;  %1880 = vmatpush1.bf16.msra.mxu0 %v3207_v42  ;;  %v3304_v42 = vld [vmem:[%s4409_s1 + $0x784] ss:$8 sps:$4 sm:$0xff]  }
  0xd1   : > { %2131 = vmatpush1.bf16.msra.mxu1 %v3212_v40  ;;  %1881 = vmatprep.subr.bf16.mxu0 %v3217_v41  ;;  %v4270_v30 = vld [vmem:[%s3592_s5 + $0x28] sm:$0x11]  ;;  %v1955_v40 = vshrl.u32 %v2766_v32, 16  ;;  %v1959_v41 = vrot.slane %v1957_v23, 1 }
  0xd2   : > { %2132 = vmatprep.subr.bf16.mxu1 %v3220_v43  ;;  %1911 = vmatprep.mubr.bf16.mxu0 %v2767_v22  ;;  %v3275_v22 = vld [vmem:[%s4409_s1 + $0x6c0] ss:$8 sps:$4 sm:$0xff]  }
  0xd3   : > { %2162 = vmatprep.mubr.bf16.mxu1 %v1967_v44  ;;  %v3299_v43 = vld [vmem:[%s4409_s1 + $0x680] ss:$8 sps:$4 sm:$0xff]  }
  0xd4   : > { %1882 = vmatpush1.bf16.msra.mxu0 %v3215_v45  ;;  %v3302_v44 = vld [vmem:[%s4409_s1 + $0x780] ss:$8 sps:$4 sm:$0xff]   ;;  %v2833_v45 = vcombine.high %v4046_v19, %v4270_v30 }
  0xd5   : > { %2133 = vmatpush1.bf16.msra.mxu1 %v3218_v47  ;;  %1883 = vmatprep.subr.bf16.mxu0 %v3223_v48  ;;  %v3309_v47 = vld [vmem:[%s4409_s1 + $0x874] ss:$8 sps:$4 sm:$0xff]   ;;  %v1960_v48 = vor.u32 %v1959_v41, %v1955_v40 }
  0xd6   : > { %2134 = vmatprep.subr.bf16.mxu1 %v3226_v49  ;;  %v3307_v49 = vld [vmem:[%s4409_s1 + $0x870] ss:$8 sps:$4 sm:$0xff]  }
  0xd8   : > { %1884 = vmatpush1.bf16.msra.mxu0 %v3221_v50  ;;  %v2211_v50 = vrot.slane %v2833_v45, 1 }
  0xd9   : > { %2135 = vmatpush1.bf16.msra.mxu1 %v3224_v51  ;;  %1885 = vmatprep.subr.bf16.mxu0 %v3229_v52  ;;  %v3312_v51 = vld [vmem:[%s4409_s1 + $0x864] ss:$8 sps:$4 sm:$0xff]  }
  0xda   : > { %2136 = vmatprep.subr.bf16.mxu1 %v3232_v53 }
  0xdc   : > { %1886 = vmatpush1.bf16.msra.mxu0 %v3227_v54 }
  0xdd   : > { %2137 = vmatpush1.bf16.msra.mxu1 %v3230_v55  ;;  %1887 = vmatprep.subr.bf16.mxu0 %v3235_v56  ;;  %v3310_v55 = vld [vmem:[%s4409_s1 + $0x860] ss:$8 sps:$4 sm:$0xff]  }
  0xde   : > { %2138 = vmatprep.subr.bf16.mxu1 %v3238_v57 }
  0xe0   : > { %1888 = vmatpush1.bf16.msra.mxu0 %v3233_v58  ;;  %v3315_v58 = vld [vmem:[%s4409_s1 + $0x854] ss:$8 sps:$4 sm:$0xff]  }
  0xe1   : > { %2139 = vmatpush1.bf16.msra.mxu1 %v3236_v59  ;;  %1889 = vmatprep.subr.bf16.mxu0 %v3241_v60 }
  0xe2   : > { %2140 = vmatprep.subr.bf16.mxu1 %v3244_v61 }
  0xe4   : > { %1890 = vmatpush1.bf16.msra.mxu0 %v3239_v62  ;;  %v3313_v62 = vld [vmem:[%s4409_s1 + $0x850] ss:$8 sps:$4 sm:$0xff]  }
  0xe5   : > { %2141 = vmatpush1.bf16.msra.mxu1 %v3242_v63  ;;  %1891 = vmatprep.subr.bf16.mxu0 %v3247_v0  ;;  %v3318_v0 = vld [vmem:[%s4409_s1 + $0x844] ss:$8 sps:$4 sm:$0xff]  }
  0xe6   : > { %2142 = vmatprep.subr.bf16.mxu1 %v3250_v1 }
  0xe8   : > { %1892 = vmatpush1.bf16.msra.mxu0 %v3245_v2  ;;  %v3316_v2 = vld [vmem:[%s4409_s1 + $0x840] ss:$8 sps:$4 sm:$0xff]  }
  0xe9   : > { %2143 = vmatpush1.bf16.msra.mxu1 %v3248_v3  ;;  %1893 = vmatprep.subr.bf16.mxu0 %v3253_v4  ;;  %v3321_v3 = vld [vmem:[%s4409_s1 + $0x834] ss:$8 sps:$4 sm:$0xff]   ;;  %v3319_v4 = vld [vmem:[%s4409_s1 + $0x830] ss:$8 sps:$4 sm:$0xff]  }
  0xea   : > { %2144 = vmatprep.subr.bf16.mxu1 %v3256_v5  ;;  %v3324_v5 = vld [vmem:[%s4409_s1 + $0x824] ss:$8 sps:$4 sm:$0xff]  }
  0xec   : > { %1894 = vmatpush1.bf16.msra.mxu0 %v3251_v6  ;;  %v3322_v6 = vld [vmem:[%s4409_s1 + $0x820] ss:$8 sps:$4 sm:$0xff]  }
  0xed   : > { %2145 = vmatpush1.bf16.msra.mxu1 %v3254_v7  ;;  %1895 = vmatprep.subr.bf16.mxu0 %v3259_v8  ;;  %v3327_v7 = vld [vmem:[%s4409_s1 + $0x814] ss:$8 sps:$4 sm:$0xff]   ;;  %v3325_v8 = vld [vmem:[%s4409_s1 + $0x810] ss:$8 sps:$4 sm:$0xff]  }
  0xee   : > { %2146 = vmatprep.subr.bf16.mxu1 %v3262_v9  ;;  %v3330_v9 = vld [vmem:[%s4409_s1 + $0x804] ss:$8 sps:$4 sm:$0xff]  }
  0xf0   : > { %1896 = vmatpush2.bf16.msra.mxu0 %v3257_v10  ;;  %v3328_v10 = vld [vmem:[%s4409_s1 + $0x800] ss:$8 sps:$4 sm:$0xff]  }
  0xf1   : > { %2147 = vmatpush2.bf16.msra.mxu1 %v3260_v11  ;;  %1897 = vmatprep.subr.bf16.mxu0 %v3265_v12  ;;  %v3333_v11 = vld [vmem:[%s4409_s1 + $0x8f4] ss:$8 sps:$4 sm:$0xff]   ;;  %v3331_v12 = vld [vmem:[%s4409_s1 + $0x8f0] ss:$8 sps:$4 sm:$0xff]  }
  0xf2   : > { %2148 = vmatprep.subr.bf16.mxu1 %v3268_v13  ;;  %v3336_v13 = vld [vmem:[%s4409_s1 + $0x8e4] ss:$8 sps:$4 sm:$0xff]  }
  0xf4   : > { %1898 = vmatpush2.bf16.msra.mxu0 %v3263_v14  ;;  %v3334_v14 = vld [vmem:[%s4409_s1 + $0x8e0] ss:$8 sps:$4 sm:$0xff]  }
  0xf5   : > { %2149 = vmatpush2.bf16.msra.mxu1 %v3266_v15  ;;  %1899 = vmatprep.subr.bf16.mxu0 %v3271_v16  ;;  %v3339_v15 = vld [vmem:[%s4409_s1 + $0x8d4] ss:$8 sps:$4 sm:$0xff]   ;;  %v3337_v16 = vld [vmem:[%s4409_s1 + $0x8d0] ss:$8 sps:$4 sm:$0xff]  }
  0xf6   : > { %2150 = vmatprep.subr.bf16.mxu1 %v3274_v17  ;;  %v3342_v17 = vld [vmem:[%s4409_s1 + $0x8c4] ss:$8 sps:$4 sm:$0xff]  }
  0xf8   : > { %1900 = vmatpush2.bf16.msra.mxu0 %v3269_v18  ;;  %v3340_v18 = vld [vmem:[%s4409_s1 + $0x8c0] ss:$8 sps:$4 sm:$0xff]  }
  0xf9   : > { %2151 = vmatpush2.bf16.msra.mxu1 %v3272_v46  ;;  %1901 = vmatprep.subr.bf16.mxu0 %v3277_v20  ;;  %v3345_v46 = vld [vmem:[%s4409_s1 + $0x8b4] ss:$8 sps:$4 sm:$0xff]   ;;  %v3343_v20 = vld [vmem:[%s4409_s1 + $0x8b0] ss:$8 sps:$4 sm:$0xff]  }
  0xfa   : > { %2152 = vmatprep.subr.bf16.mxu1 %v3280_v21  ;;  %v3348_v21 = vld [vmem:[%s4409_s1 + $0x8a4] ss:$8 sps:$4 sm:$0xff]  }
  0xfc   : > { %1902 = vmatpush2.bf16.msra.mxu0 %v3275_v22  ;;  %v3346_v22 = vld [vmem:[%s4409_s1 + $0x8a0] ss:$8 sps:$4 sm:$0xff]  }
  0xfd   : > { %2153 = vmatpush2.bf16.msra.mxu1 %v3278_v24  ;;  %1903 = vmatprep.subr.bf16.mxu0 %v3283_v25  ;;  %v3351_v24 = vld [vmem:[%s4409_s1 + $0x894] ss:$8 sps:$4 sm:$0xff]   ;;  %v3349_v25 = vld [vmem:[%s4409_s1 + $0x890] ss:$8 sps:$4 sm:$0xff]  }
  0xfe   : > { %2154 = vmatprep.subr.bf16.mxu1 %v3286_v26  ;;  %v3354_v26 = vld [vmem:[%s4409_s1 + $0x884] ss:$8 sps:$4 sm:$0xff]  }
 0x100   : > { %1904 = vmatpush2.bf16.msra.mxu0 %v3281_v27  ;;  %v2832_v27 = vcombine.low %v4046_v19, %v4270_v30 }
 0x101   : > { %2155 = vmatpush2.bf16.msra.mxu1 %v3284_v28  ;;  %1905 = vmatprep.subr.bf16.mxu0 %v3289_v29  ;;  %v3352_v28 = vld [vmem:[%s4409_s1 + $0x880] ss:$8 sps:$4 sm:$0xff]  }
 0x102   : > { %2156 = vmatprep.subr.bf16.mxu1 %v3292_v31  ;;  %v2210_v29 = vrot.slane %v2832_v27, 1 }
 0x104   : > { %1906 = vmatpush2.bf16.msra.mxu0 %v3287_v33 }
 0x105   : > { %2157 = vmatpush2.bf16.msra.mxu1 %v3290_v34  ;;  %1907 = vmatprep.subr.bf16.mxu0 %v3295_v35 }
 0x106   : > { %2158 = vmatprep.subr.bf16.mxu1 %v3298_v36 }
 0x108   : > { %1908 = vmatpush2.bf16.msra.mxu0 %v3293_v37 }
 0x109   : > { %2159 = vmatpush2.bf16.msra.mxu1 %v3296_v38  ;;  %1909 = vmatprep.subr.bf16.mxu0 %v3301_v39 }
 0x10a   : > { %2160 = vmatprep.subr.bf16.mxu1 %v3304_v42 }
 0x10c   : > { %1910 = vmatpush2.bf16.msra.mxu0 %v3299_v43 }
 0x10d   : > { %2161 = vmatpush2.bf16.msra.mxu1 %v3302_v44  ;;  %2374 = vmatprep.subr.bf16.mxu0 %v3309_v47 }
 0x10f   : > { %v477_v52 = vpop.f32.mrf.mxu0  ;;  %1912 = vmatmul.mubr.bf16.vlgmr.msra.gmra.mxu0 %v2766_v32 }
 0x110   : > { %v680_v53 = vpop.f32.mrf.mxu1  ;;  %2163 = vmatmul.mubr.bf16.vlgmr.msra.gmra.mxu1 %v1960_v48  ;;  %2375 = vmatpush1.bf16.msra.mxu0 %v3307_v49 }
 0x111   : > { %v4289_v54 = vadd.f32 %v680_v53, %v477_v52  ;;  %2406 = vmatprep.mubr.bf16.mxu0 %v2211_v50  ;;  %v479_v56 = vpop.f32.mrf.mxu0  ;;  %2376 = vmatprep.subr.bf16.mxu0 %v3312_v51 }
 0x112   : > { %v682_v57 = vpop.f32.mrf.mxu1 }
 0x113   : > { %v4297_v59 = vadd.f32 %v682_v57, %v479_v56  ;;  %v481_v60 = vpop.f32.mrf.mxu0 }
 0x114   : > { %v684_v61 = vpop.f32.mrf.mxu1  ;;  %2377 = vmatpush1.bf16.msra.mxu0 %v3310_v55 }
 0x115   : > { %v482_v63 = vpop.f32.mrf.mxu0  ;;  %2378 = vmatprep.subr.bf16.mxu0 %v3315_v58 }
 0x116   : > { %v685_v1 = vpop.f32.mrf.mxu1  ;;  %v2419_v63 = vlaneseq }
 0x118   : > { %2379 = vmatpush1.bf16.msra.mxu0 %v3313_v62 }
 0x119   : > { %2380 = vmatprep.subr.bf16.mxu0 %v3318_v0  ;;  %v2420_v0 = vshrl.u32 %v2419_v63, 7 }
 0x11b   : > { %v2421_v1 = vsub.s32 0, %v2420_v0 }
 0x11c   : > { %2381 = vmatpush1.bf16.msra.mxu0 %v3316_v2  ;;  %v2417_v2 = vld [vmem:[%s4410_s2] sm:$0x3] }
 0x11d   : > { %2382 = vmatprep.subr.bf16.mxu0 %v3321_v3 }
 0x120   : > { %2383 = vmatpush1.bf16.msra.mxu0 %v3319_v4  ;;  %v2425_v4 = vsub.s32 1, %v2420_v0 }
 0x121   : > { %2384 = vmatprep.subr.bf16.mxu0 %v3324_v5  ;;  %v2422_v5 = vrot.slane %v2417_v2, %v2421_v1 }
 0x124   : > { %2385 = vmatpush1.bf16.msra.mxu0 %v3322_v6 }
 0x125   : > { %2386 = vmatprep.subr.bf16.mxu0 %v3327_v7 }
 0x128   : > { %2387 = vmatpush1.bf16.msra.mxu0 %v3325_v8 }
 0x129   : > { %2388 = vmatprep.subr.bf16.mxu0 %v3330_v9  ;;  %v2426_v9 = vrot.slane %v2417_v2, %v2425_v4 }
 0x12c   : > { %2389 = vmatpush1.bf16.msra.mxu0 %v3328_v10 }
 0x12d   : > { %2390 = vmatprep.subr.bf16.mxu0 %v3333_v11 }
 0x130   : > { %2391 = vmatpush2.bf16.msra.mxu0 %v3331_v12 }
 0x131   : > { %2392 = vmatprep.subr.bf16.mxu0 %v3336_v13 }
 0x134   : > { %2393 = vmatpush2.bf16.msra.mxu0 %v3334_v14 }
 0x135   : > { %2394 = vmatprep.subr.bf16.mxu0 %v3339_v15 }
 0x138   : > { %2395 = vmatpush2.bf16.msra.mxu0 %v3337_v16 }
 0x139   : > { %2396 = vmatprep.subr.bf16.mxu0 %v3342_v17 }
 0x13c   : > { %2397 = vmatpush2.bf16.msra.mxu0 %v3340_v18 }
 0x13d   : > { %2398 = vmatprep.subr.bf16.mxu0 %v3345_v46 }
 0x140   : > { %2399 = vmatpush2.bf16.msra.mxu0 %v3343_v20  ;;  %v2452_v20 = vld [vmem:[%s192_s28] sm:$0xff] }
 0x141   : > { %2400 = vmatprep.subr.bf16.mxu0 %v3348_v21 }
 0x144   : > { %2401 = vmatpush2.bf16.msra.mxu0 %v3346_v22 }
 0x145   : > { %2402 = vmatprep.subr.bf16.mxu0 %v3351_v24 }
 0x148   : > { %2403 = vmatpush2.bf16.msra.mxu0 %v3349_v25 }
 0x149   : > { %2404 = vmatprep.subr.bf16.mxu0 %v3354_v26 }
 0x14c   : > { %2405 = vmatpush2.bf16.msra.mxu0 %v3352_v28 }
 0x14f   : > { %v922_v31 = vpop.f32.mrf.mxu0  ;;  %2407 = vmatmul.mubr.bf16.vlgmr.msra.gmra.mxu0 %v2210_v29 }
 0x150   : > { %v1170_v32 = vpop.f32.mrf.mxu1  ;;  %v929_v33 = vadd.f32 %v922_v31, %v4289_v54 }
 0x151   : > { %v924_v34 = vpop.f32.mrf.mxu0 }
 0x152   : > { %v1172_v35 = vpop.f32.mrf.mxu1  ;;  %v930_v36 = vadd.f32 %v924_v34, %v4297_v59  ;;  %v1177_v23 = vadd.f32 %v1170_v32, %v929_v33 }
 0x153   : > { %v926_v37 = vpop.f32.mrf.mxu0 }
 0x154   : > { %v1174_v19 = vpop.f32.mrf.mxu1  ;;  %v1178_v38 = vadd.f32 %v1172_v35, %v930_v36 }
 0x155   : > { %v927_v39 = vpop.f32.mrf.mxu0 }
 0x156   : > { %v1175_v42 = vpop.f32.mrf.mxu1 }
 0x18f   : > { %v1421_v30 = vpop.f32.mrf.mxu0 }
 0x190   : > { %v1665_v40 = vpop.f32.mrf.mxu1  ;;  %v1428_v41 = vadd.f32 %v1421_v30, %v1177_v23 }
 0x191   : > { %v1423_v43 = vpop.f32.mrf.mxu0 }
 0x192   : > { %v1667_v44 = vpop.f32.mrf.mxu1  ;;  %v1429_v45 = vadd.f32 %v1423_v43, %v1178_v38  ;;  %v1672_v47 = vadd.f32 %v1665_v40, %v1428_v41 }
 0x193   : > { %v1425_v48 = vpop.f32.mrf.mxu0 }
 0x194   : > { %v1669_v49 = vpop.f32.mrf.mxu1  ;;  %v1673_v50 = vadd.f32 %v1667_v44, %v1429_v45 }
 0x195   : > { %v1426_v51 = vpop.f32.mrf.mxu0 }
 0x196   : > { %v1670_v52 = vpop.f32.mrf.mxu1 }
 0x1cf   : > { %v1913_v53 = vpop.f32.mrf.mxu0 }
 0x1d0   : > { %v2164_v54 = vpop.f32.mrf.mxu1  ;;  %v1920_v55 = vadd.f32 %v1913_v53, %v1672_v47 }
 0x1d1   : > { %v1915_v56 = vpop.f32.mrf.mxu0 }
 0x1d2   : > { %v2166_v57 = vpop.f32.mrf.mxu1  ;;  %v2171_v58 = vadd.f32 %v2164_v54, %v1920_v55  ;;  %v1921_v3 = vadd.f32 %v1915_v56, %v1673_v50 }
 0x1d3   : > { %v1917_v59 = vpop.f32.mrf.mxu0 }
 0x1d4   : > { %v2168_v60 = vpop.f32.mrf.mxu1  ;;  %v2172_v7 = vadd.f32 %v2166_v57, %v1921_v3 }
 0x1d5   : > { %v1918_v61 = vpop.f32.mrf.mxu0 }
 0x1d6   : > { %v2169_v62 = vpop.f32.mrf.mxu1 }
 0x20f   : > { %v2408_v6 = vpop.f32.mrf.mxu0 }
 0x210   : > { %v2415_v8 = vadd.f32 %v2408_v6, %v2171_v58 }
 0x211   : > { %v2410_v10 = vpop.f32.mrf.mxu0 }
 0x212   : > { %v2429_v11 = vadd.f32 %v2422_v5, %v2415_v8  ;;  %v2416_v12 = vadd.f32 %v2410_v10, %v2172_v7 }
 0x213   : > { %v2412_v13 = vpop.f32.mrf.mxu0 }
 0x214   : > { %v2433_v14 = vmul.f32 0.01, %v2429_v11  ;;  %v2430_v15 = vadd.f32 %v2426_v9, %v2416_v12  ;;  %vm2431_vm5 = vcmp.ge.f32.partialorder %v2429_v11, 0.0 }
 0x215   : > { %v2413_v16 = vpop.f32.mrf.mxu0 }
 0x216   : > { %vm2432_vm7 = vcmp.ge.f32.partialorder %v2430_v15, 0.0  ;;  %v2434_v17 = vmul.f32 0.01, %v2430_v15  ;;  %v2435_v18 = vsel %vm2431_vm5, %v2429_v11, %v2433_v14 }
 0x218   : > { %v2436_v46 = vsel %vm2432_vm7, %v2430_v15, %v2434_v17 }
 0x219   : > { %v2871_v21 = vpack.c.bf16 %v2436_v46, %v2435_v18 }
 0x21b   : > { %v2453_v22 = vsel %vm2451_vm8, %v2871_v21, %v2452_v20 }
 0x21c   : > { %2454 = vst [vmem:[%s192_s28] sm:$0xff] %v2453_v22 }
 0x21d PF: > { %s13_s16 = sadd.s32 1, %s3395_s16   ;;  %s4412_s12 = smov %s3387_s14 }
 0x21e   : > { %p10_p7 = scmp.ge.s32.totalorder %s13_s16, 30   ;;  %s4413_s13 = smov %s3391_s15 }
 0x21f   : > { %s4414_s14 = smov %s4417_s17  ;;  %s4415_s15 = smov %s4421_s18 }
 0x220   :  { %12 = sbr.rel (!%p10_p7) target bundleno = 3 (0x3), region = 65 }

// kernel: ocr_forward.18
= control target key start
LH: loop header
LB: loop body
LE: loop exit
PB: predicated region body
PF: predicated region fallthrough
CT: control target
= control target key end

     0   :  { %s924_s9 = smov 0   ;;  %s926_s10 = smov 0   ;;  %s1023_s0 = inlined_call_operand.vmem [shape: f32[2,6,2,512], index: 0, kind: input, shape index: {}]   ;;  %s1024_s1 = inlined_call_operand.vmem [shape: bf16[2,128,512], index: 1, kind: input, shape index: {}]   ;;  %s1025_s2 = inlined_call_operand.vmem [shape: f32[2,6,2,128], index: 2, kind: output, shape index: {}]  }
   0x1   :  { %s928_s11 = smov 0   ;;  %s930_s12 = smov 0  }
   0x2   :  { %s932_s13 = smov 0  }
   0x3 LB: > { %s21_s14 = sadd.s32 1, %s896_s11  ;;  %s24_s15 = sadd.s32 1, %s900_s12  ;;  %s904_s13 = sphi %s932_s13, %s12_s13   ;;  %s900_s12 = sphi %s930_s12, %s1029_s12   ;;  %s896_s11 = sphi %s928_s11, %s1028_s11   ;;  %s892_s10 = sphi %s926_s10, %s1027_s10   ;;  %s888_s9 = sphi %s924_s9, %s1026_s9  }
   0x4   : > { %p22_p0 = scmp.ge.s32.totalorder %s21_s14, 6  ;;  %p710_p1 = scmp.ge.s32.totalorder %s904_s13, 1 }
   0x5   : > { %p166_p2 = scmp.lt.s32.totalorder %s904_s13, 13 }
   0x6   : > { %s1031_s14 = smov (%p22_p0, %s21_s14), 0  ;;  %s1033_s15 = smov (!%p22_p0, %s24_s15), %s900_s12 }
   0x7   : > { %p167_p3 = pnand %p710_p1, %p166_p2  ;;  %p26_p4 = scmp.ge.s32.totalorder %s1033_s15, 2 }
   0x8   : > { %s711_s16 = sshll.u32 (!%p167_p3), %s888_s9, 1  ;;  %p212_p5 = scmp.lt.s32.totalorder (!%p167_p3), %s892_s10, 1 }
   0x9   : > { %s1035_s15 = smov (%p26_p4, %s1033_s15), 0  ;;  %170 = sbr.rel (%p167_p3) target bundleno = 320 (0x140), region = 28 }
   0xa   : > { %s209_s17 = ssub.s32 (!%p167_p3), 5, %s711_s16  ;;  %p718_p7 = scmp.ne.s32.totalorder (!%p167_p3), %s888_s9, 0 }
   0xb   : > { %s210_s18 = smul.u32 (!%p167_p3), %s892_s10, %s209_s17 }
   0xd   : > { %s211_s19 = sadd.s32 (!%p167_p3), %s888_s9, %s210_s18 }
   0xe   : > { %s1037_s10 = smov (!%p212_p5, %s892_s10), 1  ;;  %p214_p6 = scmp.lt.s32.totalorder %s211_s19, 5 }
   0xf   : > { %s757_s20 = smul.u32 24, %s1037_s10  ;;  %s756_s21 = sshll.u32 %s1037_s10, 8 }
  0x10   : > { %s758_s22 = smul.u32 6, %s1037_s10  ;;  %s1039_s19 = smov (!%p214_p6, %s211_s19), 5 }
  0x11   : > { %s961_s25 = scalar_lea.vmem %s1024_s1, %s756_s21  ;;  %s712_s26 = sshll.u32 %s1039_s19, 2 }
  0x12   : > { %s239_s27 = sadd.s32 %s758_s22, %s1039_s19  ;;  %s218_s28 = sadd.s32 %s757_s20, %s712_s26 }
  0x13   : > { %s717_s29 = sshll.u32 %s239_s27, 1  ;;  %s713_s30 = sshll.u32 %s218_s28, 1 }
  0x14   : > { %s966_s5 = scalar_lea.vmem %s1025_s2, %s717_s29  ;;  %s971_s8 = scalar_lea.vmem %s1023_s0, %s713_s30 }
  0x15   : > { %250 = sbr.rel (%p718_p7) target bundleno = 28 (0x1c), region = 32 }
  0x1a   : > { %v906_v0 = vmov 0.0  }
  0x1b   : > { %251 = vst [vmem:[#allocation2] sm:$0x3] %v906_v0  ;;  %252 = vst [vmem:[#allocation3] sm:$0x3] %v906_v0 }
  0x1c PF: > { %v802_v1 = vld [vmem:[%s961_s25 + $0xe4] ss:$16 sps:$4 sm:$0xff]   ;;  %v804_v2 = vld [vmem:[%s961_s25 + $0xec] ss:$16 sps:$4 sm:$0xff]   ;;  %v907_v3 = vmov 0   ;;  %v539_v38 = vlaneseq }
  0x1d   : > { %480 = vmatprep.mubr.bf16.mxu0 %v907_v3  ;;  %521 = vmatprep.mubr.bf16.mxu1 %v907_v3  ;;  %v806_v4 = vld [vmem:[%s961_s25 + $0xe0] ss:$16 sps:$4 sm:$0xff]   ;;  %v807_v5 = vld [vmem:[%s961_s25 + $0xe8] ss:$16 sps:$4 sm:$0xff]   ;;  %v808_v6 = vld [vmem:[%s961_s25 + $0xc4] ss:$16 sps:$4 sm:$0xff]  }
  0x1e   : > { %448 = vmatprep.subr.bf16.mxu0 %v802_v1  ;;  %489 = vmatprep.subr.bf16.mxu1 %v804_v2  ;;  %v810_v7 = vld [vmem:[%s961_s25 + $0xcc] ss:$16 sps:$4 sm:$0xff]   ;;  %v812_v8 = vld [vmem:[%s961_s25 + $0xc0] ss:$16 sps:$4 sm:$0xff]   ;;  %v813_v9 = vld [vmem:[%s961_s25 + $0xc8] ss:$16 sps:$4 sm:$0xff]  }
  0x1f   : > { %449 = vmatpush1.bf16.msra.mxu0 %v806_v4  ;;  %490 = vmatpush1.bf16.msra.mxu1 %v807_v5  ;;  %v814_v10 = vld [vmem:[%s961_s25 + $0xa4] ss:$16 sps:$4 sm:$0xff]   ;;  %v816_v11 = vld [vmem:[%s961_s25 + $0xac] ss:$16 sps:$4 sm:$0xff]   ;;  %v818_v12 = vld [vmem:[%s961_s25 + $0xa0] ss:$16 sps:$4 sm:$0xff]  }
  0x20   : > { %450 = vmatprep.subr.bf16.mxu0 %v808_v6  ;;  %491 = vmatprep.subr.bf16.mxu1 %v810_v7  ;;  %v819_v13 = vld [vmem:[%s961_s25 + $0xa8] ss:$16 sps:$4 sm:$0xff]   ;;  %v820_v14 = vld [vmem:[%s961_s25 + $0x84] ss:$16 sps:$4 sm:$0xff]   ;;  %v822_v15 = vld [vmem:[%s961_s25 + $0x8c] ss:$16 sps:$4 sm:$0xff]  }
  0x21   : > { %v824_v16 = vld [vmem:[%s961_s25 + $0x80] ss:$16 sps:$4 sm:$0xff]   ;;  %v825_v17 = vld [vmem:[%s961_s25 + $0x88] ss:$16 sps:$4 sm:$0xff]   ;;  %v826_v18 = vld [vmem:[%s961_s25 + $0x64] ss:$16 sps:$4 sm:$0xff]  }
  0x22   : > { %v828_v19 = vld [vmem:[%s961_s25 + $0x6c] ss:$16 sps:$4 sm:$0xff]   ;;  %v830_v20 = vld [vmem:[%s961_s25 + $0x60] ss:$16 sps:$4 sm:$0xff]   ;;  %v831_v21 = vld [vmem:[%s961_s25 + $0x68] ss:$16 sps:$4 sm:$0xff]  }
  0x23   : > { %451 = vmatpush1.bf16.msra.mxu0 %v812_v8  ;;  %492 = vmatpush1.bf16.msra.mxu1 %v813_v9  ;;  %v832_v22 = vld [vmem:[%s961_s25 + $0x44] ss:$16 sps:$4 sm:$0xff]   ;;  %v834_v23 = vld [vmem:[%s961_s25 + $0x4c] ss:$16 sps:$4 sm:$0xff]   ;;  %v836_v24 = vld [vmem:[%s961_s25 + $0x40] ss:$16 sps:$4 sm:$0xff]  }
  0x24   : > { %452 = vmatprep.subr.bf16.mxu0 %v814_v10  ;;  %493 = vmatprep.subr.bf16.mxu1 %v816_v11  ;;  %v837_v25 = vld [vmem:[%s961_s25 + $0x48] ss:$16 sps:$4 sm:$0xff]   ;;  %v838_v26 = vld [vmem:[%s961_s25 + $0x24] ss:$16 sps:$4 sm:$0xff]   ;;  %v840_v27 = vld [vmem:[%s961_s25 + $0x2c] ss:$16 sps:$4 sm:$0xff]  }
  0x25   : > { %v842_v28 = vld [vmem:[%s961_s25 + $0x20] ss:$16 sps:$4 sm:$0xff]   ;;  %v843_v29 = vld [vmem:[%s961_s25 + $0x28] ss:$16 sps:$4 sm:$0xff]   ;;  %v844_v30 = vld [vmem:[%s961_s25 + $0x4] ss:$16 sps:$4 sm:$0xff]  }
  0x26   : > { %v846_v31 = vld [vmem:[%s961_s25 + $0xc] ss:$16 sps:$4 sm:$0xff]   ;;  %v848_v32 = vld [vmem:[%s961_s25] ss:$16 sps:$4 sm:$0xff]   ;;  %v849_v33 = vld [vmem:[%s961_s25 + $0x8] ss:$16 sps:$4 sm:$0xff]  }
  0x27   : > { %453 = vmatpush1.bf16.msra.mxu0 %v818_v12  ;;  %494 = vmatpush1.bf16.msra.mxu1 %v819_v13  ;;  %v254_v34 = vld [vmem:[#allocation2] sm:$0x3]  ;;  %v908_v36 = vmov 1983009808   ;;  %v540_v40 = vshrl.u32 %v539_v38, 7 }
  0x28   : > { %454 = vmatprep.subr.bf16.mxu0 %v820_v14  ;;  %495 = vmatprep.subr.bf16.mxu1 %v822_v15  ;;  %v255_v35 = vpack.c.bf16 %v254_v34, %v254_v34  ;;  %v537_v37 = vunpack.c.l.s4 %v908_v36  ;;  %v253_v52 = vld [vmem:[%s971_s8] sm:$0xff] }
  0x29   : > { %v579_v5 = vld [vmem:[#allocation3] sm:$0x3] }
  0x2a   : > { %v538_v39 = vunpack.c.0.s8 %v537_v37 }
  0x2b   : > { %455 = vmatpush1.bf16.msra.mxu0 %v824_v16  ;;  %496 = vmatpush1.bf16.msra.mxu1 %v825_v17 }
  0x2c   : > { %456 = vmatprep.subr.bf16.mxu0 %v826_v18  ;;  %497 = vmatprep.subr.bf16.mxu1 %v828_v19  ;;  %v541_v43 = vsub.s32 %v538_v39, %v540_v40 }
  0x2f   : > { %457 = vmatpush1.bf16.msra.mxu0 %v830_v20  ;;  %498 = vmatpush1.bf16.msra.mxu1 %v831_v21 }
  0x30   : > { %458 = vmatprep.subr.bf16.mxu0 %v832_v22  ;;  %499 = vmatprep.subr.bf16.mxu1 %v834_v23 }
  0x33   : > { %459 = vmatpush1.bf16.msra.mxu0 %v836_v24  ;;  %500 = vmatpush1.bf16.msra.mxu1 %v837_v25 }
  0x34   : > { %460 = vmatprep.subr.bf16.mxu0 %v838_v26  ;;  %501 = vmatprep.subr.bf16.mxu1 %v840_v27 }
  0x37   : > { %461 = vmatpush1.bf16.msra.mxu0 %v842_v28  ;;  %502 = vmatpush1.bf16.msra.mxu1 %v843_v29 }
  0x38   : > { %462 = vmatprep.subr.bf16.mxu0 %v844_v30  ;;  %503 = vmatprep.subr.bf16.mxu1 %v846_v31 }
  0x3b   : > { %463 = vmatpush1.bf16.msra.mxu0 %v848_v32  ;;  %504 = vmatpush1.bf16.msra.mxu1 %v849_v33 }
  0x3e   : > { %481 = vmatmul.mubr.bf16.vlgmr.msra.gmra.mxu0 %v255_v35  ;;  %522 = vmatmul.mubr.bf16.vlgmr.msra.gmra.mxu1 %v255_v35 }
  0xfe   : > { %v482_v41 = vpop.f32.mrf.mxu0  ;;  %v523_v42 = vpop.f32.mrf.mxu1 }
 0x100   : > { %v484_v44 = vpop.f32.mrf.mxu0  ;;  %v525_v45 = vpop.f32.mrf.mxu1 }
 0x101   : > { %v534_v46 = vcombine.low %v482_v41, %v484_v44  ;;  %v535_v47 = vcombine.low %v523_v42, %v525_v45 }
 0x102   : > { %v486_v48 = vpop.f32.mrf.mxu0  ;;  %v527_v49 = vpop.f32.mrf.mxu1 }
 0x103   : > { %v542_v50 = vrot.slane %v534_v46, %v541_v43  ;;  %v549_v51 = vrot.slane %v535_v47, %v541_v43 }
 0x104   : > { %v487_v53 = vpop.f32.mrf.mxu0  ;;  %v528_v54 = vpop.f32.mrf.mxu1 }
 0x105   : > { %v550_v55 = vcombine.low %v542_v50, %v549_v51 }
 0x107   : > { %v552_v56 = vadd.f32 %v550_v55, %v253_v52 }
 0x109   : > { %v751_v57 = vmul.f32 -1.442695, %v552_v56  ;;  %v560_v58 = vrot.slane %v552_v56, 2  ;;  %v571_v60 = vrot.slane %v552_v56, 6  ;;  %v568_v63 = vrot.slane %v552_v56, 4 }
 0x10b   : > { %850 = vpow2.f32 %v751_v57  ;;  %v752_v59 = vmul.f32 -1.442695, %v560_v58  ;;  %v753_v61 = vmul.f32 -1.442695, %v571_v60 }
 0x10d   : > { %852 = vpow2.f32 %v752_v59 }
 0x10e   : > { %854 = vpow2.f32 %v753_v61 }
 0x118   : > { %v851_v62 = vpop.eup %850 }
 0x119   : > { %v556_v0 = vadd.f32 1.0, %v851_v62 }
 0x11a   : > { %v853_v1 = vpop.eup %852 }
 0x11b   : > { %856 = vrcp.f32 %v556_v0  ;;  %v565_v2 = vadd.f32 1.0, %v853_v1  ;;  %v855_v3 = vpop.eup %854 }
 0x11c   : > { %858 = vtanh.f32 %v568_v63  ;;  %v576_v8 = vadd.f32 1.0, %v855_v3 }
 0x11d   : > { %860 = vrcp.f32 %v565_v2 }
 0x11e   : > { %862 = vrcp.f32 %v576_v8 }
 0x128   : > { %v857_v4 = vpop.eup %856 }
 0x129   : > { %v859_v6 = vpop.eup %858 }
 0x12a   : > { %v861_v7 = vpop.eup %860  ;;  %v581_v10 = vmul.f32 %v859_v6, %v857_v4 }
 0x12b   : > { %v580_v9 = vmul.f32 %v861_v7, %v579_v5  ;;  %v863_v12 = vpop.eup %862 }
 0x12d   : > { %v582_v11 = vadd.f32 %v581_v10, %v580_v9 }
 0x12f   : > { %864 = vtanh.f32 %v582_v11  ;;  %585 = vst [vmem:[#allocation3] sm:$0x3] %v582_v11 }
 0x13c   : > { %v865_v13 = vpop.eup %864 }
 0x13d   : > { %v584_v14 = vmul.f32 %v865_v13, %v863_v12 }
 0x13f   : > { %586 = vst [vmem:[#allocation2] sm:$0x3] %v584_v14  ;;  %587 = vst [vmem:[%s966_s5] sm:$0x3] %v584_v14 }
 0x140 PF: > { %s12_s13 = sadd.s32 1, %s904_s13   ;;  %s1026_s9 = smov %s896_s11 }
 0x141   : > { %p9_p8 = scmp.ge.s32.totalorder %s12_s13, 14   ;;  %s1027_s10 = smov %s900_s12 }
 0x142   : > { %s1028_s11 = smov %s1031_s14  ;;  %s1029_s12 = smov %s1035_s15 }
 0x143   :  { %11 = sbr.rel (!%p9_p8) target bundleno = 3 (0x3), region = 65 }

// kernel: ocr_forward.19
= control target key start
LH: loop header
LB: loop body
LE: loop exit
PB: predicated region body
PF: predicated region fallthrough
CT: control target
= control target key end

     0   :  { %s3298_s1 = inlined_call_operand.vmem [shape: bf16[256,512], index: 1, kind: input, shape index: {}]   ;;  %s3299_s0 = inlined_call_operand.vmem [shape: bf16[12,256], index: 0, kind: input, shape index: {}]   ;;  %s3300_s3 = inlined_call_operand.vmem [shape: bf16[512,512], index: 3, kind: input, shape index: {}]   ;;  %s3301_s5 = inlined_call_operand.vmem [shape: bf16[512,128], index: 5, kind: input, shape index: {}]   ;;  %s3302_s2 = inlined_call_operand.vmem [shape: f32[1,512], index: 2, kind: input, shape index: {}]   ;;  %s3303_s4 = inlined_call_operand.vmem [shape: f32[1,512], index: 4, kind: input, shape index: {}]   ;;  %s3304_s6 = inlined_call_operand.vmem [shape: f32[1,128], index: 6, kind: input, shape index: {}]   ;;  %s3305_s7 = inlined_call_operand.vmem [shape: f32[12,128], index: 7, kind: output, shape index: {}]  }
   0x1   :  { %v2199_v0 = vld [vmem:[%s3298_s1 + $0xe4] ss:$16 sps:$4 sm:$0xff]   ;;  %v2201_v1 = vld [vmem:[%s3298_s1 + $0xec] ss:$16 sps:$4 sm:$0xff]   ;;  %v2203_v2 = vld [vmem:[%s3298_s1 + $0xe0] ss:$16 sps:$4 sm:$0xff]  }
   0x2   :  { %445 = vmatprep.subr.bf16.mxu0 %v2199_v0  ;;  %v2204_v3 = vld [vmem:[%s3298_s1 + $0xe8] ss:$16 sps:$4 sm:$0xff]   ;;  %488 = vmatprep.subr.bf16.mxu1 %v2201_v1  ;;  %v2205_v4 = vld [vmem:[%s3298_s1 + $0xc4] ss:$16 sps:$4 sm:$0xff]   ;;  %v2207_v5 = vld [vmem:[%s3298_s1 + $0xcc] ss:$16 sps:$4 sm:$0xff]  }
   0x3   :  { %446 = vmatpush1.bf16.msra.mxu0 %v2203_v2  ;;  %489 = vmatpush1.bf16.msra.mxu1 %v2204_v3  ;;  %v2209_v6 = vld [vmem:[%s3298_s1 + $0xc0] ss:$16 sps:$4 sm:$0xff]   ;;  %v2210_v7 = vld [vmem:[%s3298_s1 + $0xc8] ss:$16 sps:$4 sm:$0xff]   ;;  %v2211_v8 = vld [vmem:[%s3298_s1 + $0xa4] ss:$16 sps:$4 sm:$0xff]  }
   0x4   :  { %447 = vmatprep.subr.bf16.mxu0 %v2205_v4  ;;  %490 = vmatprep.subr.bf16.mxu1 %v2207_v5  ;;  %v2213_v9 = vld [vmem:[%s3298_s1 + $0xac] ss:$16 sps:$4 sm:$0xff]   ;;  %v2215_v10 = vld [vmem:[%s3298_s1 + $0xa0] ss:$16 sps:$4 sm:$0xff]   ;;  %v2216_v11 = vld [vmem:[%s3298_s1 + $0xa8] ss:$16 sps:$4 sm:$0xff]  }
   0x5   :  { %v2217_v12 = vld [vmem:[%s3298_s1 + $0x84] ss:$16 sps:$4 sm:$0xff]   ;;  %v2219_v13 = vld [vmem:[%s3298_s1 + $0x8c] ss:$16 sps:$4 sm:$0xff]   ;;  %v2221_v14 = vld [vmem:[%s3298_s1 + $0x80] ss:$16 sps:$4 sm:$0xff]  }
   0x6   :  { %v2222_v15 = vld [vmem:[%s3298_s1 + $0x88] ss:$16 sps:$4 sm:$0xff]   ;;  %v2223_v16 = vld [vmem:[%s3298_s1 + $0x64] ss:$16 sps:$4 sm:$0xff]   ;;  %v2225_v17 = vld [vmem:[%s3298_s1 + $0x6c] ss:$16 sps:$4 sm:$0xff]  }
   0x7   :  { %448 = vmatpush1.bf16.msra.mxu0 %v2209_v6  ;;  %491 = vmatpush1.bf16.msra.mxu1 %v2210_v7  ;;  %v2227_v18 = vld [vmem:[%s3298_s1 + $0x60] ss:$16 sps:$4 sm:$0xff]   ;;  %v2228_v19 = vld [vmem:[%s3298_s1 + $0x68] ss:$16 sps:$4 sm:$0xff]   ;;  %v2229_v20 = vld [vmem:[%s3298_s1 + $0x44] ss:$16 sps:$4 sm:$0xff]  }
   0x8   :  { %449 = vmatprep.subr.bf16.mxu0 %v2211_v8  ;;  %492 = vmatprep.subr.bf16.mxu1 %v2213_v9  ;;  %v2231_v21 = vld [vmem:[%s3298_s1 + $0x4c] ss:$16 sps:$4 sm:$0xff]   ;;  %v2233_v22 = vld [vmem:[%s3298_s1 + $0x40] ss:$16 sps:$4 sm:$0xff]   ;;  %v2234_v23 = vld [vmem:[%s3298_s1 + $0x48] ss:$16 sps:$4 sm:$0xff]  }
   0x9   :  { %v2235_v24 = vld [vmem:[%s3298_s1 + $0x24] ss:$16 sps:$4 sm:$0xff]   ;;  %v2237_v25 = vld [vmem:[%s3298_s1 + $0x2c] ss:$16 sps:$4 sm:$0xff]   ;;  %v2239_v26 = vld [vmem:[%s3298_s1 + $0x20] ss:$16 sps:$4 sm:$0xff]  }
   0xa   :  { %v2240_v27 = vld [vmem:[%s3298_s1 + $0x28] ss:$16 sps:$4 sm:$0xff]   ;;  %v2241_v28 = vld [vmem:[%s3298_s1 + $0x4] ss:$16 sps:$4 sm:$0xff]   ;;  %v2243_v29 = vld [vmem:[%s3298_s1 + $0xc] ss:$16 sps:$4 sm:$0xff]  }
   0xb   :  { %450 = vmatpush1.bf16.msra.mxu0 %v2215_v10  ;;  %493 = vmatpush1.bf16.msra.mxu1 %v2216_v11  ;;  %v2245_v30 = vld [vmem:[%s3298_s1] ss:$16 sps:$4 sm:$0xff]   ;;  %v2246_v31 = vld [vmem:[%s3298_s1 + $0x8] ss:$16 sps:$4 sm:$0xff]   ;;  %v2247_v32 = vld [vmem:[%s3298_s1 + $0x1e4] ss:$16 sps:$4 sm:$0xff]  }
   0xc   :  { %451 = vmatprep.subr.bf16.mxu0 %v2217_v12  ;;  %494 = vmatprep.subr.bf16.mxu1 %v2219_v13  ;;  %v2249_v33 = vld [vmem:[%s3298_s1 + $0x1ec] ss:$16 sps:$4 sm:$0xff]   ;;  %v2251_v34 = vld [vmem:[%s3298_s1 + $0x1e0] ss:$16 sps:$4 sm:$0xff]   ;;  %v2252_v35 = vld [vmem:[%s3298_s1 + $0x1e8] ss:$16 sps:$4 sm:$0xff]  }
   0xd   :  { %v2253_v36 = vld [vmem:[%s3298_s1 + $0x1c4] ss:$16 sps:$4 sm:$0xff]   ;;  %v2255_v37 = vld [vmem:[%s3298_s1 + $0x1cc] ss:$16 sps:$4 sm:$0xff]   ;;  %v2257_v38 = vld [vmem:[%s3298_s1 + $0x1c0] ss:$16 sps:$4 sm:$0xff]  }
   0xe   :  { %v2258_v39 = vld [vmem:[%s3298_s1 + $0x1c8] ss:$16 sps:$4 sm:$0xff]   ;;  %v2259_v40 = vld [vmem:[%s3298_s1 + $0x1a4] ss:$16 sps:$4 sm:$0xff]   ;;  %v2261_v41 = vld [vmem:[%s3298_s1 + $0x1ac] ss:$16 sps:$4 sm:$0xff]  }
   0xf   :  { %452 = vmatpush1.bf16.msra.mxu0 %v2221_v14  ;;  %495 = vmatpush1.bf16.msra.mxu1 %v2222_v15  ;;  %v2263_v42 = vld [vmem:[%s3298_s1 + $0x1a0] ss:$16 sps:$4 sm:$0xff]   ;;  %v2264_v43 = vld [vmem:[%s3298_s1 + $0x1a8] ss:$16 sps:$4 sm:$0xff]   ;;  %v2265_v44 = vld [vmem:[%s3298_s1 + $0x184] ss:$16 sps:$4 sm:$0xff]  }
  0x10   :  { %453 = vmatprep.subr.bf16.mxu0 %v2223_v16  ;;  %496 = vmatprep.subr.bf16.mxu1 %v2225_v17  ;;  %v2267_v45 = vld [vmem:[%s3298_s1 + $0x18c] ss:$16 sps:$4 sm:$0xff]   ;;  %v2269_v46 = vld [vmem:[%s3298_s1 + $0x180] ss:$16 sps:$4 sm:$0xff]   ;;  %v2270_v47 = vld [vmem:[%s3298_s1 + $0x188] ss:$16 sps:$4 sm:$0xff]  }
  0x11   :  { %v2271_v48 = vld [vmem:[%s3298_s1 + $0x164] ss:$16 sps:$4 sm:$0xff]   ;;  %v2273_v50 = vld [vmem:[%s3298_s1 + $0x16c] ss:$16 sps:$4 sm:$0xff]   ;;  %v2275_v51 = vld [vmem:[%s3298_s1 + $0x160] ss:$16 sps:$4 sm:$0xff]  }
  0x12   :  { %v2297_v49 = vld [vmem:[%s3299_s0 + $0x4] ss:$8 sps:$4 sm:$0x3f]   ;;  %v2276_v52 = vld [vmem:[%s3298_s1 + $0x168] ss:$16 sps:$4 sm:$0xff]  }
  0x13   :  { %454 = vmatpush1.bf16.msra.mxu0 %v2227_v18  ;;  %497 = vmatpush1.bf16.msra.mxu1 %v2228_v19  ;;  %v2277_v53 = vld [vmem:[%s3298_s1 + $0x144] ss:$16 sps:$4 sm:$0xff]   ;;  %v2279_v54 = vld [vmem:[%s3298_s1 + $0x14c] ss:$16 sps:$4 sm:$0xff]   ;;  %v2281_v55 = vld [vmem:[%s3298_s1 + $0x140] ss:$16 sps:$4 sm:$0xff]  }
  0x14   :  { %455 = vmatprep.subr.bf16.mxu0 %v2229_v20  ;;  %498 = vmatprep.subr.bf16.mxu1 %v2231_v21  ;;  %v2282_v56 = vld [vmem:[%s3298_s1 + $0x148] ss:$16 sps:$4 sm:$0xff]   ;;  %v2283_v57 = vld [vmem:[%s3298_s1 + $0x124] ss:$16 sps:$4 sm:$0xff]   ;;  %v2285_v58 = vld [vmem:[%s3298_s1 + $0x12c] ss:$16 sps:$4 sm:$0xff]  }
  0x15   :  { %477 = vmatprep.mubr.bf16.mxu0 %v2297_v49  ;;  %520 = vmatprep.mubr.bf16.mxu1 %v2297_v49  ;;  %v2287_v59 = vld [vmem:[%s3298_s1 + $0x120] ss:$16 sps:$4 sm:$0xff]   ;;  %v2288_v60 = vld [vmem:[%s3298_s1 + $0x128] ss:$16 sps:$4 sm:$0xff]   ;;  %v2289_v61 = vld [vmem:[%s3298_s1 + $0x104] ss:$16 sps:$4 sm:$0xff]  }
  0x16   :  { %v2291_v62 = vld [vmem:[%s3298_s1 + $0x10c] ss:$16 sps:$4 sm:$0xff]   ;;  %v2293_v63 = vld [vmem:[%s3298_s1 + $0x100] ss:$16 sps:$4 sm:$0xff]   ;;  %v2294_v0 = vld [vmem:[%s3298_s1 + $0x108] ss:$16 sps:$4 sm:$0xff]  }
  0x17   :  { %456 = vmatpush1.bf16.msra.mxu0 %v2233_v22  ;;  %499 = vmatpush1.bf16.msra.mxu1 %v2234_v23  ;;  %v2300_v1 = vld [vmem:[%s3300_s3 + $0xe4] ss:$16 sps:$4 sm:$0xff]   ;;  %v2295_v3 = vld [vmem:[%s3299_s0] ss:$8 sps:$4 sm:$0x3f]  }
  0x18   :  { %457 = vmatprep.subr.bf16.mxu0 %v2235_v24  ;;  %500 = vmatprep.subr.bf16.mxu1 %v2237_v25  ;;  %v2303_v2 = vld [vmem:[%s3300_s3 + $0x2e4] ss:$16 sps:$4 sm:$0xff]   ;;  %v2298_v4 = vld [vmem:[%s3300_s3 + $0xe0] ss:$16 sps:$4 sm:$0xff]  }
  0x19   :  { %v2301_v5 = vld [vmem:[%s3300_s3 + $0x2e0] ss:$16 sps:$4 sm:$0xff]   ;;  %v2306_v6 = vld [vmem:[%s3300_s3 + $0xc4] ss:$16 sps:$4 sm:$0xff]  }
  0x1a   :  { %v2309_v7 = vld [vmem:[%s3300_s3 + $0x2c4] ss:$16 sps:$4 sm:$0xff]   ;;  %v2304_v8 = vld [vmem:[%s3300_s3 + $0xc0] ss:$16 sps:$4 sm:$0xff]  }
  0x1b   :  { %458 = vmatpush1.bf16.msra.mxu0 %v2239_v26  ;;  %501 = vmatpush1.bf16.msra.mxu1 %v2240_v27  ;;  %v2307_v9 = vld [vmem:[%s3300_s3 + $0x2c0] ss:$16 sps:$4 sm:$0xff]   ;;  %v2312_v10 = vld [vmem:[%s3300_s3 + $0xa4] ss:$16 sps:$4 sm:$0xff]  }
  0x1c   :  { %459 = vmatprep.subr.bf16.mxu0 %v2241_v28  ;;  %502 = vmatprep.subr.bf16.mxu1 %v2243_v29  ;;  %v2315_v11 = vld [vmem:[%s3300_s3 + $0x2a4] ss:$16 sps:$4 sm:$0xff]   ;;  %v2310_v12 = vld [vmem:[%s3300_s3 + $0xa0] ss:$16 sps:$4 sm:$0xff]  }
  0x1d   :  { %v2313_v13 = vld [vmem:[%s3300_s3 + $0x2a0] ss:$16 sps:$4 sm:$0xff]   ;;  %v2318_v14 = vld [vmem:[%s3300_s3 + $0x84] ss:$16 sps:$4 sm:$0xff]  }
  0x1e   :  { %v2321_v15 = vld [vmem:[%s3300_s3 + $0x284] ss:$16 sps:$4 sm:$0xff]   ;;  %v2316_v16 = vld [vmem:[%s3300_s3 + $0x80] ss:$16 sps:$4 sm:$0xff]  }
  0x1f   :  { %460 = vmatpush1.bf16.msra.mxu0 %v2245_v30  ;;  %503 = vmatpush1.bf16.msra.mxu1 %v2246_v31  ;;  %v2319_v17 = vld [vmem:[%s3300_s3 + $0x280] ss:$16 sps:$4 sm:$0xff]   ;;  %v2324_v18 = vld [vmem:[%s3300_s3 + $0x64] ss:$16 sps:$4 sm:$0xff]  }
  0x20   :  { %461 = vmatprep.subr.bf16.mxu0 %v2247_v32  ;;  %504 = vmatprep.subr.bf16.mxu1 %v2249_v33  ;;  %v2327_v19 = vld [vmem:[%s3300_s3 + $0x264] ss:$16 sps:$4 sm:$0xff]   ;;  %v2322_v20 = vld [vmem:[%s3300_s3 + $0x60] ss:$16 sps:$4 sm:$0xff]  }
  0x21   :  { %v2325_v21 = vld [vmem:[%s3300_s3 + $0x260] ss:$16 sps:$4 sm:$0xff]   ;;  %v2330_v22 = vld [vmem:[%s3300_s3 + $0x44] ss:$16 sps:$4 sm:$0xff]  }
  0x22   :  { %v2333_v23 = vld [vmem:[%s3300_s3 + $0x244] ss:$16 sps:$4 sm:$0xff]   ;;  %v2328_v24 = vld [vmem:[%s3300_s3 + $0x40] ss:$16 sps:$4 sm:$0xff]  }
  0x23   :  { %462 = vmatpush2.bf16.msra.mxu0 %v2251_v34  ;;  %505 = vmatpush2.bf16.msra.mxu1 %v2252_v35  ;;  %v2331_v25 = vld [vmem:[%s3300_s3 + $0x240] ss:$16 sps:$4 sm:$0xff]   ;;  %v2336_v26 = vld [vmem:[%s3300_s3 + $0x24] ss:$16 sps:$4 sm:$0xff]  }
  0x24   :  { %463 = vmatprep.subr.bf16.mxu0 %v2253_v36  ;;  %506 = vmatprep.subr.bf16.mxu1 %v2255_v37  ;;  %v2339_v27 = vld [vmem:[%s3300_s3 + $0x224] ss:$16 sps:$4 sm:$0xff]   ;;  %v2334_v28 = vld [vmem:[%s3300_s3 + $0x20] ss:$16 sps:$4 sm:$0xff]  }
  0x25   :  { %v2337_v29 = vld [vmem:[%s3300_s3 + $0x220] ss:$16 sps:$4 sm:$0xff]   ;;  %v2342_v30 = vld [vmem:[%s3300_s3 + $0x4] ss:$16 sps:$4 sm:$0xff]  }
  0x26   :  { %v2345_v31 = vld [vmem:[%s3300_s3 + $0x204] ss:$16 sps:$4 sm:$0xff]   ;;  %v2340_v32 = vld [vmem:[%s3300_s3] ss:$16 sps:$4 sm:$0xff]  }
  0x27   :  { %464 = vmatpush2.bf16.msra.mxu0 %v2257_v38  ;;  %507 = vmatpush2.bf16.msra.mxu1 %v2258_v39  ;;  %v2343_v33 = vld [vmem:[%s3300_s3 + $0x200] ss:$16 sps:$4 sm:$0xff]   ;;  %v2348_v34 = vld [vmem:[%s3300_s3 + $0x1e4] ss:$16 sps:$4 sm:$0xff]  }
  0x28   :  { %465 = vmatprep.subr.bf16.mxu0 %v2259_v40  ;;  %508 = vmatprep.subr.bf16.mxu1 %v2261_v41  ;;  %v2351_v35 = vld [vmem:[%s3300_s3 + $0x3e4] ss:$16 sps:$4 sm:$0xff]   ;;  %v2346_v36 = vld [vmem:[%s3300_s3 + $0x1e0] ss:$16 sps:$4 sm:$0xff]  }
  0x29   :  { %v2349_v37 = vld [vmem:[%s3300_s3 + $0x3e0] ss:$16 sps:$4 sm:$0xff]   ;;  %v2354_v38 = vld [vmem:[%s3300_s3 + $0x1c4] ss:$16 sps:$4 sm:$0xff]  }
  0x2a   :  { %v2357_v39 = vld [vmem:[%s3300_s3 + $0x3c4] ss:$16 sps:$4 sm:$0xff]   ;;  %v2352_v40 = vld [vmem:[%s3300_s3 + $0x1c0] ss:$16 sps:$4 sm:$0xff]  }
  0x2b   :  { %466 = vmatpush2.bf16.msra.mxu0 %v2263_v42  ;;  %509 = vmatpush2.bf16.msra.mxu1 %v2264_v43  ;;  %v2355_v41 = vld [vmem:[%s3300_s3 + $0x3c0] ss:$16 sps:$4 sm:$0xff]   ;;  %v2360_v42 = vld [vmem:[%s3300_s3 + $0x1a4] ss:$16 sps:$4 sm:$0xff]  }
  0x2c   :  { %467 = vmatprep.subr.bf16.mxu0 %v2265_v44  ;;  %510 = vmatprep.subr.bf16.mxu1 %v2267_v45  ;;  %v2363_v43 = vld [vmem:[%s3300_s3 + $0x3a4] ss:$16 sps:$4 sm:$0xff]   ;;  %v2358_v44 = vld [vmem:[%s3300_s3 + $0x1a0] ss:$16 sps:$4 sm:$0xff]  }
  0x2d   :  { %v2361_v45 = vld [vmem:[%s3300_s3 + $0x3a0] ss:$16 sps:$4 sm:$0xff]  }
  0x2e   :  { %v2367_v49 = vld [vmem:[%s3300_s3 + $0x380] ss:$16 sps:$4 sm:$0xff]  }
  0x2f   :  { %468 = vmatpush2.bf16.msra.mxu0 %v2269_v46  ;;  %511 = vmatpush2.bf16.msra.mxu1 %v2270_v47  ;;  %v2366_v46 = vld [vmem:[%s3300_s3 + $0x184] ss:$16 sps:$4 sm:$0xff]  }
  0x30   :  { %469 = vmatprep.subr.bf16.mxu0 %v2271_v48  ;;  %512 = vmatprep.subr.bf16.mxu1 %v2273_v50  ;;  %v2369_v47 = vld [vmem:[%s3300_s3 + $0x384] ss:$16 sps:$4 sm:$0xff]   ;;  %v2364_v48 = vld [vmem:[%s3300_s3 + $0x180] ss:$16 sps:$4 sm:$0xff]  }
  0x31   :  { %v2372_v50 = vld [vmem:[%s3300_s3 + $0x164] ss:$16 sps:$4 sm:$0xff]  }
  0x33   :  { %470 = vmatpush2.bf16.msra.mxu0 %v2275_v51  ;;  %513 = vmatpush2.bf16.msra.mxu1 %v2276_v52  ;;  %v2375_v51 = vld [vmem:[%s3300_s3 + $0x364] ss:$16 sps:$4 sm:$0xff]   ;;  %v2370_v52 = vld [vmem:[%s3300_s3 + $0x160] ss:$16 sps:$4 sm:$0xff]  }
  0x34   :  { %471 = vmatprep.subr.bf16.mxu0 %v2277_v53  ;;  %514 = vmatprep.subr.bf16.mxu1 %v2279_v54  ;;  %v2373_v53 = vld [vmem:[%s3300_s3 + $0x360] ss:$16 sps:$4 sm:$0xff]   ;;  %v2378_v54 = vld [vmem:[%s3300_s3 + $0x144] ss:$16 sps:$4 sm:$0xff]  }
  0x37   :  { %472 = vmatpush2.bf16.msra.mxu0 %v2281_v55  ;;  %515 = vmatpush2.bf16.msra.mxu1 %v2282_v56  ;;  %v2381_v55 = vld [vmem:[%s3300_s3 + $0x344] ss:$16 sps:$4 sm:$0xff]   ;;  %v2376_v56 = vld [vmem:[%s3300_s3 + $0x140] ss:$16 sps:$4 sm:$0xff]  }
  0x38   :  { %473 = vmatprep.subr.bf16.mxu0 %v2283_v57  ;;  %516 = vmatprep.subr.bf16.mxu1 %v2285_v58  ;;  %v2379_v57 = vld [vmem:[%s3300_s3 + $0x340] ss:$16 sps:$4 sm:$0xff]   ;;  %v2384_v58 = vld [vmem:[%s3300_s3 + $0x124] ss:$16 sps:$4 sm:$0xff]  }
  0x3b   :  { %474 = vmatpush2.bf16.msra.mxu0 %v2287_v59  ;;  %517 = vmatpush2.bf16.msra.mxu1 %v2288_v60  ;;  %v2387_v59 = vld [vmem:[%s3300_s3 + $0x324] ss:$16 sps:$4 sm:$0xff]   ;;  %v2382_v60 = vld [vmem:[%s3300_s3 + $0x120] ss:$16 sps:$4 sm:$0xff]  }
  0x3c   :  { %475 = vmatprep.subr.bf16.mxu0 %v2289_v61  ;;  %518 = vmatprep.subr.bf16.mxu1 %v2291_v62  ;;  %v2385_v61 = vld [vmem:[%s3300_s3 + $0x320] ss:$16 sps:$4 sm:$0xff]   ;;  %v2390_v62 = vld [vmem:[%s3300_s3 + $0x104] ss:$16 sps:$4 sm:$0xff]  }
  0x3f   :  { %476 = vmatpush2.bf16.msra.mxu0 %v2293_v63  ;;  %519 = vmatpush2.bf16.msra.mxu1 %v2294_v0  ;;  %v2393_v63 = vld [vmem:[%s3300_s3 + $0x304] ss:$16 sps:$4 sm:$0xff]   ;;  %v2388_v0 = vld [vmem:[%s3300_s3 + $0x100] ss:$16 sps:$4 sm:$0xff]  }
  0x40   :  { %1349 = vmatprep.subr.bf16.mxu0 %v2300_v1  ;;  %1392 = vmatprep.subr.bf16.mxu1 %v2303_v2  ;;  %v2391_v1 = vld [vmem:[%s3300_s3 + $0x300] ss:$16 sps:$4 sm:$0xff]   ;;  %v2396_v2 = vld [vmem:[%s3300_s3 + $0xec] ss:$16 sps:$4 sm:$0xff]  }
  0x42   :  { %478 = vmatmul.mubr.bf16.vlgmr.msra.gmra.mxu0 %v2295_v3  ;;  %521 = vmatmul.mubr.bf16.vlgmr.msra.gmra.mxu1 %v2295_v3  ;;  %v2399_v3 = vld [vmem:[%s3300_s3 + $0x2ec] ss:$16 sps:$4 sm:$0xff]  }
  0x43   :  { %1350 = vmatpush1.bf16.msra.mxu0 %v2298_v4  ;;  %1393 = vmatpush1.bf16.msra.mxu1 %v2301_v5  ;;  %v95_v4 = vlaneseq }
  0x44   :  { %1351 = vmatprep.subr.bf16.mxu0 %v2306_v6  ;;  %1394 = vmatprep.subr.bf16.mxu1 %v2309_v7  ;;  %v93_v7 = vld [vmem:[%s3302_s2] sm:$0xf] }
  0x45   :  { %v2967_v5 = vshrl.u32 %v95_v4, 7 }
  0x47   :  { %1352 = vmatpush1.bf16.msra.mxu0 %v2304_v8  ;;  %1395 = vmatpush1.bf16.msra.mxu1 %v2307_v9  ;;  %v97_v6 = vsub.s32 0, %v2967_v5  ;;  %v101_v8 = vsub.s32 1, %v2967_v5  ;;  %v109_v9 = vsub.s32 3, %v2967_v5 }
  0x48   :  { %1353 = vmatprep.subr.bf16.mxu0 %v2312_v10  ;;  %1396 = vmatprep.subr.bf16.mxu1 %v2315_v11  ;;  %v105_v10 = vsub.s32 2, %v2967_v5 }
  0x49   :  { %v98_v11 = vrot.slane %v93_v7, %v97_v6 }
  0x4b   :  { %1354 = vmatpush1.bf16.msra.mxu0 %v2310_v12  ;;  %1397 = vmatpush1.bf16.msra.mxu1 %v2313_v13 }
  0x4c   :  { %1355 = vmatprep.subr.bf16.mxu0 %v2318_v14  ;;  %1398 = vmatprep.subr.bf16.mxu1 %v2321_v15  ;;  %v102_v14 = vrot.slane %v93_v7, %v101_v8  ;;  %v110_v15 = vrot.slane %v93_v7, %v109_v9 }
  0x4f   :  { %1356 = vmatpush1.bf16.msra.mxu0 %v2316_v16  ;;  %1399 = vmatpush1.bf16.msra.mxu1 %v2319_v17  ;;  %v106_v16 = vrot.slane %v93_v7, %v105_v10  ;;  %v2421_v7 = vld [vmem:[%s3300_s3 + $0x268] ss:$16 sps:$4 sm:$0xff]  }
  0x50   :  { %1357 = vmatprep.subr.bf16.mxu0 %v2324_v18  ;;  %1400 = vmatprep.subr.bf16.mxu1 %v2327_v19 }
  0x53   :  { %1358 = vmatpush1.bf16.msra.mxu0 %v2322_v20  ;;  %1401 = vmatpush1.bf16.msra.mxu1 %v2325_v21 }
  0x54   :  { %1359 = vmatprep.subr.bf16.mxu0 %v2330_v22  ;;  %1402 = vmatprep.subr.bf16.mxu1 %v2333_v23 }
  0x57   :  { %1360 = vmatpush1.bf16.msra.mxu0 %v2328_v24  ;;  %1403 = vmatpush1.bf16.msra.mxu1 %v2331_v25 }
  0x58   :  { %1361 = vmatprep.subr.bf16.mxu0 %v2336_v26  ;;  %1404 = vmatprep.subr.bf16.mxu1 %v2339_v27 }
  0x5b   :  { %1362 = vmatpush1.bf16.msra.mxu0 %v2334_v28  ;;  %1405 = vmatpush1.bf16.msra.mxu1 %v2337_v29 }
  0x5c   :  { %1363 = vmatprep.subr.bf16.mxu0 %v2342_v30  ;;  %1406 = vmatprep.subr.bf16.mxu1 %v2345_v31 }
  0x5f   :  { %1364 = vmatpush1.bf16.msra.mxu0 %v2340_v32  ;;  %1407 = vmatpush1.bf16.msra.mxu1 %v2343_v33 }
  0x60   :  { %1365 = vmatprep.subr.bf16.mxu0 %v2348_v34  ;;  %1408 = vmatprep.subr.bf16.mxu1 %v2351_v35 }
  0x63   :  { %1366 = vmatpush2.bf16.msra.mxu0 %v2346_v36  ;;  %1409 = vmatpush2.bf16.msra.mxu1 %v2349_v37 }
  0x64   :  { %1367 = vmatprep.subr.bf16.mxu0 %v2354_v38  ;;  %1410 = vmatprep.subr.bf16.mxu1 %v2357_v39 }
  0x67   :  { %1368 = vmatpush2.bf16.msra.mxu0 %v2352_v40  ;;  %1411 = vmatpush2.bf16.msra.mxu1 %v2355_v41 }
  0x68   :  { %1369 = vmatprep.subr.bf16.mxu0 %v2360_v42  ;;  %1412 = vmatprep.subr.bf16.mxu1 %v2363_v43 }
  0x6b   :  { %1370 = vmatpush2.bf16.msra.mxu0 %v2358_v44  ;;  %1413 = vmatpush2.bf16.msra.mxu1 %v2361_v45 }
  0x6c   :  { %1371 = vmatprep.subr.bf16.mxu0 %v2366_v46  ;;  %1414 = vmatprep.subr.bf16.mxu1 %v2369_v47  ;;  %v2394_v47 = vld [vmem:[%s3300_s3 + $0xe8] ss:$16 sps:$4 sm:$0xff]  }
  0x6f   :  { %1372 = vmatpush2.bf16.msra.mxu0 %v2364_v48  ;;  %1415 = vmatpush2.bf16.msra.mxu1 %v2367_v49 }
  0x70   :  { %1373 = vmatprep.subr.bf16.mxu0 %v2372_v50  ;;  %1416 = vmatprep.subr.bf16.mxu1 %v2375_v51  ;;  %v2397_v51 = vld [vmem:[%s3300_s3 + $0x2e8] ss:$16 sps:$4 sm:$0xff]  }
  0x73   :  { %1374 = vmatpush2.bf16.msra.mxu0 %v2370_v52  ;;  %1417 = vmatpush2.bf16.msra.mxu1 %v2373_v53  ;;  %v2402_v53 = vld [vmem:[%s3300_s3 + $0xcc] ss:$16 sps:$4 sm:$0xff]  }
  0x74   :  { %1375 = vmatprep.subr.bf16.mxu0 %v2378_v54  ;;  %1418 = vmatprep.subr.bf16.mxu1 %v2381_v55  ;;  %v2405_v54 = vld [vmem:[%s3300_s3 + $0x2cc] ss:$16 sps:$4 sm:$0xff]   ;;  %v2400_v55 = vld [vmem:[%s3300_s3 + $0xc8] ss:$16 sps:$4 sm:$0xff]  }
  0x77   :  { %1376 = vmatpush2.bf16.msra.mxu0 %v2376_v56  ;;  %1419 = vmatpush2.bf16.msra.mxu1 %v2379_v57  ;;  %v2403_v56 = vld [vmem:[%s3300_s3 + $0x2c8] ss:$16 sps:$4 sm:$0xff]   ;;  %v2408_v57 = vld [vmem:[%s3300_s3 + $0xac] ss:$16 sps:$4 sm:$0xff]  }
  0x78   :  { %1377 = vmatprep.subr.bf16.mxu0 %v2384_v58  ;;  %1420 = vmatprep.subr.bf16.mxu1 %v2387_v59  ;;  %v2411_v58 = vld [vmem:[%s3300_s3 + $0x2ac] ss:$16 sps:$4 sm:$0xff]   ;;  %v2406_v59 = vld [vmem:[%s3300_s3 + $0xa8] ss:$16 sps:$4 sm:$0xff]  }
  0x7b   :  { %1378 = vmatpush2.bf16.msra.mxu0 %v2382_v60  ;;  %1421 = vmatpush2.bf16.msra.mxu1 %v2385_v61  ;;  %v2409_v60 = vld [vmem:[%s3300_s3 + $0x2a8] ss:$16 sps:$4 sm:$0xff]   ;;  %v2414_v61 = vld [vmem:[%s3300_s3 + $0x8c] ss:$16 sps:$4 sm:$0xff]  }
  0x7c   :  { %1379 = vmatprep.subr.bf16.mxu0 %v2390_v62  ;;  %1422 = vmatprep.subr.bf16.mxu1 %v2393_v63  ;;  %v2417_v62 = vld [vmem:[%s3300_s3 + $0x28c] ss:$16 sps:$4 sm:$0xff]   ;;  %v2412_v63 = vld [vmem:[%s3300_s3 + $0x88] ss:$16 sps:$4 sm:$0xff]  }
  0x7f   :  { %1380 = vmatpush2.bf16.msra.mxu0 %v2388_v0  ;;  %1423 = vmatpush2.bf16.msra.mxu1 %v2391_v1  ;;  %v2415_v0 = vld [vmem:[%s3300_s3 + $0x288] ss:$16 sps:$4 sm:$0xff]   ;;  %v2420_v1 = vld [vmem:[%s3300_s3 + $0x6c] ss:$16 sps:$4 sm:$0xff]  }
  0x80   :  { %1435 = vmatprep.subr.bf16.mxu0 %v2396_v2  ;;  %1478 = vmatprep.subr.bf16.mxu1 %v2399_v3  ;;  %v2423_v2 = vld [vmem:[%s3300_s3 + $0x26c] ss:$16 sps:$4 sm:$0xff]   ;;  %v2418_v3 = vld [vmem:[%s3300_s3 + $0x68] ss:$16 sps:$4 sm:$0xff]  }
 0x102   :  { %v479_v12 = vpop.f32.mrf.mxu0  ;;  %v522_v13 = vpop.f32.mrf.mxu1 }
 0x103   :  { %v480_v19 = vadd.f32 %v479_v12, %v98_v11  ;;  %v523_v26 = vadd.f32 %v522_v13, %v106_v16  ;;  %v2429_v12 = vld [vmem:[%s3300_s3 + $0x24c] ss:$16 sps:$4 sm:$0xff]   ;;  %v2424_v13 = vld [vmem:[%s3300_s3 + $0x48] ss:$16 sps:$4 sm:$0xff]  }
 0x104   :  { %v481_v17 = vpop.f32.mrf.mxu0  ;;  %v524_v18 = vpop.f32.mrf.mxu1 }
 0x105   :  { %v482_v20 = vadd.f32 %v481_v17, %v102_v14  ;;  %v525_v23 = vadd.f32 %v524_v18, %v110_v15  ;;  %vm531_vm0 = vcmp.ge.f32.partialorder %v480_v19, 0.0  ;;  %v539_v34 = vmul.f32 0.01, %v480_v19  ;;  %v2430_v17 = vld [vmem:[%s3300_s3 + $0x28] ss:$16 sps:$4 sm:$0xff]  }
 0x106   :  { %v483_v21 = vpop.f32.mrf.mxu0  ;;  %v526_v22 = vpop.f32.mrf.mxu1  ;;  %v541_v36 = vmul.f32 0.01, %v523_v26  ;;  %vm533_vm6 = vcmp.ge.f32.partialorder %v523_v26, 0.0  ;;  %v2433_v18 = vld [vmem:[%s3300_s3 + $0x228] ss:$16 sps:$4 sm:$0xff]  }
 0x107   :  { %v484_v24 = vadd.f32 %v483_v21, %v98_v11  ;;  %v527_v25 = vadd.f32 %v526_v22, %v106_v16  ;;  %v540_v29 = vmul.f32 0.01, %v482_v20  ;;  %vm532_vm2 = vcmp.ge.f32.partialorder %v482_v20, 0.0  ;;  %v2426_v11 = vld [vmem:[%s3300_s3 + $0x4c] ss:$16 sps:$4 sm:$0xff]  }
 0x108   :  { %v485_v27 = vpop.f32.mrf.mxu0  ;;  %v528_v28 = vpop.f32.mrf.mxu1  ;;  %v542_v35 = vmul.f32 0.01, %v525_v23  ;;  %vm534_vm4 = vcmp.ge.f32.partialorder %v525_v23, 0.0  ;;  %v547_v43 = vsel %vm531_vm0, %v480_v19, %v539_v34  ;;  %v549_v48 = vsel %vm533_vm6, %v523_v26, %v541_v36  ;;  %v2435_v16 = vld [vmem:[%s3300_s3 + $0x22c] ss:$16 sps:$4 sm:$0xff]  }
 0x109   :  { %v543_v30 = vmul.f32 0.01, %v484_v24  ;;  %vm535_vm1 = vcmp.ge.f32.partialorder %v484_v24, 0.0  ;;  %v545_v31 = vmul.f32 0.01, %v527_v25  ;;  %v486_v32 = vadd.f32 %v485_v27, %v102_v14 }
 0x10a   :  { %v529_v33 = vadd.f32 %v528_v28, %v110_v15  ;;  %vm537_vm3 = vcmp.ge.f32.partialorder %v527_v25, 0.0  ;;  %v548_v41 = vsel %vm532_vm2, %v482_v20, %v540_v29  ;;  %v550_v45 = vsel %vm534_vm4, %v525_v23, %v542_v35  ;;  %v2427_v14 = vld [vmem:[%s3300_s3 + $0x248] ss:$16 sps:$4 sm:$0xff]   ;;  %v2432_v15 = vld [vmem:[%s3300_s3 + $0x2c] ss:$16 sps:$4 sm:$0xff]  }
 0x10b   :  { %vm536_vm5 = vcmp.ge.f32.partialorder %v486_v32, 0.0  ;;  %v544_v37 = vmul.f32 0.01, %v486_v32  ;;  %v551_v38 = vsel %vm535_vm1, %v484_v24, %v543_v30  ;;  %v553_v40 = vsel %vm537_vm3, %v527_v25, %v545_v31  ;;  %v2438_v19 = vld [vmem:[%s3300_s3 + $0xc] ss:$16 sps:$4 sm:$0xff]  }
 0x10c   :  { %vm538_vm7 = vcmp.ge.f32.partialorder %v529_v33, 0.0  ;;  %v546_v39 = vmul.f32 0.01, %v529_v33  ;;  %v2988_v49 = vpack.c.bf16 %v551_v38, %v547_v43  ;;  %v2993_v52 = vpack.c.bf16 %v553_v40, %v549_v48  ;;  %v2441_v20 = vld [vmem:[%s3300_s3 + $0x20c] ss:$16 sps:$4 sm:$0xff]  }
 0x10d   :  { %v552_v42 = vsel %vm536_vm5, %v486_v32, %v544_v37  ;;  %v2436_v21 = vld [vmem:[%s3300_s3 + $0x8] ss:$16 sps:$4 sm:$0xff]   ;;  %v2444_v23 = vld [vmem:[%s3300_s3 + $0x1ec] ss:$16 sps:$4 sm:$0xff]   ;;  %vm1901_vm0 = vcmask 1043456  }
 0x10e   :  { %v556_v44 = vpack.c.bf16 %v552_v42, %v548_v41  ;;  %v554_v46 = vsel %vm538_vm7, %v529_v33, %v546_v39  ;;  %v2439_v22 = vld [vmem:[%s3300_s3 + $0x208] ss:$16 sps:$4 sm:$0xff]   ;;  %v2447_v24 = vld [vmem:[%s3300_s3 + $0x3ec] ss:$16 sps:$4 sm:$0xff]  }
 0x10f   :  { %v558_v50 = vpack.c.bf16 %v554_v46, %v550_v45  ;;  %v2442_v25 = vld [vmem:[%s3300_s3 + $0x1e8] ss:$16 sps:$4 sm:$0xff]   ;;  %v2450_v27 = vld [vmem:[%s3300_s3 + $0x1cc] ss:$16 sps:$4 sm:$0xff]  }
 0x110   :  { %1381 = vmatprep.mubr.bf16.mxu0 %v556_v44  ;;  %v2445_v26 = vld [vmem:[%s3300_s3 + $0x3e8] ss:$16 sps:$4 sm:$0xff]   ;;  %v2453_v28 = vld [vmem:[%s3300_s3 + $0x3cc] ss:$16 sps:$4 sm:$0xff]  }
 0x111   :  { %1424 = vmatprep.mubr.bf16.mxu1 %v558_v50  ;;  %1382 = vmatmul.mubr.bf16.vlgmr.msra.gmra.mxu0 %v2988_v49  ;;  %v2448_v29 = vld [vmem:[%s3300_s3 + $0x1c8] ss:$16 sps:$4 sm:$0xff]   ;;  %v2456_v31 = vld [vmem:[%s3300_s3 + $0x1ac] ss:$16 sps:$4 sm:$0xff]  }
 0x112   :  { %1425 = vmatmul.mubr.bf16.vlgmr.msra.gmra.mxu1 %v2993_v52  ;;  %1436 = vmatpush1.bf16.msra.mxu0 %v2394_v47  ;;  %v2451_v30 = vld [vmem:[%s3300_s3 + $0x3c8] ss:$16 sps:$4 sm:$0xff]   ;;  %v2459_v32 = vld [vmem:[%s3300_s3 + $0x3ac] ss:$16 sps:$4 sm:$0xff]  }
 0x113   :  { %1479 = vmatpush1.bf16.msra.mxu1 %v2397_v51  ;;  %1467 = vmatprep.mubr.bf16.mxu0 %v556_v44  ;;  %v2454_v33 = vld [vmem:[%s3300_s3 + $0x1a8] ss:$16 sps:$4 sm:$0xff]   ;;  %v2462_v35 = vld [vmem:[%s3300_s3 + $0x18c] ss:$16 sps:$4 sm:$0xff]  }
 0x114   :  { %1510 = vmatprep.mubr.bf16.mxu1 %v558_v50  ;;  %1437 = vmatprep.subr.bf16.mxu0 %v2402_v53  ;;  %v2457_v34 = vld [vmem:[%s3300_s3 + $0x3a8] ss:$16 sps:$4 sm:$0xff]   ;;  %v2465_v36 = vld [vmem:[%s3300_s3 + $0x38c] ss:$16 sps:$4 sm:$0xff]  }
 0x115   :  { %1480 = vmatprep.subr.bf16.mxu1 %v2405_v54  ;;  %v2460_v37 = vld [vmem:[%s3300_s3 + $0x188] ss:$16 sps:$4 sm:$0xff]   ;;  %v2468_v39 = vld [vmem:[%s3300_s3 + $0x16c] ss:$16 sps:$4 sm:$0xff]  }
 0x116   :  { %1438 = vmatpush1.bf16.msra.mxu0 %v2400_v55  ;;  %v2463_v38 = vld [vmem:[%s3300_s3 + $0x388] ss:$16 sps:$4 sm:$0xff]   ;;  %v2471_v40 = vld [vmem:[%s3300_s3 + $0x36c] ss:$16 sps:$4 sm:$0xff]  }
 0x117   :  { %1481 = vmatpush1.bf16.msra.mxu1 %v2403_v56  ;;  %1439 = vmatprep.subr.bf16.mxu0 %v2408_v57  ;;  %v2466_v41 = vld [vmem:[%s3300_s3 + $0x168] ss:$16 sps:$4 sm:$0xff]   ;;  %v2474_v43 = vld [vmem:[%s3300_s3 + $0x14c] ss:$16 sps:$4 sm:$0xff]  }
 0x118   :  { %1482 = vmatprep.subr.bf16.mxu1 %v2411_v58  ;;  %v2469_v42 = vld [vmem:[%s3300_s3 + $0x368] ss:$16 sps:$4 sm:$0xff]   ;;  %v2477_v44 = vld [vmem:[%s3300_s3 + $0x34c] ss:$16 sps:$4 sm:$0xff]  }
 0x119   :  { %v2472_v45 = vld [vmem:[%s3300_s3 + $0x148] ss:$16 sps:$4 sm:$0xff]   ;;  %v2480_v47 = vld [vmem:[%s3300_s3 + $0x12c] ss:$16 sps:$4 sm:$0xff]  }
 0x11a   :  { %1440 = vmatpush1.bf16.msra.mxu0 %v2406_v59  ;;  %v2475_v46 = vld [vmem:[%s3300_s3 + $0x348] ss:$16 sps:$4 sm:$0xff]   ;;  %v2483_v48 = vld [vmem:[%s3300_s3 + $0x32c] ss:$16 sps:$4 sm:$0xff]   ;;  %v2492_v59 = vld [vmem:[%s3301_s5 + $0x70] sm:$0xff]  }
 0x11b   :  { %1483 = vmatpush1.bf16.msra.mxu1 %v2409_v60  ;;  %1441 = vmatprep.subr.bf16.mxu0 %v2414_v61  ;;  %v2478_v50 = vld [vmem:[%s3300_s3 + $0x128] ss:$16 sps:$4 sm:$0xff]   ;;  %v2486_v53 = vld [vmem:[%s3300_s3 + $0x10c] ss:$16 sps:$4 sm:$0xff]   ;;  %v2493_v60 = vld [vmem:[%s3301_s5 + $0x30] sm:$0xff]  }
 0x11c   :  { %1484 = vmatprep.subr.bf16.mxu1 %v2417_v62  ;;  %v2481_v51 = vld [vmem:[%s3300_s3 + $0x328] ss:$16 sps:$4 sm:$0xff]   ;;  %v2489_v54 = vld [vmem:[%s3300_s3 + $0x30c] ss:$16 sps:$4 sm:$0xff]  }
 0x11d   :  { %v2484_v55 = vld [vmem:[%s3300_s3 + $0x108] ss:$16 sps:$4 sm:$0xff]  }
 0x11e   :  { %1442 = vmatpush1.bf16.msra.mxu0 %v2412_v63  ;;  %v2487_v56 = vld [vmem:[%s3300_s3 + $0x308] ss:$16 sps:$4 sm:$0xff]  }
 0x11f   :  { %1485 = vmatpush1.bf16.msra.mxu1 %v2415_v0  ;;  %1443 = vmatprep.subr.bf16.mxu0 %v2420_v1  ;;  %v2490_v57 = vld [vmem:[%s3301_s5 + $0x78] sm:$0xff]   ;;  %v2494_v61 = vld [vmem:[%s3301_s5 + $0x68] sm:$0xff]   ;;  %v2500_v1 = vld [vmem:[%s3301_s5 + $0x50] sm:$0xff]  }
 0x120   :  { %1486 = vmatprep.subr.bf16.mxu1 %v2423_v2  ;;  %v2491_v58 = vld [vmem:[%s3301_s5 + $0x38] sm:$0xff]   ;;  %v2495_v62 = vld [vmem:[%s3301_s5 + $0x28] sm:$0xff]   ;;  %v2501_v2 = vld [vmem:[%s3301_s5 + $0x10] sm:$0xff]  }
 0x121   :  { %v2498_v63 = vld [vmem:[%s3301_s5 + $0x58] sm:$0xff]  }
 0x122   :  { %1444 = vmatpush1.bf16.msra.mxu0 %v2418_v3  ;;  %v2499_v0 = vld [vmem:[%s3301_s5 + $0x18] sm:$0xff]   ;;  %v2502_v3 = vld [vmem:[%s3301_s5 + $0x48] sm:$0xff]  }
 0x123   :  { %1487 = vmatpush1.bf16.msra.mxu1 %v2421_v7  ;;  %1445 = vmatprep.subr.bf16.mxu0 %v2426_v11  ;;  %v2506_v7 = vld [vmem:[%s3301_s5 + $0xf8] sm:$0xff]  }
 0x124   :  { %1488 = vmatprep.subr.bf16.mxu1 %v2429_v12  ;;  %v2507_v11 = vld [vmem:[%s3301_s5 + $0xb8] sm:$0xff]   ;;  %v2508_v12 = vld [vmem:[%s3301_s5 + $0xf0] sm:$0xff]  }
 0x126   :  { %1446 = vmatpush1.bf16.msra.mxu0 %v2424_v13  ;;  %v2503_v13 = vld [vmem:[%s3301_s5 + $0x8] sm:$0xff]  }
 0x127   :  { %1489 = vmatpush1.bf16.msra.mxu1 %v2427_v14  ;;  %1447 = vmatprep.subr.bf16.mxu0 %v2432_v15  ;;  %v2509_v14 = vld [vmem:[%s3301_s5 + $0xb0] sm:$0xff]   ;;  %v2504_v15 = vld [vmem:[%s3301_s5 + $0x40] sm:$0xff]  }
 0x128   :  { %1490 = vmatprep.subr.bf16.mxu1 %v2435_v16  ;;  %v2510_v16 = vld [vmem:[%s3301_s5 + $0xe8] sm:$0xff]  }
 0x12a   :  { %1448 = vmatpush1.bf16.msra.mxu0 %v2430_v17  ;;  %v2505_v17 = vld [vmem:[%s3301_s5] sm:$0xff]  }
 0x12b   :  { %1491 = vmatpush1.bf16.msra.mxu1 %v2433_v18  ;;  %1449 = vmatprep.subr.bf16.mxu0 %v2438_v19  ;;  %v2511_v18 = vld [vmem:[%s3301_s5 + $0xa8] sm:$0xff]   ;;  %v2512_v19 = vld [vmem:[%s3301_s5 + $0xe0] sm:$0xff]  }
 0x12c   :  { %1492 = vmatprep.subr.bf16.mxu1 %v2441_v20  ;;  %v2513_v20 = vld [vmem:[%s3301_s5 + $0xa0] sm:$0xff]  }
 0x12e   :  { %1450 = vmatpush1.bf16.msra.mxu0 %v2436_v21  ;;  %v2514_v21 = vld [vmem:[%s3301_s5 + $0xd8] sm:$0xff]  }
 0x12f   :  { %1493 = vmatpush1.bf16.msra.mxu1 %v2439_v22  ;;  %1451 = vmatprep.subr.bf16.mxu0 %v2444_v23  ;;  %v2515_v22 = vld [vmem:[%s3301_s5 + $0x98] sm:$0xff]   ;;  %v2516_v23 = vld [vmem:[%s3301_s5 + $0xd0] sm:$0xff]  }
 0x130   :  { %1494 = vmatprep.subr.bf16.mxu1 %v2447_v24  ;;  %v2517_v24 = vld [vmem:[%s3301_s5 + $0x90] sm:$0xff]  }
 0x132   :  { %1452 = vmatpush2.bf16.msra.mxu0 %v2442_v25  ;;  %v2518_v25 = vld [vmem:[%s3301_s5 + $0xc8] sm:$0xff]  }
 0x133   :  { %1495 = vmatpush2.bf16.msra.mxu1 %v2445_v26  ;;  %1453 = vmatprep.subr.bf16.mxu0 %v2450_v27  ;;  %v2519_v26 = vld [vmem:[%s3301_s5 + $0x88] sm:$0xff]   ;;  %v2520_v27 = vld [vmem:[%s3301_s5 + $0xc0] sm:$0xff]  }
 0x134   :  { %1496 = vmatprep.subr.bf16.mxu1 %v2453_v28  ;;  %v2521_v28 = vld [vmem:[%s3301_s5 + $0x80] sm:$0xff]  }
 0x136   :  { %1454 = vmatpush2.bf16.msra.mxu0 %v2448_v29  ;;  %v687_v29 = vld [vmem:[%s3303_s4] sm:$0xf] }
 0x137   :  { %1497 = vmatpush2.bf16.msra.mxu1 %v2451_v30  ;;  %1455 = vmatprep.subr.bf16.mxu0 %v2456_v31  ;;  %v692_v30 = vrot.slane %v687_v29, %v97_v6  ;;  %v696_v31 = vrot.slane %v687_v29, %v101_v8 }
 0x138   :  { %1498 = vmatprep.subr.bf16.mxu1 %v2459_v32 }
 0x13a   :  { %1456 = vmatpush2.bf16.msra.mxu0 %v2454_v33 }
 0x13b   :  { %1499 = vmatpush2.bf16.msra.mxu1 %v2457_v34  ;;  %1457 = vmatprep.subr.bf16.mxu0 %v2462_v35 }
 0x13c   :  { %1500 = vmatprep.subr.bf16.mxu1 %v2465_v36 }
 0x13e   :  { %1458 = vmatpush2.bf16.msra.mxu0 %v2460_v37 }
 0x13f   :  { %1501 = vmatpush2.bf16.msra.mxu1 %v2463_v38  ;;  %1459 = vmatprep.subr.bf16.mxu0 %v2468_v39 }
 0x140   :  { %1502 = vmatprep.subr.bf16.mxu1 %v2471_v40 }
 0x142   :  { %1460 = vmatpush2.bf16.msra.mxu0 %v2466_v41 }
 0x143   :  { %1503 = vmatpush2.bf16.msra.mxu1 %v2469_v42  ;;  %1461 = vmatprep.subr.bf16.mxu0 %v2474_v43 }
 0x144   :  { %1504 = vmatprep.subr.bf16.mxu1 %v2477_v44 }
 0x146   :  { %1462 = vmatpush2.bf16.msra.mxu0 %v2472_v45 }
 0x147   :  { %1505 = vmatpush2.bf16.msra.mxu1 %v2475_v46  ;;  %1463 = vmatprep.subr.bf16.mxu0 %v2480_v47 }
 0x148   :  { %1506 = vmatprep.subr.bf16.mxu1 %v2483_v48 }
 0x14a   :  { %1464 = vmatpush2.bf16.msra.mxu0 %v2478_v50 }
 0x14b   :  { %1507 = vmatpush2.bf16.msra.mxu1 %v2481_v51  ;;  %1465 = vmatprep.subr.bf16.mxu0 %v2486_v53 }
 0x14c   :  { %1508 = vmatprep.subr.bf16.mxu1 %v2489_v54 }
 0x14e   :  { %1466 = vmatpush2.bf16.msra.mxu0 %v2484_v55 }
 0x14f   :  { %1509 = vmatpush2.bf16.msra.mxu1 %v2487_v56  ;;  %2155 = vmatprep.subr.bf16.mxu0 %v2490_v57 }
 0x150   :  { %2177 = vmatprep.subr.bf16.mxu1 %v2506_v7 }
 0x151   :  { %1468 = vmatmul.mubr.bf16.vlgmr.msra.gmra.mxu0 %v2988_v49  ;;  %v2496_v49 = vld [vmem:[%s3301_s5 + $0x60] sm:$0xff]  }
 0x152   :  { %1511 = vmatmul.mubr.bf16.vlgmr.msra.gmra.mxu1 %v2993_v52  ;;  %2156 = vmatpush3.bf16.msra.mxu0 %v2491_v58  ;;  %v2497_v52 = vld [vmem:[%s3301_s5 + $0x20] sm:$0xff]   ;;  %v700_v58 = vrot.slane %v687_v29, %v105_v10 }
 0x153   :  { %2157 = vmatprep.subr.bf16.mxu0 %v2492_v59  ;;  %2178 = vmatpush3.bf16.msra.mxu1 %v2507_v11  ;;  %v704_v59 = vrot.slane %v687_v29, %v109_v9 }
 0x154   :  { %2179 = vmatprep.subr.bf16.mxu1 %v2508_v12 }
 0x156   :  { %2158 = vmatpush3.bf16.msra.mxu0 %v2493_v60 }
 0x157   :  { %2159 = vmatprep.subr.bf16.mxu0 %v2494_v61  ;;  %2180 = vmatpush3.bf16.msra.mxu1 %v2509_v14 }
 0x158   :  { %2181 = vmatprep.subr.bf16.mxu1 %v2510_v16 }
 0x15a   :  { %2160 = vmatpush3.bf16.msra.mxu0 %v2495_v62 }
 0x15b   :  { %2161 = vmatprep.subr.bf16.mxu0 %v2496_v49  ;;  %2182 = vmatpush3.bf16.msra.mxu1 %v2511_v18 }
 0x15c   :  { %2183 = vmatprep.subr.bf16.mxu1 %v2512_v19 }
 0x15e   :  { %2162 = vmatpush3.bf16.msra.mxu0 %v2497_v52 }
 0x15f   :  { %2163 = vmatprep.subr.bf16.mxu0 %v2498_v63  ;;  %2184 = vmatpush3.bf16.msra.mxu1 %v2513_v20 }
 0x160   :  { %2185 = vmatprep.subr.bf16.mxu1 %v2514_v21 }
 0x162   :  { %2164 = vmatpush3.bf16.msra.mxu0 %v2499_v0 }
 0x163   :  { %2165 = vmatprep.subr.bf16.mxu0 %v2500_v1  ;;  %2186 = vmatpush3.bf16.msra.mxu1 %v2515_v22 }
 0x164   :  { %2187 = vmatprep.subr.bf16.mxu1 %v2516_v23 }
 0x166   :  { %2166 = vmatpush3.bf16.msra.mxu0 %v2501_v2 }
 0x167   :  { %2167 = vmatprep.subr.bf16.mxu0 %v2502_v3  ;;  %2188 = vmatpush3.bf16.msra.mxu1 %v2517_v24 }
 0x168   :  { %2189 = vmatprep.subr.bf16.mxu1 %v2518_v25 }
 0x16a   :  { %2168 = vmatpush3.bf16.msra.mxu0 %v2503_v13 }
 0x16b   :  { %2169 = vmatprep.subr.bf16.mxu0 %v2504_v15  ;;  %2190 = vmatpush3.bf16.msra.mxu1 %v2519_v26 }
 0x16c   :  { %2191 = vmatprep.subr.bf16.mxu1 %v2520_v27 }
 0x16e   :  { %2170 = vmatpush3.bf16.msra.mxu0 %v2505_v17 }
 0x16f   :  { %2192 = vmatpush3.bf16.msra.mxu1 %v2521_v28 }
 0x1d1   :  { %v1383_v32 = vpop.f32.mrf.mxu0 }
 0x1d2   :  { %v1426_v33 = vpop.f32.mrf.mxu1  ;;  %v1384_v35 = vadd.f32 %v1383_v32, %v692_v30 }
 0x1d3   :  { %v1385_v34 = vpop.f32.mrf.mxu0 }
 0x1d4   :  { %v1386_v36 = vadd.f32 %v1385_v34, %v696_v31  ;;  %v1428_v37 = vpop.f32.mrf.mxu1  ;;  %v1427_v43 = vadd.f32 %v1426_v33, %v1384_v35  ;;  %v1895_v34 = vand.u32 127, %v95_v4 }
 0x1d5   :  { %v1387_v38 = vpop.f32.mrf.mxu0 }
 0x1d6   :  { %v1388_v39 = vadd.f32 %v1387_v38, %v692_v30  ;;  %v1430_v40 = vpop.f32.mrf.mxu1  ;;  %v1429_v41 = vadd.f32 %v1428_v37, %v1386_v36  ;;  %v1529_v8 = vmul.f32 0.01, %v1427_v43  ;;  %vm1521_vm10 = vcmp.ge.f32.partialorder %v1427_v43, 0.0 }
 0x1d7   :  { %v1389_v42 = vpop.f32.mrf.mxu0  ;;  %vm1896_vm1 = vcmp.lt.s32.totalorder %v1895_v34, 2 }
 0x1d8   :  { %v1431_v44 = vadd.f32 %v1430_v40, %v1388_v39  ;;  %v1390_v45 = vadd.f32 %v1389_v42, %v696_v31  ;;  %v1432_v47 = vpop.f32.mrf.mxu1  ;;  %v1530_v6 = vmul.f32 0.01, %v1429_v41  ;;  %vm1522_vm9 = vcmp.ge.f32.partialorder %v1429_v41, 0.0  ;;  %v2122_v31 = vld [vmem:[%s3304_s6] ss:$0 sm:$0xff] }
 0x1d9   :  { %v1537_v55 = vsel %vm1521_vm10, %v1427_v43, %v1529_v8 }
 0x1da   :  { %v1533_v46 = vmul.f32 0.01, %v1431_v44  ;;  %vm1525_vm8 = vcmp.ge.f32.partialorder %v1431_v44, 0.0  ;;  %v1433_v48 = vadd.f32 %v1432_v47, %v1390_v45  ;;  %v1538_v53 = vsel %vm1522_vm9, %v1429_v41, %v1530_v6 }
 0x1dc   :  { %vm1526_vm11 = vcmp.ge.f32.partialorder %v1433_v48, 0.0  ;;  %v1534_v50 = vmul.f32 0.01, %v1433_v48  ;;  %v1541_v51 = vsel %vm1525_vm8, %v1431_v44, %v1533_v46 }
 0x1dd   :  { %v1545_v57 = vpack.c.bf16 %v1541_v51, %v1537_v55 }
 0x1de   :  { %v1542_v54 = vsel %vm1526_vm11, %v1433_v48, %v1534_v50 }
 0x1df   :  { %v1546_v56 = vpack.c.bf16 %v1542_v54, %v1538_v53 }
 0x1e1   :  { %1844 = vmatprep.mubr.bf16.mxu0 %v1546_v56 }
 0x1e2   :  { %1845 = vmatmul.mubr.bf16.vlgmr.msra.gmra.mxu0 %v1545_v57 }
 0x211   :  { %v1469_v60 = vpop.f32.mrf.mxu0 }
 0x212   :  { %v1512_v61 = vpop.f32.mrf.mxu1  ;;  %v1470_v49 = vadd.f32 %v1469_v60, %v700_v58 }
 0x213   :  { %v1471_v62 = vpop.f32.mrf.mxu0 }
 0x214   :  { %v1472_v52 = vadd.f32 %v1471_v62, %v704_v59  ;;  %v1514_v63 = vpop.f32.mrf.mxu1  ;;  %v1513_v11 = vadd.f32 %v1512_v61, %v1470_v49 }
 0x215   :  { %v1473_v0 = vpop.f32.mrf.mxu0 }
 0x216   :  { %v1474_v1 = vadd.f32 %v1473_v0, %v700_v58  ;;  %v1516_v2 = vpop.f32.mrf.mxu1  ;;  %v1515_v3 = vadd.f32 %v1514_v63, %v1472_v52  ;;  %v1531_v9 = vmul.f32 0.01, %v1513_v11  ;;  %vm1523_vm14 = vcmp.ge.f32.partialorder %v1513_v11, 0.0 }
 0x217   :  { %v1475_v7 = vpop.f32.mrf.mxu0 }
 0x218   :  { %v1517_v12 = vadd.f32 %v1516_v2, %v1474_v1  ;;  %v1476_v13 = vadd.f32 %v1475_v7, %v704_v59  ;;  %v1518_v15 = vpop.f32.mrf.mxu1  ;;  %v1532_v10 = vmul.f32 0.01, %v1515_v3  ;;  %vm1524_vm13 = vcmp.ge.f32.partialorder %v1515_v3, 0.0 }
 0x219   :  { %v1539_v20 = vsel %vm1523_vm14, %v1513_v11, %v1531_v9 }
 0x21a   :  { %v1535_v14 = vmul.f32 0.01, %v1517_v12  ;;  %vm1527_vm12 = vcmp.ge.f32.partialorder %v1517_v12, 0.0  ;;  %v1519_v5 = vadd.f32 %v1518_v15, %v1476_v13  ;;  %v1540_v18 = vsel %vm1524_vm13, %v1515_v3, %v1532_v10 }
 0x21c   :  { %vm1528_vm15 = vcmp.ge.f32.partialorder %v1519_v5, 0.0  ;;  %v1536_v16 = vmul.f32 0.01, %v1519_v5  ;;  %v1543_v17 = vsel %vm1527_vm12, %v1517_v12, %v1535_v14 }
 0x21d   :  { %v1547_v22 = vpack.c.bf16 %v1543_v17, %v1539_v20 }
 0x21e   :  { %v1544_v19 = vsel %vm1528_vm15, %v1519_v5, %v1536_v16 }
 0x21f   :  { %v1548_v21 = vpack.c.bf16 %v1544_v19, %v1540_v18 }
 0x221   :  { %1885 = vmatprep.mubr.bf16.mxu1 %v1548_v21 }
 0x222   :  { %1886 = vmatmul.mubr.bf16.vlgmr.msra.gmra.mxu1 %v1547_v22 }
 0x2a2   :  { %v2171_v23 = vpop.f32.mrf.mxu0 }
 0x2a4   :  { %v2172_v24 = vpop.f32.mrf.mxu0 }
 0x2a5   :  { %v2173_v32 = vadd.f32 %v2172_v24, %v2171_v23 }
 0x2a6   :  { %v2174_v25 = vpop.f32.mrf.mxu0 }
 0x2a7   :  { %v1847_v39 = vadd.f32 %v2173_v32, %v2122_v31 }
 0x2a8   :  { %v2175_v26 = vpop.f32.mrf.mxu0 }
 0x2a9   :  { %v2176_v29 = vadd.f32 %v2175_v26, %v2174_v25 }
 0x2ab   :  { %v1850_v35 = vadd.f32 %v2176_v29, %v2122_v31 }
 0x2e2   :  { %v2193_v27 = vpop.f32.mrf.mxu1 }
 0x2e4   :  { %v2194_v28 = vpop.f32.mrf.mxu1 }
 0x2e5   :  { %v2195_v37 = vadd.f32 %v2194_v28, %v2193_v27 }
 0x2e6   :  { %v2196_v30 = vpop.f32.mrf.mxu1 }
 0x2e7   :  { %v1888_v42 = vadd.f32 %v2195_v37, %v1847_v39 }
 0x2e8   :  { %v2197_v33 = vpop.f32.mrf.mxu1 }
 0x2e9   :  { %v2198_v36 = vadd.f32 %v2197_v33, %v2196_v30  ;;  %v1897_v43 = vsel %vm1896_vm1, %v1888_v42, -inf }
 0x2eb   :  { %v1891_v38 = vadd.f32 %v2198_v36, %v1850_v35 }
 0x2ed   :  { %v1898_v40 = vsel %vm1896_vm1, %v1891_v38, -inf }
 0x2ee   :  { %v1902_v41 = vsel %vm1901_vm0, %v1898_v40, -inf }
 0x2ef   :  { %1903 = vmax.xlane.f32.xlu0 %v1902_v41 }
 0x2f3   :  { %1899 = vmax.xlane.f32.xlu0 %v1897_v43 }
 0x378   :  { %v1904_v44 = vpop.xlane.xlu0 %1903 }
 0x379   :  { %v1906_v45 = vsub.f32 %v1898_v40, %v1904_v44 }
 0x37b   :  { %v1909_v6 = vmul.f32 1.442695, %v1906_v45 }
 0x37c   :  { %v1900_v46 = vpop.xlane.xlu0 %1899 }
 0x37d   :  { %v1905_v47 = vsub.f32 %v1897_v43, %v1900_v46 }
 0x37f   :  { %v1907_v4 = vmul.f32 1.442695, %v1905_v47 }
 0x381   :  { %2522 = vpow2.f32 %v1907_v4 }
 0x382   :  { %2524 = vpow2.f32 %v1909_v6 }
 0x38e   :  { %v2523_v48 = vpop.eup %2522 }
 0x38f   :  { %v2525_v8 = vpop.eup %2524  ;;  %1911 = vadd.xlane.f32.xlu1 %v2523_v48 }
 0x390   :  { %v1913_v50 = vsel %vm1901_vm0, %v2525_v8, 0.0 }
 0x393   :  { %1914 = vadd.xlane.f32.xlu1 %v1913_v50 }
 0x418   :  { %v1912_v51 = vpop.xlane.xlu1 %1911 }
 0x419   :  { %2526 = vlog2.f32 %v1912_v51 }
 0x41c   :  { %v1915_v53 = vpop.xlane.xlu1 %1914 }
 0x41d   :  { %2528 = vlog2.f32 %v1915_v53 }
 0x426   :  { %v2527_v54 = vpop.eup %2526 }
 0x427   :  { %v1917_v55 = vmul.f32 0.6931472, %v2527_v54 }
 0x429   :  { %v1920_v56 = vsub.f32 %v1905_v47, %v1917_v55 }
 0x42a   :  { %v2529_v57 = vpop.eup %2528 }
 0x42b   :  { %1922 = vst [vmem:[%s3305_s7] sm:$0xff] %v1920_v56  ;;  %v1919_v58 = vmul.f32 0.6931472, %v2529_v57 }
 0x42d   :  { %v1921_v59 = vsub.f32 %v1906_v45, %v1919_v58 }
 0x42f   :  { %1923 = vst [vmem:[%s3305_s7 + $0x8] sm:$0xf] %v1921_v59 }

</bundles_post_ra>
